<compile_context>
chip_gen: v5e
topology: v5e:2x2
jax: 0.10.0
libtpu: 0.0.40
codegen_flags: <defaults>
</compile_context>

<pallas_src>
import functools

import jax
import jax.numpy as jnp
from jax.experimental import pallas as pl
from jax.experimental.pallas import tpu as pltpu


# --------------------------- fused per-sample kernel ---------------------------

def _conv_relu_pool(x, w_flat, b, *, ksize, pool):
    """One Conv1d(valid, stride=1) + ReLU + MaxPool1d, channels-last.

    x:      (L_in, C_in)      value already resident on-chip
    w_flat: (K*C_in, C_out)   im2col-flattened conv weight, row = k*C_in + c
    b:      (1, C_out)
    returns (L_out // pool, C_out)
    """
    l_in, c_in = x.shape
    c_out = w_flat.shape[-1]
    l_out = l_in - ksize + 1

    # im2col: one (L_out, K*C_in) slab -> ONE MXU matmul with a large
    # contraction dim (48 / 128 / 256) instead of 16 tiny accumulating dots.
    slab = jnp.concatenate([x[k:k + l_out, :] for k in range(ksize)], axis=1)
    acc = jnp.dot(slab, w_flat, preferred_element_type=jnp.float32)
    acc = jnp.maximum(acc + b, 0.0)                 # bias + ReLU
    # Dropout(p=0.2): identity at inference time (model.eval()).

    # MaxPool1d (floor division drops the trailing remainder, like PyTorch).
    # Kept as a reshape+max reduction: it is a tiny, known-good lowering and
    # sits far off the MXU critical path.
    l_pool = l_out // pool
    pooled = acc[:l_pool * pool].reshape(l_pool, pool, c_out).max(axis=1)
    return pooled


def _cell_cnn_kernel(x_ref, w0_ref, b0_ref, w1_ref, b1_ref, w2_ref, b2_ref,
                     wl_ref, bl_ref, o_ref, *, ksize, pools):
    # Whole forward for one batch element; all intermediates stay on-chip.
    h = x_ref[0].astype(jnp.float32)                        # (L_in, C_in)
    h = _conv_relu_pool(h, w0_ref[...], b0_ref[...], ksize=ksize, pool=pools[0])
    h = _conv_relu_pool(h, w1_ref[...], b1_ref[...], ksize=ksize, pool=pools[1])
    h = _conv_relu_pool(h, w2_ref[...], b2_ref[...], ksize=ksize, pool=pools[2])
    y = jnp.dot(h, wl_ref[...], preferred_element_type=jnp.float32) + bl_ref[...]
    o_ref[0] = y.astype(o_ref.dtype)


def cell_cnn_forward(params, x, *, ksize=16, pools=(2, 2, 6)):
    """x: (B, L, C_in) -> (B, L_final, feat_dim). Single fused pallas_call."""
    B, L, _ = x.shape
    l_final = L
    for p in pools:
        l_final = (l_final - ksize + 1) // p
    feat_dim = params["w_lin"].shape[-1]

    w0, b0 = params["w0"], params["b0"]
    w1, b1 = params["w1"], params["b1"]
    w2, b2 = params["w2"], params["b2"]
    wl, bl = params["w_lin"], params["b_lin"]

    kernel = functools.partial(_cell_cnn_kernel, ksize=ksize, pools=pools)

    def whole(arr):
        # Full-array block, broadcast to every grid step (weights / biases).
        ndim = arr.ndim
        return pl.BlockSpec(arr.shape, lambda bidx: (0,) * ndim)

    return pl.pallas_call(
        kernel,
        out_shape=jax.ShapeDtypeStruct((B, l_final, feat_dim), x.dtype),
        grid=(B,),
        in_specs=[
            pl.BlockSpec((1,) + x.shape[1:], lambda bidx: (bidx, 0, 0)),
            whole(w0), whole(b0),
            whole(w1), whole(b1),
            whole(w2), whole(b2),
            whole(wl), whole(bl),
        ],
        out_specs=pl.BlockSpec((1, l_final, feat_dim), lambda bidx: (bidx, 0, 0)),
        compiler_params=pltpu.CompilerParams(
            dimension_semantics=("parallel",),       # v7x: batch over 2 TCs
            vmem_limit_bytes=8 * 1024 * 1024),       # working set << 1 MiB
    )(x, w0, b0, w1, b1, w2, b2, wl, bl)


# -------------------------- parameter init + reference -------------------------

def init_params(key, in_channel=3, feat_dim=32):
    if in_channel == 3:
        in_channels = [3, 8, 16]
        out_channels = [8, 16, 32]
    elif in_channel == 6:
        in_channels = [6, 16, 32]
        out_channels = [16, 32, 64]
    else:
        raise ValueError("in_channel must be 3 or 6")
    ksize = 16
    keys = jax.random.split(key, 4)
    params = {}
    for i in range(3):
        # xavier-normal, matching nn.init.xavier_normal_ on (C_out, C_in, K)
        fan_in = in_channels[i] * ksize
        fan_out = out_channels[i] * ksize
        std = (2.0 / (fan_in + fan_out)) ** 0.5
        w = std * jax.random.normal(
            keys[i], (ksize, in_channels[i], out_channels[i]), jnp.float32)
        # Stored pre-flattened in im2col layout: (K*C_in, C_out), row = k*C_in+c.
        params[f"w{i}"] = w.reshape(ksize * in_channels[i], out_channels[i])
        params[f"b{i}"] = jnp.zeros((1, out_channels[i]), jnp.float32)
    std = (2.0 / (out_channels[2] + feat_dim)) ** 0.5
    params["w_lin"] = std * jax.random.normal(
        keys[3], (out_channels[2], feat_dim), jnp.float32)
    params["b_lin"] = jnp.zeros((1, feat_dim), jnp.float32)
    return params


def reference_forward(params, x, *, ksize=16, pools=(2, 2, 6)):
    """Pure-JAX reference of the same math (eval-mode Dropout)."""
    hp = jax.lax.Precision.HIGHEST
    h = x
    for i, pool in enumerate(pools):
        w_flat = params[f"w{i}"]
        c_in = w_flat.shape[0] // ksize
        c_out = w_flat.shape[1]
        w = w_flat.reshape(ksize, c_in, c_out)
        l_out = h.shape[1] - ksize + 1
        acc = jnp.zeros((h.shape[0], l_out, c_out), jnp.float32)
        for k in range(ksize):
            acc = acc + jnp.einsum("blc,co->blo", h[:, k:k + l_out, :], w[k],
                                   precision=hp)
        acc = jnp.maximum(acc + params[f"b{i}"][None], 0.0)
        l_pool = l_out // pool
        h = acc[:, :l_pool * pool].reshape(
            h.shape[0], l_pool, pool, c_out).max(axis=2)
    return jnp.einsum("blc,cf->blf", h, params["w_lin"],
                      precision=hp) + params["b_lin"][None]


# ----------------------------------- main --------------------------------------

if __name__ == "__main__":
    key = jax.random.PRNGKey(0)
    kx, kp = jax.random.split(key)

    B, L, C_in, feat_dim = 2, 160, 3, 32
    x = jax.random.normal(kx, (B, L, C_in), jnp.float32)
    params = init_params(kp, in_channel=C_in, feat_dim=feat_dim)

    out = jax.block_until_ready(cell_cnn_forward(params, x))

    # shape trace: 160 -conv16-> 145 -pool2-> 72 -conv16-> 57 -pool2-> 28
    #              -conv16-> 13 -pool6-> 2 -> linear -> (2, 2, 32)
    assert out.shape == (B, 2, feat_dim), out.shape
    assert bool(jnp.isfinite(out).all())

    ref = reference_forward(params, x)
    max_err = float(jnp.max(jnp.abs(out - ref)))
    assert max_err < 2e-2, f"max abs diff vs reference: {max_err}"

    print("KERNEL_OK")
</pallas_src>

<mosaic_0001>
module attributes {stable_mosaic.version = 11 : i64} {
  func.func @_cell_cnn_kernel(%arg0: i32, %arg1: memref<1x160x3xf32, #tpu.memory_space<vmem>>, %arg2: memref<48x8xf32, #tpu.memory_space<vmem>>, %arg3: memref<1x8xf32, #tpu.memory_space<vmem>>, %arg4: memref<128x16xf32, #tpu.memory_space<vmem>>, %arg5: memref<1x16xf32, #tpu.memory_space<vmem>>, %arg6: memref<256x32xf32, #tpu.memory_space<vmem>>, %arg7: memref<1x32xf32, #tpu.memory_space<vmem>>, %arg8: memref<32x32xf32, #tpu.memory_space<vmem>>, %arg9: memref<1x32xf32, #tpu.memory_space<vmem>>, %arg10: memref<1x2x32xf32, #tpu.memory_space<vmem>>) attributes {dimension_semantics = [#tpu.dimension_semantics<parallel>], iteration_bounds = array<i64: 2>, scalar_prefetch = 0 : i64, scratch_operands = 0 : i64, tpu.core_type = #tpu.core_type<tc>, window_params = [{transform_indices = @transform_0, window_bounds = array<i64: 1, 160, 3>}, {pipeline_mode = #tpu.pipeline_mode<synchronous>, transform_indices = @transform_1, window_bounds = array<i64: 48, 8>}, {pipeline_mode = #tpu.pipeline_mode<synchronous>, transform_indices = @transform_2, window_bounds = array<i64: 1, 8>}, {pipeline_mode = #tpu.pipeline_mode<synchronous>, transform_indices = @transform_3, window_bounds = array<i64: 128, 16>}, {pipeline_mode = #tpu.pipeline_mode<synchronous>, transform_indices = @transform_4, window_bounds = array<i64: 1, 16>}, {pipeline_mode = #tpu.pipeline_mode<synchronous>, transform_indices = @transform_5, window_bounds = array<i64: 256, 32>}, {pipeline_mode = #tpu.pipeline_mode<synchronous>, transform_indices = @transform_6, window_bounds = array<i64: 1, 32>}, {pipeline_mode = #tpu.pipeline_mode<synchronous>, transform_indices = @transform_7, window_bounds = array<i64: 32, 32>}, {pipeline_mode = #tpu.pipeline_mode<synchronous>, transform_indices = @transform_8, window_bounds = array<i64: 1, 32>}, {transform_indices = @transform_9, window_bounds = array<i64: 1, 2, 32>}]} {
    %c0 = arith.constant 0 : index
    %c0_0 = arith.constant 0 : index
    %c0_1 = arith.constant 0 : index
    %0 = vector.load %arg1[%c0, %c0_0, %c0_1] : memref<1x160x3xf32, #tpu.memory_space<vmem>>, vector<1x160x3xf32>
    %1 = vector.shape_cast %0 : vector<1x160x3xf32> to vector<160x3xf32>
    %c0_2 = arith.constant 0 : index
    %c0_3 = arith.constant 0 : index
    %2 = vector.load %arg2[%c0_2, %c0_3] : memref<48x8xf32, #tpu.memory_space<vmem>>, vector<48x8xf32>
    %c0_4 = arith.constant 0 : index
    %c0_5 = arith.constant 0 : index
    %3 = vector.load %arg3[%c0_4, %c0_5] : memref<1x8xf32, #tpu.memory_space<vmem>>, vector<1x8xf32>
    %4 = vector.extract_strided_slice %1 {offsets = [0, 0], sizes = [145, 3], strides = [1, 1]} : vector<160x3xf32> to vector<145x3xf32>
    %5 = vector.extract_strided_slice %1 {offsets = [1, 0], sizes = [145, 3], strides = [1, 1]} : vector<160x3xf32> to vector<145x3xf32>
    %6 = vector.extract_strided_slice %1 {offsets = [2, 0], sizes = [145, 3], strides = [1, 1]} : vector<160x3xf32> to vector<145x3xf32>
    %7 = vector.extract_strided_slice %1 {offsets = [3, 0], sizes = [145, 3], strides = [1, 1]} : vector<160x3xf32> to vector<145x3xf32>
    %8 = vector.extract_strided_slice %1 {offsets = [4, 0], sizes = [145, 3], strides = [1, 1]} : vector<160x3xf32> to vector<145x3xf32>
    %9 = vector.extract_strided_slice %1 {offsets = [5, 0], sizes = [145, 3], strides = [1, 1]} : vector<160x3xf32> to vector<145x3xf32>
    %10 = vector.extract_strided_slice %1 {offsets = [6, 0], sizes = [145, 3], strides = [1, 1]} : vector<160x3xf32> to vector<145x3xf32>
    %11 = vector.extract_strided_slice %1 {offsets = [7, 0], sizes = [145, 3], strides = [1, 1]} : vector<160x3xf32> to vector<145x3xf32>
    %12 = vector.extract_strided_slice %1 {offsets = [8, 0], sizes = [145, 3], strides = [1, 1]} : vector<160x3xf32> to vector<145x3xf32>
    %13 = vector.extract_strided_slice %1 {offsets = [9, 0], sizes = [145, 3], strides = [1, 1]} : vector<160x3xf32> to vector<145x3xf32>
    %14 = vector.extract_strided_slice %1 {offsets = [10, 0], sizes = [145, 3], strides = [1, 1]} : vector<160x3xf32> to vector<145x3xf32>
    %15 = vector.extract_strided_slice %1 {offsets = [11, 0], sizes = [145, 3], strides = [1, 1]} : vector<160x3xf32> to vector<145x3xf32>
    %16 = vector.extract_strided_slice %1 {offsets = [12, 0], sizes = [145, 3], strides = [1, 1]} : vector<160x3xf32> to vector<145x3xf32>
    %17 = vector.extract_strided_slice %1 {offsets = [13, 0], sizes = [145, 3], strides = [1, 1]} : vector<160x3xf32> to vector<145x3xf32>
    %18 = vector.extract_strided_slice %1 {offsets = [14, 0], sizes = [145, 3], strides = [1, 1]} : vector<160x3xf32> to vector<145x3xf32>
    %19 = vector.extract_strided_slice %1 {offsets = [15, 0], sizes = [145, 3], strides = [1, 1]} : vector<160x3xf32> to vector<145x3xf32>
    %20 = tpu.concatenate %4, %5, %6, %7, %8, %9, %10, %11, %12, %13, %14, %15, %16, %17, %18, %19 in 1 : vector<145x3xf32>, vector<145x3xf32>, vector<145x3xf32>, vector<145x3xf32>, vector<145x3xf32>, vector<145x3xf32>, vector<145x3xf32>, vector<145x3xf32>, vector<145x3xf32>, vector<145x3xf32>, vector<145x3xf32>, vector<145x3xf32>, vector<145x3xf32>, vector<145x3xf32>, vector<145x3xf32>, vector<145x3xf32> -> vector<145x48xf32>
    %cst = arith.constant dense<0.000000e+00> : vector<145x8xf32>
    %21 = tpu.matmul %20, %2, %cst {dimension_numbers = #tpu.dot_dimension_numbers<[1], [0], [0], [1], [0, 0, 1, 1], [], []>} : vector<145x48xf32>, vector<48x8xf32>, vector<145x8xf32> -> vector<145x8xf32>
    %22 = vector.broadcast %3 : vector<1x8xf32> to vector<145x8xf32>
    %23 = arith.addf %21, %22 : vector<145x8xf32>
    %cst_6 = arith.constant 0.000000e+00 : f32
    %24 = vector.broadcast %cst_6 : f32 to vector<145x8xf32>
    %25 = arith.maximumf %23, %24 : vector<145x8xf32>
    %26 = vector.extract_strided_slice %25 {offsets = [0, 0], sizes = [144, 8], strides = [1, 1]} : vector<145x8xf32> to vector<144x8xf32>
    %27 = vector.shape_cast %26 : vector<144x8xf32> to vector<72x2x8xf32>
    %cst_7 = arith.constant dense<0xFF800000> : vector<72x8xf32>
    %28 = vector.multi_reduction <maximumf>, %27, %cst_7 [1] : vector<72x2x8xf32> to vector<72x8xf32>
    %c0_8 = arith.constant 0 : index
    %c0_9 = arith.constant 0 : index
    %29 = vector.load %arg4[%c0_8, %c0_9] : memref<128x16xf32, #tpu.memory_space<vmem>>, vector<128x16xf32>
    %c0_10 = arith.constant 0 : index
    %c0_11 = arith.constant 0 : index
    %30 = vector.load %arg5[%c0_10, %c0_11] : memref<1x16xf32, #tpu.memory_space<vmem>>, vector<1x16xf32>
    %31 = vector.extract_strided_slice %28 {offsets = [0, 0], sizes = [57, 8], strides = [1, 1]} : vector<72x8xf32> to vector<57x8xf32>
    %32 = vector.extract_strided_slice %28 {offsets = [1, 0], sizes = [57, 8], strides = [1, 1]} : vector<72x8xf32> to vector<57x8xf32>
    %33 = vector.extract_strided_slice %28 {offsets = [2, 0], sizes = [57, 8], strides = [1, 1]} : vector<72x8xf32> to vector<57x8xf32>
    %34 = vector.extract_strided_slice %28 {offsets = [3, 0], sizes = [57, 8], strides = [1, 1]} : vector<72x8xf32> to vector<57x8xf32>
    %35 = vector.extract_strided_slice %28 {offsets = [4, 0], sizes = [57, 8], strides = [1, 1]} : vector<72x8xf32> to vector<57x8xf32>
    %36 = vector.extract_strided_slice %28 {offsets = [5, 0], sizes = [57, 8], strides = [1, 1]} : vector<72x8xf32> to vector<57x8xf32>
    %37 = vector.extract_strided_slice %28 {offsets = [6, 0], sizes = [57, 8], strides = [1, 1]} : vector<72x8xf32> to vector<57x8xf32>
    %38 = vector.extract_strided_slice %28 {offsets = [7, 0], sizes = [57, 8], strides = [1, 1]} : vector<72x8xf32> to vector<57x8xf32>
    %39 = vector.extract_strided_slice %28 {offsets = [8, 0], sizes = [57, 8], strides = [1, 1]} : vector<72x8xf32> to vector<57x8xf32>
    %40 = vector.extract_strided_slice %28 {offsets = [9, 0], sizes = [57, 8], strides = [1, 1]} : vector<72x8xf32> to vector<57x8xf32>
    %41 = vector.extract_strided_slice %28 {offsets = [10, 0], sizes = [57, 8], strides = [1, 1]} : vector<72x8xf32> to vector<57x8xf32>
    %42 = vector.extract_strided_slice %28 {offsets = [11, 0], sizes = [57, 8], strides = [1, 1]} : vector<72x8xf32> to vector<57x8xf32>
    %43 = vector.extract_strided_slice %28 {offsets = [12, 0], sizes = [57, 8], strides = [1, 1]} : vector<72x8xf32> to vector<57x8xf32>
    %44 = vector.extract_strided_slice %28 {offsets = [13, 0], sizes = [57, 8], strides = [1, 1]} : vector<72x8xf32> to vector<57x8xf32>
    %45 = vector.extract_strided_slice %28 {offsets = [14, 0], sizes = [57, 8], strides = [1, 1]} : vector<72x8xf32> to vector<57x8xf32>
    %46 = vector.extract_strided_slice %28 {offsets = [15, 0], sizes = [57, 8], strides = [1, 1]} : vector<72x8xf32> to vector<57x8xf32>
    %47 = tpu.concatenate %31, %32, %33, %34, %35, %36, %37, %38, %39, %40, %41, %42, %43, %44, %45, %46 in 1 : vector<57x8xf32>, vector<57x8xf32>, vector<57x8xf32>, vector<57x8xf32>, vector<57x8xf32>, vector<57x8xf32>, vector<57x8xf32>, vector<57x8xf32>, vector<57x8xf32>, vector<57x8xf32>, vector<57x8xf32>, vector<57x8xf32>, vector<57x8xf32>, vector<57x8xf32>, vector<57x8xf32>, vector<57x8xf32> -> vector<57x128xf32>
    %cst_12 = arith.constant dense<0.000000e+00> : vector<57x16xf32>
    %48 = tpu.matmul %47, %29, %cst_12 {dimension_numbers = #tpu.dot_dimension_numbers<[1], [0], [0], [1], [0, 0, 1, 1], [], []>} : vector<57x128xf32>, vector<128x16xf32>, vector<57x16xf32> -> vector<57x16xf32>
    %49 = vector.broadcast %30 : vector<1x16xf32> to vector<57x16xf32>
    %50 = arith.addf %48, %49 : vector<57x16xf32>
    %cst_13 = arith.constant 0.000000e+00 : f32
    %51 = vector.broadcast %cst_13 : f32 to vector<57x16xf32>
    %52 = arith.maximumf %50, %51 : vector<57x16xf32>
    %53 = vector.extract_strided_slice %52 {offsets = [0, 0], sizes = [56, 16], strides = [1, 1]} : vector<57x16xf32> to vector<56x16xf32>
    %54 = vector.shape_cast %53 : vector<56x16xf32> to vector<28x2x16xf32>
    %cst_14 = arith.constant dense<0xFF800000> : vector<28x16xf32>
    %55 = vector.multi_reduction <maximumf>, %54, %cst_14 [1] : vector<28x2x16xf32> to vector<28x16xf32>
    %c0_15 = arith.constant 0 : index
    %c0_16 = arith.constant 0 : index
    %56 = vector.load %arg6[%c0_15, %c0_16] : memref<256x32xf32, #tpu.memory_space<vmem>>, vector<256x32xf32>
    %c0_17 = arith.constant 0 : index
    %c0_18 = arith.constant 0 : index
    %57 = vector.load %arg7[%c0_17, %c0_18] : memref<1x32xf32, #tpu.memory_space<vmem>>, vector<1x32xf32>
    %58 = vector.extract_strided_slice %55 {offsets = [0, 0], sizes = [13, 16], strides = [1, 1]} : vector<28x16xf32> to vector<13x16xf32>
    %59 = vector.extract_strided_slice %55 {offsets = [1, 0], sizes = [13, 16], strides = [1, 1]} : vector<28x16xf32> to vector<13x16xf32>
    %60 = vector.extract_strided_slice %55 {offsets = [2, 0], sizes = [13, 16], strides = [1, 1]} : vector<28x16xf32> to vector<13x16xf32>
    %61 = vector.extract_strided_slice %55 {offsets = [3, 0], sizes = [13, 16], strides = [1, 1]} : vector<28x16xf32> to vector<13x16xf32>
    %62 = vector.extract_strided_slice %55 {offsets = [4, 0], sizes = [13, 16], strides = [1, 1]} : vector<28x16xf32> to vector<13x16xf32>
    %63 = vector.extract_strided_slice %55 {offsets = [5, 0], sizes = [13, 16], strides = [1, 1]} : vector<28x16xf32> to vector<13x16xf32>
    %64 = vector.extract_strided_slice %55 {offsets = [6, 0], sizes = [13, 16], strides = [1, 1]} : vector<28x16xf32> to vector<13x16xf32>
    %65 = vector.extract_strided_slice %55 {offsets = [7, 0], sizes = [13, 16], strides = [1, 1]} : vector<28x16xf32> to vector<13x16xf32>
    %66 = vector.extract_strided_slice %55 {offsets = [8, 0], sizes = [13, 16], strides = [1, 1]} : vector<28x16xf32> to vector<13x16xf32>
    %67 = vector.extract_strided_slice %55 {offsets = [9, 0], sizes = [13, 16], strides = [1, 1]} : vector<28x16xf32> to vector<13x16xf32>
    %68 = vector.extract_strided_slice %55 {offsets = [10, 0], sizes = [13, 16], strides = [1, 1]} : vector<28x16xf32> to vector<13x16xf32>
    %69 = vector.extract_strided_slice %55 {offsets = [11, 0], sizes = [13, 16], strides = [1, 1]} : vector<28x16xf32> to vector<13x16xf32>
    %70 = vector.extract_strided_slice %55 {offsets = [12, 0], sizes = [13, 16], strides = [1, 1]} : vector<28x16xf32> to vector<13x16xf32>
    %71 = vector.extract_strided_slice %55 {offsets = [13, 0], sizes = [13, 16], strides = [1, 1]} : vector<28x16xf32> to vector<13x16xf32>
    %72 = vector.extract_strided_slice %55 {offsets = [14, 0], sizes = [13, 16], strides = [1, 1]} : vector<28x16xf32> to vector<13x16xf32>
    %73 = vector.extract_strided_slice %55 {offsets = [15, 0], sizes = [13, 16], strides = [1, 1]} : vector<28x16xf32> to vector<13x16xf32>
    %74 = tpu.concatenate %58, %59, %60, %61, %62, %63, %64, %65, %66, %67, %68, %69, %70, %71, %72, %73 in 1 : vector<13x16xf32>, vector<13x16xf32>, vector<13x16xf32>, vector<13x16xf32>, vector<13x16xf32>, vector<13x16xf32>, vector<13x16xf32>, vector<13x16xf32>, vector<13x16xf32>, vector<13x16xf32>, vector<13x16xf32>, vector<13x16xf32>, vector<13x16xf32>, vector<13x16xf32>, vector<13x16xf32>, vector<13x16xf32> -> vector<13x256xf32>
    %cst_19 = arith.constant dense<0.000000e+00> : vector<13x32xf32>
    %75 = tpu.matmul %74, %56, %cst_19 {dimension_numbers = #tpu.dot_dimension_numbers<[1], [0], [0], [1], [0, 0, 1, 1], [], []>} : vector<13x256xf32>, vector<256x32xf32>, vector<13x32xf32> -> vector<13x32xf32>
    %76 = vector.broadcast %57 : vector<1x32xf32> to vector<13x32xf32>
    %77 = arith.addf %75, %76 : vector<13x32xf32>
    %cst_20 = arith.constant 0.000000e+00 : f32
    %78 = vector.broadcast %cst_20 : f32 to vector<13x32xf32>
    %79 = arith.maximumf %77, %78 : vector<13x32xf32>
    %80 = vector.extract_strided_slice %79 {offsets = [0, 0], sizes = [12, 32], strides = [1, 1]} : vector<13x32xf32> to vector<12x32xf32>
    %81 = vector.shape_cast %80 : vector<12x32xf32> to vector<2x6x32xf32>
    %cst_21 = arith.constant dense<0xFF800000> : vector<2x32xf32>
    %82 = vector.multi_reduction <maximumf>, %81, %cst_21 [1] : vector<2x6x32xf32> to vector<2x32xf32>
    %c0_22 = arith.constant 0 : index
    %c0_23 = arith.constant 0 : index
    %83 = vector.load %arg8[%c0_22, %c0_23] : memref<32x32xf32, #tpu.memory_space<vmem>>, vector<32x32xf32>
    %cst_24 = arith.constant dense<0.000000e+00> : vector<2x32xf32>
    %84 = tpu.matmul %82, %83, %cst_24 {dimension_numbers = #tpu.dot_dimension_numbers<[1], [0], [0], [1], [0, 0, 1, 1], [], []>} : vector<2x32xf32>, vector<32x32xf32>, vector<2x32xf32> -> vector<2x32xf32>
    %c0_25 = arith.constant 0 : index
    %c0_26 = arith.constant 0 : index
    %85 = vector.load %arg9[%c0_25, %c0_26] : memref<1x32xf32, #tpu.memory_space<vmem>>, vector<1x32xf32>
    %86 = vector.broadcast %85 : vector<1x32xf32> to vector<2x32xf32>
    %87 = arith.addf %84, %86 : vector<2x32xf32>
    %c0_27 = arith.constant 0 : index
    %c0_28 = arith.constant 0 : index
    %c0_29 = arith.constant 0 : index
    %88 = vector.load %arg10[%c0_27, %c0_28, %c0_29] : memref<1x2x32xf32, #tpu.memory_space<vmem>>, vector<1x2x32xf32>
    %89 = vector.shape_cast %88 : vector<1x2x32xf32> to vector<2x32xf32>
    %90 = vector.shape_cast %87 : vector<2x32xf32> to vector<1x2x32xf32>
    tpu.vector_store %arg10[%c0_27, %c0_28, %c0_29], %90 {strides = array<i32>} : memref<1x2x32xf32, #tpu.memory_space<vmem>>, vector<1x2x32xf32>,
    return
  }
  func.func @transform_0(%arg0: i32) -> (i32, i32, i32) {
    %c0_i32 = arith.constant 0 : i32
    %c0_i32_0 = arith.constant 0 : i32
    %c0_i32_1 = arith.constant 0 : i32
    return %arg0, %c0_i32, %c0_i32_0 : i32, i32, i32
  }
  func.func @transform_1(%arg0: i32) -> (i32, i32) {
    %c0_i32 = arith.constant 0 : i32
    %c0_i32_0 = arith.constant 0 : i32
    %c0_i32_1 = arith.constant 0 : i32
    return %c0_i32, %c0_i32_0 : i32, i32
  }
  func.func @transform_2(%arg0: i32) -> (i32, i32) {
    %c0_i32 = arith.constant 0 : i32
    %c0_i32_0 = arith.constant 0 : i32
    %c0_i32_1 = arith.constant 0 : i32
    return %c0_i32, %c0_i32_0 : i32, i32
  }
  func.func @transform_3(%arg0: i32) -> (i32, i32) {
    %c0_i32 = arith.constant 0 : i32
    %c0_i32_0 = arith.constant 0 : i32
    %c0_i32_1 = arith.constant 0 : i32
    return %c0_i32, %c0_i32_0 : i32, i32
  }
  func.func @transform_4(%arg0: i32) -> (i32, i32) {
    %c0_i32 = arith.constant 0 : i32
    %c0_i32_0 = arith.constant 0 : i32
    %c0_i32_1 = arith.constant 0 : i32
    return %c0_i32, %c0_i32_0 : i32, i32
  }
  func.func @transform_5(%arg0: i32) -> (i32, i32) {
    %c0_i32 = arith.constant 0 : i32
    %c0_i32_0 = arith.constant 0 : i32
    %c0_i32_1 = arith.constant 0 : i32
    return %c0_i32, %c0_i32_0 : i32, i32
  }
  func.func @transform_6(%arg0: i32) -> (i32, i32) {
    %c0_i32 = arith.constant 0 : i32
    %c0_i32_0 = arith.constant 0 : i32
    %c0_i32_1 = arith.constant 0 : i32
    return %c0_i32, %c0_i32_0 : i32, i32
  }
  func.func @transform_7(%arg0: i32) -> (i32, i32) {
    %c0_i32 = arith.constant 0 : i32
    %c0_i32_0 = arith.constant 0 : i32
    %c0_i32_1 = arith.constant 0 : i32
    return %c0_i32, %c0_i32_0 : i32, i32
  }
  func.func @transform_8(%arg0: i32) -> (i32, i32) {
    %c0_i32 = arith.constant 0 : i32
    %c0_i32_0 = arith.constant 0 : i32
    %c0_i32_1 = arith.constant 0 : i32
    return %c0_i32, %c0_i32_0 : i32, i32
  }
  func.func @transform_9(%arg0: i32) -> (i32, i32, i32) {
    %c0_i32 = arith.constant 0 : i32
    %c0_i32_0 = arith.constant 0 : i32
    %c0_i32_1 = arith.constant 0 : i32
    return %arg0, %c0_i32, %c0_i32_0 : i32, i32, i32
  }
}

</mosaic_0001>

<bundles_post_ra>
// kernel: tpu_custom_call.1
= control target key start
LH: loop header
LB: loop body
LE: loop exit
PB: predicated region body
PF: predicated region fallthrough
CT: control target
= control target key end

     0   :  { %s9671_s0 = inlined_call_operand.vmem [shape: f32[2,160,3], index: 0, kind: input, shape index: {}]   ;;  %s9672_s1 = inlined_call_operand.vmem [shape: f32[48,8], index: 1, kind: input, shape index: {}]   ;;  %s9673_s2 = inlined_call_operand.vmem [shape: f32[1,8], index: 2, kind: input, shape index: {}]   ;;  %s9674_s3 = inlined_call_operand.vmem [shape: f32[128,16], index: 3, kind: input, shape index: {}]   ;;  %s9675_s4 = inlined_call_operand.vmem [shape: f32[1,16], index: 4, kind: input, shape index: {}]   ;;  %s9676_s5 = inlined_call_operand.vmem [shape: f32[256,32], index: 5, kind: input, shape index: {}]   ;;  %s9677_s6 = inlined_call_operand.vmem [shape: f32[1,32], index: 6, kind: input, shape index: {}]   ;;  %s9678_s7 = inlined_call_operand.vmem [shape: f32[32,32], index: 7, kind: input, shape index: {}]   ;;  %s9679_s8 = inlined_call_operand.vmem [shape: f32[1,32], index: 8, kind: input, shape index: {}]   ;;  %s9680_s9 = inlined_call_operand.hbm [shape: f32[2,2,32], index: 9, kind: output, shape index: {}]  }
   0x1   :  { %9854 = sst [smem:[#allocation208_spill]] %s9671_s0 }
   0x2   :  { %9855 = sst [smem:[#allocation209_spill]] %s9672_s1 }
   0x3   :  { %9856 = sst [smem:[#allocation210_spill]] %s9673_s2 }
   0x4   :  { %9857 = sst [smem:[#allocation211_spill]] %s9674_s3 }
   0x5   :  { %14 = vsyncpa [#allocation3], 0 }
   0x6   :  { %16 = vsyncpa [#allocation3 + $0x1], 0  ;;  %s5030_s30 = smov 0   ;;  %s5032_s10 = smov 0  }
   0x7   :  { %s5034_s11 = smov 0   ;;  %s5036_s12 = smov 0  }
   0x8 LB: > { %9858 = sst [smem:[#allocation5_spill]] %s4945_s11  ;;  %s5051_s13 = sadd.s32 4294967295, %s4949_s12   ;;  %s4949_s12 = sphi %s5036_s12, %s10626_s12   ;;  %s4945_s11 = sphi %s5034_s11, %s10628_s11   ;;  %s4941_s10 = sphi %s5032_s10, %s10630_s10   ;;  %s4937_s30 = sphi %s5030_s30, %s10629_s30  }
   0x9   : > { %s4455_s14 = sadd.s32 4294967294, %s4949_s12   ;;  %s5055_s15 = sadd.s32 1, %s4949_s12  }
   0xa   : > { %9859 = sst [smem:[#allocation6_spill]] %s5055_s15  ;;  %s223_s16 = sadd.s32 1, %s4945_s11 }
   0xb   : > { %s220_s17 = ssub.s32 %s4949_s12, %s5055_s15  ;;  %p233_p0 = scmp.ne.s32.totalorder %s4945_s11, %s4941_s10 }
   0xc   : > { %p221_p1 = scmp.eq.s32.totalorder %s220_s17, 0  ;;  %p234_p2 = scmp.eq.s32.totalorder %s5051_s13, 1 }
   0xd   : > { %p239_p3 = scmp.ne.s32.totalorder %s4941_s10, %s4937_s30  ;;  %p240_p4 = scmp.eq.s32.totalorder %s4455_s14, 1 }
   0xe   : > { %s5066_s18 = scalar_select %p221_p1, %s4945_s11, %s223_s16  }
   0xf   : > { %p5068_p5 = por %p234_p2, %p233_p0  ;;  %p5072_p6 = por %p240_p4, %p239_p3 }
  0x10   : > { %9860 = sst [smem:[#allocation7_spill]] %s5066_s18  ;;  %p4458_p7 = scmp.ge.s32.totalorder %s4949_s12, 1 }
  0x11   : > { %s9862_s20 = scalar_select %p5072_p6, 1, 0 }
  0x12   : > { %p290_p8 = scmp.lt.s32.totalorder %s4949_s12, 3 }
  0x13   : > { %9863 = sst [smem:[#allocation8_spill]] %s9862_s20 }
  0x14   : > { %p291_p9 = pnand %p4458_p7, %p290_p8 }
  0x16   : > { %294 = sbr.rel (%p291_p9) target bundleno = 1781 (0x6f5), region = 56 }
  0x1b   : > { %p326_p10 = scmp.lt.s32.totalorder %s5051_s13, 1  ;;  %s9864_s0 = sld [smem:[#allocation208_spill]]  ;;  %vm9780_vm0 = vcmask 1046528   ;;  %vm9776_vm1 = vcmask 1045504   ;;  %vm9779_vm2 = vcmask 1044480   ;;  %vm9778_vm3 = vcmask 1043456  }
  0x1c   : > { %s4951_s26 = smov 3   ;;  %s4952_s27 = smov 6   ;;  %vm9774_vm4 = vcmask 1042432   ;;  %vm9777_vm5 = vcmask 1041408   ;;  %vm9775_vm6 = vcmask 1040384   ;;  %vm9781_vm7 = vcmask 23552  }
  0x1d   : > { %s327_s21 = scalar_select %p326_p10, %s5051_s13, 1  ;;  %vm9787_vm8 = vcmask 72704   ;;  %vm9788_vm9 = vcmask 48128   ;;  %vm9786_vm10 = vcmask 97280   ;;  %vm9783_vm11 = vcmask 146432  }
  0x1e   : > { %s4953_s28 = smov 9   ;;  %s4954_s29 = smov 12   ;;  %vm9785_vm12 = vcmask 121856   ;;  %vm9782_vm13 = vcmask 171008   ;;  %vm9836_vm14 = vcmask 220160   ;;  %vm9784_vm15 = vcmask 195584  }
  0x1f   : > { %s4497_s22 = smul.u32 160, %s327_s21  ;;  %s4955_s14 = smov 15  }
  0x20   : > { %s4956_s16 = smov 18   ;;  %s4957_s17 = smov 21  }
  0x21   : > { %s5083_s25 = scalar_lea.vmem %s9864_s0, %s4497_s22  ;;  %s9768_s21 = smov 24  }
  0x22   : > { %v5086_v0 = vld [vmem:[%s5083_s25 + $0x20] sm:$0xff]  ;;  %v5089_v1 = vld [vmem:[%s5083_s25 + $0x28] sm:$0xff]  ;;  %v5092_v2 = vld [vmem:[%s5083_s25 + $0x10] sm:$0xff]  ;;  %s9770_s22 = smov 27   ;;  %s9792_s23 = smov 33  }
  0x23   : > { %v385_v3 = vrot.slane %v5086_v0, 1  ;;  %v387_v4 = vrot.slane %v5089_v1, 1  ;;  %v5097_v5 = vld [vmem:[%s5083_s25 + $0x18] sm:$0xff]  ;;  %v381_v6 = vrot.slane %v5092_v2, 1  ;;  %v5101_v7 = vld [vmem:[%s5083_s25] sm:$0xff]  ;;  %v5104_v8 = vld [vmem:[%s5083_s25 + $0x8] sm:$0xff] }
  0x24   : > { %v383_v9 = vrot.slane %v5097_v5, 1  ;;  %v378_v10 = vrot.slane %v5101_v7, 1  ;;  %v379_v11 = vrot.slane %v5104_v8, 1  ;;  %v5110_v12 = vld [vmem:[%s5083_s25 + $0x30] sm:$0xff]  ;;  %v5135_v20 = vld [vmem:[%s5083_s25 + $0x40] sm:$0xff]  ;;  %v5138_v21 = vld [vmem:[%s5083_s25 + $0x48] sm:$0xff] }
  0x25   : > { %v5113_v13 = vsel %vm9780_vm0, %v385_v3, %v387_v4  ;;  %v389_v16 = vrot.slane %v5110_v12, 1  ;;  %v5141_v22 = vld [vmem:[%s5083_s25 + $0x38] sm:$0xff]  ;;  %v393_v23 = vrot.slane %v5135_v20, 1  ;;  %v395_v24 = vrot.slane %v5138_v21, 1  ;;  %v5165_v30 = vld [vmem:[%s5083_s25 + $0x60] sm:$0xff]  ;;  %v5168_v31 = vld [vmem:[%s5083_s25 + $0x50] sm:$0xff] }
  0x26   : > { %423 = vrot.lane.b32.xlu2 %v5113_v13, %s4951_s26  ;;  %v5118_v14 = vsel %vm9780_vm0, %v381_v6, %v383_v9  ;;  %v380_v15 = vsel %vm9780_vm0, %v378_v10, %v379_v11  ;;  %v5129_v18 = vsel %vm9780_vm0, %v383_v9, %v385_v3  ;;  %v5132_v19 = vsel %vm9780_vm0, %v379_v11, %v381_v6  ;;  %v5162_v29 = vld [vmem:[%s5083_s25 + $0x58] sm:$0xff]  ;;  %v5189_v38 = vld [vmem:[%s5083_s25 + $0x70] sm:$0xff]  ;;  %v5195_v40 = vld [vmem:[%s5083_s25 + $0x68] sm:$0xff]  ;;  %s9794_s24 = smov 30   ;;  %s10069_s1 = sld [smem:[#allocation209_spill]] }
  0x27   : > { %419 = vrot.lane.b32.xlu1 %v5118_v14, %s4951_s26  ;;  %415 = vrot.lane.b32.xlu0 %v380_v15, %s4951_s26  ;;  %v5126_v17 = vsel %vm9780_vm0, %v387_v4, %v389_v16  ;;  %v391_v25 = vrot.slane %v5141_v22, 1  ;;  %v5153_v26 = vsel %vm9780_vm0, %v393_v23, %v395_v24  ;;  %v399_v32 = vrot.slane %v5162_v29, 1  ;;  %v5192_v39 = vld [vmem:[%s5083_s25 + $0x78] sm:$0xff]  ;;  %v5216_v47 = vld [vmem:[%s5083_s25 + $0x88] sm:$0xff]  ;;  %s10179_s2 = sld [smem:[#allocation210_spill]]  ;;  %s10373_s0 = smov 120  }
  0x28   : > { %v401_v33 = vrot.slane %v5165_v30, 1  ;;  %v397_v34 = vrot.slane %v5168_v31, 1  ;;  %v405_v41 = vrot.slane %v5189_v38, 1  ;;  %v407_v42 = vrot.slane %v5192_v39, 1  ;;  %v5219_v48 = vld [vmem:[%s5083_s25 + $0x90] sm:$0xff]  ;;  %v5222_v49 = vld [vmem:[%s5083_s25 + $0x80] sm:$0xff] }
  0x29   : > { %v5156_v27 = vsel %vm9780_vm0, %v391_v25, %v393_v23  ;;  %v5159_v28 = vsel %vm9780_vm0, %v389_v16, %v391_v25  ;;  %v403_v43 = vrot.slane %v5195_v40, 1  ;;  %v411_v50 = vrot.slane %v5216_v47, 1  ;;  %s10331_s3 = sld [smem:[#allocation211_spill]]  ;;  %s10382_s11 = smov 32  }
  0x2a   : > { %v5180_v35 = vsel %vm9780_vm0, %v399_v32, %v401_v33  ;;  %v5183_v36 = vsel %vm9780_vm0, %v397_v34, %v399_v32  ;;  %v5186_v37 = vsel %vm9780_vm0, %v395_v24, %v397_v34  ;;  %v5207_v44 = vsel %vm9780_vm0, %v405_v41, %v407_v42  ;;  %s10385_s18 = smov 40   ;;  %s10448_s15 = smov 30  }
  0x2b   : > { %9865 = vst [vmem:[#allocation9_spill] sm:$0xff] %v5180_v35  ;;  %v5210_v45 = vsel %vm9780_vm0, %v403_v43, %v405_v41  ;;  %v5213_v46 = vsel %vm9780_vm0, %v401_v33, %v403_v43  ;;  %v5232_v51 = vrot.slane %v5219_v48, 1  ;;  %v409_v52 = vrot.slane %v5222_v49, 1 }
  0x2c   : > { %9866 = vst [vmem:[#allocation10_spill] sm:$0xff] %v5183_v36  ;;  %v474_v56 = vrot.slane %v5104_v8, 2  ;;  %v476_v57 = vrot.slane %v5092_v2, 2  ;;  %v473_v58 = vrot.slane %v5101_v7, 2  ;;  %v480_v61 = vrot.slane %v5086_v0, 2 }
  0x2d   : > { %9867 = vst [vmem:[#allocation11_spill] sm:$0xff] %v5186_v37  ;;  %v5237_v53 = vsel %vm9780_vm0, %v411_v50, %v5232_v51  ;;  %v5240_v54 = vsel %vm9780_vm0, %v409_v52, %v411_v50  ;;  %v5243_v55 = vsel %vm9780_vm0, %v407_v42, %v409_v52  ;;  %v482_v62 = vrot.slane %v5089_v1, 2 }
  0x2e   : > { %425 = vrot.lane.b32.xlu2 %v5126_v17, %s4951_s26  ;;  %9868 = vst [vmem:[#allocation12_spill] sm:$0xff] %v5207_v44  ;;  %v5255_v59 = vsel %vm9776_vm1, %v474_v56, %v476_v57  ;;  %v475_v60 = vsel %vm9776_vm1, %v473_v58, %v474_v56  ;;  %v478_v63 = vrot.slane %v5097_v5, 2  ;;  %v486_v9 = vrot.slane %v5141_v22, 2 }
  0x2f   : > { %421 = vrot.lane.b32.xlu1 %v5129_v18, %s4951_s26  ;;  %417 = vrot.lane.b32.xlu0 %v5132_v19, %s4951_s26  ;;  %9869 = vst [vmem:[#allocation13_spill] sm:$0xff] %v5210_v45  ;;  %v5267_v3 = vsel %vm9776_vm1, %v480_v61, %v482_v62  ;;  %v488_v10 = vrot.slane %v5135_v20, 2  ;;  %v484_v11 = vrot.slane %v5110_v12, 2  ;;  %v492_v24 = vrot.slane %v5168_v31, 2 }
  0x30   : > { %9870 = vst [vmem:[#allocation14_spill] sm:$0xff] %v5213_v46  ;;  %v5270_v4 = vsel %vm9776_vm1, %v478_v63, %v480_v61  ;;  %v5273_v6 = vsel %vm9776_vm1, %v476_v57, %v478_v63  ;;  %v494_v25 = vrot.slane %v5162_v29, 2  ;;  %v490_v32 = vrot.slane %v5138_v21, 2 }
  0x31   : > { %9871 = vst [vmem:[#allocation15_spill] sm:$0xff] %v5232_v51  ;;  %v5285_v15 = vsel %vm9776_vm1, %v486_v9, %v488_v10  ;;  %v5288_v16 = vsel %vm9776_vm1, %v484_v11, %v486_v9  ;;  %v5291_v23 = vsel %vm9776_vm1, %v482_v62, %v484_v11  ;;  %v498_v42 = vrot.slane %v5195_v40, 2 }
  0x32   : > { %9872 = vst [vmem:[#allocation16_spill] sm:$0xff] %v5237_v53  ;;  %v5303_v33 = vsel %vm9776_vm1, %v492_v24, %v494_v25  ;;  %v5306_v34 = vsel %vm9776_vm1, %v490_v32, %v492_v24  ;;  %v5309_v41 = vsel %vm9776_vm1, %v488_v10, %v490_v32  ;;  %v500_v43 = vrot.slane %v5189_v38, 2 }
  0x33   : > { %9873 = vst [vmem:[#allocation17_spill] sm:$0xff] %v5240_v54  ;;  %v496_v50 = vrot.slane %v5165_v30, 2  ;;  %v504_v58 = vrot.slane %v5222_v49, 2  ;;  %v502_v61 = vrot.slane %v5192_v39, 2  ;;  %v568_v10 = vrot.slane %v5101_v7, 3 }
  0x34   : > { %9874 = vst [vmem:[#allocation18_spill] sm:$0xff] %v5243_v55  ;;  %v5321_v52 = vsel %vm9776_vm1, %v498_v42, %v500_v43  ;;  %v569_v11 = vrot.slane %v5104_v8, 3  ;;  %vm9801_vm0 = vcmask 392192  }
  0x35   : > { %9875 = vst [vmem:[#allocation19_spill] sm:$0xff] %v5285_v15  ;;  %v5324_v56 = vsel %vm9776_vm1, %v496_v50, %v498_v42  ;;  %v5327_v57 = vsel %vm9776_vm1, %v494_v25, %v496_v50  ;;  %v5342_v63 = vsel %vm9776_vm1, %v502_v61, %v504_v58  ;;  %v5345_v9 = vsel %vm9776_vm1, %v500_v43, %v502_v61 }
  0x36   : > { %431 = vrot.lane.b32.xlu2 %v5153_v26, %s4951_s26  ;;  %9876 = vst [vmem:[#allocation20_spill] sm:$0xff] %v5288_v16  ;;  %v5358_v25 = vrot.slane %v5219_v48, 2  ;;  %v570_v32 = vsel %vm9779_vm2, %v568_v10, %v569_v11  ;;  %v573_v43 = vrot.slane %v5097_v5, 3  ;;  %v575_v50 = vrot.slane %v5086_v0, 3 }
  0x37   : > { %429 = vrot.lane.b32.xlu1 %v5156_v27, %s4951_s26  ;;  %427 = vrot.lane.b32.xlu0 %v5159_v28, %s4951_s26  ;;  %9877 = vst [vmem:[#allocation21_spill] sm:$0xff] %v5303_v33  ;;  %v571_v61 = vrot.slane %v5092_v2, 3 }
  0x38   : > { %9878 = vst [vmem:[#allocation22_spill] sm:$0xff] %v5306_v34 }
  0x39   : > { %9879 = vst [vmem:[#allocation23_spill] sm:$0xff] %v5309_v41  ;;  %v5379_v10 = vsel %vm9779_vm2, %v571_v61, %v573_v43 }
  0x3a   : > { %9880 = vst [vmem:[#allocation24_spill] sm:$0xff] %v5321_v52 }
  0x3b   : > { %9881 = vst [vmem:[#allocation25_spill] sm:$0xff] %v5324_v56 }
  0x3c   : > { %9882 = vst [vmem:[#allocation26_spill] sm:$0xff] %v5327_v57 }
  0x3d   : > { %9884 = vst [vmem:[#allocation28_spill] sm:$0xff] %v5342_v63 }
  0x3e   : > { %437 = vrot.lane.b32.xlu2 %v5180_v35, %s4951_s26  ;;  %9885 = vst [vmem:[#allocation29_spill] sm:$0xff] %v5345_v9 }
  0x3f   : > { %435 = vrot.lane.b32.xlu1 %v5183_v36, %s4951_s26  ;;  %433 = vrot.lane.b32.xlu0 %v5186_v37, %s4951_s26  ;;  %9887 = vst [vmem:[#allocation31_spill] sm:$0xff] %v5358_v25 }
  0x46   : > { %443 = vrot.lane.b32.xlu2 %v5207_v44, %s4951_s26  ;;  %v593_v44 = vrot.slane %v5195_v40, 3 }
  0x47   : > { %441 = vrot.lane.b32.xlu1 %v5210_v45, %s4951_s26  ;;  %439 = vrot.lane.b32.xlu0 %v5213_v46, %s4951_s26 }
  0x4e   : > { %449 = vrot.lane.b32.xlu2 %v5237_v53, %s4951_s26 }
  0x4f   : > { %447 = vrot.lane.b32.xlu1 %v5240_v54, %s4951_s26  ;;  %445 = vrot.lane.b32.xlu0 %v5243_v55, %s4951_s26 }
  0x56   : > { %512 = vrot.lane.b32.xlu2 %v5255_v59, %s4952_s27 }
  0x57   : > { %510 = vrot.lane.b32.xlu1 %v475_v60, %s4952_s27  ;;  %451 = vrot.lane.b32.xlu0 %v5232_v51, %s4951_s26  ;;  %v506_v60 = vrot.slane %v5216_v47, 2  ;;  %v581_v51 = vrot.slane %v5141_v22, 3  ;;  %s9790_s26 = smov 42  }
  0x59   : > { %v5339_v62 = vsel %vm9776_vm1, %v504_v58, %v506_v60  ;;  %v5363_v42 = vsel %vm9776_vm1, %v506_v60, %v5358_v25  ;;  %v5376_v60 = vsel %vm9779_vm2, %v573_v43, %v575_v50  ;;  %v577_v43 = vrot.slane %v5089_v1, 3 }
  0x5a   : > { %9883 = vst [vmem:[#allocation27_spill] sm:$0xff] %v5339_v62  ;;  %vm9832_vm1 = vcmask 293888  }
  0x5b   : > { %9888 = vst [vmem:[#allocation32_spill] sm:$0xff] %v5363_v42 }
  0x5e   : > { %518 = vrot.lane.b32.xlu2 %v5267_v3, %s4952_s27 }
  0x5f   : > { %516 = vrot.lane.b32.xlu1 %v5270_v4, %s4952_s27  ;;  %514 = vrot.lane.b32.xlu0 %v5273_v6, %s4952_s27 }
  0x66   : > { %524 = vrot.lane.b32.xlu2 %v5285_v15, %s4952_s27 }
  0x67   : > { %522 = vrot.lane.b32.xlu1 %v5288_v16, %s4952_s27  ;;  %520 = vrot.lane.b32.xlu0 %v5291_v23, %s4952_s27 }
  0x6e   : > { %530 = vrot.lane.b32.xlu2 %v5303_v33, %s4952_s27 }
  0x6f   : > { %528 = vrot.lane.b32.xlu1 %v5306_v34, %s4952_s27  ;;  %526 = vrot.lane.b32.xlu0 %v5309_v41, %s4952_s27 }
  0x76   : > { %536 = vrot.lane.b32.xlu2 %v5321_v52, %s4952_s27  ;;  %v599_v52 = vrot.slane %v5222_v49, 3 }
  0x77   : > { %534 = vrot.lane.b32.xlu1 %v5324_v56, %s4952_s27  ;;  %532 = vrot.lane.b32.xlu0 %v5327_v57, %s4952_s27 }
  0x7e   : > { %542 = vrot.lane.b32.xlu2 %v5339_v62, %s4952_s27 }
  0x7f   : > { %540 = vrot.lane.b32.xlu1 %v5342_v63, %s4952_s27  ;;  %538 = vrot.lane.b32.xlu0 %v5345_v9, %s4952_s27  ;;  %v585_v63 = vrot.slane %v5138_v21, 3 }
  0x80   : > { %v5355_v24 = vpop.permute.xlu2 %423 }
  0x81   : > { %9886 = vst [vmem:[#allocation30_spill] sm:$0xff] %v5355_v24 }
  0x86   : > { %605 = vrot.lane.b32.xlu2 %v570_v32, %s4953_s28  ;;  %v5382_v32 = vsel %vm9779_vm2, %v569_v11, %v571_v61 }
  0x87   : > { %546 = vrot.lane.b32.xlu1 %v5358_v25, %s4952_s27  ;;  %544 = vrot.lane.b32.xlu0 %v5363_v42, %s4952_s27  ;;  %v579_v25 = vrot.slane %v5110_v12, 3  ;;  %v5402_v42 = vsel %vm9779_vm2, %v575_v50, %v577_v43  ;;  %s9793_s27 = smov 39  }
  0x88   : > { %v5372_v58 = vpop.permute.xlu2 %425 }
  0x89   : > { %9889 = vst [vmem:[#allocation33_spill] sm:$0xff] %v5372_v58  ;;  %v5396_v11 = vsel %vm9779_vm2, %v579_v25, %v581_v51  ;;  %v5399_v61 = vsel %vm9779_vm2, %v577_v43, %v579_v25  ;;  %v583_v25 = vrot.slane %v5135_v20, 3 }
  0x8b   : > { %v5423_v54 = vsel %vm9779_vm2, %v583_v25, %v585_v63  ;;  %v5426_v9 = vsel %vm9779_vm2, %v581_v51, %v583_v25 }
  0x8c   : > { %9895 = vst [vmem:[#allocation39_spill] sm:$0xff] %v5423_v54 }
  0x8d   : > { %9896 = vst [vmem:[#allocation40_spill] sm:$0xff] %v5426_v9 }
  0x8e   : > { %611 = vrot.lane.b32.xlu2 %v5376_v60, %s4953_s28 }
  0x8f   : > { %609 = vrot.lane.b32.xlu1 %v5379_v10, %s4953_s28  ;;  %607 = vrot.lane.b32.xlu0 %v5382_v32, %s4953_s28 }
  0x90   : > { %v5392_v53 = vpop.permute.xlu2 %431 }
  0x91   : > { %9890 = vst [vmem:[#allocation34_spill] sm:$0xff] %v5392_v53  ;;  %v587_v53 = vrot.slane %v5168_v31, 3 }
  0x93   : > { %v5420_v43 = vsel %vm9779_vm2, %v585_v63, %v587_v53  ;;  %v589_v63 = vrot.slane %v5162_v29, 3 }
  0x94   : > { %9894 = vst [vmem:[#allocation38_spill] sm:$0xff] %v5420_v43 }
  0x95   : > { %v5450_v45 = vsel %vm9779_vm2, %v587_v53, %v589_v63 }
  0x96   : > { %617 = vrot.lane.b32.xlu2 %v5396_v11, %s4953_s28  ;;  %9902 = vst [vmem:[#allocation46_spill] sm:$0xff] %v5450_v45 }
  0x97   : > { %615 = vrot.lane.b32.xlu1 %v5399_v61, %s4953_s28  ;;  %613 = vrot.lane.b32.xlu0 %v5402_v42, %s4953_s28 }
  0x98   : > { %v5412_v55 = vpop.permute.xlu2 %437 }
  0x99   : > { %9891 = vst [vmem:[#allocation35_spill] sm:$0xff] %v5412_v55  ;;  %v5415_v62 = vpop.permute.xlu1 %419  ;;  %v5417_v50 = vpop.permute.xlu0 %415  ;;  %v591_v55 = vrot.slane %v5165_v30, 3 }
  0x9a   : > { %9892 = vst [vmem:[#allocation36_spill] sm:$0xff] %v5415_v62 }
  0x9b   : > { %9893 = vst [vmem:[#allocation37_spill] sm:$0xff] %v5417_v50  ;;  %v5444_v25 = vsel %vm9779_vm2, %v591_v55, %v593_v44  ;;  %v5447_v58 = vsel %vm9779_vm2, %v589_v63, %v591_v55  ;;  %v595_v55 = vrot.slane %v5189_v38, 3 }
  0x9c   : > { %9900 = vst [vmem:[#allocation44_spill] sm:$0xff] %v5444_v25 }
  0x9d   : > { %9901 = vst [vmem:[#allocation45_spill] sm:$0xff] %v5447_v58 }
  0x9e   : > { %623 = vrot.lane.b32.xlu2 %v5420_v43, %s4953_s28 }
  0x9f   : > { %621 = vrot.lane.b32.xlu1 %v5423_v54, %s4953_s28  ;;  %619 = vrot.lane.b32.xlu0 %v5426_v9, %s4953_s28 }
  0xa0   : > { %v5436_v36 = vpop.permute.xlu2 %443 }
  0xa1   : > { %9897 = vst [vmem:[#allocation41_spill] sm:$0xff] %v5436_v36  ;;  %v5439_v33 = vpop.permute.xlu1 %421  ;;  %v5441_v51 = vpop.permute.xlu0 %417  ;;  %v597_v36 = vrot.slane %v5192_v39, 3 }
  0xa2   : > { %9898 = vst [vmem:[#allocation42_spill] sm:$0xff] %v5439_v33 }
  0xa3   : > { %9899 = vst [vmem:[#allocation43_spill] sm:$0xff] %v5441_v51  ;;  %v5468_v63 = vsel %vm9779_vm2, %v597_v36, %v599_v52  ;;  %v5471_v43 = vsel %vm9779_vm2, %v595_v55, %v597_v36  ;;  %v601_v36 = vrot.slane %v5216_v47, 3 }
  0xa4   : > { %9906 = vst [vmem:[#allocation50_spill] sm:$0xff] %v5468_v63 }
  0xa5   : > { %9907 = vst [vmem:[#allocation51_spill] sm:$0xff] %v5471_v43 }
  0xa6   : > { %629 = vrot.lane.b32.xlu2 %v5444_v25, %s4953_s28 }
  0xa7   : > { %627 = vrot.lane.b32.xlu1 %v5447_v58, %s4953_s28  ;;  %625 = vrot.lane.b32.xlu0 %v5450_v45, %s4953_s28  ;;  %v5474_v45 = vsel %vm9779_vm2, %v593_v44, %v595_v55 }
  0xa8   : > { %v5460_v24 = vpop.permute.xlu2 %449  ;;  %9908 = vst [vmem:[#allocation52_spill] sm:$0xff] %v5474_v45 }
  0xa9   : > { %9903 = vst [vmem:[#allocation47_spill] sm:$0xff] %v5460_v24  ;;  %v5463_v34 = vpop.permute.xlu1 %429  ;;  %v5465_v53 = vpop.permute.xlu0 %427 }
  0xaa   : > { %9904 = vst [vmem:[#allocation48_spill] sm:$0xff] %v5463_v34  ;;  %v5485_v34 = vrot.slane %v5219_v48, 3 }
  0xab   : > { %9905 = vst [vmem:[#allocation49_spill] sm:$0xff] %v5465_v53 }
  0xac   : > { %9910 = vst [vmem:[#allocation54_spill] sm:$0xff] %v5485_v34  ;;  %v5494_v55 = vsel %vm9779_vm2, %v601_v36, %v5485_v34 }
  0xad   : > { %9913 = vst [vmem:[#allocation57_spill] sm:$0xff] %v5494_v55 }
  0xae   : > { %635 = vrot.lane.b32.xlu2 %v5468_v63, %s4953_s28  ;;  %v5497_v63 = vsel %vm9779_vm2, %v599_v52, %v601_v36  ;;  %v663_v52 = vrot.slane %v5101_v7, 4  ;;  %vm9808_vm2 = vcmask 367616  }
  0xaf   : > { %633 = vrot.lane.b32.xlu1 %v5471_v43, %s4953_s28  ;;  %631 = vrot.lane.b32.xlu0 %v5474_v45, %s4953_s28  ;;  %9914 = vst [vmem:[#allocation58_spill] sm:$0xff] %v5497_v63  ;;  %v664_v45 = vrot.slane %v5104_v8, 4 }
  0xb0   : > { %v5482_v24 = vpop.permute.xlu2 %512 }
  0xb1   : > { %9909 = vst [vmem:[#allocation53_spill] sm:$0xff] %v5482_v24  ;;  %v5488_v53 = vpop.permute.xlu1 %435  ;;  %v5490_v44 = vpop.permute.xlu0 %433  ;;  %v665_v33 = vsel %vm9778_vm3, %v663_v52, %v664_v45 }
  0xb2   : > { %9911 = vst [vmem:[#allocation55_spill] sm:$0xff] %v5488_v53  ;;  %v666_v53 = vrot.slane %v5092_v2, 4 }
  0xb3   : > { %9912 = vst [vmem:[#allocation56_spill] sm:$0xff] %v5490_v44  ;;  %v668_v44 = vrot.slane %v5097_v5, 4 }
  0xb6   : > { %641 = vrot.lane.b32.xlu2 %v5485_v34, %s4953_s28 }
  0xb7   : > { %639 = vrot.lane.b32.xlu1 %v5494_v55, %s4953_s28  ;;  %637 = vrot.lane.b32.xlu0 %v5497_v63, %s4953_s28  ;;  %v5516_v55 = vsel %vm9778_vm3, %v666_v53, %v668_v44  ;;  %v5519_v63 = vsel %vm9778_vm3, %v664_v45, %v666_v53  ;;  %v670_v53 = vrot.slane %v5086_v0, 4  ;;  %s9772_s28 = smov 36  }
  0xb8   : > { %v5507_v43 = vpop.permute.xlu2 %518 }
  0xb9   : > { %9915 = vst [vmem:[#allocation59_spill] sm:$0xff] %v5507_v43  ;;  %v5511_v36 = vpop.permute.xlu1 %441  ;;  %v5513_v34 = vpop.permute.xlu0 %439 }
  0xba   : > { %9916 = vst [vmem:[#allocation60_spill] sm:$0xff] %v5511_v36  ;;  %v672_v36 = vrot.slane %v5089_v1, 4 }
  0xbb   : > { %9917 = vst [vmem:[#allocation61_spill] sm:$0xff] %v5513_v34  ;;  %v674_v34 = vrot.slane %v5110_v12, 4 }
  0xbc   : > { %v5540_v37 = vsel %vm9778_vm3, %v670_v53, %v672_v36 }
  0xbd   : > { %v5537_v52 = vsel %vm9778_vm3, %v672_v36, %v674_v34  ;;  %v676_v36 = vrot.slane %v5141_v22, 4 }
  0xbe   : > { %704 = vrot.lane.b32.xlu2 %v5516_v55, %s4954_s29 }
  0xbf   : > { %702 = vrot.lane.b32.xlu1 %v5519_v63, %s4954_s29  ;;  %700 = vrot.lane.b32.xlu0 %v665_v33, %s4954_s29  ;;  %v5543_v33 = vsel %vm9778_vm3, %v668_v44, %v670_v53  ;;  %v5567_v62 = vsel %vm9778_vm3, %v674_v34, %v676_v36 }
  0xc0   : > { %v5529_v43 = vpop.permute.xlu2 %524  ;;  %9926 = vst [vmem:[#allocation70_spill] sm:$0xff] %v5567_v62 }
  0xc1   : > { %9918 = vst [vmem:[#allocation62_spill] sm:$0xff] %v5529_v43  ;;  %v5532_v56 = vpop.permute.xlu1 %447  ;;  %v5534_v45 = vpop.permute.xlu0 %445 }
  0xc2   : > { %9919 = vst [vmem:[#allocation63_spill] sm:$0xff] %v5532_v56  ;;  %v678_v56 = vrot.slane %v5135_v20, 4 }
  0xc3   : > { %9920 = vst [vmem:[#allocation64_spill] sm:$0xff] %v5534_v45  ;;  %v680_v45 = vrot.slane %v5138_v21, 4 }
  0xc4   : > { %v5564_v46 = vsel %vm9778_vm3, %v676_v36, %v678_v56 }
  0xc5   : > { %v5561_v53 = vsel %vm9778_vm3, %v678_v56, %v680_v45  ;;  %9925 = vst [vmem:[#allocation69_spill] sm:$0xff] %v5564_v46  ;;  %v682_v56 = vrot.slane %v5168_v31, 4 }
  0xc6   : > { %710 = vrot.lane.b32.xlu2 %v5537_v52, %s4954_s29  ;;  %9924 = vst [vmem:[#allocation68_spill] sm:$0xff] %v5561_v53 }
  0xc7   : > { %708 = vrot.lane.b32.xlu1 %v5540_v37, %s4954_s29  ;;  %706 = vrot.lane.b32.xlu0 %v5543_v33, %s4954_s29  ;;  %v5591_v51 = vsel %vm9778_vm3, %v680_v45, %v682_v56 }
  0xc8   : > { %v5553_v43 = vpop.permute.xlu2 %530  ;;  %9932 = vst [vmem:[#allocation76_spill] sm:$0xff] %v5591_v51 }
  0xc9   : > { %9921 = vst [vmem:[#allocation65_spill] sm:$0xff] %v5553_v43  ;;  %v5556_v25 = vpop.permute.xlu1 %510  ;;  %v5558_v44 = vpop.permute.xlu0 %451  ;;  %v686_v43 = vrot.slane %v5165_v30, 4 }
  0xca   : > { %9922 = vst [vmem:[#allocation66_spill] sm:$0xff] %v5556_v25 }
  0xcb   : > { %9923 = vst [vmem:[#allocation67_spill] sm:$0xff] %v5558_v44  ;;  %v684_v44 = vrot.slane %v5162_v29, 4 }
  0xcd   : > { %v5585_v36 = vsel %vm9778_vm3, %v684_v44, %v686_v43 }
  0xce   : > { %716 = vrot.lane.b32.xlu2 %v5561_v53, %s4954_s29  ;;  %9930 = vst [vmem:[#allocation74_spill] sm:$0xff] %v5585_v36  ;;  %v5588_v53 = vsel %vm9778_vm3, %v682_v56, %v684_v44  ;;  %v688_v44 = vrot.slane %v5195_v40, 4 }
  0xcf   : > { %714 = vrot.lane.b32.xlu1 %v5564_v46, %s4954_s29  ;;  %712 = vrot.lane.b32.xlu0 %v5567_v62, %s4954_s29  ;;  %9931 = vst [vmem:[#allocation75_spill] sm:$0xff] %v5588_v53 }
  0xd0   : > { %v5577_v54 = vpop.permute.xlu2 %536 }
  0xd1   : > { %9927 = vst [vmem:[#allocation71_spill] sm:$0xff] %v5577_v54  ;;  %v5580_v24 = vpop.permute.xlu1 %516  ;;  %v5582_v34 = vpop.permute.xlu0 %514  ;;  %v690_v54 = vrot.slane %v5189_v38, 4 }
  0xd2   : > { %9928 = vst [vmem:[#allocation72_spill] sm:$0xff] %v5580_v24  ;;  %v692_v24 = vrot.slane %v5192_v39, 4 }
  0xd3   : > { %9929 = vst [vmem:[#allocation73_spill] sm:$0xff] %v5582_v34 }
  0xd4   : > { %v5609_v56 = vsel %vm9778_vm3, %v690_v54, %v692_v24 }
  0xd5   : > { %9936 = vst [vmem:[#allocation80_spill] sm:$0xff] %v5609_v56 }
  0xd6   : > { %722 = vrot.lane.b32.xlu2 %v5585_v36, %s4954_s29 }
  0xd7   : > { %720 = vrot.lane.b32.xlu1 %v5588_v53, %s4954_s29  ;;  %718 = vrot.lane.b32.xlu0 %v5591_v51, %s4954_s29  ;;  %v5612_v53 = vsel %vm9778_vm3, %v688_v44, %v690_v54  ;;  %v5615_v51 = vsel %vm9778_vm3, %v686_v43, %v688_v44  ;;  %v694_v54 = vrot.slane %v5222_v49, 4 }
  0xd8   : > { %v5601_v34 = vpop.permute.xlu2 %542  ;;  %9937 = vst [vmem:[#allocation81_spill] sm:$0xff] %v5612_v53 }
  0xd9   : > { %9933 = vst [vmem:[#allocation77_spill] sm:$0xff] %v5601_v34  ;;  %v5604_v58 = vpop.permute.xlu1 %522  ;;  %v5606_v45 = vpop.permute.xlu0 %520  ;;  %v696_v34 = vrot.slane %v5216_v47, 4 }
  0xda   : > { %9934 = vst [vmem:[#allocation78_spill] sm:$0xff] %v5604_v58  ;;  %v5625_v58 = vrot.slane %v5219_v48, 4 }
  0xdb   : > { %9935 = vst [vmem:[#allocation79_spill] sm:$0xff] %v5606_v45 }
  0xdc   : > { %9938 = vst [vmem:[#allocation82_spill] sm:$0xff] %v5615_v51 }
  0xdd   : > { %9939 = vst [vmem:[#allocation83_spill] sm:$0xff] %v5625_v58 }
  0xde   : > { %728 = vrot.lane.b32.xlu2 %v5609_v56, %s4954_s29  ;;  %v5636_v56 = vsel %vm9778_vm3, %v696_v34, %v5625_v58 }
  0xdf   : > { %726 = vrot.lane.b32.xlu1 %v5612_v53, %s4954_s29  ;;  %724 = vrot.lane.b32.xlu0 %v5615_v51, %s4954_s29  ;;  %9943 = vst [vmem:[#allocation87_spill] sm:$0xff] %v5636_v56  ;;  %v5639_v53 = vsel %vm9778_vm3, %v694_v54, %v696_v34  ;;  %v5642_v51 = vsel %vm9778_vm3, %v692_v24, %v694_v54  ;;  %v758_v34 = vrot.slane %v5101_v7, 5  ;;  %vm9809_vm3 = vcmask 343040  }
  0xe0   : > { %v5627_v45 = vpop.permute.xlu2 %605  ;;  %9944 = vst [vmem:[#allocation88_spill] sm:$0xff] %v5639_v53 }
  0xe1   : > { %9940 = vst [vmem:[#allocation84_spill] sm:$0xff] %v5627_v45  ;;  %v5630_v43 = vpop.permute.xlu1 %528  ;;  %v5632_v44 = vpop.permute.xlu0 %526 }
  0xe2   : > { %9941 = vst [vmem:[#allocation85_spill] sm:$0xff] %v5630_v43  ;;  %v761_v43 = vrot.slane %v5092_v2, 5 }
  0xe3   : > { %9942 = vst [vmem:[#allocation86_spill] sm:$0xff] %v5632_v44  ;;  %v759_v44 = vrot.slane %v5104_v8, 5 }
  0xe4   : > { %9945 = vst [vmem:[#allocation89_spill] sm:$0xff] %v5642_v51 }
  0xe6   : > { %734 = vrot.lane.b32.xlu2 %v5636_v56, %s4954_s29  ;;  %v5660_v56 = vsel %vm9774_vm4, %v759_v44, %v761_v43 }
  0xe7   : > { %732 = vrot.lane.b32.xlu1 %v5639_v53, %s4954_s29  ;;  %730 = vrot.lane.b32.xlu0 %v5642_v51, %s4954_s29  ;;  %v760_v53 = vsel %vm9774_vm4, %v758_v34, %v759_v44  ;;  %v765_v51 = vrot.slane %v5086_v0, 5 }
  0xe8   : > { %v5652_v41 = vpop.permute.xlu2 %611 }
  0xe9   : > { %9946 = vst [vmem:[#allocation90_spill] sm:$0xff] %v5652_v41  ;;  %v5655_v24 = vpop.permute.xlu1 %534  ;;  %v5657_v54 = vpop.permute.xlu0 %532 }
  0xea   : > { %9947 = vst [vmem:[#allocation91_spill] sm:$0xff] %v5655_v24  ;;  %v767_v24 = vrot.slane %v5089_v1, 5 }
  0xeb   : > { %9948 = vst [vmem:[#allocation92_spill] sm:$0xff] %v5657_v54  ;;  %v763_v54 = vrot.slane %v5097_v5, 5 }
  0xec   : > { %v5678_v34 = vsel %vm9774_vm4, %v765_v51, %v767_v24 }
  0xee   : > { %797 = vrot.lane.b32.xlu2 %v5660_v56, %s4955_s14 }
  0xef   : > { %795 = vrot.lane.b32.xlu1 %v760_v53, %s4955_s14  ;;  %736 = vrot.lane.b32.xlu0 %v5625_v58, %s4954_s29  ;;  %v5681_v53 = vsel %vm9774_vm4, %v763_v54, %v765_v51  ;;  %v5684_v58 = vsel %vm9774_vm4, %v761_v43, %v763_v54  ;;  %v769_v51 = vrot.slane %v5110_v12, 5  ;;  %s9791_s29 = smov 45  }
  0xf0   : > { %v5670_v41 = vpop.permute.xlu2 %617 }
  0xf1   : > { %9949 = vst [vmem:[#allocation93_spill] sm:$0xff] %v5670_v41  ;;  %v5673_v36 = vpop.permute.xlu1 %540  ;;  %v5675_v44 = vpop.permute.xlu0 %538  ;;  %v5708_v25 = vsel %vm9774_vm4, %v767_v24, %v769_v51 }
  0xf2   : > { %9950 = vst [vmem:[#allocation94_spill] sm:$0xff] %v5673_v36  ;;  %v773_v36 = vrot.slane %v5135_v20, 5 }
  0xf3   : > { %9951 = vst [vmem:[#allocation95_spill] sm:$0xff] %v5675_v44  ;;  %v771_v44 = vrot.slane %v5141_v22, 5 }
  0xf5   : > { %v5702_v54 = vsel %vm9774_vm4, %v771_v44, %v773_v36  ;;  %v5705_v35 = vsel %vm9774_vm4, %v769_v51, %v771_v44  ;;  %v775_v44 = vrot.slane %v5138_v21, 5 }
  0xf6   : > { %803 = vrot.lane.b32.xlu2 %v5678_v34, %s4955_s14  ;;  %9955 = vst [vmem:[#allocation99_spill] sm:$0xff] %v5702_v54 }
  0xf7   : > { %801 = vrot.lane.b32.xlu1 %v5681_v53, %s4955_s14  ;;  %799 = vrot.lane.b32.xlu0 %v5684_v58, %s4955_s14  ;;  %9956 = vst [vmem:[#allocation100_spill] sm:$0xff] %v5705_v35  ;;  %v5732_v46 = vsel %vm9774_vm4, %v773_v36, %v775_v44 }
  0xf8   : > { %v5694_v41 = vpop.permute.xlu2 %623  ;;  %9962 = vst [vmem:[#allocation106_spill] sm:$0xff] %v5732_v46 }
  0xf9   : > { %9952 = vst [vmem:[#allocation96_spill] sm:$0xff] %v5694_v41  ;;  %v5697_v45 = vpop.permute.xlu1 %546  ;;  %v5699_v43 = vpop.permute.xlu0 %544 }
  0xfa   : > { %9953 = vst [vmem:[#allocation97_spill] sm:$0xff] %v5697_v45  ;;  %v777_v45 = vrot.slane %v5168_v31, 5 }
  0xfb   : > { %9954 = vst [vmem:[#allocation98_spill] sm:$0xff] %v5699_v43  ;;  %v779_v43 = vrot.slane %v5162_v29, 5 }
  0xfc   : > { %v5729_v50 = vsel %vm9774_vm4, %v775_v44, %v777_v45 }
  0xfd   : > { %v5726_v51 = vsel %vm9774_vm4, %v777_v45, %v779_v43  ;;  %9961 = vst [vmem:[#allocation105_spill] sm:$0xff] %v5729_v50  ;;  %v781_v45 = vrot.slane %v5165_v30, 5 }
  0xfe   : > { %809 = vrot.lane.b32.xlu2 %v5702_v54, %s4955_s14  ;;  %9960 = vst [vmem:[#allocation104_spill] sm:$0xff] %v5726_v51 }
  0xff   : > { %807 = vrot.lane.b32.xlu1 %v5705_v35, %s4955_s14  ;;  %805 = vrot.lane.b32.xlu0 %v5708_v25, %s4955_s14 }
 0x100   : > { %v5718_v41 = vpop.permute.xlu2 %629 }
 0x101   : > { %9957 = vst [vmem:[#allocation101_spill] sm:$0xff] %v5718_v41  ;;  %v5721_v57 = vpop.permute.xlu1 %609  ;;  %v5723_v24 = vpop.permute.xlu0 %607  ;;  %v783_v41 = vrot.slane %v5195_v40, 5 }
 0x102   : > { %9958 = vst [vmem:[#allocation102_spill] sm:$0xff] %v5721_v57  ;;  %v785_v57 = vrot.slane %v5189_v38, 5 }
 0x103   : > { %9959 = vst [vmem:[#allocation103_spill] sm:$0xff] %v5723_v24 }
 0x104   : > { %v5750_v44 = vsel %vm9774_vm4, %v783_v41, %v785_v57 }
 0x105   : > { %9966 = vst [vmem:[#allocation110_spill] sm:$0xff] %v5750_v44 }
 0x106   : > { %815 = vrot.lane.b32.xlu2 %v5726_v51, %s4955_s14  ;;  %v5753_v51 = vsel %vm9774_vm4, %v781_v45, %v783_v41  ;;  %v787_v41 = vrot.slane %v5192_v39, 5 }
 0x107   : > { %813 = vrot.lane.b32.xlu1 %v5729_v50, %s4955_s14  ;;  %811 = vrot.lane.b32.xlu0 %v5732_v46, %s4955_s14  ;;  %9967 = vst [vmem:[#allocation111_spill] sm:$0xff] %v5753_v51  ;;  %v5756_v50 = vsel %vm9774_vm4, %v779_v43, %v781_v45 }
 0x108   : > { %v5742_v24 = vpop.permute.xlu2 %635  ;;  %9968 = vst [vmem:[#allocation112_spill] sm:$0xff] %v5756_v50 }
 0x109   : > { %9963 = vst [vmem:[#allocation107_spill] sm:$0xff] %v5742_v24  ;;  %v5745_v54 = vpop.permute.xlu1 %615  ;;  %v5747_v36 = vpop.permute.xlu0 %613  ;;  %v789_v24 = vrot.slane %v5222_v49, 5 }
 0x10a   : > { %9964 = vst [vmem:[#allocation108_spill] sm:$0xff] %v5745_v54  ;;  %v791_v54 = vrot.slane %v5216_v47, 5 }
 0x10b   : > { %9965 = vst [vmem:[#allocation109_spill] sm:$0xff] %v5747_v36 }
 0x10c   : > { %v5774_v45 = vsel %vm9774_vm4, %v789_v24, %v791_v54 }
 0x10d   : > { %9972 = vst [vmem:[#allocation116_spill] sm:$0xff] %v5774_v45 }
 0x10e   : > { %821 = vrot.lane.b32.xlu2 %v5750_v44, %s4955_s14  ;;  %v5777_v44 = vsel %vm9774_vm4, %v787_v41, %v789_v24  ;;  %v5793_v24 = vrot.slane %v5219_v48, 5 }
 0x10f   : > { %819 = vrot.lane.b32.xlu1 %v5753_v51, %s4955_s14  ;;  %817 = vrot.lane.b32.xlu0 %v5756_v50, %s4955_s14  ;;  %9973 = vst [vmem:[#allocation117_spill] sm:$0xff] %v5777_v44  ;;  %v5780_v51 = vsel %vm9774_vm4, %v785_v57, %v787_v41 }
 0x110   : > { %v5766_v36 = vpop.permute.xlu2 %641  ;;  %9974 = vst [vmem:[#allocation118_spill] sm:$0xff] %v5780_v51 }
 0x111   : > { %9969 = vst [vmem:[#allocation113_spill] sm:$0xff] %v5766_v36  ;;  %v5769_v46 = vpop.permute.xlu1 %621  ;;  %v5771_v43 = vpop.permute.xlu0 %619  ;;  %v853_v36 = vrot.slane %v5101_v7, 6 }
 0x112   : > { %9970 = vst [vmem:[#allocation114_spill] sm:$0xff] %v5769_v46  ;;  %v854_v46 = vrot.slane %v5104_v8, 6 }
 0x113   : > { %9971 = vst [vmem:[#allocation115_spill] sm:$0xff] %v5771_v43 }
 0x114   : > { %9976 = vst [vmem:[#allocation120_spill] sm:$0xff] %v5793_v24 }
 0x116   : > { %827 = vrot.lane.b32.xlu2 %v5774_v45, %s4955_s14  ;;  %v855_v45 = vsel %vm9777_vm5, %v853_v36, %v854_v46  ;;  %v856_v36 = vrot.slane %v5092_v2, 6 }
 0x117   : > { %825 = vrot.lane.b32.xlu1 %v5777_v44, %s4955_s14  ;;  %823 = vrot.lane.b32.xlu0 %v5780_v51, %s4955_s14  ;;  %v5802_v44 = vsel %vm9774_vm4, %v791_v54, %v5793_v24  ;;  %v858_v51 = vrot.slane %v5097_v5, 6  ;;  %vm9833_vm4 = vcmask 244736  }
 0x118   : > { %v5790_v43 = vpop.permute.xlu2 %704  ;;  %9979 = vst [vmem:[#allocation123_spill] sm:$0xff] %v5802_v44 }
 0x119   : > { %9975 = vst [vmem:[#allocation119_spill] sm:$0xff] %v5790_v43  ;;  %v5795_v57 = vpop.permute.xlu1 %627  ;;  %v5797_v41 = vpop.permute.xlu0 %625 }
 0x11a   : > { %9977 = vst [vmem:[#allocation121_spill] sm:$0xff] %v5795_v57  ;;  %v860_v57 = vrot.slane %v5086_v0, 6 }
 0x11b   : > { %9978 = vst [vmem:[#allocation122_spill] sm:$0xff] %v5797_v41 }
 0x11e   : > { %890 = vrot.lane.b32.xlu2 %v855_v45, %s4956_s16  ;;  %v5819_v45 = vsel %vm9777_vm5, %v858_v51, %v860_v57 }
 0x11f   : > { %831 = vrot.lane.b32.xlu1 %v5793_v24, %s4955_s14  ;;  %829 = vrot.lane.b32.xlu0 %v5802_v44, %s4955_s14  ;;  %v5822_v24 = vsel %vm9777_vm5, %v856_v36, %v858_v51  ;;  %v5825_v44 = vsel %vm9777_vm5, %v854_v46, %v856_v36  ;;  %v862_v51 = vrot.slane %v5089_v1, 6  ;;  %s10076_s14 = smov 36  }
 0x120   : > { %v5811_v41 = vpop.permute.xlu2 %710 }
 0x121   : > { %9980 = vst [vmem:[#allocation124_spill] sm:$0xff] %v5811_v41  ;;  %v5814_v43 = vpop.permute.xlu1 %633  ;;  %v5816_v54 = vpop.permute.xlu0 %631  ;;  %v5849_v9 = vsel %vm9777_vm5, %v860_v57, %v862_v51 }
 0x122   : > { %9981 = vst [vmem:[#allocation125_spill] sm:$0xff] %v5814_v43  ;;  %v864_v43 = vrot.slane %v5110_v12, 6 }
 0x123   : > { %9982 = vst [vmem:[#allocation126_spill] sm:$0xff] %v5816_v54  ;;  %v866_v54 = vrot.slane %v5141_v22, 6 }
 0x124   : > { %v5846_v15 = vsel %vm9777_vm5, %v862_v51, %v864_v43 }
 0x125   : > { %v5843_v36 = vsel %vm9777_vm5, %v864_v43, %v866_v54  ;;  %v868_v43 = vrot.slane %v5135_v20, 6 }
 0x126   : > { %896 = vrot.lane.b32.xlu2 %v5819_v45, %s4956_s16  ;;  %9986 = vst [vmem:[#allocation130_spill] sm:$0xff] %v5843_v36 }
 0x127   : > { %894 = vrot.lane.b32.xlu1 %v5822_v24, %s4956_s16  ;;  %892 = vrot.lane.b32.xlu0 %v5825_v44, %s4956_s16 }
 0x128   : > { %v5835_v41 = vpop.permute.xlu2 %716 }
 0x129   : > { %9983 = vst [vmem:[#allocation127_spill] sm:$0xff] %v5835_v41  ;;  %v5838_v50 = vpop.permute.xlu1 %639  ;;  %v5840_v46 = vpop.permute.xlu0 %637 }
 0x12a   : > { %9984 = vst [vmem:[#allocation128_spill] sm:$0xff] %v5838_v50  ;;  %v870_v50 = vrot.slane %v5138_v21, 6 }
 0x12b   : > { %9985 = vst [vmem:[#allocation129_spill] sm:$0xff] %v5840_v46  ;;  %v872_v46 = vrot.slane %v5168_v31, 6 }
 0x12c   : > { %v5870_v35 = vsel %vm9777_vm5, %v868_v43, %v870_v50 }
 0x12d   : > { %v5867_v51 = vsel %vm9777_vm5, %v870_v50, %v872_v46  ;;  %9991 = vst [vmem:[#allocation135_spill] sm:$0xff] %v5870_v35  ;;  %v874_v50 = vrot.slane %v5162_v29, 6 }
 0x12e   : > { %902 = vrot.lane.b32.xlu2 %v5843_v36, %s4956_s16  ;;  %9990 = vst [vmem:[#allocation134_spill] sm:$0xff] %v5867_v51  ;;  %v5873_v36 = vsel %vm9777_vm5, %v866_v54, %v868_v43 }
 0x12f   : > { %900 = vrot.lane.b32.xlu1 %v5846_v15, %s4956_s16  ;;  %898 = vrot.lane.b32.xlu0 %v5849_v9, %s4956_s16  ;;  %9992 = vst [vmem:[#allocation136_spill] sm:$0xff] %v5873_v36 }
 0x130   : > { %v5859_v41 = vpop.permute.xlu2 %722 }
 0x131   : > { %9987 = vst [vmem:[#allocation131_spill] sm:$0xff] %v5859_v41  ;;  %v5862_v62 = vpop.permute.xlu1 %702  ;;  %v5864_v57 = vpop.permute.xlu0 %700  ;;  %v876_v41 = vrot.slane %v5165_v30, 6 }
 0x132   : > { %9988 = vst [vmem:[#allocation132_spill] sm:$0xff] %v5862_v62  ;;  %v878_v62 = vrot.slane %v5195_v40, 6 }
 0x133   : > { %9989 = vst [vmem:[#allocation133_spill] sm:$0xff] %v5864_v57 }
 0x134   : > { %v5891_v43 = vsel %vm9777_vm5, %v876_v41, %v878_v62 }
 0x135   : > { %9996 = vst [vmem:[#allocation140_spill] sm:$0xff] %v5891_v43 }
 0x136   : > { %908 = vrot.lane.b32.xlu2 %v5867_v51, %s4956_s16  ;;  %v5894_v51 = vsel %vm9777_vm5, %v874_v50, %v876_v41  ;;  %v880_v41 = vrot.slane %v5189_v38, 6 }
 0x137   : > { %906 = vrot.lane.b32.xlu1 %v5870_v35, %s4956_s16  ;;  %904 = vrot.lane.b32.xlu0 %v5873_v36, %s4956_s16  ;;  %9997 = vst [vmem:[#allocation141_spill] sm:$0xff] %v5894_v51  ;;  %v5897_v35 = vsel %vm9777_vm5, %v872_v46, %v874_v50 }
 0x138   : > { %v5883_v57 = vpop.permute.xlu2 %728  ;;  %9998 = vst [vmem:[#allocation142_spill] sm:$0xff] %v5897_v35 }
 0x139   : > { %9993 = vst [vmem:[#allocation137_spill] sm:$0xff] %v5883_v57  ;;  %v5886_v16 = vpop.permute.xlu1 %708  ;;  %v5888_v54 = vpop.permute.xlu0 %706  ;;  %v882_v57 = vrot.slane %v5192_v39, 6 }
 0x13a   : > { %9994 = vst [vmem:[#allocation138_spill] sm:$0xff] %v5886_v16  ;;  %v884_v16 = vrot.slane %v5222_v49, 6 }
 0x13b   : > { %9995 = vst [vmem:[#allocation139_spill] sm:$0xff] %v5888_v54 }
 0x13c   : > { %v5915_v50 = vsel %vm9777_vm5, %v882_v57, %v884_v16 }
 0x13d   : > { %10002 = vst [vmem:[#allocation146_spill] sm:$0xff] %v5915_v50 }
 0x13e   : > { %914 = vrot.lane.b32.xlu2 %v5891_v43, %s4956_s16  ;;  %v5918_v43 = vsel %vm9777_vm5, %v880_v41, %v882_v57  ;;  %v886_v57 = vrot.slane %v5216_v47, 6 }
 0x13f   : > { %912 = vrot.lane.b32.xlu1 %v5894_v51, %s4956_s16  ;;  %910 = vrot.lane.b32.xlu0 %v5897_v35, %s4956_s16  ;;  %10003 = vst [vmem:[#allocation147_spill] sm:$0xff] %v5918_v43  ;;  %v5921_v35 = vsel %vm9777_vm5, %v878_v62, %v880_v41 }
 0x140   : > { %v5907_v54 = vpop.permute.xlu2 %734  ;;  %10004 = vst [vmem:[#allocation148_spill] sm:$0xff] %v5921_v35 }
 0x141   : > { %9999 = vst [vmem:[#allocation143_spill] sm:$0xff] %v5907_v54  ;;  %v5910_v36 = vpop.permute.xlu1 %714  ;;  %v5912_v46 = vpop.permute.xlu0 %712 }
 0x142   : > { %10000 = vst [vmem:[#allocation144_spill] sm:$0xff] %v5910_v36  ;;  %v5932_v36 = vrot.slane %v5219_v48, 6 }
 0x143   : > { %10001 = vst [vmem:[#allocation145_spill] sm:$0xff] %v5912_v46 }
 0x144   : > { %10006 = vst [vmem:[#allocation150_spill] sm:$0xff] %v5932_v36  ;;  %v5941_v41 = vsel %vm9777_vm5, %v886_v57, %v5932_v36 }
 0x145   : > { %10009 = vst [vmem:[#allocation153_spill] sm:$0xff] %v5941_v41 }
 0x146   : > { %920 = vrot.lane.b32.xlu2 %v5915_v50, %s4956_s16  ;;  %v5944_v50 = vsel %vm9777_vm5, %v884_v16, %v886_v57  ;;  %v948_v16 = vrot.slane %v5101_v7, 7  ;;  %v959_v7 = vrot.slane %v5110_v12, 7  ;;  %vm9827_vm5 = vcmask 318464  }
 0x147   : > { %918 = vrot.lane.b32.xlu1 %v5918_v43, %s4956_s16  ;;  %916 = vrot.lane.b32.xlu0 %v5921_v35, %s4956_s16  ;;  %10010 = vst [vmem:[#allocation154_spill] sm:$0xff] %v5944_v50  ;;  %v951_v43 = vrot.slane %v5092_v2, 7  ;;  %v949_v35 = vrot.slane %v5104_v8, 7 }
 0x148   : > { %v5929_v54 = vpop.permute.xlu2 %797 }
 0x149   : > { %10005 = vst [vmem:[#allocation149_spill] sm:$0xff] %v5929_v54  ;;  %v5935_v46 = vpop.permute.xlu1 %720  ;;  %v5937_v62 = vpop.permute.xlu0 %718  ;;  %v950_v2 = vsel %vm9775_vm6, %v948_v16, %v949_v35 }
 0x14a   : > { %10007 = vst [vmem:[#allocation151_spill] sm:$0xff] %v5935_v46 }
 0x14b   : > { %10008 = vst [vmem:[#allocation152_spill] sm:$0xff] %v5937_v62  ;;  %v953_v62 = vrot.slane %v5097_v5, 7  ;;  %v957_v5 = vrot.slane %v5089_v1, 7  ;;  %v965_v1 = vrot.slane %v5138_v21, 7  ;;  %v969_v21 = vrot.slane %v5162_v29, 7 }
 0x14d   : > { %v5984_v16 = vsel %vm9775_vm6, %v957_v5, %v959_v7 }
 0x14e   : > { %926 = vrot.lane.b32.xlu2 %v5932_v36, %s4956_s16 }
 0x14f   : > { %924 = vrot.lane.b32.xlu1 %v5941_v41, %s4956_s16  ;;  %922 = vrot.lane.b32.xlu0 %v5944_v50, %s4956_s16  ;;  %v5963_v41 = vsel %vm9775_vm6, %v951_v43, %v953_v62  ;;  %v5966_v50 = vsel %vm9775_vm6, %v949_v35, %v951_v43  ;;  %v955_v43 = vrot.slane %v5086_v0, 7  ;;  %v963_v0 = vrot.slane %v5135_v20, 7  ;;  %s10081_s16 = smov 27  }
 0x150   : > { %v5954_v46 = vpop.permute.xlu2 %803 }
 0x151   : > { %10011 = vst [vmem:[#allocation155_spill] sm:$0xff] %v5954_v46  ;;  %v5958_v57 = vpop.permute.xlu1 %726  ;;  %v5960_v36 = vpop.permute.xlu0 %724  ;;  %v5987_v46 = vsel %vm9775_vm6, %v955_v43, %v957_v5  ;;  %v961_v5 = vrot.slane %v5141_v22, 7 }
 0x152   : > { %10012 = vst [vmem:[#allocation156_spill] sm:$0xff] %v5958_v57 }
 0x153   : > { %10013 = vst [vmem:[#allocation157_spill] sm:$0xff] %v5960_v36 }
 0x156   : > { %989 = vrot.lane.b32.xlu2 %v5963_v41, %s4957_s17 }
 0x157   : > { %987 = vrot.lane.b32.xlu1 %v5966_v50, %s4957_s17  ;;  %985 = vrot.lane.b32.xlu0 %v950_v2, %s4957_s17  ;;  %v5990_v2 = vsel %vm9775_vm6, %v953_v62, %v955_v43  ;;  %v6008_v43 = vsel %vm9775_vm6, %v963_v0, %v965_v1 }
 0x158   : > { %v5976_v36 = vpop.permute.xlu2 %809  ;;  %10020 = vst [vmem:[#allocation164_spill] sm:$0xff] %v6008_v43 }
 0x159   : > { %10014 = vst [vmem:[#allocation158_spill] sm:$0xff] %v5976_v36  ;;  %v5979_v57 = vpop.permute.xlu1 %732  ;;  %v5981_v35 = vpop.permute.xlu0 %730  ;;  %v6014_v36 = vsel %vm9775_vm6, %v959_v7, %v961_v5 }
 0x15a   : > { %10015 = vst [vmem:[#allocation159_spill] sm:$0xff] %v5979_v57 }
 0x15b   : > { %10016 = vst [vmem:[#allocation160_spill] sm:$0xff] %v5981_v35  ;;  %v6011_v35 = vsel %vm9775_vm6, %v961_v5, %v963_v0  ;;  %v967_v0 = vrot.slane %v5168_v31, 7 }
 0x15d   : > { %v6038_v54 = vsel %vm9775_vm6, %v965_v1, %v967_v0 }
 0x15e   : > { %995 = vrot.lane.b32.xlu2 %v5984_v16, %s4957_s17  ;;  %10026 = vst [vmem:[#allocation170_spill] sm:$0xff] %v6038_v54 }
 0x15f   : > { %993 = vrot.lane.b32.xlu1 %v5987_v46, %s4957_s17  ;;  %991 = vrot.lane.b32.xlu0 %v5990_v2, %s4957_s17 }
 0x160   : > { %v6000_v12 = vpop.permute.xlu2 %815 }
 0x161   : > { %10017 = vst [vmem:[#allocation161_spill] sm:$0xff] %v6000_v12  ;;  %v6003_v57 = vpop.permute.xlu1 %795  ;;  %v6005_v62 = vpop.permute.xlu0 %736 }
 0x162   : > { %10018 = vst [vmem:[#allocation162_spill] sm:$0xff] %v6003_v57 }
 0x163   : > { %10019 = vst [vmem:[#allocation163_spill] sm:$0xff] %v6005_v62  ;;  %v971_v62 = vrot.slane %v5165_v30, 7 }
 0x165   : > { %v6032_v5 = vsel %vm9775_vm6, %v969_v21, %v971_v62 }
 0x166   : > { %1001 = vrot.lane.b32.xlu2 %v6008_v43, %s4957_s17  ;;  %10024 = vst [vmem:[#allocation168_spill] sm:$0xff] %v6032_v5  ;;  %v6035_v43 = vsel %vm9775_vm6, %v967_v0, %v969_v21  ;;  %v973_v21 = vrot.slane %v5195_v40, 7 }
 0x167   : > { %999 = vrot.lane.b32.xlu1 %v6011_v35, %s4957_s17  ;;  %997 = vrot.lane.b32.xlu0 %v6014_v36, %s4957_s17  ;;  %10025 = vst [vmem:[#allocation169_spill] sm:$0xff] %v6035_v43 }
 0x168   : > { %v6024_v12 = vpop.permute.xlu2 %821 }
 0x169   : > { %10021 = vst [vmem:[#allocation165_spill] sm:$0xff] %v6024_v12  ;;  %v6027_v51 = vpop.permute.xlu1 %801  ;;  %v6029_v7 = vpop.permute.xlu0 %799  ;;  %v975_v12 = vrot.slane %v5189_v38, 7 }
 0x16a   : > { %10022 = vst [vmem:[#allocation166_spill] sm:$0xff] %v6027_v51  ;;  %v977_v51 = vrot.slane %v5192_v39, 7 }
 0x16b   : > { %10023 = vst [vmem:[#allocation167_spill] sm:$0xff] %v6029_v7 }
 0x16c   : > { %v6056_v0 = vsel %vm9775_vm6, %v975_v12, %v977_v51 }
 0x16d   : > { %10030 = vst [vmem:[#allocation174_spill] sm:$0xff] %v6056_v0 }
 0x16e   : > { %1007 = vrot.lane.b32.xlu2 %v6032_v5, %s4957_s17  ;;  %v6104_v5 = vld [vmem:[%s5083_s25 + $0x10] sm:$0xff] }
 0x16f   : > { %1005 = vrot.lane.b32.xlu1 %v6035_v43, %s4957_s17  ;;  %1003 = vrot.lane.b32.xlu0 %v6038_v54, %s4957_s17  ;;  %v6059_v43 = vsel %vm9775_vm6, %v973_v21, %v975_v12  ;;  %v6062_v54 = vsel %vm9775_vm6, %v971_v62, %v973_v21  ;;  %v979_v62 = vrot.slane %v5222_v49, 7 }
 0x170   : > { %v6048_v7 = vpop.permute.xlu2 %827  ;;  %10031 = vst [vmem:[#allocation175_spill] sm:$0xff] %v6059_v43 }
 0x171   : > { %10027 = vst [vmem:[#allocation171_spill] sm:$0xff] %v6048_v7  ;;  %v6051_v57 = vpop.permute.xlu1 %807  ;;  %v6053_v1 = vpop.permute.xlu0 %805  ;;  %v981_v7 = vrot.slane %v5216_v47, 7 }
 0x172   : > { %10028 = vst [vmem:[#allocation172_spill] sm:$0xff] %v6051_v57  ;;  %v6072_v57 = vrot.slane %v5219_v48, 7 }
 0x173   : > { %10029 = vst [vmem:[#allocation173_spill] sm:$0xff] %v6053_v1 }
 0x174   : > { %10032 = vst [vmem:[#allocation176_spill] sm:$0xff] %v6062_v54 }
 0x175   : > { %10033 = vst [vmem:[#allocation177_spill] sm:$0xff] %v6072_v57 }
 0x176   : > { %1013 = vrot.lane.b32.xlu2 %v6056_v0, %s4957_s17  ;;  %v6083_v0 = vsel %vm9775_vm6, %v981_v7, %v6072_v57 }
 0x177   : > { %1011 = vrot.lane.b32.xlu1 %v6059_v43, %s4957_s17  ;;  %1009 = vrot.lane.b32.xlu0 %v6062_v54, %s4957_s17  ;;  %10036 = vst [vmem:[#allocation180_spill] sm:$0xff] %v6083_v0  ;;  %v6086_v43 = vsel %vm9775_vm6, %v979_v62, %v981_v7  ;;  %v6089_v54 = vsel %vm9775_vm6, %v977_v51, %v979_v62  ;;  %vm9789_vm6 = vcmask 269312  }
 0x178   : > { %v6074_v12 = vpop.permute.xlu2 %890  ;;  %10037 = vst [vmem:[#allocation181_spill] sm:$0xff] %v6086_v43 }
 0x179   : > { %v6077_v21 = vpop.permute.xlu1 %813  ;;  %v6079_v1 = vpop.permute.xlu0 %811  ;;  %10038 = vst [vmem:[#allocation182_spill] sm:$0xff] %v6089_v54 }
 0x17a   : > { %10034 = vst [vmem:[#allocation178_spill] sm:$0xff] %v6077_v21 }
 0x17b   : > { %10035 = vst [vmem:[#allocation179_spill] sm:$0xff] %v6079_v1 }
 0x17e   : > { %1019 = vrot.lane.b32.xlu2 %v6083_v0, %s4957_s17 }
 0x17f   : > { %1017 = vrot.lane.b32.xlu1 %v6086_v43, %s4957_s17  ;;  %1015 = vrot.lane.b32.xlu0 %v6089_v54, %s4957_s17  ;;  %v6119_v54 = vld [vmem:[%s5083_s25 + $0x28] sm:$0xff] }
 0x180   : > { %v6097_v1 = vpop.permute.xlu2 %896 }
 0x181   : > { %v6099_v21 = vpop.permute.xlu1 %819  ;;  %v6101_v7 = vpop.permute.xlu0 %817 }
 0x182   : > { %10039 = vst [vmem:[#allocation183_spill] sm:$0xff] %v6099_v21  ;;  %v6144_v21 = vld [vmem:[%s5083_s25 + $0x30] sm:$0xff] }
 0x183   : > { %10040 = vst [vmem:[#allocation184_spill] sm:$0xff] %v6101_v7  ;;  %v6124_v7 = vld [vmem:[%s5083_s25 + $0x20] sm:$0xff] }
 0x186   : > { %1045 = vrot.lane.b32.xlu2 %v6104_v5, %s9768_s21 }
 0x187   : > { %1043 = vrot.lane.b32.xlu1 %v5104_v8, %s9768_s21  ;;  %1021 = vrot.lane.b32.xlu0 %v6072_v57, %s4957_s17  ;;  %v6129_v8 = vld [vmem:[%s5083_s25 + $0x18] sm:$0xff]  ;;  %s9818_s17 = smov 16  }
 0x188   : > { %v6112_v51 = vpop.permute.xlu2 %902 }
 0x189   : > { %10041 = vst [vmem:[#allocation185_spill] sm:$0xff] %v6112_v51  ;;  %v6114_v62 = vpop.permute.xlu1 %825  ;;  %v6116_v0 = vpop.permute.xlu0 %823 }
 0x18a   : > { %10042 = vst [vmem:[#allocation186_spill] sm:$0xff] %v6114_v62 }
 0x18b   : > { %10043 = vst [vmem:[#allocation187_spill] sm:$0xff] %v6116_v0 }
 0x18e   : > { %1051 = vrot.lane.b32.xlu2 %v6119_v54, %s9768_s21 }
 0x18f   : > { %1049 = vrot.lane.b32.xlu1 %v6124_v7, %s9768_s21  ;;  %1047 = vrot.lane.b32.xlu0 %v6129_v8, %s9768_s21 }
 0x190   : > { %v6133_v57 = vpop.permute.xlu2 %908 }
 0x191   : > { %10044 = vst [vmem:[#allocation188_spill] sm:$0xff] %v6133_v57  ;;  %v6135_v62 = vpop.permute.xlu1 %831  ;;  %v6137_v0 = vpop.permute.xlu0 %829 }
 0x192   : > { %10045 = vst [vmem:[#allocation189_spill] sm:$0xff] %v6135_v62 }
 0x193   : > { %10046 = vst [vmem:[#allocation190_spill] sm:$0xff] %v6137_v0 }
 0x196   : > { %1057 = vrot.lane.b32.xlu2 %v5135_v20, %s9768_s21  ;;  %v6159_v20 = vld [vmem:[%s5083_s25 + $0x48] sm:$0xff] }
 0x197   : > { %1055 = vrot.lane.b32.xlu1 %v5141_v22, %s9768_s21  ;;  %1053 = vrot.lane.b32.xlu0 %v6144_v21, %s9768_s21 }
 0x198   : > { %v6148_v43 = vpop.permute.xlu2 %914 }
 0x199   : > { %10047 = vst [vmem:[#allocation191_spill] sm:$0xff] %v6148_v43  ;;  %v6150_v51 = vpop.permute.xlu1 %894  ;;  %v6152_v57 = vpop.permute.xlu0 %892 }
 0x19e   : > { %1063 = vrot.lane.b32.xlu2 %v5162_v29, %s9768_s21 }
 0x19f   : > { %1061 = vrot.lane.b32.xlu1 %v5168_v31, %s9768_s21  ;;  %1059 = vrot.lane.b32.xlu0 %v6159_v20, %s9768_s21 }
 0x1a0   : > { %v6163_v22 = vpop.permute.xlu2 %920 }
 0x1a1   : > { %v6165_v62 = vpop.permute.xlu1 %900  ;;  %v6167_v0 = vpop.permute.xlu0 %898 }
 0x1a6   : > { %1069 = vrot.lane.b32.xlu2 %v5189_v38, %s9768_s21 }
 0x1a7   : > { %1067 = vrot.lane.b32.xlu1 %v5195_v40, %s9768_s21  ;;  %1065 = vrot.lane.b32.xlu0 %v5165_v30, %s9768_s21 }
 0x1a8   : > { %v6175_v29 = vpop.permute.xlu2 %926 }
 0x1a9   : > { %10048 = vst [vmem:[#allocation192_spill] sm:$0xff] %v6175_v29  ;;  %v6177_v31 = vpop.permute.xlu1 %906  ;;  %v6179_v43 = vpop.permute.xlu0 %904  ;;  %v6194_v29 = vld [vmem:[%s5083_s25 + $0x98] sm:$0xff] }
 0x1aa   : > { %10049 = vst [vmem:[#allocation193_spill] sm:$0xff] %v6194_v29 }
 0x1ae   : > { %1075 = vrot.lane.b32.xlu2 %v5216_v47, %s9768_s21 }
 0x1af   : > { %1073 = vrot.lane.b32.xlu1 %v5222_v49, %s9768_s21  ;;  %1071 = vrot.lane.b32.xlu0 %v5192_v39, %s9768_s21 }
 0x1b0   : > { %v6187_v38 = vpop.permute.xlu2 %989 }
 0x1b1   : > { %v6189_v40 = vpop.permute.xlu1 %912  ;;  %v6191_v30 = vpop.permute.xlu0 %910 }
 0x1b6   : > { %1102 = vrot.lane.b32.xlu2 %v5132_v19, %s9770_s22 }
 0x1b7   : > { %1079 = vrot.lane.b32.xlu1 %v6194_v29, %s9768_s21  ;;  %1077 = vrot.lane.b32.xlu0 %v5219_v48, %s9768_s21  ;;  %s10249_s21 = smov 24  }
 0x1b8   : > { %v6202_v47 = vpop.permute.xlu2 %995 }
 0x1b9   : > { %v6204_v39 = vpop.permute.xlu1 %918  ;;  %v6206_v49 = vpop.permute.xlu0 %916 }
 0x1ba   : > { %10050 = vst [vmem:[#allocation194_spill] sm:$0xff] %v6204_v39 }
 0x1be   : > { %1108 = vrot.lane.b32.xlu2 %v5113_v13, %s9770_s22 }
 0x1bf   : > { %1106 = vrot.lane.b32.xlu1 %v5129_v18, %s9770_s22  ;;  %1104 = vrot.lane.b32.xlu0 %v5118_v14, %s9770_s22 }
 0x1c0   : > { %v6214_v19 = vpop.permute.xlu2 %1001 }
 0x1c1   : > { %v6216_v29 = vpop.permute.xlu1 %924  ;;  %v6218_v48 = vpop.permute.xlu0 %922 }
 0x1c2   : > { %10051 = vst [vmem:[#allocation195_spill] sm:$0xff] %v6216_v29  ;;  %v10067_v29 = vld [vmem:[#allocation100_spill] sm:$0xff] }
 0x1c3   : > { %10052 = vst [vmem:[#allocation196_spill] sm:$0xff] %v6218_v48 }
 0x1c6   : > { %1114 = vrot.lane.b32.xlu2 %v5156_v27, %s9770_s22 }
 0x1c7   : > { %1112 = vrot.lane.b32.xlu1 %v5159_v28, %s9770_s22  ;;  %1110 = vrot.lane.b32.xlu0 %v5126_v17, %s9770_s22 }
 0x1c8   : > { %v6226_v13 = vpop.permute.xlu2 %1007 }
 0x1c9   : > { %v6228_v18 = vpop.permute.xlu1 %987  ;;  %v6230_v14 = vpop.permute.xlu0 %985 }
 0x1ce   : > { %1220 = vrot.lane.b32.xlu2 %v5382_v32, %s9792_s23 }
 0x1cf   : > { %1161 = vrot.lane.b32.xlu1 %v5255_v59, %s9794_s24  ;;  %1116 = vrot.lane.b32.xlu0 %v5153_v26, %s9770_s22  ;;  %s9816_s22 = smov 32  }
 0x1d0   : > { %v6238_v27 = vpop.permute.xlu2 %1013 }
 0x1d1   : > { %10053 = vst [vmem:[#allocation197_spill] sm:$0xff] %v6238_v27  ;;  %v6240_v17 = vpop.permute.xlu1 %993  ;;  %v6242_v28 = vpop.permute.xlu0 %991 }
 0x1d6   : > { %1397 = vrot.lane.b32.xlu2 %v5825_v44, %s9790_s26 }
 0x1d7   : > { %1338 = vrot.lane.b32.xlu1 %v5660_v56, %s9793_s27  ;;  %1279 = vrot.lane.b32.xlu0 %v5519_v63, %s9772_s28 }
 0x1d8   : > { %v6250_v59 = vpop.permute.xlu2 %1019 }
 0x1d9   : > { %10054 = vst [vmem:[#allocation198_spill] sm:$0xff] %v6250_v59  ;;  %v6252_v26 = vpop.permute.xlu1 %999  ;;  %v6254_v32 = vpop.permute.xlu0 %997  ;;  %v10066_v59 = vld [vmem:[#allocation130_spill] sm:$0xff] }
 0x1de   : > { %1222 = vrot.lane.b32.xlu2 %v5379_v10, %s9792_s23 }
 0x1df   : > { %1163 = vrot.lane.b32.xlu1 %v5273_v6, %s9794_s24  ;;  %1456 = vrot.lane.b32.xlu0 %v5966_v50, %s9791_s29 }
 0x1e0   : > { %v6262_v56 = vpop.permute.xlu2 %1045 }
 0x1e1   : > { %v6264_v44 = vpop.permute.xlu1 %1005  ;;  %v6266_v63 = vpop.permute.xlu0 %1003 }
 0x1e6   : > { %1399 = vrot.lane.b32.xlu2 %v5822_v24, %s9790_s26 }
 0x1e7   : > { %1340 = vrot.lane.b32.xlu1 %v5684_v58, %s9793_s27  ;;  %1281 = vrot.lane.b32.xlu0 %v5516_v55, %s9772_s28 }
 0x1e8   : > { %v6274_v6 = vpop.permute.xlu2 %1051 }
 0x1e9   : > { %v6276_v10 = vpop.permute.xlu1 %1011  ;;  %v6278_v50 = vpop.permute.xlu0 %1009 }
 0x1ee   : > { %1224 = vrot.lane.b32.xlu2 %v5376_v60, %s9792_s23 }
 0x1ef   : > { %1165 = vrot.lane.b32.xlu1 %v5270_v4, %s9794_s24  ;;  %1458 = vrot.lane.b32.xlu0 %v5963_v41, %s9791_s29 }
 0x1f0   : > { %v6286_v24 = vpop.permute.xlu2 %1057 }
 0x1f1   : > { %v6288_v58 = vpop.permute.xlu1 %1017  ;;  %v6290_v55 = vpop.permute.xlu0 %1015 }
 0x1f2   : > { %10055 = vst [vmem:[#allocation199_spill] sm:$0xff] %v6288_v58 }
 0x1f6   : > { %1401 = vrot.lane.b32.xlu2 %v5819_v45, %s9790_s26 }
 0x1f7   : > { %1342 = vrot.lane.b32.xlu1 %v5681_v53, %s9793_s27  ;;  %1283 = vrot.lane.b32.xlu0 %v5543_v33, %s9772_s28 }
 0x1f8   : > { %v6298_v60 = vpop.permute.xlu2 %1063 }
 0x1f9   : > { %v6300_v4 = vpop.permute.xlu1 %1043  ;;  %v6302_v41 = vpop.permute.xlu0 %1021 }
 0x1fa   : > { %10056 = vst [vmem:[#allocation200_spill] sm:$0xff] %v6302_v41  ;;  %v10063_v41 = vld [vmem:[#allocation20_spill] sm:$0xff] }
 0x1fe   : > { %1226 = vrot.lane.b32.xlu2 %v5402_v42, %s9792_s23 }
 0x1ff   : > { %1167 = vrot.lane.b32.xlu1 %v5267_v3, %s9794_s24  ;;  %1460 = vrot.lane.b32.xlu0 %v5990_v2, %s9791_s29 }
 0x200   : > { %v6310_v45 = vpop.permute.xlu2 %1069 }
 0x201   : > { %10057 = vst [vmem:[#allocation201_spill] sm:$0xff] %v6310_v45  ;;  %v6312_v53 = vpop.permute.xlu1 %1049  ;;  %v6314_v33 = vpop.permute.xlu0 %1047 }
 0x206   : > { %1403 = vrot.lane.b32.xlu2 %v5849_v9, %s9790_s26 }
 0x207   : > { %1344 = vrot.lane.b32.xlu1 %v5678_v34, %s9793_s27  ;;  %1285 = vrot.lane.b32.xlu0 %v5540_v37, %s9772_s28 }
 0x208   : > { %v6322_v42 = vpop.permute.xlu2 %1075 }
 0x209   : > { %10058 = vst [vmem:[#allocation202_spill] sm:$0xff] %v6322_v42  ;;  %v6324_v3 = vpop.permute.xlu1 %1055  ;;  %v6326_v2 = vpop.permute.xlu0 %1053 }
 0x20e   : > { %1228 = vrot.lane.b32.xlu2 %v5399_v61, %s9792_s23 }
 0x20f   : > { %1169 = vrot.lane.b32.xlu1 %v5291_v23, %s9794_s24  ;;  %1462 = vrot.lane.b32.xlu0 %v5987_v46, %s9791_s29 }
 0x210   : > { %v6334_v9 = vpop.permute.xlu2 %1102 }
 0x211   : > { %v6336_v34 = vpop.permute.xlu1 %1061  ;;  %v6338_v37 = vpop.permute.xlu0 %1059 }
 0x212   : > { %10059 = vst [vmem:[#allocation203_spill] sm:$0xff] %v6336_v34 }
 0x213   : > { %10060 = vst [vmem:[#allocation204_spill] sm:$0xff] %v6338_v37 }
 0x216   : > { %1405 = vrot.lane.b32.xlu2 %v5846_v15, %s9790_s26 }
 0x217   : > { %1346 = vrot.lane.b32.xlu1 %v5708_v25, %s9793_s27  ;;  %1287 = vrot.lane.b32.xlu0 %v5537_v52, %s9772_s28 }
 0x218   : > { %v6346_v61 = vpop.permute.xlu2 %1108 }
 0x219   : > { %v6348_v23 = vpop.permute.xlu1 %1067  ;;  %v6350_v46 = vpop.permute.xlu0 %1065 }
 0x21a   : > { %10061 = vst [vmem:[#allocation205_spill] sm:$0xff] %v6348_v23  ;;  %v10083_v23 = vld [vmem:[#allocation84_spill] sm:$0xff] }
 0x21b   : > { %10062 = vst [vmem:[#allocation206_spill] sm:$0xff] %v6350_v46 }
 0x21e   : > { %1230 = vrot.lane.b32.xlu2 %v5396_v11, %s9792_s23  ;;  %v10068_v11 = vld [vmem:[#allocation70_spill] sm:$0xff] }
 0x21f   : > { %1171 = vrot.lane.b32.xlu1 %v10063_v41, %s9794_s24  ;;  %1464 = vrot.lane.b32.xlu0 %v5984_v16, %s9791_s29  ;;  %v356_v41 = vld [vmem:[%s10069_s1 + $0x28] sm:$0xff] }
 0x220   : > { %v6358_v15 = vpop.permute.xlu2 %1114  ;;  %1884 = vmatpush.msra.mxu0 %v356_v41  ;;  %4485 = vmatpush.msra.mxu2 %v356_v41 }
 0x221   : > { %v6360_v25 = vpop.permute.xlu1 %1073  ;;  %v6362_v52 = vpop.permute.xlu0 %1071  ;;  %4486 = vmatpush.msra.mxu3 %v356_v41  ;;  %v10073_v41 = vld [vmem:[#allocation19_spill] sm:$0xff] }
 0x222   : > { %10064 = vst [vmem:[#allocation20_spill] sm:$0xff] %v6360_v25 }
 0x223   : > { %10065 = vst [vmem:[#allocation207_spill] sm:$0xff] %v6362_v52  ;;  %v10077_v52 = vld [vmem:[#allocation69_spill] sm:$0xff] }
 0x226   : > { %1407 = vrot.lane.b32.xlu2 %v10066_v59, %s9790_s26  ;;  %v355_v59 = vld [vmem:[%s10069_s1 + $0x20] sm:$0xff] }
 0x227   : > { %1348 = vrot.lane.b32.xlu1 %v10067_v29, %s9793_s27  ;;  %1289 = vrot.lane.b32.xlu0 %v10068_v11, %s9772_s28  ;;  %v354_v29 = vld [vmem:[%s10069_s1 + $0x18] sm:$0xff]  ;;  %v353_v11 = vld [vmem:[%s10069_s1 + $0x10] sm:$0xff]  ;;  %s9820_s28 = smov 8  }
 0x228   : > { %v6373_v16 = vpop.permute.xlu2 %1220  ;;  %1885 = vmatpush.msra.mxu0 %v355_v59  ;;  %4487 = vmatpush.msra.mxu2 %v355_v59 }
 0x229   : > { %v6375_v42 = vpop.permute.xlu1 %1079  ;;  %v6377_v58 = vpop.permute.xlu0 %1077  ;;  %4488 = vmatpush.msra.mxu3 %v355_v59 }
 0x22a   : > { %10070 = vst [vmem:[#allocation130_spill] sm:$0xff] %v6375_v42  ;;  %1886 = vmatpush.msra.mxu0 %v354_v29  ;;  %4489 = vmatpush.msra.mxu2 %v354_v29  ;;  %v10072_v42 = vld [vmem:[#allocation40_spill] sm:$0xff] }
 0x22b   : > { %10071 = vst [vmem:[#allocation100_spill] sm:$0xff] %v6377_v58  ;;  %4490 = vmatpush.msra.mxu3 %v354_v29  ;;  %v352_v58 = vld [vmem:[%s10069_s1 + $0x8] sm:$0xff] }
 0x22c   : > { %1887 = vmatpush.msra.mxu0 %v353_v11  ;;  %4491 = vmatpush.msra.mxu2 %v353_v11 }
 0x22d   : > { %4492 = vmatpush.msra.mxu3 %v353_v11  ;;  %v10078_v11 = vld [vmem:[#allocation37_spill] sm:$0xff] }
 0x22e   : > { %1232 = vrot.lane.b32.xlu2 %v10072_v42, %s9792_s23  ;;  %1888 = vmatpush.msra.mxu0 %v352_v58  ;;  %v351_v42 = vld [vmem:[%s10069_s1] sm:$0xff]  ;;  %s10374_s1 = smov 8  }
 0x22f   : > { %1173 = vrot.lane.b32.xlu1 %v10073_v41, %s9794_s24  ;;  %1466 = vrot.lane.b32.xlu0 %v6014_v36, %s9791_s29  ;;  %v10074_v36 = vld [vmem:[#allocation136_spill] sm:$0xff]  ;;  %v10075_v41 = vld [vmem:[#allocation99_spill] sm:$0xff] }
 0x230   : > { %v6397_v48 = vpop.permute.xlu2 %1397  ;;  %1889 = vmatpush.msra.mxu0 %v351_v42  ;;  %4493 = vmatpush.msra.mxu2 %v352_v58 }
 0x231   : > { %v6399_v59 = vpop.permute.xlu1 %1106  ;;  %v6401_v29 = vpop.permute.xlu0 %1104  ;;  %4494 = vmatpush.msra.mxu3 %v352_v58  ;;  %v4871_v58 = vld [vmem:[%s5083_s25] sm:$0xff] }
 0x232   : > { %4495 = vmatpush.msra.mxu2 %v351_v42 }
 0x233   : > { %4496 = vmatpush.msra.mxu3 %v351_v42  ;;  %v1514_v42 = vsel %vm9781_vm7, %v4871_v58, %v10078_v11  ;;  %v10084_v58 = vld [vmem:[#allocation133_spill] sm:$0xff] }
 0x236   : > { %1409 = vrot.lane.b32.xlu2 %v10074_v36, %s9790_s26  ;;  %v10079_v36 = vld [vmem:[#allocation26_spill] sm:$0xff] }
 0x237   : > { %1350 = vrot.lane.b32.xlu1 %v10075_v41, %s9793_s27  ;;  %1291 = vrot.lane.b32.xlu0 %v10077_v52, %s10076_s14  ;;  %v10080_v41 = vld [vmem:[#allocation66_spill] sm:$0xff]  ;;  %v10082_v52 = vld [vmem:[#allocation9_spill] sm:$0xff] }
 0x238   : > { %v6412_v27 = vpop.permute.xlu2 %1222  ;;  %v1534_v46 = vsel %vm9788_vm9, %v1514_v42, %v10080_v41  ;;  %v10085_v42 = vld [vmem:[#allocation162_spill] sm:$0xff] }
 0x239   : > { %v6414_v39 = vpop.permute.xlu1 %1112  ;;  %v6416_v25 = vpop.permute.xlu0 %1110  ;;  %v1554_v37 = vsel %vm9787_vm8, %v1534_v46, %v10083_v23 }
 0x23a   : > { %v1574_v11 = vsel %vm9786_vm10, %v1554_v37, %v10084_v58 }
 0x23e   : > { %1181 = vrot.lane.b32.xlu2 %v10079_v36, %s9794_s24 }
 0x23f   : > { %1468 = vrot.lane.b32.xlu1 %v6011_v35, %s9791_s29  ;;  %1122 = vrot.lane.b32.xlu0 %v10082_v52, %s10081_s16  ;;  %v1594_v35 = vsel %vm9785_vm12, %v1574_v11, %v10085_v42  ;;  %v10086_v52 = vld [vmem:[#allocation74_spill] sm:$0xff]  ;;  %v10088_v11 = vld [vmem:[#allocation45_spill] sm:$0xff] }
 0x240   : > { %v6431_v34 = vpop.permute.xlu2 %1399  ;;  %v1614_v41 = vsel %vm9783_vm11, %v1594_v35, %v6074_v12  ;;  %v10087_v12 = vld [vmem:[#allocation23_spill] sm:$0xff] }
 0x241   : > { %v1162_v36 = vpop.permute.xlu1 %1161  ;;  %v6435_v45 = vpop.permute.xlu0 %1116  ;;  %v1634_v23 = vsel %vm9782_vm13, %v1614_v41, %v6230_v14  ;;  %v4872_v41 = vld [vmem:[%s5083_s25 + $0x8] sm:$0xff] }
 0x242   : > { %v1654_v37 = vsel %vm9784_vm15, %v1634_v23, %v6300_v4 }
 0x243   : > { %v1674_v46 = vsel %vm9836_vm14, %v1654_v37, %v6334_v9 }
 0x244   : > { %v1694_v58 = vsel %vm9833_vm4, %v1674_v46, %v1162_v36  ;;  %v10089_v36 = vld [vmem:[#allocation43_spill] sm:$0xff]  ;;  %v10090_v46 = vld [vmem:[#allocation68_spill] sm:$0xff] }
 0x245   : > { %v1714_v9 = vsel %vm9789_vm6, %v1694_v58, %v6373_v16  ;;  %v1515_v23 = vsel %vm9781_vm7, %v4872_v41, %v10089_v36  ;;  %v10093_v16 = vld [vmem:[#allocation39_spill] sm:$0xff] }
 0x246   : > { %1299 = vrot.lane.b32.xlu2 %v10086_v52, %s10076_s14  ;;  %v10091_v52 = vld [vmem:[#allocation53_spill] sm:$0xff]  ;;  %v10094_v58 = vld [vmem:[#allocation103_spill] sm:$0xff] }
 0x247   : > { %1175 = vrot.lane.b32.xlu1 %v10087_v12, %s9794_s24  ;;  %1240 = vrot.lane.b32.xlu0 %v10088_v11, %s9792_s23  ;;  %v1535_v12 = vsel %vm9788_vm9, %v1515_v23, %v10091_v52  ;;  %v10092_v11 = vld [vmem:[#allocation112_spill] sm:$0xff] }
 0x248   : > { %v6454_v14 = vpop.permute.xlu2 %1224 }
 0x249   : > { %v1339_v42 = vpop.permute.xlu1 %1338  ;;  %v1280_v4 = vpop.permute.xlu0 %1279 }
 0x24a   : > { %v1734_v35 = vsel %vm9832_vm1, %v1714_v9, %v1280_v4  ;;  %v1555_v4 = vsel %vm9787_vm8, %v1535_v12, %v10094_v58 }
 0x24b   : > { %v1754_v37 = vsel %vm9827_vm5, %v1734_v35, %v1339_v42  ;;  %v10095_v42 = vld [vmem:[#allocation132_spill] sm:$0xff] }
 0x24c   : > { %v1575_v35 = vsel %vm9786_vm10, %v1555_v4, %v10095_v42  ;;  %v1774_v23 = vsel %vm9809_vm3, %v1754_v37, %v6397_v48  ;;  %v10097_v48 = vld [vmem:[#allocation168_spill] sm:$0xff]  ;;  %v10098_v42 = vld [vmem:[#allocation106_spill] sm:$0xff] }
 0x24e   : > { %1293 = vrot.lane.b32.xlu2 %v10090_v46, %s10076_s14  ;;  %v10096_v46 = vld [vmem:[#allocation149_spill] sm:$0xff] }
 0x24f   : > { %1358 = vrot.lane.b32.xlu1 %v10092_v11, %s9793_s27  ;;  %1234 = vrot.lane.b32.xlu0 %v10093_v16, %s9792_s23  ;;  %v1595_v52 = vsel %vm9785_vm12, %v1575_v35, %v10096_v46 }
 0x250   : > { %v1402_v9 = vpop.permute.xlu2 %1401  ;;  %v1615_v16 = vsel %vm9783_vm11, %v1595_v52, %v6152_v57  ;;  %v10099_v57 = vld [vmem:[#allocation141_spill] sm:$0xff]  ;;  %v10101_v52 = vld [vmem:[#allocation164_spill] sm:$0xff] }
 0x251   : > { %v1164_v41 = vpop.permute.xlu1 %1163  ;;  %v1457_v36 = vpop.permute.xlu0 %1456  ;;  %v1635_v12 = vsel %vm9782_vm13, %v1615_v16, %v6228_v18 }
 0x252   : > { %v1794_v11 = vsel %vm9808_vm2, %v1774_v23, %v1457_v36  ;;  %v1655_v58 = vsel %vm9784_vm15, %v1635_v12, %v6262_v56  ;;  %v10103_v12 = vld [vmem:[#allocation14_spill] sm:$0xff] }
 0x253   : > { %4461 = vmatmul.msk.f32.vlgmr.msra.gmra.mxu0 %vm9801_vm0, %v1794_v11  ;;  %v1675_v4 = vsel %vm9836_vm14, %v1655_v58, %v6401_v29  ;;  %v10100_v29 = vld [vmem:[#allocation36_spill] sm:$0xff]  ;;  %v10102_v11 = vld [vmem:[#allocation73_spill] sm:$0xff]  ;;  %v10104_v58 = vld [vmem:[#allocation135_spill] sm:$0xff] }
 0x254   : > { %v1695_v37 = vsel %vm9833_vm4, %v1675_v4, %v1164_v41  ;;  %v1516_v46 = vsel %vm9781_vm7, %v6104_v5, %v10100_v29 }
 0x255   : > { %v1715_v56 = vsel %vm9789_vm6, %v1695_v37, %v6412_v27  ;;  %v1536_v16 = vsel %vm9788_vm9, %v1516_v46, %v10102_v11  ;;  %v10105_v27 = vld [vmem:[#allocation102_spill] sm:$0xff]  ;;  %v10106_v37 = vld [vmem:[#allocation119_spill] sm:$0xff] }
 0x256   : > { %1476 = vrot.lane.b32.xlu2 %v10097_v48, %s9791_s29  ;;  %v1556_v4 = vsel %vm9787_vm8, %v1536_v16, %v10105_v27  ;;  %v10109_v16 = vld [vmem:[#allocation11_spill] sm:$0xff] }
 0x257   : > { %1352 = vrot.lane.b32.xlu1 %v10098_v42, %s9793_s27  ;;  %1417 = vrot.lane.b32.xlu0 %v10099_v57, %s9790_s26  ;;  %v1576_v5 = vsel %vm9786_vm10, %v1556_v4, %v10106_v37 }
 0x258   : > { %v1227_v35 = vpop.permute.xlu2 %1226 }
 0x259   : > { %v1341_v36 = vpop.permute.xlu1 %1340  ;;  %v1282_v18 = vpop.permute.xlu0 %1281 }
 0x25a   : > { %v1735_v23 = vsel %vm9832_vm1, %v1715_v56, %v1282_v18  ;;  %v10107_v18 = vld [vmem:[#allocation167_spill] sm:$0xff] }
 0x25b   : > { %v1755_v41 = vsel %vm9827_vm5, %v1735_v23, %v1341_v36  ;;  %v1596_v56 = vsel %vm9785_vm12, %v1576_v5, %v10107_v18  ;;  %v10112_v5 = vld [vmem:[#allocation38_spill] sm:$0xff] }
 0x25c   : > { %v1775_v36 = vsel %vm9809_vm3, %v1755_v41, %v6431_v34  ;;  %v1616_v29 = vsel %vm9783_vm11, %v1596_v56, %v6150_v51  ;;  %v10108_v34 = vld [vmem:[#allocation44_spill] sm:$0xff]  ;;  %v10110_v51 = vld [vmem:[#allocation25_spill] sm:$0xff]  ;;  %v10115_v18 = vld [vmem:[#allocation22_spill] sm:$0xff] }
 0x25d   : > { %v1636_v46 = vsel %vm9782_vm13, %v1616_v29, %v6187_v38  ;;  %v10117_v29 = vld [vmem:[#allocation139_spill] sm:$0xff] }
 0x25e   : > { %1470 = vrot.lane.b32.xlu2 %v10101_v52, %s9791_s29  ;;  %v1656_v52 = vsel %vm9784_vm15, %v1636_v46, %v6314_v33 }
 0x25f   : > { %1124 = vrot.lane.b32.xlu1 %v10103_v12, %s10081_s16  ;;  %1411 = vrot.lane.b32.xlu0 %v10104_v58, %s9790_s26  ;;  %v1676_v11 = vsel %vm9836_vm14, %v1656_v52, %v6399_v59  ;;  %v10111_v59 = vld [vmem:[#allocation42_spill] sm:$0xff] }
 0x260   : > { %v1404_v48 = vpop.permute.xlu2 %1403  ;;  %v1517_v4 = vsel %vm9781_vm7, %v6129_v8, %v10111_v59  ;;  %v10120_v59 = vld [vmem:[#allocation76_spill] sm:$0xff] }
 0x261   : > { %v1166_v42 = vpop.permute.xlu1 %1165  ;;  %v1459_v57 = vpop.permute.xlu0 %1458 }
 0x262   : > { %v1795_v23 = vsel %vm9808_vm2, %v1775_v36, %v1459_v57  ;;  %v1696_v41 = vsel %vm9833_vm4, %v1676_v11, %v1166_v42  ;;  %v10113_v42 = vld [vmem:[#allocation72_spill] sm:$0xff]  ;;  %v10114_v36 = vld [vmem:[#allocation82_spill] sm:$0xff] }
 0x263   : > { %4462 = vmatmul.msk.f32.gmra.mxu0 %vm9801_vm0, %v1795_v23  ;;  %v1716_v33 = vsel %vm9789_vm6, %v1696_v41, %v6454_v14  ;;  %v1537_v57 = vsel %vm9788_vm9, %v1517_v4, %v10113_v42  ;;  %v10116_v14 = vld [vmem:[#allocation90_spill] sm:$0xff] }
 0x264   : > { %v1557_v56 = vsel %vm9787_vm8, %v1537_v57, %v10116_v14  ;;  %v10122_v42 = vld [vmem:[#allocation30_spill] sm:$0xff] }
 0x265   : > { %v1577_v8 = vsel %vm9786_vm10, %v1557_v56, %v10117_v29  ;;  %v10125_v56 = vld [vmem:[#allocation176_spill] sm:$0xff]  ;;  %v10126_v29 = vld [vmem:[#allocation105_spill] sm:$0xff] }
 0x266   : > { %1242 = vrot.lane.b32.xlu2 %v10108_v34, %s9792_s23  ;;  %v10118_v34 = vld [vmem:[#allocation166_spill] sm:$0xff] }
 0x267   : > { %1118 = vrot.lane.b32.xlu1 %v10109_v16, %s10081_s16  ;;  %1183 = vrot.lane.b32.xlu0 %v10110_v51, %s9794_s24  ;;  %v1597_v41 = vsel %vm9785_vm12, %v1577_v8, %v10118_v34 }
 0x268   : > { %v1229_v12 = vpop.permute.xlu2 %1228  ;;  %v1617_v51 = vsel %vm9783_vm11, %v1597_v41, %v6097_v1  ;;  %v10121_v1 = vld [vmem:[#allocation111_spill] sm:$0xff] }
 0x269   : > { %v1343_v58 = vpop.permute.xlu1 %1342  ;;  %v1284_v38 = vpop.permute.xlu0 %1283 }
 0x26a   : > { %v1736_v27 = vsel %vm9832_vm1, %v1716_v33, %v1284_v38 }
 0x26b   : > { %v1756_v37 = vsel %vm9827_vm5, %v1736_v27, %v1343_v58  ;;  %v1637_v58 = vsel %vm9782_vm13, %v1617_v51, %v6242_v28 }
 0x26c   : > { %v1776_v11 = vsel %vm9809_vm3, %v1756_v37, %v1402_v9  ;;  %v1657_v38 = vsel %vm9784_vm15, %v1637_v58, %v6312_v53  ;;  %v10119_v9 = vld [vmem:[#allocation140_spill] sm:$0xff] }
 0x26d   : > { %v1677_v33 = vsel %vm9836_vm14, %v1657_v38, %v6346_v61  ;;  %v1518_v61 = vsel %vm9781_vm7, %v6124_v7, %v10122_v42 }
 0x26e   : > { %1236 = vrot.lane.b32.xlu2 %v10112_v5, %s9792_s23 }
 0x26f   : > { %1301 = vrot.lane.b32.xlu1 %v10114_v36, %s10076_s14  ;;  %1177 = vrot.lane.b32.xlu0 %v10115_v18, %s9794_s24  ;;  %v10123_v36 = vld [vmem:[#allocation134_spill] sm:$0xff]  ;;  %v10124_v18 = vld [vmem:[#allocation59_spill] sm:$0xff] }
 0x270   : > { %v1406_v23 = vpop.permute.xlu2 %1405  ;;  %v1538_v14 = vsel %vm9788_vm9, %v1518_v61, %v10124_v18  ;;  %v10134_v61 = vld [vmem:[#allocation21_spill] sm:$0xff]  ;;  %v10136_v18 = vld [vmem:[#allocation52_spill] sm:$0xff] }
 0x271   : > { %v1168_v46 = vpop.permute.xlu1 %1167  ;;  %v1461_v52 = vpop.permute.xlu0 %1460 }
 0x272   : > { %v1796_v16 = vsel %vm9808_vm2, %v1776_v11, %v1461_v52  ;;  %v1697_v27 = vsel %vm9833_vm4, %v1677_v33, %v1168_v46  ;;  %v10128_v52 = vld [vmem:[#allocation138_spill] sm:$0xff] }
 0x273   : > { %4463 = vmatmul.msk.f32.gmra.mxu0 %vm9801_vm0, %v1796_v16  ;;  %v1717_v5 = vsel %vm9789_vm6, %v1697_v27, %v1227_v35  ;;  %v10127_v35 = vld [vmem:[#allocation109_spill] sm:$0xff]  ;;  %v10129_v16 = vld [vmem:[#allocation155_spill] sm:$0xff] }
 0x274   : > { %v1558_v8 = vsel %vm9787_vm8, %v1538_v14, %v10127_v35  ;;  %v10137_v14 = vld [vmem:[#allocation10_spill] sm:$0xff]  ;;  %v10139_v35 = vld [vmem:[#allocation124_spill] sm:$0xff] }
 0x275   : > { %v1578_v7 = vsel %vm9786_vm10, %v1558_v8, %v10128_v52 }
 0x276   : > { %1419 = vrot.lane.b32.xlu2 %v10119_v9, %s9790_s26  ;;  %v1598_v51 = vsel %vm9785_vm12, %v1578_v7, %v10129_v16 }
 0x277   : > { %1295 = vrot.lane.b32.xlu1 %v10120_v59, %s10076_s14  ;;  %1360 = vrot.lane.b32.xlu0 %v10121_v1, %s9793_s27  ;;  %v1618_v38 = vsel %vm9783_vm11, %v1598_v51, %v6167_v0  ;;  %v10131_v1 = vld [vmem:[#allocation170_spill] sm:$0xff]  ;;  %v10132_v0 = vld [vmem:[#allocation13_spill] sm:$0xff] }
 0x278   : > { %v1231_v4 = vpop.permute.xlu2 %1230  ;;  %v1638_v33 = vsel %vm9782_vm13, %v1618_v38, %v6240_v17 }
 0x279   : > { %v1345_v37 = vpop.permute.xlu1 %1344  ;;  %v1286_v28 = vpop.permute.xlu0 %1285  ;;  %v1658_v9 = vsel %vm9784_vm15, %v1638_v33, %v6274_v6 }
 0x27a   : > { %v1737_v53 = vsel %vm9832_vm1, %v1717_v5, %v1286_v28  ;;  %v1678_v27 = vsel %vm9836_vm14, %v1658_v9, %v6416_v25  ;;  %v10142_v9 = vld [vmem:[#allocation46_spill] sm:$0xff] }
 0x27b   : > { %v1757_v57 = vsel %vm9827_vm5, %v1737_v53, %v1345_v37  ;;  %v10133_v53 = vld [vmem:[#allocation33_spill] sm:$0xff] }
 0x27c   : > { %v1777_v41 = vsel %vm9809_vm3, %v1757_v57, %v1404_v48  ;;  %v10130_v48 = vld [vmem:[#allocation24_spill] sm:$0xff]  ;;  %v1519_v25 = vsel %vm9781_vm7, %v6119_v54, %v10133_v53  ;;  %v10135_v57 = vld [vmem:[#allocation79_spill] sm:$0xff] }
 0x27d   : > { %v10148_v53 = vld [vmem:[#allocation75_spill] sm:$0xff] }
 0x27e   : > { %1413 = vrot.lane.b32.xlu2 %v10123_v36, %s9790_s26  ;;  %v1539_v36 = vsel %vm9788_vm9, %v1519_v25, %v10135_v57 }
 0x27f   : > { %1478 = vrot.lane.b32.xlu1 %v10125_v56, %s9791_s29  ;;  %1354 = vrot.lane.b32.xlu0 %v10126_v29, %s9793_s27 }
 0x280   : > { %v1408_v46 = vpop.permute.xlu2 %1407 }
 0x281   : > { %v1170_v11 = vpop.permute.xlu1 %1169  ;;  %v1463_v34 = vpop.permute.xlu0 %1462 }
 0x282   : > { %v1797_v58 = vsel %vm9808_vm2, %v1777_v41, %v1463_v34  ;;  %v1698_v59 = vsel %vm9833_vm4, %v1678_v27, %v1170_v11  ;;  %v10140_v11 = vld [vmem:[#allocation173_spill] sm:$0xff] }
 0x283   : > { %4464 = vmatmul.msk.f32.gmra.mxu0 %vm9801_vm0, %v1797_v58  ;;  %v1718_v5 = vsel %vm9789_vm6, %v1698_v59, %v1229_v12  ;;  %v10138_v12 = vld [vmem:[#allocation108_spill] sm:$0xff] }
 0x284   : > { %v1559_v56 = vsel %vm9787_vm8, %v1539_v36, %v10138_v12 }
 0x285   : > { %v1579_v54 = vsel %vm9786_vm10, %v1559_v56, %v10139_v35  ;;  %v10152_v35 = vld [vmem:[#allocation185_spill] sm:$0xff] }
 0x286   : > { %1185 = vrot.lane.b32.xlu2 %v10130_v48, %s9794_s24  ;;  %v1599_v34 = vsel %vm9785_vm12, %v1579_v54, %v10140_v11 }
 0x287   : > { %1472 = vrot.lane.b32.xlu1 %v10131_v1, %s9791_s29  ;;  %1126 = vrot.lane.b32.xlu0 %v10132_v0, %s10081_s16  ;;  %v1619_v16 = vsel %vm9783_vm11, %v1599_v34, %v6165_v62  ;;  %v10143_v62 = vld [vmem:[#allocation81_spill] sm:$0xff]  ;;  %v10154_v34 = vld [vmem:[#allocation142_spill] sm:$0xff] }
 0x288   : > { %v1233_v37 = vpop.permute.xlu2 %1232  ;;  %v1639_v51 = vsel %vm9782_vm13, %v1619_v16, %v6202_v47 }
 0x289   : > { %v1347_v28 = vpop.permute.xlu1 %1346  ;;  %v1288_v17 = vpop.permute.xlu0 %1287  ;;  %v1659_v58 = vsel %vm9784_vm15, %v1639_v51, %v6326_v2 }
 0x28a   : > { %v1738_v6 = vsel %vm9832_vm1, %v1718_v5, %v1288_v17  ;;  %v1679_v38 = vsel %vm9836_vm14, %v1659_v58, %v6414_v39  ;;  %v10144_v39 = vld [vmem:[#allocation49_spill] sm:$0xff]  ;;  %v10146_v17 = vld [vmem:[#allocation78_spill] sm:$0xff] }
 0x28b   : > { %v1758_v42 = vsel %vm9827_vm5, %v1738_v6, %v1347_v28  ;;  %v1520_v1 = vsel %vm9781_vm7, %v6144_v21, %v10144_v39  ;;  %v10145_v28 = vld [vmem:[#allocation104_spill] sm:$0xff]  ;;  %v10150_v21 = vld [vmem:[#allocation145_spill] sm:$0xff] }
 0x28c   : > { %v1778_v7 = vsel %vm9809_vm3, %v1758_v42, %v1406_v23  ;;  %v10141_v23 = vld [vmem:[#allocation110_spill] sm:$0xff]  ;;  %v1540_v5 = vsel %vm9788_vm9, %v1520_v1, %v10146_v17  ;;  %v10147_v6 = vld [vmem:[#allocation148_spill] sm:$0xff] }
 0x28d   : > { %v10161_v39 = vld [vmem:[#allocation80_spill] sm:$0xff] }
 0x28e   : > { %1179 = vrot.lane.b32.xlu2 %v10134_v61, %s9794_s24 }
 0x28f   : > { %1244 = vrot.lane.b32.xlu1 %v10136_v18, %s9792_s23  ;;  %1120 = vrot.lane.b32.xlu0 %v10137_v14, %s10081_s16  ;;  %v10151_v14 = vld [vmem:[#allocation172_spill] sm:$0xff] }
 0x290   : > { %v1410_v29 = vpop.permute.xlu2 %1409 }
 0x291   : > { %v1172_v8 = vpop.permute.xlu1 %1171  ;;  %v1465_v52 = vpop.permute.xlu0 %1464 }
 0x292   : > { %v1798_v41 = vsel %vm9808_vm2, %v1778_v7, %v1465_v52  ;;  %v1699_v33 = vsel %vm9833_vm4, %v1679_v38, %v1172_v8  ;;  %v10156_v38 = vld [vmem:[#allocation51_spill] sm:$0xff] }
 0x293   : > { %4465 = vmatmul.msk.f32.gmra.mxu0 %vm9801_vm0, %v1798_v41  ;;  %v1719_v2 = vsel %vm9789_vm6, %v1699_v33, %v1231_v4  ;;  %v10149_v4 = vld [vmem:[#allocation93_spill] sm:$0xff]  ;;  %v10155_v41 = vld [vmem:[#allocation175_spill] sm:$0xff] }
 0x294   : > { %v1560_v25 = vsel %vm9787_vm8, %v1540_v5, %v10149_v4  ;;  %v10158_v33 = vld [vmem:[#allocation169_spill] sm:$0xff]  ;;  %v10164_v4 = vld [vmem:[#allocation122_spill] sm:$0xff] }
 0x295   : > { %v1580_v61 = vsel %vm9786_vm10, %v1560_v25, %v10150_v21  ;;  %v10165_v21 = vld [vmem:[#allocation151_spill] sm:$0xff] }
 0x296   : > { %1362 = vrot.lane.b32.xlu2 %v10141_v23, %s9793_s27  ;;  %v1600_v12 = vsel %vm9785_vm12, %v1580_v61, %v10151_v14  ;;  %v10157_v23 = vld [vmem:[#allocation29_spill] sm:$0xff]  ;;  %v10167_v14 = vld [vmem:[#allocation58_spill] sm:$0xff] }
 0x297   : > { %1238 = vrot.lane.b32.xlu1 %v10142_v9, %s9792_s23  ;;  %1303 = vrot.lane.b32.xlu0 %v10143_v62, %s10076_s14  ;;  %v1620_v54 = vsel %vm9783_vm11, %v1600_v12, %v10152_v35  ;;  %v10169_v35 = vld [vmem:[#allocation27_spill] sm:$0xff] }
 0x298   : > { %v6651_v27 = vpop.permute.xlu2 %1181  ;;  %v1640_v8 = vsel %vm9782_vm13, %v1620_v54, %v6254_v32 }
 0x299   : > { %v1349_v47 = vpop.permute.xlu1 %1348  ;;  %v1290_v48 = vpop.permute.xlu0 %1289  ;;  %v1660_v52 = vsel %vm9784_vm15, %v1640_v8, %v6324_v3 }
 0x29a   : > { %v1739_v59 = vsel %vm9832_vm1, %v1719_v2, %v1290_v48  ;;  %v1680_v7 = vsel %vm9836_vm14, %v1660_v52, %v6358_v15  ;;  %v10159_v2 = vld [vmem:[#allocation118_spill] sm:$0xff] }
 0x29b   : > { %v1759_v0 = vsel %vm9827_vm5, %v1739_v59, %v1349_v47  ;;  %v10160_v59 = vld [vmem:[#allocation17_spill] sm:$0xff] }
 0x29c   : > { %v1779_v18 = vsel %vm9809_vm3, %v1759_v0, %v1408_v46  ;;  %v10153_v46 = vld [vmem:[#allocation12_spill] sm:$0xff]  ;;  %v4873_v0 = vld [vmem:[%s5083_s25 + $0x50] sm:$0xff] }
 0x29e   : > { %1356 = vrot.lane.b32.xlu2 %v10145_v28, %s9793_s27  ;;  %v10162_v28 = vld [vmem:[#allocation55_spill] sm:$0xff] }
 0x29f   : > { %1421 = vrot.lane.b32.xlu1 %v10147_v6, %s9790_s26  ;;  %1297 = vrot.lane.b32.xlu0 %v10148_v53, %s10076_s14  ;;  %v1524_v17 = vsel %vm9781_vm7, %v4873_v0, %v10162_v28  ;;  %v10163_v6 = vld [vmem:[#allocation65_spill] sm:$0xff] }
 0x2a0   : > { %v6669_v42 = vpop.permute.xlu2 %1299  ;;  %v1544_v53 = vsel %vm9788_vm9, %v1524_v17, %v10163_v6  ;;  %v10178_v6 = vld [vmem:[#allocation34_spill] sm:$0xff] }
 0x2a1   : > { %v1174_v57 = vpop.permute.xlu1 %1173  ;;  %v1467_v36 = vpop.permute.xlu0 %1466  ;;  %v1564_v25 = vsel %vm9787_vm8, %v1544_v53, %v10164_v4 }
 0x2a2   : > { %v1799_v56 = vsel %vm9808_vm2, %v1779_v18, %v1467_v36  ;;  %v1700_v11 = vsel %vm9833_vm4, %v1680_v7, %v1174_v57  ;;  %v1584_v61 = vsel %vm9786_vm10, %v1564_v25, %v10165_v21  ;;  %v10166_v57 = vld [vmem:[#allocation161_spill] sm:$0xff]  ;;  %v4876_v25 = vld [vmem:[%s5083_s25 + $0x58] sm:$0xff] }
 0x2a3   : > { %4466 = vmatmul.msk.f32.gmra.mxu0 %vm9801_vm0, %v1799_v56  ;;  %v1720_v3 = vsel %vm9789_vm6, %v1700_v11, %v1233_v37  ;;  %v1604_v36 = vsel %vm9785_vm12, %v1584_v61, %v10166_v57  ;;  %v10168_v56 = vld [vmem:[#allocation147_spill] sm:$0xff]  ;;  %v10170_v11 = vld [vmem:[#allocation48_spill] sm:$0xff] }
 0x2a4   : > { %v1624_v18 = vsel %vm9783_vm11, %v1604_v36, %v6191_v30  ;;  %v4877_v61 = vld [vmem:[%s5083_s25 + $0x68] sm:$0xff] }
 0x2a5   : > { %v1644_v12 = vsel %vm9782_vm13, %v1624_v18, %v6264_v44  ;;  %v10171_v44 = vld [vmem:[#allocation62_spill] sm:$0xff]  ;;  %v10182_v57 = vld [vmem:[#allocation60_spill] sm:$0xff] }
 0x2a6   : > { %1128 = vrot.lane.b32.xlu2 %v10153_v46, %s10081_s16  ;;  %v1664_v54 = vsel %vm9784_vm15, %v1644_v12, %v6298_v60  ;;  %v4874_v46 = vld [vmem:[%s5083_s25 + $0x38] sm:$0xff]  ;;  %v1527_v36 = vsel %vm9781_vm7, %v4877_v61, %v10182_v57  ;;  %v4878_v18 = vld [vmem:[%s5083_s25 + $0x60] sm:$0xff] }
 0x2a7   : > { %1415 = vrot.lane.b32.xlu1 %v10154_v34, %s9790_s26  ;;  %1480 = vrot.lane.b32.xlu0 %v10155_v41, %s9791_s29  ;;  %v1521_v34 = vsel %vm9781_vm7, %v4874_v46, %v10170_v11  ;;  %v10187_v46 = vld [vmem:[#allocation85_spill] sm:$0xff]  ;;  %v10188_v11 = vld [vmem:[#allocation28_spill] sm:$0xff] }
 0x2a8   : > { %v6693_v16 = vpop.permute.xlu2 %1293  ;;  %v1541_v41 = vsel %vm9788_vm9, %v1521_v34, %v10171_v44  ;;  %v10189_v34 = vld [vmem:[#allocation116_spill] sm:$0xff]  ;;  %v10190_v44 = vld [vmem:[#allocation86_spill] sm:$0xff] }
 0x2a9   : > { %v1351_v32 = vpop.permute.xlu1 %1350  ;;  %v1292_v51 = vpop.permute.xlu0 %1291  ;;  %v10202_v61 = vld [vmem:[#allocation152_spill] sm:$0xff] }
 0x2aa   : > { %v1740_v15 = vsel %vm9832_vm1, %v1720_v3, %v1292_v51  ;;  %v10172_v51 = vld [vmem:[#allocation115_spill] sm:$0xff] }
 0x2ab   : > { %v1760_v58 = vsel %vm9827_vm5, %v1740_v15, %v1351_v32  ;;  %v1561_v3 = vsel %vm9787_vm8, %v1541_v41, %v10172_v51  ;;  %v10173_v15 = vld [vmem:[#allocation144_spill] sm:$0xff] }
 0x2ac   : > { %v1780_v48 = vsel %vm9809_vm3, %v1760_v58, %v1410_v29  ;;  %v1581_v58 = vsel %vm9786_vm10, %v1561_v3, %v10173_v15  ;;  %v10192_v3 = vld [vmem:[#allocation92_spill] sm:$0xff] }
 0x2ae   : > { %1246 = vrot.lane.b32.xlu2 %v10156_v38, %s9792_s23  ;;  %v10174_v38 = vld [vmem:[#allocation18_spill] sm:$0xff] }
 0x2af   : > { %1187 = vrot.lane.b32.xlu1 %v10157_v23, %s9794_s24  ;;  %1474 = vrot.lane.b32.xlu0 %v10158_v33, %s9791_s29  ;;  %v10175_v23 = vld [vmem:[#allocation158_spill] sm:$0xff] }
 0x2b0   : > { %v1477_v9 = vpop.permute.xlu2 %1476  ;;  %v1601_v33 = vsel %vm9785_vm12, %v1581_v58, %v10175_v23  ;;  %v10193_v23 = vld [vmem:[#allocation94_spill] sm:$0xff] }
 0x2b1   : > { %v1469_v62 = vpop.permute.xlu1 %1468  ;;  %v1123_v47 = vpop.permute.xlu0 %1122 }
 0x2b2   : > { %v1800_v37 = vsel %vm9808_vm2, %v1780_v48, %v1469_v62  ;;  %v1684_v52 = vsel %vm9836_vm14, %v1664_v54, %v1123_v47  ;;  %v10176_v62 = vld [vmem:[#allocation88_spill] sm:$0xff]  ;;  %v1621_v47 = vsel %vm9783_vm11, %v1601_v33, %v6179_v43 }
 0x2b3   : > { %4467 = vmatmul.msk.f32.gmra.mxu0 %vm9801_vm0, %v1800_v37  ;;  %v1704_v32 = vsel %vm9833_vm4, %v1684_v52, %v6651_v27  ;;  %v10177_v27 = vld [vmem:[#allocation174_spill] sm:$0xff]  ;;  %v10185_v54 = vld [vmem:[#allocation64_spill] sm:$0xff] }
 0x2b6   : > { %1364 = vrot.lane.b32.xlu2 %v10159_v2, %s9793_s27  ;;  %v1641_v2 = vsel %vm9782_vm13, %v1621_v47, %v6252_v26  ;;  %v4875_v26 = vld [vmem:[%s5083_s25 + $0x40] sm:$0xff] }
 0x2b7   : > { %1132 = vrot.lane.b32.xlu1 %v10160_v59, %s10081_s16  ;;  %1305 = vrot.lane.b32.xlu0 %v10161_v39, %s10076_s14  ;;  %v1661_v28 = vsel %vm9784_vm15, %v1641_v2, %v6286_v24  ;;  %v1522_v53 = vsel %vm9781_vm7, %v4875_v26, %v10178_v6  ;;  %v6785_v24 = vld [vmem:[%s10179_s2] ss:$0 sm:$0xff]  ;;  %v10198_v26 = vld [vmem:[#allocation121_spill] sm:$0xff] }
 0x2b8   : > { %v6713_v1 = vpop.permute.xlu2 %1470  ;;  %v1542_v41 = vsel %vm9788_vm9, %v1522_v53, %v10190_v44 }
 0x2b9   : > { %v1176_v29 = vpop.permute.xlu1 %1175  ;;  %v1241_v5 = vpop.permute.xlu0 %1240 }
 0x2ba   : > { %v1724_v60 = vsel %vm9789_vm6, %v1704_v32, %v1241_v5  ;;  %v10191_v32 = vld [vmem:[#allocation91_spill] sm:$0xff] }
 0x2bb   : > { %v1744_v48 = vsel %vm9832_vm1, %v1724_v60, %v6669_v42  ;;  %v1681_v42 = vsel %vm9836_vm14, %v1661_v28, %v6435_v45  ;;  %v10180_v45 = vld [vmem:[#allocation35_spill] sm:$0xff] }
 0x2bc   : > { %v1701_v5 = vsel %vm9833_vm4, %v1681_v42, %v1176_v29  ;;  %v1525_v21 = vsel %vm9781_vm7, %v4876_v25, %v10180_v45  ;;  %v10200_v45 = vld [vmem:[#allocation127_spill] sm:$0xff] }
 0x2bd   : > { %v1545_v60 = vsel %vm9788_vm9, %v1525_v21, %v10192_v3 }
 0x2be   : > { %1250 = vrot.lane.b32.xlu2 %v10167_v14, %s9792_s23  ;;  %v10183_v14 = vld [vmem:[#allocation61_spill] sm:$0xff] }
 0x2bf   : > { %1423 = vrot.lane.b32.xlu1 %v10168_v56, %s9790_s26  ;;  %1191 = vrot.lane.b32.xlu0 %v10169_v35, %s9794_s24  ;;  %v1526_v12 = vsel %vm9781_vm7, %v4878_v18, %v10183_v14  ;;  %v10184_v56 = vld [vmem:[#allocation154_spill] sm:$0xff] }
 0x2c0   : > { %v6738_v8 = vpop.permute.xlu2 %1242  ;;  %v4879_v35 = vld [vmem:[%s5083_s25 + $0x78] sm:$0xff]  ;;  %v1546_v51 = vsel %vm9788_vm9, %v1526_v12, %v10191_v32  ;;  %v10208_v32 = vld [vmem:[#allocation181_spill] sm:$0xff] }
 0x2c1   : > { %v1359_v30 = vpop.permute.xlu1 %1358  ;;  %v1235_v7 = vpop.permute.xlu0 %1234  ;;  %v1529_v52 = vsel %vm9781_vm7, %v4879_v35, %v10185_v54  ;;  %v10204_v35 = vld [vmem:[#allocation157_spill] sm:$0xff] }
 0x2c2   : > { %v1764_v59 = vsel %vm9827_vm5, %v1744_v48, %v1359_v30  ;;  %v1721_v4 = vsel %vm9789_vm6, %v1701_v5, %v1235_v7  ;;  %v10186_v30 = vld [vmem:[#allocation71_spill] sm:$0xff]  ;;  %v1549_v33 = vsel %vm9788_vm9, %v1529_v52, %v10193_v23  ;;  %v10205_v52 = vld [vmem:[#allocation160_spill] sm:$0xff] }
 0x2c3   : > { %v1547_v7 = vsel %vm9788_vm9, %v1527_v36, %v10186_v30  ;;  %v1741_v15 = vsel %vm9832_vm1, %v1721_v4, %v6693_v16  ;;  %v10196_v16 = vld [vmem:[#allocation107_spill] sm:$0xff]  ;;  %v10199_v4 = vld [vmem:[#allocation126_spill] sm:$0xff] }
 0x2c4   : > { %v1567_v25 = vsel %vm9787_vm8, %v1547_v7, %v10199_v4 }
 0x2c6   : > { %1130 = vrot.lane.b32.xlu2 %v10174_v38, %s10081_s16 }
 0x2c7   : > { %1309 = vrot.lane.b32.xlu1 %v10176_v62, %s10076_s14  ;;  %1482 = vrot.lane.b32.xlu0 %v10177_v27, %s9791_s29  ;;  %v10194_v62 = vld [vmem:[#allocation96_spill] sm:$0xff] }
 0x2c8   : > { %v6765_v37 = vpop.permute.xlu2 %1236 }
 0x2c9   : > { %v1353_v39 = vpop.permute.xlu1 %1352  ;;  %v1418_v0 = vpop.permute.xlu0 %1417 }
 0x2ca   : > { %v1784_v43 = vsel %vm9809_vm3, %v1764_v59, %v1418_v0  ;;  %v1761_v47 = vsel %vm9827_vm5, %v1741_v15, %v1353_v39  ;;  %v10195_v0 = vld [vmem:[#allocation101_spill] sm:$0xff]  ;;  %v1565_v39 = vsel %vm9787_vm8, %v1545_v60, %v10198_v26 }
 0x2cb   : > { %v1804_v17 = vsel %vm9808_vm2, %v1784_v43, %v1477_v9  ;;  %v10181_v9 = vld [vmem:[#allocation56_spill] sm:$0xff]  ;;  %v1566_v28 = vsel %vm9787_vm8, %v1546_v51, %v10195_v0  ;;  %v1569_v43 = vsel %vm9787_vm8, %v1549_v33, %v10196_v16  ;;  %v10209_v51 = vld [vmem:[#allocation50_spill] sm:$0xff] }
 0x2cc   : > { %4471 = vmatmul.msk.f32.vlgmr.msra.gmra.mxu2 %vm9801_vm0, %v1804_v17  ;;  %v1523_v29 = vsel %vm9781_vm7, %v6159_v20, %v10181_v9  ;;  %vm9845_vm7 = vcmask 58368   ;;  %v10197_v17 = vld [vmem:[#allocation114_spill] sm:$0xff]  ;;  %v10201_v9 = vld [vmem:[#allocation131_spill] sm:$0xff]  ;;  %v1586_v54 = vsel %vm9786_vm10, %v1566_v28, %v10204_v35  ;;  %v1589_v30 = vsel %vm9786_vm10, %v1569_v43, %v10205_v52  ;;  %v10213_v0 = vld [vmem:[#allocation184_spill] sm:$0xff] }
 0x2cd   : > { %v1543_v20 = vsel %vm9788_vm9, %v1523_v29, %v10187_v46  ;;  %v1562_v5 = vsel %vm9787_vm8, %v1542_v41, %v10197_v17  ;;  %v1585_v29 = vsel %vm9786_vm10, %v1565_v39, %v10201_v9  ;;  %v10206_v46 = vld [vmem:[#allocation89_spill] sm:$0xff]  ;;  %v10210_v33 = vld [vmem:[#allocation178_spill] sm:$0xff]  ;;  %vm10242_vm9 = vcmask 1045504  }
 0x2ce   : > { %1427 = vrot.lane.b32.xlu2 %v10184_v56, %s9790_s26  ;;  %v1563_v27 = vsel %vm9787_vm8, %v1543_v20, %v10194_v62  ;;  %v1582_v21 = vsel %vm9786_vm10, %v1562_v5, %v10200_v45  ;;  %v10207_v20 = vld [vmem:[#allocation165_spill] sm:$0xff]  ;;  %v1605_v28 = vsel %vm9785_vm12, %v1585_v29, %v10213_v0  ;;  %v10214_v39 = vld [vmem:[#allocation186_spill] sm:$0xff]  ;;  %vm9849_vm8 = vcmask 1044484  }
 0x2cf   : > { %1189 = vrot.lane.b32.xlu1 %v10188_v11, %s9794_s24  ;;  %1368 = vrot.lane.b32.xlu0 %v10189_v34, %s9793_s27  ;;  %v1583_v57 = vsel %vm9786_vm10, %v1563_v27, %v10202_v61  ;;  %v10211_v27 = vld [vmem:[#allocation179_spill] sm:$0xff] }
 0x2d0   : > { %v1891_v58 = vpop.f32.mrf.mxu0  ;;  %v6820_v38 = vpop.permute.xlu2 %1419  ;;  %v1603_v62 = vsel %vm9785_vm12, %v1583_v57, %v10210_v33 }
 0x2d1   : > { %v1892_v48 = vadd.f32 %v6785_v24, %v1891_v58  ;;  %v6828_v2 = vpop.permute.xlu1 %1124  ;;  %v1412_v59 = vpop.permute.xlu0 %1411 }
 0x2d2   : > { %v1781_v42 = vsel %vm9809_vm3, %v1761_v47, %v1412_v59  ;;  %v1602_v47 = vsel %vm9785_vm12, %v1582_v21, %v10211_v27 }
 0x2d3   : > { %v1947_v6 = vmax.f32 %v1892_v48, 0.0  ;;  %v1801_v53 = vsel %vm9808_vm2, %v1781_v42, %v6713_v1  ;;  %v10203_v1 = vld [vmem:[#allocation156_spill] sm:$0xff]  ;;  %v10212_v48 = vld [vmem:[#allocation183_spill] sm:$0xff]  ;;  %v1622_v21 = vsel %vm9783_vm11, %v1602_v47, %v6177_v31 }
 0x2d4   : > { %4468 = vmatmul.msk.f32.gmra.mxu0 %vm9801_vm0, %v1801_v53  ;;  %v1587_v56 = vsel %vm9786_vm10, %v1567_v25, %v10203_v1  ;;  %v1606_v59 = vsel %vm9785_vm12, %v1586_v54, %v10212_v48  ;;  %v10215_v53 = vld [vmem:[#allocation188_spill] sm:$0xff]  ;;  %v10216_v25 = vld [vmem:[#allocation191_spill] sm:$0xff]  ;;  %vm10233_vm10 = vcmask 1044480  }
 0x2d5   : > { %v1983_v36 = vrot.slane %v1947_v6, 2  ;;  %v1984_v18 = vrot.slane %v1947_v6, 4  ;;  %v1985_v14 = vrot.slane %v1947_v6, 6  ;;  %v2092_v12 = vsel %vm9845_vm7, %v1947_v6, -inf  ;;  %v10217_v54 = vld [vmem:[#allocation32_spill] sm:$0xff] }
 0x2d6   : > { %v2093_v7 = vrot.slane %v2092_v12, 4  ;;  %1307 = vrot.lane.b32.xlu2 %v10206_v46, %s10076_s14  ;;  %v1607_v11 = vsel %vm9785_vm12, %v1587_v56, %v10207_v20  ;;  %v1609_v6 = vsel %vm9785_vm12, %v1589_v30, %v10214_v39  ;;  %v1623_v4 = vsel %vm9783_vm11, %v1603_v62, %v10215_v53  ;;  %v10225_v62 = vld [vmem:[#allocation20_spill] sm:$0xff] }
 0x2d7   : > { %v2099_v34 = vsel %vm9845_vm7, %v1983_v36, -inf  ;;  %v2106_v44 = vsel %vm9845_vm7, %v1984_v18, -inf  ;;  %v2113_v41 = vsel %vm9845_vm7, %v1985_v14, -inf  ;;  %1486 = vrot.lane.b32.xlu1 %v10208_v32, %s9791_s29  ;;  %1248 = vrot.lane.b32.xlu0 %v10209_v51, %s9792_s23  ;;  %v1626_v45 = vsel %vm9783_vm11, %v1606_v59, %v10216_v25  ;;  %v10223_v51 = vld [vmem:[#allocation205_spill] sm:$0xff]  ;;  %v6942_v25 = vld [vmem:[%s5083_s25 + $0x98] sm:$0xff] }
 0x2d8   : > { %v2094_v3 = vmax.f32 %v2092_v12, %v2093_v7  ;;  %v2100_v60 = vrot.slane %v2099_v34, 4  ;;  %v2107_v15 = vrot.slane %v2106_v44, 4  ;;  %v2114_v58 = vrot.slane %v2113_v41, 4  ;;  %v6868_v23 = vpop.permute.xlu2 %1413 }
 0x2d9   : > { %v6878_v16 = vpop.permute.xlu1 %1118  ;;  %v1184_v43 = vpop.permute.xlu0 %1183  ;;  %v1629_v36 = vsel %vm9783_vm11, %v1609_v6, %v6163_v22  ;;  %v1625_v18 = vsel %vm9783_vm11, %v1605_v28, %v6189_v40  ;;  %v1627_v14 = vsel %vm9783_vm11, %v1607_v11, %v6206_v49  ;;  %v1642_v12 = vsel %vm9782_vm13, %v1622_v21, %v6214_v19  ;;  %v10218_v19 = vld [vmem:[#allocation117_spill] sm:$0xff] }
 0x2da   : > { %v2095_v42 = vrot.slane %v2094_v3, 2  ;;  %v2101_v17 = vmax.f32 %v2099_v34, %v2100_v60  ;;  %v2108_v5 = vmax.f32 %v2106_v44, %v2107_v15  ;;  %v2115_v26 = vmax.f32 %v2113_v41, %v2114_v58  ;;  %v10224_v60 = vld [vmem:[#allocation206_spill] sm:$0xff] }
 0x2db   : > { %v1645_v1 = vsel %vm9782_vm13, %v1625_v18, %v6226_v13  ;;  %v1643_v31 = vsel %vm9782_vm13, %v1623_v4, %v6266_v63  ;;  %v1647_v22 = vsel %vm9782_vm13, %v1627_v14, %v6276_v10  ;;  %v1646_v40 = vsel %vm9782_vm13, %v1626_v45, %v6278_v50  ;;  %v10219_v13 = vld [vmem:[#allocation16_spill] sm:$0xff]  ;;  %v10220_v63 = vld [vmem:[#allocation201_spill] sm:$0xff]  ;;  %v10221_v50 = vld [vmem:[#allocation203_spill] sm:$0xff] }
 0x2dc   : > { %v2096_v9 = vmax.f32 %v2094_v3, %v2095_v42  ;;  %v2102_v29 = vrot.slane %v2101_v17, 2  ;;  %v2109_v61 = vrot.slane %v2108_v5, 2  ;;  %v2116_v57 = vrot.slane %v2115_v26, 2  ;;  %v10226_v42 = vld [vmem:[#allocation193_spill] sm:$0xff]  ;;  %v10227_v45 = vld [vmem:[#allocation182_spill] sm:$0xff] }
 0x2dd   : > { %v1649_v49 = vsel %vm9782_vm13, %v1629_v36, %v6290_v55  ;;  %v6914_v52 = vsel %vm9784_vm15, %v1647_v22, %v10220_v63  ;;  %v6920_v11 = vsel %vm9784_vm15, %v1643_v31, %v10221_v50  ;;  %v10222_v55 = vld [vmem:[#allocation204_spill] sm:$0xff]  ;;  %vm9850_vm13 = vcmask 1041409   ;;  %v10234_v50 = vld [vmem:[#allocation83_spill] sm:$0xff] }
 0x2de   : > { %v2097_v56 = vrot.slane %v2096_v9, 1  ;;  %v2103_v35 = vmax.f32 %v2101_v17, %v2102_v29  ;;  %1193 = vrot.lane.b32.xlu2 %v10217_v54, %s9794_s24  ;;  %v2110_v7 = vmax.f32 %v2108_v5, %v2109_v61  ;;  %v2117_v46 = vmax.f32 %v2115_v26, %v2116_v57  ;;  %v10228_v61 = vld [vmem:[#allocation57_spill] sm:$0xff] }
 0x2df   : > { %1366 = vrot.lane.b32.xlu1 %v10218_v19, %s9793_s27  ;;  %1134 = vrot.lane.b32.xlu0 %v10219_v13, %s10081_s16  ;;  %v1662_v34 = vsel %vm9784_vm15, %v1642_v12, %v10222_v55  ;;  %v6927_v3 = vsel %vm9784_vm15, %v1646_v40, %v10223_v51  ;;  %v1665_v15 = vsel %vm9784_vm15, %v1645_v1, %v10224_v60  ;;  %vm2672_vm11 = vcmask 1042434   ;;  %v10230_v40 = vld [vmem:[#allocation15_spill] sm:$0xff] }
 0x2e0   : > { %v2104_v30 = vrot.slane %v2103_v35, 1  ;;  %v1894_v10 = vpop.f32.mrf.mxu0  ;;  %v6916_v20 = vpop.permute.xlu2 %1185  ;;  %v2098_v58 = vmax.f32 %v2096_v9, %v2097_v56  ;;  %v6933_v27 = vsel %vm9784_vm15, %v1649_v49, %v10225_v62  ;;  %v1685_v47 = vsel %vm9836_vm14, %v1665_v15, %v6828_v2 }
 0x2e1   : > { %v1895_v44 = vadd.f32 %v6785_v24, %v1894_v10  ;;  %v1302_v41 = vpop.permute.xlu1 %1301  ;;  %v1178_v32 = vpop.permute.xlu0 %1177  ;;  %v2111_v59 = vrot.slane %v2110_v7, 1  ;;  %v2118_v0 = vrot.slane %v2117_v46, 1  ;;  %v1100_v17 = vrot.slane %v10226_v42, 1 }
 0x2e2   : > { %v2105_v33 = vmax.f32 %v2103_v35, %v2104_v30  ;;  %v1705_v53 = vsel %vm9833_vm4, %v1685_v47, %v1184_v43  ;;  %v9815_v2 = vrot.slane %v6942_v25, 3  ;;  %vm2674_vm15 = vcmask 1043459   ;;  %v10229_v43 = vld [vmem:[#allocation146_spill] sm:$0xff] }
 0x2e3   : > { %v1948_v48 = vmax.f32 %v1895_v44, 0.0  ;;  %v1277_v57 = vrot.slane %v6942_v25, 4  ;;  %v2112_v31 = vmax.f32 %v2110_v7, %v2111_v59  ;;  %v6957_v56 = vmax.f32 %v2117_v46, %v2118_v0  ;;  %v10236_v0 = vld [vmem:[#allocation153_spill] sm:$0xff] }
 0x2e4   : > { %v2671_v28 = vsel %vm9850_vm13, %v2105_v33, %v2098_v58  ;;  %v1725_v35 = vsel %vm9789_vm6, %v1705_v53, %v6738_v8  ;;  %vm10231_vm12 = vcmask 1046528   ;;  %v1682_v7 = vsel %vm9836_vm14, %v1662_v34, %v6878_v16  ;;  %v10232_v8 = vld [vmem:[#allocation54_spill] sm:$0xff] }
 0x2e5   : > { %v1986_v5 = vrot.slane %v1948_v48, 2  ;;  %v1987_v26 = vrot.slane %v1948_v48, 4  ;;  %v1988_v39 = vrot.slane %v1948_v48, 6  ;;  %v2120_v6 = vsel %vm9845_vm7, %v1948_v48, -inf }
 0x2e6   : > { %v2121_v4 = vrot.slane %v2120_v6, 4  ;;  %1484 = vrot.lane.b32.xlu2 %v10227_v45, %s9791_s29  ;;  %v6965_v49 = vsel %vm10231_vm12, %v10230_v40, %v1100_v17  ;;  %v1745_v46 = vsel %vm9832_vm1, %v1725_v35, %v1302_v41  ;;  %v6974_v10 = vsel %vm10233_vm10, %v10232_v8, %v9815_v2 }
 0x2e7   : > { %v2127_v21 = vsel %vm9845_vm7, %v1986_v5, -inf  ;;  %v2134_v9 = vsel %vm9845_vm7, %v1987_v26, -inf  ;;  %v2141_v29 = vsel %vm9845_vm7, %v1988_v39, -inf  ;;  %1252 = vrot.lane.b32.xlu1 %v10228_v61, %s9792_s23  ;;  %1425 = vrot.lane.b32.xlu0 %v10229_v43, %s9790_s26  ;;  %vm10235_vm12 = vcmask 1043456  }
 0x2e8   : > { %v2122_v36 = vmax.f32 %v2120_v6, %v2121_v4  ;;  %v2128_v18 = vrot.slane %v2127_v21, 4  ;;  %v2135_v14 = vrot.slane %v2134_v9, 4  ;;  %v2142_v12 = vrot.slane %v2141_v29, 4  ;;  %v6955_v1 = vpop.permute.xlu2 %1179 }
 0x2e9   : > { %v1296_v54 = vpop.permute.xlu1 %1295  ;;  %v1361_v22 = vpop.permute.xlu0 %1360  ;;  %v6980_v55 = vsel %vm10235_vm12, %v10234_v50, %v1277_v57  ;;  %v2735_v16 = vsel %vm9850_vm13, %v2112_v31, %v2105_v33  ;;  %v1702_v34 = vsel %vm9833_vm4, %v1682_v7, %v1178_v32  ;;  %v9813_v41 = vrot.slane %v6942_v25, 6  ;;  %v10237_v33 = vld [vmem:[#allocation123_spill] sm:$0xff] }
 0x2ea   : > { %v2123_v19 = vrot.slane %v2122_v36, 2  ;;  %v2129_v13 = vmax.f32 %v2127_v21, %v2128_v18  ;;  %v2136_v63 = vmax.f32 %v2134_v9, %v2135_v14  ;;  %v2143_v30 = vmax.f32 %v2141_v29, %v2142_v12  ;;  %v10238_v32 = vld [vmem:[#allocation87_spill] sm:$0xff]  ;;  %v10239_v18 = vld [vmem:[#allocation150_spill] sm:$0xff] }
 0x2eb   : > { %v2673_v58 = vsel %vm2672_vm11, %v2112_v31, %v2671_v28  ;;  %v2809_v62 = vsel %vm9850_vm13, %v6957_v56, %v2112_v31  ;;  %vm9810_vm10 = vcmask 1045509   ;;  %v1765_v5 = vsel %vm9827_vm5, %v1745_v46, %v1361_v22  ;;  %v10241_v22 = vld [vmem:[#allocation31_spill] sm:$0xff] }
 0x2ec   : > { %v2124_v44 = vmax.f32 %v2122_v36, %v2123_v19  ;;  %v2130_v51 = vrot.slane %v2129_v13, 2  ;;  %v2137_v60 = vrot.slane %v2136_v63, 2  ;;  %v2144_v15 = vrot.slane %v2143_v30, 2 }
 0x2ed   : > { %v9814_v28 = vrot.slane %v6942_v25, 7  ;;  %v1159_v26 = vrot.slane %v6942_v25, 2  ;;  %v6999_v39 = vsel %vm2674_vm15, %v6957_v56, %v2673_v58  ;;  %v1722_v29 = vsel %vm9789_vm6, %v1702_v34, %v6765_v37 }
 0x2ee   : > { %v2125_v47 = vrot.slane %v2124_v44, 1  ;;  %v2131_v48 = vmax.f32 %v2129_v13, %v2130_v51  ;;  %v2138_v59 = vmax.f32 %v2136_v63, %v2137_v60  ;;  %1429 = vrot.lane.b32.xlu2 %v10236_v0, %s9790_s26  ;;  %v2145_v45 = vmax.f32 %v2143_v30, %v2144_v15 }
 0x2ef   : > { %1370 = vrot.lane.b32.xlu1 %v10237_v33, %s9793_s27  ;;  %1311 = vrot.lane.b32.xlu0 %v10238_v32, %s10076_s14  ;;  %vm10240_vm12 = vcmask 1041408   ;;  %v2736_v12 = vsel %vm2672_vm11, %v6957_v56, %v2735_v16  ;;  %v1742_v35 = vsel %vm9832_vm1, %v1722_v29, %v1296_v54  ;;  %v1785_v37 = vsel %vm9809_vm3, %v1765_v5, %v6820_v38  ;;  %v10243_v38 = vld [vmem:[#allocation177_spill] sm:$0xff] }
 0x2f0   : > { %v7001_v6 = vmax.f32 %v2124_v44, %v2125_v47  ;;  %v2132_v53 = vrot.slane %v2131_v48, 1  ;;  %v2139_v4 = vrot.slane %v2138_v59, 1  ;;  %v1897_v21 = vpop.f32.mrf.mxu0  ;;  %v7003_v9 = vpop.permute.xlu2 %1362  ;;  %v7012_v14 = vsel %vm10240_vm12, %v10239_v18, %v9813_v41 }
 0x2f1   : > { %v1898_v61 = vadd.f32 %v6785_v24, %v1897_v21  ;;  %v1479_v43 = vpop.permute.xlu1 %1478  ;;  %v1355_v36 = vpop.permute.xlu0 %1354  ;;  %v1160_v40 = vsel %vm10242_vm9, %v10241_v22, %v1159_v26  ;;  %vm9807_vm6 = vcmask 1046534   ;;  %v2146_v54 = vrot.slane %v2145_v45, 1  ;;  %v10246_v22 = vld [vmem:[#allocation120_spill] sm:$0xff] }
 0x2f2   : > { %v7016_v31 = vmax.f32 %v2131_v48, %v2132_v53  ;;  %v1762_v13 = vsel %vm9827_vm5, %v1742_v35, %v1355_v36  ;;  %v1805_v63 = vsel %vm9808_vm2, %v1785_v37, %v1479_v43  ;;  %v2737_v30 = vsel %vm2674_vm15, %v7001_v6, %v2736_v12 }
 0x2f3   : > { %v1949_v19 = vmax.f32 %v1898_v61, 0.0  ;;  %v7029_v7 = vmax.f32 %v2138_v59, %v2139_v4  ;;  %4472 = vmatmul.msk.f32.gmra.mxu2 %vm9801_vm0, %v1805_v63  ;;  %vm10244_vm12 = vcmask 1040384   ;;  %v2810_v8 = vsel %vm2672_vm11, %v7001_v6, %v2809_v62 }
 0x2f4   : > { %v7036_v46 = vsel %vm10244_vm12, %v10243_v38, %v9814_v28  ;;  %v1782_v16 = vsel %vm9809_vm3, %v1762_v13, %v6868_v23  ;;  %v2738_v34 = vsel %vm9849_vm8, %v7016_v31, %v2737_v30  ;;  %v2883_v58 = vsel %vm9850_vm13, %v7001_v6, %v6957_v56  ;;  %v10245_v23 = vld [vmem:[#allocation180_spill] sm:$0xff] }
 0x2f5   : > { %v1989_v50 = vrot.slane %v1949_v19, 2  ;;  %v1990_v44 = vrot.slane %v1949_v19, 4  ;;  %v1991_v51 = vrot.slane %v1949_v19, 6  ;;  %v2148_v60 = vsel %vm9845_vm7, %v1949_v19, -inf }
 0x2f6   : > { %v2149_v15 = vrot.slane %v2148_v60, 4  ;;  %1195 = vrot.lane.b32.xlu2 %v1160_v40, %s9794_s24  ;;  %v2811_v59 = vsel %vm2674_vm15, %v7016_v31, %v2810_v8  ;;  %v9826_v21 = vrot.slane %v6942_v25, 5  ;;  %v2739_v29 = vsel %vm9810_vm10, %v7029_v7, %v2738_v34  ;;  %s9795_s24 = smov 72  }
 0x2f7   : > { %v2155_v62 = vsel %vm9845_vm7, %v1989_v50, -inf  ;;  %v2162_v47 = vsel %vm9845_vm7, %v1990_v44, -inf  ;;  %v2169_v48 = vsel %vm9845_vm7, %v1991_v51, -inf  ;;  %1136 = vrot.lane.b32.xlu1 %v6965_v49, %s10081_s16  ;;  %1488 = vrot.lane.b32.xlu0 %v10245_v23, %s9791_s29  ;;  %v2884_v49 = vsel %vm2672_vm11, %v7016_v31, %v2883_v58 }
 0x2f8   : > { %v2150_v0 = vmax.f32 %v2148_v60, %v2149_v15  ;;  %v2156_v5 = vrot.slane %v2155_v62, 4  ;;  %v2163_v33 = vrot.slane %v2162_v47, 4  ;;  %v2170_v32 = vrot.slane %v2169_v48, 4  ;;  %v7058_v56 = vpop.permute.xlu2 %1356 }
 0x2f9   : > { %v1473_v53 = vpop.permute.xlu1 %1472  ;;  %v1127_v4 = vpop.permute.xlu0 %1126  ;;  %v2957_v61 = vsel %vm9850_vm13, %v7016_v31, %v7001_v6  ;;  %v7068_v35 = vmax.f32 %v2145_v45, %v2146_v54  ;;  %vm10247_vm9 = vcmask 1042432   ;;  %v2812_v19 = vsel %vm9849_vm8, %v7029_v7, %v2811_v59 }
 0x2fa   : > { %v2151_v43 = vrot.slane %v2150_v0, 2  ;;  %v2157_v36 = vmax.f32 %v2155_v62, %v2156_v5  ;;  %v2164_v18 = vmax.f32 %v2162_v47, %v2163_v33  ;;  %v2171_v12 = vmax.f32 %v2169_v48, %v2170_v32 }
 0x2fb   : > { %v1802_v37 = vsel %vm9808_vm2, %v1782_v16, %v1473_v53  ;;  %v1337_v40 = vsel %vm10247_vm9, %v10246_v22, %v9826_v21  ;;  %v1686_v45 = vsel %vm9836_vm14, %v6927_v3, %v1127_v4  ;;  %v2740_v54 = vsel %vm9807_vm6, %v7068_v35, %v2739_v29 }
 0x2fc   : > { %v2152_v13 = vmax.f32 %v2150_v0, %v2151_v43  ;;  %v2158_v63 = vrot.slane %v2157_v36, 2  ;;  %v2165_v30 = vrot.slane %v2164_v18, 2  ;;  %v2172_v38 = vrot.slane %v2171_v12, 2  ;;  %4469 = vmatmul.msk.f32.gmra.mxu0 %vm9801_vm0, %v1802_v37 }
 0x2fd   : > { %v2885_v8 = vsel %vm2674_vm15, %v7029_v7, %v2884_v49  ;;  %v2958_v50 = vsel %vm2672_vm11, %v7029_v7, %v2957_v61  ;;  %vm9802_vm12 = vcmask 1047559   ;;  %v2813_v3 = vsel %vm9810_vm10, %v7068_v35, %v2812_v19 }
 0x2fe   : > { %v2153_v44 = vrot.slane %v2152_v13, 1  ;;  %v2159_v51 = vmax.f32 %v2157_v36, %v2158_v63  ;;  %v2166_v60 = vmax.f32 %v2164_v18, %v2165_v30  ;;  %v2173_v15 = vmax.f32 %v2171_v12, %v2172_v38  ;;  %1372 = vrot.lane.b32.xlu2 %v1337_v40, %s9793_s27  ;;  %s9797_s27 = smov 64  }
 0x2ff   : > { %1254 = vrot.lane.b32.xlu0 %v6974_v10, %s9792_s23  ;;  %1313 = vrot.lane.b32.xlu1 %v6980_v55, %s10076_s14  ;;  %v3031_v16 = vsel %vm9850_vm13, %v7029_v7, %v7016_v31  ;;  %v2677_v34 = vsel %vm9849_vm8, %v7001_v6, %v6999_v39  ;;  %v1706_v0 = vsel %vm9833_vm4, %v1686_v45, %v6916_v20  ;;  %vm10248_vm9 = vcmask 269312   ;;  %s9803_s23 = smov 56  }
 0x300   : > { %v7099_v58 = vmax.f32 %v2152_v13, %v2153_v44  ;;  %v2160_v62 = vrot.slane %v2159_v51, 1  ;;  %v2167_v47 = vrot.slane %v2166_v60, 1  ;;  %v2174_v10 = vrot.slane %v2173_v15, 1  ;;  %v1900_v48 = vpop.f32.mrf.mxu0  ;;  %v1129_v23 = vpop.permute.xlu2 %1128 }
 0x301   : > { %v1901_v55 = vadd.f32 %v6785_v24, %v1900_v48  ;;  %v1245_v59 = vpop.permute.xlu1 %1244  ;;  %v1121_v5 = vpop.permute.xlu0 %1120  ;;  %v2886_v33 = vsel %vm9849_vm8, %v7068_v35, %v2885_v8  ;;  %v7108_v39 = vsel %vm9810_vm10, %v7016_v31, %v2677_v34  ;;  %v7112_v6 = vsel %vm9836_vm14, %v6914_v52, %v1129_v23 }
 0x302   : > { %v2959_v32 = vsel %vm2674_vm15, %v7068_v35, %v2958_v50  ;;  %v3032_v53 = vsel %vm2672_vm11, %v7068_v35, %v3031_v16  ;;  %v3105_v20 = vsel %vm9850_vm13, %v7068_v35, %v7029_v7  ;;  %v7121_v4 = vmax.f32 %v2159_v51, %v2160_v62 }
 0x303   : > { %v7123_v29 = vmax.f32 %v2166_v60, %v2167_v47  ;;  %v1950_v31 = vmax.f32 %v1901_v55, 0.0  ;;  %v1683_v49 = vsel %vm9836_vm14, %v6920_v11, %v1121_v5  ;;  %v7127_v52 = vmax.f32 %v2173_v15, %v2174_v10 }
 0x304   : > { %v1726_v61 = vsel %vm10248_vm9, %v1706_v0, %v1245_v59  ;;  %v7132_v43 = vsel %vm9802_vm12, %v7099_v58, %v2740_v54  ;;  %v2814_v36 = vsel %vm9807_vm6, %v7099_v58, %v2813_v3  ;;  %v1703_v11 = vsel %vm9833_vm4, %v1683_v49, %v6955_v1 }
 0x305   : > { %v1992_v18 = vrot.slane %v1950_v31, 2  ;;  %v1993_v12 = vrot.slane %v1950_v31, 4  ;;  %v1994_v37 = vrot.slane %v1950_v31, 6  ;;  %v2176_v22 = vsel %vm9845_vm7, %v1950_v31, -inf }
 0x306   : > { %v2177_v40 = vrot.slane %v2176_v22, 4  ;;  %v2887_v19 = vsel %vm9810_vm10, %v7099_v58, %v2886_v33  ;;  %v2960_v13 = vsel %vm9849_vm8, %v7099_v58, %v2959_v32  ;;  %v2742_v1 = vsel %vm9850_vm13, %v7123_v29, %v7121_v4 }
 0x307   : > { %v2183_v63 = vsel %vm9845_vm7, %v1992_v18, -inf  ;;  %v2190_v30 = vsel %vm9845_vm7, %v1993_v12, -inf  ;;  %v2197_v38 = vsel %vm9845_vm7, %v1994_v37, -inf  ;;  %1431 = vrot.lane.b32.xlu0 %v7012_v14, %s9790_s26  ;;  %1490 = vrot.lane.b32.xlu1 %v7036_v46, %s9791_s29  ;;  %v2888_v60 = vsel %vm9807_vm6, %v7121_v4, %v2887_v19  ;;  %s9828_s26 = smov 40   ;;  %s9805_s29 = smov 48  }
 0x308   : > { %v2178_v45 = vmax.f32 %v2176_v22, %v2177_v40  ;;  %v2184_v54 = vrot.slane %v2183_v63, 4  ;;  %v2191_v8 = vrot.slane %v2190_v30, 4  ;;  %v2198_v50 = vrot.slane %v2197_v38, 4 }
 0x309   : > { %v1239_v44 = vpop.permute.xlu1 %1238  ;;  %v1304_v51 = vpop.permute.xlu0 %1303  ;;  %v2961_v15 = vsel %vm9810_vm10, %v7121_v4, %v2960_v13  ;;  %v3033_v14 = vsel %vm2674_vm15, %v7099_v58, %v3032_v53  ;;  %v3106_v46 = vsel %vm2672_vm11, %v7099_v58, %v3105_v20  ;;  %v2743_v47 = vsel %vm2672_vm11, %v7127_v52, %v2742_v1 }
 0x30a   : > { %v2179_v3 = vrot.slane %v2178_v45, 2  ;;  %v2185_v16 = vmax.f32 %v2183_v63, %v2184_v54  ;;  %v2192_v34 = vmax.f32 %v2190_v30, %v2191_v8  ;;  %v2199_v62 = vmax.f32 %v2197_v38, %v2198_v50 }
 0x30b   : > { %v7165_v10 = vsel %vm9802_vm12, %v7121_v4, %v2814_v36  ;;  %v2816_v48 = vsel %vm9850_vm13, %v7127_v52, %v7123_v29  ;;  %v3034_v23 = vsel %vm9849_vm8, %v7121_v4, %v3033_v14  ;;  %v1746_v33 = vsel %vm9832_vm1, %v1726_v61, %v1304_v51 }
 0x30c   : > { %v2180_v55 = vmax.f32 %v2178_v45, %v2179_v3  ;;  %v2186_v59 = vrot.slane %v2185_v16, 2  ;;  %v2193_v0 = vrot.slane %v2192_v34, 2  ;;  %v2200_v5 = vrot.slane %v2199_v62, 2  ;;  %v7217_v3 = vpop.permute.xlu2 %1246 }
 0x30d   : > { %v7175_v32 = vsel %vm9802_vm12, %v7123_v29, %v2888_v60  ;;  %v2962_v53 = vsel %vm9807_vm6, %v7123_v29, %v2961_v15  ;;  %v3107_v20 = vsel %vm2674_vm15, %v7121_v4, %v3106_v46  ;;  %v1723_v12 = vsel %vm10248_vm9, %v1703_v11, %v1239_v44 }
 0x30e   : > { %v2181_v31 = vrot.slane %v2180_v55, 1  ;;  %v2187_v49 = vmax.f32 %v2185_v16, %v2186_v59  ;;  %v2194_v36 = vmax.f32 %v2192_v34, %v2193_v0  ;;  %v2201_v18 = vmax.f32 %v2199_v62, %v2200_v5 }
 0x30f   : > { %v3035_v37 = vsel %vm9810_vm10, %v7123_v29, %v3034_v23  ;;  %v3108_v61 = vsel %vm9849_vm8, %v7123_v29, %v3107_v20  ;;  %v3179_v22 = vsel %vm9850_vm13, %v7099_v58, %v7068_v35  ;;  %v1766_v11 = vsel %vm9827_vm5, %v1746_v33, %v7003_v9 }
 0x310   : > { %v7189_v40 = vmax.f32 %v2180_v55, %v2181_v31  ;;  %v2188_v19 = vrot.slane %v2187_v49, 1  ;;  %v2195_v13 = vrot.slane %v2194_v36, 1  ;;  %v2202_v63 = vrot.slane %v2201_v18, 1  ;;  %v1903_v30 = vpop.f32.mrf.mxu0 }
 0x311   : > { %v1904_v38 = vadd.f32 %v6785_v24, %v1903_v30  ;;  %v1422_v1 = vpop.permute.xlu1 %1421  ;;  %v1298_v45 = vpop.permute.xlu0 %1297  ;;  %v7196_v54 = vsel %vm9802_vm12, %v7127_v52, %v2962_v53  ;;  %v2684_v8 = vsel %vm9850_vm13, %v7121_v4, %v7099_v58  ;;  %v3036_v51 = vsel %vm9807_vm6, %v7127_v52, %v3035_v37 }
 0x312   : > { %v7201_v50 = vmax.f32 %v2187_v49, %v2188_v19  ;;  %v7203_v44 = vmax.f32 %v2194_v36, %v2195_v13  ;;  %v3109_v60 = vsel %vm9810_vm10, %v7127_v52, %v3108_v61  ;;  %v2744_v15 = vsel %vm2674_vm15, %v7189_v40, %v2743_v47 }
 0x313   : > { %v1951_v9 = vmax.f32 %v1904_v38, 0.0  ;;  %v2817_v14 = vsel %vm2672_vm11, %v7189_v40, %v2816_v48  ;;  %v3180_v58 = vsel %vm2672_vm11, %v7121_v4, %v3179_v22  ;;  %v7215_v46 = vmax.f32 %v2201_v18, %v2202_v63 }
 0x314   : > { %v2745_v16 = vsel %vm9849_vm8, %v7201_v50, %v2744_v15  ;;  %v2890_v34 = vsel %vm9850_vm13, %v7189_v40, %v7127_v52  ;;  %v2685_v62 = vsel %vm2672_vm11, %v7123_v29, %v2684_v8  ;;  %v1743_v59 = vsel %vm9832_vm1, %v1723_v12, %v1298_v45 }
 0x315   : > { %v1995_v47 = vrot.slane %v1951_v9, 2  ;;  %v1996_v23 = vrot.slane %v1951_v9, 4  ;;  %v1997_v48 = vrot.slane %v1951_v9, 6  ;;  %v2204_v55 = vsel %vm9845_vm7, %v1951_v9, -inf }
 0x316   : > { %v2205_v4 = vrot.slane %v2204_v55, 4  ;;  %v2746_v0 = vsel %vm9810_vm10, %v7203_v44, %v2745_v16  ;;  %v2818_v5 = vsel %vm2674_vm15, %v7201_v50, %v2817_v14  ;;  %v2891_v31 = vsel %vm2672_vm11, %v7201_v50, %v2890_v34 }
 0x317   : > { %v2211_v33 = vsel %vm9845_vm7, %v1995_v47, -inf  ;;  %v2218_v53 = vsel %vm9845_vm7, %v1996_v23, -inf  ;;  %v2225_v20 = vsel %vm9845_vm7, %v1997_v48, -inf  ;;  %v1786_v12 = vsel %vm9809_vm3, %v1766_v11, %v1422_v1 }
 0x318   : > { %v2206_v49 = vmax.f32 %v2204_v55, %v2205_v4  ;;  %v2212_v36 = vrot.slane %v2211_v33, 4  ;;  %v2219_v18 = vrot.slane %v2218_v53, 4  ;;  %v2226_v37 = vrot.slane %v2225_v20, 4 }
 0x319   : > { %v1416_v61 = vpop.permute.xlu1 %1415  ;;  %v1763_v22 = vsel %vm9827_vm5, %v1743_v59, %v7058_v56  ;;  %v1481_v19 = vpop.permute.xlu0 %1480  ;;  %v2819_v13 = vsel %vm9849_vm8, %v7203_v44, %v2818_v5  ;;  %v2964_v63 = vsel %vm9850_vm13, %v7201_v50, %v7189_v40  ;;  %v2747_v1 = vsel %vm9807_vm6, %v7215_v46, %v2746_v0 }
 0x31a   : > { %v2207_v30 = vrot.slane %v2206_v49, 2  ;;  %v2213_v38 = vmax.f32 %v2211_v33, %v2212_v36  ;;  %v2220_v45 = vmax.f32 %v2218_v53, %v2219_v18  ;;  %v2227_v8 = vmax.f32 %v2225_v20, %v2226_v37  ;;  %v7264_v33 = vpop.permute.xlu2 %1364 }
 0x31b   : > { %v1806_v9 = vsel %vm9808_vm2, %v1786_v12, %v1481_v19  ;;  %v2892_v56 = vsel %vm2674_vm15, %v7203_v44, %v2891_v31  ;;  %v2965_v11 = vsel %vm2672_vm11, %v7203_v44, %v2964_v63  ;;  %v2820_v47 = vsel %vm9810_vm10, %v7215_v46, %v2819_v13 }
 0x31c   : > { %v2208_v15 = vmax.f32 %v2206_v49, %v2207_v30  ;;  %v2214_v14 = vrot.slane %v2213_v38, 2  ;;  %v2221_v16 = vrot.slane %v2220_v45, 2  ;;  %v2228_v34 = vrot.slane %v2227_v8, 2  ;;  %4473 = vmatmul.msk.f32.gmra.mxu2 %vm9801_vm0, %v1806_v9 }
 0x31d   : > { %v7257_v23 = vsel %vm9802_vm12, %v7189_v40, %v3036_v51  ;;  %v3038_v48 = vsel %vm9850_vm13, %v7203_v44, %v7201_v50  ;;  %v3110_v55 = vsel %vm9807_vm6, %v7189_v40, %v3109_v60  ;;  %v1783_v53 = vsel %vm9809_vm3, %v1763_v22, %v1416_v61 }
 0x31e   : > { %v2209_v4 = vrot.slane %v2208_v15, 1  ;;  %v2215_v59 = vmax.f32 %v2213_v38, %v2214_v14  ;;  %v2222_v0 = vmax.f32 %v2220_v45, %v2221_v16  ;;  %v2229_v5 = vmax.f32 %v2227_v8, %v2228_v34 }
 0x31f   : > { %v2893_v20 = vsel %vm9849_vm8, %v7215_v46, %v2892_v56  ;;  %v2966_v51 = vsel %vm2674_vm15, %v7215_v46, %v2965_v11  ;;  %v3181_v31 = vsel %vm2674_vm15, %v7123_v29, %v3180_v58  ;;  %v3112_v37 = vsel %vm9850_vm13, %v7215_v46, %v7203_v44 }
 0x320   : > { %v7273_v49 = vmax.f32 %v2208_v15, %v2209_v4  ;;  %v2216_v60 = vrot.slane %v2215_v59, 1  ;;  %v2223_v36 = vrot.slane %v2222_v0, 1  ;;  %v1906_v18 = vpop.f32.mrf.mxu0  ;;  %v3039_v19 = vsel %vm2672_vm11, %v7215_v46, %v3038_v48 }
 0x321   : > { %v1907_v12 = vadd.f32 %v6785_v24, %v1906_v18  ;;  %v1188_v61 = vpop.permute.xlu1 %1187  ;;  %v1475_v22 = vpop.permute.xlu0 %1474  ;;  %v7283_v13 = vsel %vm9802_vm12, %v7201_v50, %v3110_v55  ;;  %v2686_v29 = vsel %vm2674_vm15, %v7127_v52, %v2685_v62  ;;  %v2230_v30 = vrot.slane %v2229_v5, 1 }
 0x322   : > { %v7287_v58 = vmax.f32 %v2215_v59, %v2216_v60  ;;  %v7289_v63 = vmax.f32 %v2222_v0, %v2223_v36  ;;  %v3182_v38 = vsel %vm9849_vm8, %v7127_v52, %v3181_v31  ;;  %v1803_v8 = vsel %vm9808_vm2, %v1783_v53, %v1475_v22  ;;  %v7326_v53 = vpop.permute.xlu2 %1250 }
 0x323   : > { %v1952_v45 = vmax.f32 %v1907_v12, 0.0  ;;  %v7296_v9 = vsel %vm9802_vm12, %v7273_v49, %v2747_v1  ;;  %v2821_v56 = vsel %vm9807_vm6, %v7273_v49, %v2820_v47  ;;  %v1707_v62 = vsel %vm9833_vm4, %v7112_v6, %v1188_v61  ;;  %4470 = vmatmul.msk.f32.gmra.mxu0 %vm9801_vm0, %v1803_v8 }
 0x324   : > { %v4566_v11 = vpack.i.bf16 %v7296_v9, %v7132_v43  ;;  %v7307_v52 = vsel %vm9802_vm12, %v7287_v58, %v2821_v56  ;;  %v2894_v15 = vsel %vm9810_vm10, %v7273_v49, %v2893_v20  ;;  %v2967_v48 = vsel %vm9849_vm8, %v7273_v49, %v2966_v51 }
 0x325   : > { %v1998_v1 = vrot.slane %v1952_v45, 2  ;;  %v1999_v14 = vrot.slane %v1952_v45, 4  ;;  %v2000_v16 = vrot.slane %v1952_v45, 6  ;;  %v2232_v34 = vsel %vm9845_vm7, %v1952_v45, -inf }
 0x326   : > { %v2233_v47 = vrot.slane %v2232_v34, 4  ;;  %4567 = vrot.lane.b32.xlu2 %v4566_v11, %s9820_s28  ;;  %v4571_v6 = vpack.i.bf16 %v7307_v52, %v7165_v10  ;;  %v2895_v43 = vsel %vm9807_vm6, %v7287_v58, %v2894_v15  ;;  %v2968_v12 = vsel %vm9810_vm10, %v7287_v58, %v2967_v48 }
 0x327   : > { %v2239_v55 = vsel %vm9845_vm7, %v1998_v1, -inf  ;;  %v2246_v4 = vsel %vm9845_vm7, %v1999_v14, -inf  ;;  %v2253_v59 = vsel %vm9845_vm7, %v2000_v16, -inf  ;;  %v7324_v0 = vsel %vm9802_vm12, %v7289_v63, %v2895_v43 }
 0x328   : > { %v2234_v20 = vmax.f32 %v2232_v34, %v2233_v47  ;;  %v2240_v10 = vrot.slane %v2239_v55, 4  ;;  %v2247_v31 = vrot.slane %v2246_v4, 4  ;;  %v2254_v60 = vrot.slane %v2253_v59, 4  ;;  %4572 = vrot.lane.b32.xlu0 %v4571_v6, %s9818_s17 }
 0x329   : > { %v4576_v51 = vpack.i.bf16 %v7324_v0, %v7175_v32  ;;  %v1133_v36 = vpop.permute.xlu1 %1132  ;;  %v1306_v18 = vpop.permute.xlu0 %1305  ;;  %v3040_v61 = vsel %vm2674_vm15, %v7273_v49, %v3039_v19  ;;  %v3113_v22 = vsel %vm2672_vm11, %v7273_v49, %v3112_v37  ;;  %v7337_v15 = vmax.f32 %v2229_v5, %v2230_v30 }
 0x32a   : > { %v2235_v45 = vrot.slane %v2234_v20, 2  ;;  %v2241_v8 = vmax.f32 %v2239_v55, %v2240_v10  ;;  %v2248_v56 = vmax.f32 %v2246_v4, %v2247_v31  ;;  %v2255_v11 = vmax.f32 %v2253_v59, %v2254_v60 }
 0x32b   : > { %4577 = vrot.lane.b32.xlu1 %v4576_v51, %s10249_s21  ;;  %v1727_v32 = vsel %vm10248_vm9, %v1707_v62, %v7217_v3  ;;  %v2969_v1 = vsel %vm9807_vm6, %v7289_v63, %v2968_v12  ;;  %v3041_v19 = vsel %vm9849_vm8, %v7287_v58, %v3040_v61  ;;  %v3114_v30 = vsel %vm2674_vm15, %v7287_v58, %v3113_v22 }
 0x32c   : > { %v2236_v14 = vmax.f32 %v2234_v20, %v2235_v45  ;;  %v2242_v16 = vrot.slane %v2241_v8, 2  ;;  %v2249_v37 = vrot.slane %v2248_v56, 2  ;;  %v2256_v34 = vrot.slane %v2255_v11, 2 }
 0x32d   : > { %v1747_v47 = vsel %vm9832_vm1, %v1727_v32, %v1306_v18  ;;  %v7349_v5 = vsel %vm9802_vm12, %v7337_v15, %v2969_v1  ;;  %v7355_v3 = vsel %vm9849_vm8, %v7189_v40, %v2686_v29  ;;  %v3042_v4 = vsel %vm9810_vm10, %v7289_v63, %v3041_v19 }
 0x32e   : > { %v2237_v62 = vrot.slane %v2236_v14, 1  ;;  %v2243_v6 = vmax.f32 %v2241_v8, %v2242_v16  ;;  %v2250_v43 = vmax.f32 %v2248_v56, %v2249_v37  ;;  %v2257_v48 = vmax.f32 %v2255_v11, %v2256_v34  ;;  %v7386_v8 = vpop.permute.xlu2 %1130 }
 0x32f   : > { %v4581_v55 = vpack.i.bf16 %v7349_v5, %v7196_v54  ;;  %v3115_v59 = vsel %vm9849_vm8, %v7289_v63, %v3114_v30  ;;  %v3183_v20 = vsel %vm9810_vm10, %v7189_v40, %v3182_v38  ;;  %v1689_v18 = vsel %vm9836_vm14, %v6933_v27, %v1133_v36 }
 0x330   : > { %v7365_v10 = vmax.f32 %v2236_v14, %v2237_v62  ;;  %v2244_v29 = vrot.slane %v2243_v6, 1  ;;  %v2251_v31 = vrot.slane %v2250_v43, 1  ;;  %v2258_v60 = vrot.slane %v2257_v48, 1  ;;  %v1909_v51 = vpop.f32.mrf.mxu0 }
 0x331   : > { %4582 = vrot.lane.b32.xlu2 %v4581_v55, %s9816_s22  ;;  %v1910_v54 = vadd.f32 %v6785_v24, %v1909_v51  ;;  %v1424_v12 = vpop.permute.xlu1 %1423  ;;  %v1767_v61 = vsel %vm9827_vm5, %v1747_v47, %v7264_v33  ;;  %v1192_v22 = vpop.permute.xlu0 %1191  ;;  %v3186_v40 = vsel %vm9850_vm13, %v7273_v49, %v7215_v46  ;;  %v3043_v45 = vsel %vm9807_vm6, %v7337_v15, %v3042_v4 }
 0x332   : > { %v7376_v38 = vmax.f32 %v2243_v6, %v2244_v29  ;;  %v3116_v27 = vsel %vm9810_vm10, %v7337_v15, %v3115_v59  ;;  %v3184_v24 = vsel %vm9807_vm6, %v7201_v50, %v3183_v20  ;;  %v7384_v36 = vmax.f32 %v2250_v43, %v2251_v31 }
 0x333   : > { %v1953_v33 = vmax.f32 %v1910_v54, 0.0  ;;  %v7390_v56 = vsel %vm9802_vm12, %v7365_v10, %v3043_v45  ;;  %v3117_v11 = vsel %vm9807_vm6, %v7365_v10, %v3116_v27  ;;  %v7394_v32 = vmax.f32 %v2257_v48, %v2258_v60 }
 0x334   : > { %v4586_v1 = vpack.i.bf16 %v7390_v56, %v7257_v23  ;;  %v7400_v19 = vsel %vm9802_vm12, %v7376_v38, %v3117_v11  ;;  %v3187_v14 = vsel %vm2672_vm11, %v7287_v58, %v3186_v40  ;;  %v1787_v62 = vsel %vm9809_vm3, %v1767_v61, %v1424_v12 }
 0x335   : > { %v2001_v16 = vrot.slane %v1953_v33, 2  ;;  %v2002_v37 = vrot.slane %v1953_v33, 4  ;;  %v2003_v34 = vrot.slane %v1953_v33, 6  ;;  %v2260_v47 = vsel %vm9845_vm7, %v1953_v33, -inf }
 0x336   : > { %v2261_v30 = vrot.slane %v2260_v47, 4  ;;  %4587 = vrot.lane.b32.xlu0 %v4586_v1, %s9828_s26  ;;  %v4591_v23 = vpack.i.bf16 %v7400_v19, %v7283_v13  ;;  %v3188_v6 = vsel %vm2674_vm15, %v7289_v63, %v3187_v14  ;;  %v1709_v13 = vsel %vm9833_vm4, %v1689_v18, %v1192_v22  ;;  %v1428_v1 = vpop.permute.xlu2 %1427 }
 0x337   : > { %v2267_v43 = vsel %vm9845_vm7, %v2001_v16, -inf  ;;  %v2274_v48 = vsel %vm9845_vm7, %v2002_v37, -inf  ;;  %v2281_v55 = vsel %vm9845_vm7, %v2003_v34, -inf  ;;  %v3189_v4 = vsel %vm9849_vm8, %v7337_v15, %v3188_v6 }
 0x338   : > { %v2262_v59 = vmax.f32 %v2260_v47, %v2261_v30  ;;  %v2268_v20 = vrot.slane %v2267_v43, 4  ;;  %v2275_v29 = vrot.slane %v2274_v48, 4  ;;  %v2282_v31 = vrot.slane %v2281_v55, 4  ;;  %4592 = vrot.lane.b32.xlu1 %v4591_v23, %s9805_s29  ;;  %s9824_s29 = smov 112  }
 0x339   : > { %v3190_v60 = vsel %vm9810_vm10, %v7365_v10, %v3189_v4  ;;  %v1310_v51 = vpop.permute.xlu1 %1309  ;;  %v1483_v54 = vpop.permute.xlu0 %1482  ;;  %v2691_v12 = vsel %vm9850_vm13, %v7287_v58, %v7273_v49  ;;  %v2749_v61 = vsel %vm9850_vm13, %v7289_v63, %v7287_v58  ;;  %v3185_v18 = vsel %vm9802_vm12, %v7203_v44, %v3184_v24 }
 0x33a   : > { %v2263_v40 = vrot.slane %v2262_v59, 2  ;;  %v2269_v45 = vmax.f32 %v2267_v43, %v2268_v20  ;;  %v2276_v27 = vmax.f32 %v2274_v48, %v2275_v29  ;;  %v2283_v33 = vmax.f32 %v2281_v55, %v2282_v31 }
 0x33b   : > { %v3191_v22 = vsel %vm9807_vm6, %v7376_v38, %v3190_v60  ;;  %v1807_v11 = vsel %vm9808_vm2, %v1787_v62, %v1483_v54  ;;  %v2688_v49 = vsel %vm9810_vm10, %v7201_v50, %v7355_v3  ;;  %v1729_v24 = vsel %vm10248_vm9, %v1709_v13, %v7326_v53 }
 0x33c   : > { %v2264_v14 = vmax.f32 %v2262_v59, %v2263_v40  ;;  %v2270_v16 = vrot.slane %v2269_v45, 2  ;;  %v2277_v58 = vrot.slane %v2276_v27, 2  ;;  %v2284_v37 = vrot.slane %v2283_v33, 2  ;;  %4474 = vmatmul.msk.f32.gmra.mxu2 %vm9801_vm0, %v1807_v11 }
 0x33d   : > { %v7437_v34 = vsel %vm9802_vm12, %v7384_v36, %v3191_v22  ;;  %v2692_v47 = vsel %vm2672_vm11, %v7289_v63, %v2691_v12  ;;  %v2750_v50 = vsel %vm2672_vm11, %v7337_v15, %v2749_v61  ;;  %v1749_v43 = vsel %vm9832_vm1, %v1729_v24, %v1310_v51 }
 0x33e   : > { %v2265_v3 = vrot.slane %v2264_v14, 1  ;;  %v2271_v30 = vmax.f32 %v2269_v45, %v2270_v16  ;;  %v2278_v62 = vmax.f32 %v2276_v27, %v2277_v58  ;;  %v2285_v23 = vmax.f32 %v2283_v33, %v2284_v37  ;;  %v7503_v58 = vpop.permute.xlu2 %1307 }
 0x33f   : > { %v4596_v6 = vpack.i.bf16 %v7437_v34, %v3185_v18  ;;  %v2689_v48 = vsel %vm9807_vm6, %v7203_v44, %v2688_v49  ;;  %v2751_v53 = vsel %vm2674_vm15, %v7365_v10, %v2750_v50  ;;  %v2693_v59 = vsel %vm2674_vm15, %v7337_v15, %v2692_v47 }
 0x340   : > { %v2272_v55 = vrot.slane %v2271_v30, 1  ;;  %v2279_v4 = vrot.slane %v2278_v62, 1  ;;  %v2823_v20 = vsel %vm9850_vm13, %v7337_v15, %v7289_v63  ;;  %v7456_v29 = vmax.f32 %v2264_v14, %v2265_v3 }
 0x341   : > { %4597 = vrot.lane.b32.xlu2 %v4596_v6, %s9803_s23  ;;  %v2694_v44 = vsel %vm9849_vm8, %v7365_v10, %v2693_v59  ;;  %v7461_v31 = vpop.permute.xlu1 %1189  ;;  %v1369_v13 = vpop.permute.xlu0 %1368  ;;  %v2752_v60 = vsel %vm9849_vm8, %v7376_v38, %v2751_v53  ;;  %v2824_v51 = vsel %vm2672_vm11, %v7365_v10, %v2823_v20  ;;  %v2286_v54 = vrot.slane %v2285_v23, 1  ;;  %s9830_s23 = smov 104  }
 0x342   : > { %v7469_v63 = vsel %vm9802_vm12, %v7215_v46, %v2689_v48  ;;  %v2695_v12 = vsel %vm9810_vm10, %v7376_v38, %v2694_v44  ;;  %v2897_v61 = vsel %vm9850_vm13, %v7365_v10, %v7337_v15  ;;  %v7476_v40 = vmax.f32 %v2271_v30, %v2272_v55 }
 0x343   : > { %v7478_v45 = vmax.f32 %v2278_v62, %v2279_v4  ;;  %v2696_v27 = vsel %vm9807_vm6, %v7384_v36, %v2695_v12  ;;  %v2753_v33 = vsel %vm9810_vm10, %v7384_v36, %v2752_v60  ;;  %v1769_v18 = vsel %vm9827_vm5, %v1749_v43, %v1369_v13  ;;  %v4881_v12 = vld [vmem:[%s5083_s25 + $0x70] sm:$0xff] }
 0x344   : > { %v7486_v46 = vsel %vm9802_vm12, %v7394_v32, %v2696_v27  ;;  %v2754_v22 = vsel %vm9807_vm6, %v7394_v32, %v2753_v33  ;;  %v2825_v15 = vsel %vm2674_vm15, %v7376_v38, %v2824_v51  ;;  %v2898_v16 = vsel %vm2672_vm11, %v7376_v38, %v2897_v61  ;;  %v10252_v27 = vld [vmem:[#allocation95_spill] sm:$0xff] }
 0x345   : > { %v4601_v11 = vpack.i.bf16 %v7486_v46, %v7469_v63  ;;  %v7497_v49 = vsel %vm9802_vm12, %v7456_v29, %v2754_v22  ;;  %v2826_v14 = vsel %vm9849_vm8, %v7384_v36, %v2825_v15  ;;  %v2899_v47 = vsel %vm2674_vm15, %v7384_v36, %v2898_v16  ;;  %v10254_v15 = vld [vmem:[#allocation125_spill] sm:$0xff] }
 0x346   : > { %v4606_v37 = vpack.i.bf16 %v7497_v49, %v7296_v9  ;;  %v2827_v24 = vsel %vm9810_vm10, %v7394_v32, %v2826_v14  ;;  %v2971_v50 = vsel %vm9850_vm13, %v7376_v38, %v7365_v10  ;;  %v2900_v30 = vsel %vm9849_vm8, %v7394_v32, %v2899_v47 }
 0x347   : > { %4602 = vrot.lane.b32.xlu0 %v4601_v11, %s9797_s27  ;;  %v2828_v3 = vsel %vm9807_vm6, %v7456_v29, %v2827_v24  ;;  %v2972_v9 = vsel %vm2672_vm11, %v7384_v36, %v2971_v50  ;;  %v2901_v10 = vsel %vm9810_vm10, %v7456_v29, %v2900_v30  ;;  %v1789_v43 = vsel %vm9809_vm3, %v1769_v18, %v1428_v1  ;;  %s9834_s27 = smov 88   ;;  %v7572_v11 = vld [vmem:[%s10179_s2] ss:$0 sm:$0xff]  ;;  %v10257_v50 = vld [vmem:[#allocation137_spill] sm:$0xff] }
 0x348   : > { %4607 = vrot.lane.b32.xlu1 %v4606_v37, %s9795_s24  ;;  %v7524_v62 = vsel %vm9802_vm12, %v7476_v40, %v2828_v3  ;;  %v2973_v6 = vsel %vm2674_vm15, %v7394_v32, %v2972_v9  ;;  %v2902_v53 = vsel %vm9807_vm6, %v7476_v40, %v2901_v10  ;;  %v7537_v20 = vmax.f32 %v2285_v23, %v2286_v54  ;;  %s9799_s24 = smov 80   ;;  %v7559_v54 = vpop.permute.xlu2 %1193  ;;  %v4883_v37 = vld [vmem:[%s5083_s25 + $0x80] sm:$0xff]  ;;  %v10259_v30 = vld [vmem:[#allocation77_spill] sm:$0xff] }
 0x349   : > { %v4611_v48 = vpack.i.bf16 %v7524_v62, %v7307_v52  ;;  %v1487_v55 = vpop.permute.xlu1 %1486  ;;  %v1249_v4 = vpop.permute.xlu0 %1248  ;;  %v2974_v59 = vsel %vm9849_vm8, %v7456_v29, %v2973_v6  ;;  %v7541_v44 = vsel %vm9802_vm12, %v7478_v45, %v2902_v53  ;;  %vm10251_vm9 = vcmask 23552   ;;  %v10256_v24 = vld [vmem:[#allocation63_spill] sm:$0xff]  ;;  %v10264_v53 = vld [vmem:[#allocation194_spill] sm:$0xff] }
 0x34a   : > { %v1809_v1 = vsel %vm9808_vm2, %v1789_v43, %v1487_v55  ;;  %v2975_v52 = vsel %vm9810_vm10, %v7476_v40, %v2974_v59  ;;  %v4616_v13 = vpack.i.bf16 %v7541_v44, %v7324_v0  ;;  %v10250_v0 = vld [vmem:[#allocation41_spill] sm:$0xff]  ;;  %v1530_v47 = vsel %vm10251_vm9, %v4883_v37, %v10256_v24  ;;  %v10260_v10 = vld [vmem:[#allocation187_spill] sm:$0xff] }
 0x34b   : > { %4612 = vrot.lane.b32.xlu2 %v4611_v48, %s9799_s24  ;;  %4476 = vmatmul.msk.f32.vlgmr.msra.gmra.mxu3 %vm9801_vm0, %v1809_v1  ;;  %v2976_v23 = vsel %vm9807_vm6, %v7478_v45, %v2975_v52  ;;  %v1528_v61 = vsel %vm10251_vm9, %v4881_v12, %v10250_v0  ;;  %s9811_s24 = smov 96   ;;  %vm10253_vm0 = vcmask 48128   ;;  %vm10258_vm6 = vcmask 97280   ;;  %v10262_v43 = vld [vmem:[#allocation129_spill] sm:$0xff]  ;;  %v10266_v1 = vld [vmem:[#allocation159_spill] sm:$0xff] }
 0x34c   : > { %v7554_v60 = vsel %vm9802_vm12, %v7537_v20, %v2976_v23  ;;  %v1548_v33 = vsel %vm10253_vm0, %v1528_v61, %v10252_v27  ;;  %vm10255_vm12 = vcmask 72704   ;;  %v1550_v9 = vsel %vm10253_vm0, %v1530_v47, %v10259_v30  ;;  %vm10267_vm10 = vmmov %vm10258_vm6  ;;  %v10272_v0 = vld [vmem:[#allocation207_spill] sm:$0xff] }
 0x34d   : > { %v4621_v51 = vpack.i.bf16 %v7554_v60, %v7349_v5  ;;  %v1568_v5 = vsel %vm10255_vm12, %v1548_v33, %v10254_v15  ;;  %vm10261_vm12 = vcmask 121856   ;;  %vm10263_vm2 = vcmask 72704  }
 0x34e   : > { %v1588_v3 = vsel %vm10258_vm6, %v1568_v5, %v10257_v50  ;;  %v1570_v48 = vsel %vm10263_vm2, %v1550_v9, %v10262_v43  ;;  %vm10265_vm3 = vcmask 146432   ;;  %vm10269_vm9 = vcmask 171008   ;;  %vm10271_vm6 = vmmov %vm10261_vm12 }
 0x34f   : > { %4617 = vrot.lane.b32.xlu0 %v4616_v13, %s9834_s27  ;;  %v1608_v6 = vsel %vm10261_vm12, %v1588_v3, %v10260_v10  ;;  %v1590_v52 = vsel %vm10267_vm10, %v1570_v48, %v10266_v1  ;;  %v10268_v13 = vld [vmem:[#allocation197_spill] sm:$0xff]  ;;  %vm10273_vm0 = vcmask 195584   ;;  %v3045_v27 = vsel %vm9850_vm13, %v7384_v36, %v7376_v38  ;;  %vm10275_vm2 = vmmov %vm10265_vm3  ;;  %v10276_v10 = vld [vmem:[#allocation199_spill] sm:$0xff] }
 0x350   : > { %4622 = vrot.lane.b32.xlu1 %v4621_v51, %s9811_s24  ;;  %v1628_v55 = vsel %vm10265_vm3, %v1608_v6, %v10264_v53  ;;  %v10270_v51 = vld [vmem:[#allocation171_spill] sm:$0xff]  ;;  %v1485_v50 = vpop.permute.xlu2 %1484  ;;  %v3046_v9 = vsel %vm2672_vm11, %v7394_v32, %v3045_v27  ;;  %vm10277_vm3 = vmmov %vm10269_vm9  ;;  %vm10278_vm10 = vcmask 269312   ;;  %s9822_s24 = smov 120  }
 0x351   : > { %v1367_v18 = vpop.permute.xlu1 %1366  ;;  %v1912_v22 = vpop.f32.mrf.mxu0  ;;  %v1648_v23 = vsel %vm10269_vm9, %v1628_v55, %v10268_v13  ;;  %v1610_v12 = vsel %vm10271_vm6, %v1590_v52, %v10270_v51  ;;  %v3047_v48 = vsel %vm2674_vm15, %v7456_v29, %v3046_v9  ;;  %v3193_v52 = vsel %vm9850_vm13, %v7456_v29, %v7394_v32  ;;  %v10279_v13 = vld [vmem:[#allocation202_spill] sm:$0xff]  ;;  %vm10280_vm12 = vmmov %vm10273_vm0 }
 0x352   : > { %v1913_v14 = vadd.f32 %v7572_v11, %v1912_v22  ;;  %v1135_v16 = vpop.permute.xlu0 %1134  ;;  %v1668_v61 = vsel %vm10273_vm0, %v1648_v23, %v10272_v0  ;;  %vm10281_vm9 = vcmask 1045509   ;;  %vm10282_vm6 = vmmov %vm10278_vm10  ;;  %vm10283_vm0 = vcmask 343040  }
 0x353   : > { %v1688_v33 = vsel %vm9836_vm14, %v1668_v61, %v7386_v8  ;;  %v3048_v61 = vsel %vm9849_vm8, %v7476_v40, %v3047_v48 }
 0x354   : > { %v7588_v59 = vmax.f32 %v1913_v14, 0.0  ;;  %v10274_v14 = vld [vmem:[#allocation196_spill] sm:$0xff]  ;;  %v1708_v24 = vsel %vm9833_vm4, %v1688_v33, %v7461_v31  ;;  %v3119_v31 = vsel %vm9850_vm13, %v7394_v32, %v7384_v36  ;;  %v3194_v32 = vsel %vm2672_vm11, %v7476_v40, %v3193_v52 }
 0x355   : > { %v1630_v37 = vsel %vm10275_vm2, %v1610_v12, %v10274_v14  ;;  %v1728_v43 = vsel %vm10278_vm10, %v1708_v24, %v1249_v4  ;;  %v3120_v4 = vsel %vm2672_vm11, %v7456_v29, %v3119_v31  ;;  %v3049_v24 = vsel %vm10281_vm9, %v7478_v45, %v3048_v61 }
 0x356   : > { %v2004_v22 = vrot.slane %v7588_v59, 2  ;;  %v2005_v15 = vrot.slane %v7588_v59, 4  ;;  %v2288_v5 = vsel %vm9845_vm7, %v7588_v59, -inf  ;;  %v1650_v6 = vsel %vm10277_vm3, %v1630_v37, %v10276_v10 }
 0x357   : > { %v2289_v3 = vrot.slane %v2288_v5, 4  ;;  %v1670_v23 = vsel %vm10280_vm12, %v1650_v6, %v10279_v13  ;;  %v1748_v36 = vsel %vm9832_vm1, %v1728_v43, %v7503_v58  ;;  %vm10284_vm2 = vcmask 367616   ;;  %vm10287_vm12 = vmmov %vm10281_vm9 }
 0x358   : > { %v2295_v38 = vsel %vm9845_vm7, %v2004_v22, -inf  ;;  %v2302_v8 = vsel %vm9845_vm7, %v2005_v15, -inf  ;;  %v1690_v27 = vsel %vm9836_vm14, %v1670_v23, %v1135_v16  ;;  %v1768_v14 = vsel %vm9827_vm5, %v1748_v36, %v1367_v18  ;;  %v1430_v6 = vpop.permute.xlu2 %1429 }
 0x359   : > { %v1253_v47 = vpop.permute.xlu1 %1252  ;;  %v2290_v53 = vmax.f32 %v2288_v5, %v2289_v3  ;;  %v2296_v55 = vrot.slane %v2295_v38, 4  ;;  %v2303_v1 = vrot.slane %v2302_v8, 4  ;;  %v3121_v5 = vsel %vm2674_vm15, %v7476_v40, %v3120_v4 }
 0x35a   : > { %v1426_v30 = vpop.permute.xlu0 %1425  ;;  %v1710_v16 = vsel %vm9833_vm4, %v1690_v27, %v7559_v54  ;;  %v3122_v43 = vsel %vm9849_vm8, %v7478_v45, %v3121_v5  ;;  %v3195_v18 = vsel %vm2674_vm15, %v7478_v45, %v3194_v32  ;;  %vm10285_vm3 = vcmask 1046534  }
 0x35b   : > { %v2291_v51 = vrot.slane %v2290_v53, 2  ;;  %v2297_v12 = vmax.f32 %v2295_v38, %v2296_v55  ;;  %v2304_v0 = vmax.f32 %v2302_v8, %v2303_v1  ;;  %v1730_v9 = vsel %vm10282_vm6, %v1710_v16, %v1253_v47  ;;  %vm10289_vm6 = vmmov %vm10285_vm3 }
 0x35c   : > { %v1788_v10 = vsel %vm10283_vm0, %v1768_v14, %v1426_v30  ;;  %v3050_v47 = vsel %vm10285_vm3, %v7537_v20, %v3049_v24  ;;  %vm10286_vm10 = vcmask 392192   ;;  %v3123_v52 = vsel %vm10287_vm12, %v7537_v20, %v3122_v43  ;;  %vm10290_vm0 = vmmov %vm10287_vm12  ;;  %v10309_v43 = vld [vmem:[#allocation198_spill] sm:$0xff] }
 0x35d   : > { %v2292_v33 = vmax.f32 %v2290_v53, %v2291_v51  ;;  %v2298_v22 = vrot.slane %v2297_v12, 2  ;;  %v2305_v15 = vrot.slane %v2304_v0, 2  ;;  %v1808_v54 = vsel %vm10284_vm2, %v1788_v10, %v1485_v50  ;;  %v10307_v10 = vld [vmem:[#allocation195_spill] sm:$0xff] }
 0x35e   : > { %4475 = vmatmul.msk.f32.gmra.mxu2 %vm10286_vm10, %v1808_v54  ;;  %v3196_v13 = vsel %vm9849_vm8, %v7537_v20, %v3195_v18  ;;  %vm10288_vm9 = vcmask 1047559   ;;  %vm10292_vm2 = vcmask 23552   ;;  %vm10294_vm10 = vmmov %vm10289_vm6  ;;  %vm10296_vm12 = vcmask 48128   ;;  %v1921_v54 = vpop.f32.mrf.mxu2 }
 0x35f   : > { %v2293_v3 = vrot.slane %v2292_v33, 1  ;;  %v2299_v38 = vmax.f32 %v2297_v12, %v2298_v22  ;;  %v2306_v58 = vmax.f32 %v2304_v0, %v2305_v15  ;;  %v4884_v12 = vld [vmem:[%s5083_s25 + $0x88] sm:$0xff]  ;;  %v10291_v0 = vld [vmem:[#allocation47_spill] sm:$0xff]  ;;  %vm10293_vm3 = vmmov %vm10288_vm9  ;;  %v2006_v24 = vrot.slane %v7588_v59, 6 }
 0x360   : > { %v1531_v61 = vsel %vm10292_vm2, %v4884_v12, %v10291_v0  ;;  %vm10302_vm2 = vcmask 97280  }
 0x361   : > { %v1371_v37 = vpop.permute.xlu1 %1370  ;;  %v7650_v48 = vmax.f32 %v2292_v33, %v2293_v3  ;;  %v2300_v31 = vrot.slane %v2299_v38, 1  ;;  %v2307_v53 = vrot.slane %v2306_v58, 1  ;;  %v10295_v33 = vld [vmem:[#allocation98_spill] sm:$0xff] }
 0x362   : > { %v1312_v8 = vpop.permute.xlu0 %1311  ;;  %v1551_v22 = vsel %vm10296_vm12, %v1531_v61, %v10295_v33  ;;  %vm10306_vm12 = vcmask 392192  }
 0x363   : > { %v1750_v55 = vsel %vm9832_vm1, %v1730_v9, %v1312_v8  ;;  %v7656_v30 = vmax.f32 %v2299_v38, %v2300_v31  ;;  %v7658_v1 = vmax.f32 %v2306_v58, %v2307_v53  ;;  %v7668_v50 = vsel %vm10288_vm9, %v7650_v48, %v3050_v47  ;;  %vm10297_vm9 = vmmov %vm10293_vm3  ;;  %v10304_v9 = vld [vmem:[#allocation190_spill] sm:$0xff]  ;;  %v10311_v53 = vld [vmem:[#allocation100_spill] sm:$0xff] }
 0x364   : > { %v1770_v23 = vsel %vm9827_vm5, %v1750_v55, %v1371_v37  ;;  %v3124_v4 = vsel %vm10289_vm6, %v7650_v48, %v3123_v52  ;;  %v3197_v51 = vsel %vm10290_vm0, %v7650_v48, %v3196_v13  ;;  %v4626_v36 = vpack.i.bf16 %v7668_v50, %v7390_v56  ;;  %v10298_v37 = vld [vmem:[#allocation128_spill] sm:$0xff] }
 0x365   : > { %v7681_v27 = vsel %vm10293_vm3, %v7656_v30, %v3124_v4  ;;  %v3198_v32 = vsel %vm10294_vm10, %v7656_v30, %v3197_v51  ;;  %vm10299_vm6 = vcmask 72704   ;;  %vm10300_vm0 = vcmask 343040  }
 0x366   : > { %v4631_v15 = vpack.i.bf16 %v7681_v27, %v7400_v19  ;;  %v7691_v14 = vsel %vm10297_vm9, %v7658_v1, %v3198_v32  ;;  %v1571_v56 = vsel %vm10299_vm6, %v1551_v22, %v10298_v37  ;;  %v1790_v3 = vsel %vm10300_vm0, %v1770_v23, %v1430_v6  ;;  %4627 = vrot.lane.b32.xlu2 %v4626_v36, %s9830_s23  ;;  %v10301_v19 = vld [vmem:[#allocation143_spill] sm:$0xff]  ;;  %v1196_v6 = vpop.permute.xlu2 %1195  ;;  %s10365_s23 = smov 104  }
 0x367   : > { %v4636_v38 = vpack.i.bf16 %v7691_v14, %v7437_v34  ;;  %v1591_v16 = vsel %vm10302_vm2, %v1571_v56, %v10301_v19  ;;  %vm10303_vm3 = vcmask 367616   ;;  %vm10305_vm10 = vcmask 121856  }
 0x368   : > { %4632 = vrot.lane.b32.xlu0 %v4631_v15, %s9824_s29  ;;  %v1611_v59 = vsel %vm10305_vm10, %v1591_v16, %v10304_v9  ;;  %vm10308_vm9 = vcmask 146432   ;;  %vm10310_vm6 = vcmask 171008   ;;  %v2309_v31 = vsel %vm9845_vm7, %v2006_v24, -inf  ;;  %s10350_s29 = smov 72  }
 0x369   : > { %v1137_v5 = vpop.permute.xlu1 %1136  ;;  %4637 = vrot.lane.b32.xlu1 %v4636_v38, %s9822_s24  ;;  %v1631_v34 = vsel %vm10308_vm9, %v1611_v59, %v10307_v10  ;;  %vm10312_vm0 = vcmask 195584   ;;  %v2310_v52 = vrot.slane %v2309_v31, 4  ;;  %v1922_v4 = vadd.f32 %v7572_v11, %v1921_v54  ;;  %s10370_s24 = smov 112  }
 0x36a   : > { %v1489_v58 = vpop.permute.xlu0 %1488  ;;  %v1651_v18 = vsel %vm10310_vm6, %v1631_v34, %v10309_v43  ;;  %vm10313_vm2 = vcmask 269312   ;;  %v2756_v38 = vsel %vm9850_vm13, %v7478_v45, %v7476_v40  ;;  %vm10315_vm10 = vcmask 367616  }
 0x36b   : > { %v1810_v8 = vsel %vm10303_vm3, %v1790_v3, %v1489_v58  ;;  %v1671_v55 = vsel %vm10312_vm0, %v1651_v18, %v10311_v53  ;;  %v2311_v0 = vmax.f32 %v2309_v31, %v2310_v52  ;;  %v1957_v61 = vmax.f32 %v1922_v4, 0.0 }
 0x36c   : > { %4477 = vmatmul.msk.f32.gmra.mxu3 %vm10306_vm12, %v1810_v8  ;;  %v1691_v47 = vsel %vm9836_vm14, %v1671_v55, %v1137_v5  ;;  %vm10314_vm3 = vcmask 343040   ;;  %v2830_v43 = vsel %vm9850_vm13, %v7537_v20, %v7478_v45  ;;  %v2904_v55 = vsel %vm9850_vm13, %v7650_v48, %v7537_v20 }
 0x36d   : > { %v1711_v51 = vsel %vm9833_vm4, %v1691_v47, %v1196_v6  ;;  %v2312_v33 = vrot.slane %v2311_v0, 2  ;;  %v7723_v24 = vsel %vm9845_vm7, %v1957_v61, -inf  ;;  %v2013_v58 = vrot.slane %v1957_v61, 2 }
 0x36e   : > { %v1373_v32 = vpop.permute.xlu2 %1372  ;;  %v2014_v19 = vrot.slane %v1957_v61, 4  ;;  %v2015_v8 = vrot.slane %v1957_v61, 6  ;;  %v2373_v34 = vrot.slane %v7723_v24, 4  ;;  %v2757_v6 = vsel %vm2672_vm11, %v7537_v20, %v2756_v38 }
 0x36f   : > { %v2313_v9 = vmax.f32 %v2311_v0, %v2312_v33  ;;  %v2758_v31 = vsel %vm2674_vm15, %v7650_v48, %v2757_v6  ;;  %v2831_v53 = vsel %vm2672_vm11, %v7650_v48, %v2830_v43  ;;  %vm10316_vm9 = vcmask 1045509  }
 0x370   : > { %v7750_v4 = vsel %vm9845_vm7, %v2014_v19, -inf  ;;  %vm10317_vm6 = vcmask 1046534   ;;  %vm10318_vm0 = vmmov %vm10316_vm9  ;;  %vm10361_vm4 = vcmask 1046534   ;;  %vm10366_vm14 = vcmask 1046534  }
 0x371   : > { %v1314_v13 = vpop.permute.xlu1 %1313  ;;  %v2387_v19 = vrot.slane %v7750_v4, 4 }
 0x372   : > { %v1255_v23 = vpop.permute.xlu0 %1254 }
 0x373   : > { %v1731_v12 = vsel %vm10313_vm2, %v1711_v51, %v1255_v23  ;;  %v7747_v23 = vsel %vm9845_vm7, %v2013_v58, -inf  ;;  %v7753_v51 = vsel %vm9845_vm7, %v2015_v8, -inf  ;;  %v2978_v8 = vsel %vm9850_vm13, %v7656_v30, %v7650_v48 }
 0x374   : > { %v1751_v36 = vsel %vm9832_vm1, %v1731_v12, %v1314_v13  ;;  %v2314_v12 = vrot.slane %v2313_v9, 1  ;;  %v2380_v58 = vrot.slane %v7747_v23, 4  ;;  %vm10319_vm2 = vcmask 1047559  }
 0x375   : > { %v1771_v15 = vsel %vm9827_vm5, %v1751_v36, %v1373_v32  ;;  %vm10348_vm5 = vcmask 1046534   ;;  %vm10357_vm1 = vcmask 1045509  }
 0x376   : > { %v1924_v16 = vpop.f32.mrf.mxu2 }
 0x377   : > { %v1925_v18 = vadd.f32 %v7572_v11, %v1924_v16  ;;  %v7766_v16 = vmax.f32 %v2313_v9, %v2314_v12 }
 0x379   : > { %v1915_v22 = vpop.f32.mrf.mxu0  ;;  %v1491_v56 = vpop.permute.xlu1 %1490  ;;  %v1958_v33 = vmax.f32 %v1925_v18, 0.0 }
 0x37a   : > { %v1916_v5 = vadd.f32 %v7572_v11, %v1915_v22  ;;  %v1432_v37 = vpop.permute.xlu0 %1431  ;;  %v2759_v22 = vsel %vm9849_vm8, %v7656_v30, %v2758_v31 }
 0x37b   : > { %v1791_v3 = vsel %vm10314_vm3, %v1771_v15, %v1432_v37  ;;  %v2832_v15 = vsel %vm2674_vm15, %v7656_v30, %v2831_v53  ;;  %v2016_v18 = vrot.slane %v1958_v33, 2  ;;  %v2760_v31 = vsel %vm10316_vm9, %v7658_v1, %v2759_v22  ;;  %vm10320_vm3 = vmmov %vm10317_vm6 }
 0x37c   : > { %v1955_v59 = vmax.f32 %v1916_v5, 0.0  ;;  %v1811_v10 = vsel %vm10315_vm10, %v1791_v3, %v1491_v56  ;;  %v2905_v5 = vsel %vm2672_vm11, %v7656_v30, %v2904_v55  ;;  %v2833_v53 = vsel %vm9849_vm8, %v7658_v1, %v2832_v15  ;;  %vm10321_vm10 = vmmov %vm10318_vm0 }
 0x37d   : > { %4478 = vmatmul.msk.f32.gmra.mxu3 %vm10306_vm12, %v1811_v10  ;;  %v2906_v55 = vsel %vm2674_vm15, %v7658_v1, %v2905_v5  ;;  %v2018_v12 = vrot.slane %v1958_v33, 6  ;;  %v2394_v15 = vrot.slane %v7753_v51, 4  ;;  %v2761_v5 = vsel %vm10317_vm6, %v7766_v16, %v2760_v31  ;;  %vm10322_vm12 = vmmov %vm10319_vm2 }
 0x37e   : > { %v2007_v54 = vrot.slane %v1955_v59, 2  ;;  %v2008_v47 = vrot.slane %v1955_v59, 4  ;;  %v2009_v52 = vrot.slane %v1955_v59, 6  ;;  %v2316_v13 = vsel %vm9845_vm7, %v1955_v59, -inf  ;;  %vm10323_vm9 = vmmov %vm10320_vm3 }
 0x37f   : > { %v2317_v0 = vrot.slane %v2316_v13, 4  ;;  %vm10324_vm6 = vmmov %vm10318_vm0 }
 0x380   : > { %v2323_v61 = vsel %vm9845_vm7, %v2007_v54, -inf  ;;  %v2330_v36 = vsel %vm9845_vm7, %v2008_v47, -inf  ;;  %v2337_v32 = vsel %vm9845_vm7, %v2009_v52, -inf }
 0x381   : > { %v2318_v37 = vmax.f32 %v2316_v13, %v2317_v0  ;;  %v2324_v56 = vrot.slane %v2323_v61, 4  ;;  %v2331_v3 = vrot.slane %v2330_v36, 4  ;;  %v2338_v38 = vrot.slane %v2337_v32, 4 }
 0x382   : > { %v2017_v13 = vrot.slane %v1958_v33, 4  ;;  %v2400_v0 = vsel %vm9845_vm7, %v1958_v33, -inf }
 0x383   : > { %v2319_v59 = vrot.slane %v2318_v37, 2  ;;  %v2325_v10 = vmax.f32 %v2323_v61, %v2324_v56  ;;  %v2332_v6 = vmax.f32 %v2330_v36, %v2331_v3  ;;  %v2339_v43 = vmax.f32 %v2337_v32, %v2338_v38 }
 0x384   : > { %v2979_v61 = vsel %vm2672_vm11, %v7658_v1, %v2978_v8  ;;  %v2907_v3 = vsel %vm9849_vm8, %v7766_v16, %v2906_v55  ;;  %v2401_v38 = vrot.slane %v2400_v0, 4 }
 0x385   : > { %v2320_v9 = vmax.f32 %v2318_v37, %v2319_v59  ;;  %v2326_v54 = vrot.slane %v2325_v10, 2  ;;  %v2333_v47 = vrot.slane %v2332_v6, 2  ;;  %v2340_v52 = vrot.slane %v2339_v43, 2 }
 0x386   : > { %v2834_v37 = vsel %vm10318_vm0, %v7766_v16, %v2833_v53  ;;  %v2980_v31 = vsel %vm2674_vm15, %v7766_v16, %v2979_v61  ;;  %vm10325_vm0 = vmmov %vm10319_vm2 }
 0x387   : > { %v2321_v36 = vrot.slane %v2320_v9, 1  ;;  %v2327_v32 = vmax.f32 %v2325_v10, %v2326_v54  ;;  %v2334_v22 = vmax.f32 %v2332_v6, %v2333_v47  ;;  %v2341_v56 = vmax.f32 %v2339_v43, %v2340_v52 }
 0x388   : > { %v2407_v10 = vsel %vm9845_vm7, %v2016_v18, -inf  ;;  %v2414_v6 = vsel %vm9845_vm7, %v2017_v13, -inf  ;;  %v2421_v43 = vsel %vm9845_vm7, %v2018_v12, -inf }
 0x389   : > { %v7787_v33 = vmax.f32 %v2320_v9, %v2321_v36  ;;  %v2328_v59 = vrot.slane %v2327_v32, 1  ;;  %v2335_v8 = vrot.slane %v2334_v22, 1  ;;  %v2342_v47 = vrot.slane %v2341_v56, 1 }
 0x38a   : > { %v2408_v12 = vrot.slane %v2407_v10, 4 }
 0x38b   : > { %v7794_v54 = vmax.f32 %v2327_v32, %v2328_v59  ;;  %v7796_v53 = vmax.f32 %v2334_v22, %v2335_v8  ;;  %v7800_v55 = vsel %vm10319_vm2, %v7787_v33, %v2761_v5  ;;  %v2835_v18 = vsel %vm10320_vm3, %v7787_v33, %v2834_v37  ;;  %vm10326_vm2 = vmmov %vm10320_vm3 }
 0x38c   : > { %v4641_v9 = vpack.i.bf16 %v7800_v55, %v7497_v49  ;;  %v2908_v52 = vsel %vm10321_vm10, %v7787_v33, %v2907_v3  ;;  %v2981_v13 = vsel %vm9849_vm8, %v7787_v33, %v2980_v31  ;;  %v2415_v32 = vrot.slane %v2414_v6, 4  ;;  %vm10327_vm3 = vmmov %vm10325_vm0 }
 0x38d   : > { %v7812_v61 = vsel %vm10322_vm12, %v7794_v54, %v2835_v18  ;;  %v2909_v36 = vsel %vm10323_vm9, %v7794_v54, %v2908_v52  ;;  %v2982_v49 = vsel %vm10324_vm6, %v7794_v54, %v2981_v13  ;;  %v2422_v3 = vrot.slane %v2421_v43, 4  ;;  %vm10328_vm10 = vmmov %vm10326_vm2 }
 0x38e   : > { %4642 = vrot.lane.b32.xlu2 %v4641_v9, %s9820_s28  ;;  %v4646_v22 = vpack.i.bf16 %v7812_v61, %v7524_v62  ;;  %v7823_v5 = vsel %vm10325_vm0, %v7796_v53, %v2909_v36  ;;  %v2983_v37 = vsel %vm10326_vm2, %v7796_v53, %v2982_v49  ;;  %v7827_v59 = vmax.f32 %v2341_v56, %v2342_v47  ;;  %vm10329_vm12 = vmmov %vm10325_vm0  ;;  %s10347_s28 = smov 64  }
 0x38f   : > { %v4651_v8 = vpack.i.bf16 %v7823_v5, %v7541_v44  ;;  %v2374_v31 = vmax.f32 %v7723_v24, %v2373_v34  ;;  %v2381_v62 = vmax.f32 %v7747_v23, %v2380_v58  ;;  %v2388_v9 = vmax.f32 %v7750_v4, %v2387_v19  ;;  %vm10330_vm2 = vmmov %vm10324_vm6 }
 0x390   : > { %4647 = vrot.lane.b32.xlu0 %v4646_v22, %s9818_s17  ;;  %v7840_v18 = vsel %vm10327_vm3, %v7827_v59, %v2983_v37  ;;  %v2395_v56 = vmax.f32 %v7753_v51, %v2394_v15  ;;  %v2402_v47 = vmax.f32 %v2400_v0, %v2401_v38  ;;  %v2409_v44 = vmax.f32 %v2407_v10, %v2408_v12  ;;  %v4568_v10 = vpop.permute.xlu2 %4567  ;;  %vm10332_vm3 = vmmov %vm10328_vm10  ;;  %s10339_s17 = smov 48  }
 0x391   : > { %4652 = vrot.lane.b32.xlu1 %v4651_v8, %s10249_s21  ;;  %v2416_v52 = vmax.f32 %v2414_v6, %v2415_v32  ;;  %v2423_v13 = vmax.f32 %v2421_v43, %v2422_v3  ;;  %v4656_v36 = vpack.i.bf16 %v7840_v18, %v7554_v60  ;;  %v2375_v24 = vrot.slane %v2374_v31, 2 }
 0x392   : > { %v2382_v34 = vrot.slane %v2381_v62, 2  ;;  %v2389_v23 = vrot.slane %v2388_v9, 2  ;;  %v2396_v58 = vrot.slane %v2395_v56, 2  ;;  %v2403_v4 = vrot.slane %v2402_v47, 2 }
 0x393   : > { %v2410_v19 = vrot.slane %v2409_v44, 2  ;;  %v2417_v49 = vrot.slane %v2416_v52, 2  ;;  %v2424_v22 = vrot.slane %v2423_v13, 2  ;;  %v2681_v51 = vsel %vm10328_vm10, %v7029_v7, %v7108_v39  ;;  %vm10333_vm10 = vmmov %vm10330_vm2 }
 0x394   : > { %v2376_v0 = vmax.f32 %v2374_v31, %v2375_v24  ;;  %v2383_v15 = vmax.f32 %v2381_v62, %v2382_v34  ;;  %v2390_v38 = vmax.f32 %v2388_v9, %v2389_v23  ;;  %v2698_v60 = vsel %vm9850_vm13, %v7476_v40, %v7456_v29 }
 0x395   : > { %v2397_v6 = vmax.f32 %v2395_v56, %v2396_v58  ;;  %v2404_v43 = vmax.f32 %v2402_v47, %v2403_v4  ;;  %v2411_v12 = vmax.f32 %v2409_v44, %v2410_v19  ;;  %v2418_v32 = vmax.f32 %v2416_v52, %v2417_v49 }
 0x396   : > { %4657 = vrot.lane.b32.xlu2 %v4656_v36, %s9816_s22  ;;  %v2425_v37 = vmax.f32 %v2423_v13, %v2424_v22  ;;  %v2699_v3 = vsel %vm2672_vm11, %v7478_v45, %v2698_v60  ;;  %v2377_v8 = vrot.slane %v2376_v0, 1  ;;  %v2384_v36 = vrot.slane %v2383_v15, 1  ;;  %s10341_s22 = smov 56  }
 0x397   : > { %v2391_v41 = vrot.slane %v2390_v38, 1  ;;  %v2683_v7 = vsel %vm10329_vm12, %v7068_v35, %v2681_v51  ;;  %v2398_v31 = vrot.slane %v2397_v6, 1  ;;  %v2405_v62 = vrot.slane %v2404_v43, 1 }
 0x398   : > { %v2412_v9 = vrot.slane %v2411_v12, 1  ;;  %v2419_v24 = vrot.slane %v2418_v32, 1  ;;  %v2426_v40 = vrot.slane %v2425_v37, 1  ;;  %v4570_v56 = vunpack.i.h.bf16 %v4568_v10 }
 0x399   : > { %v2700_v44 = vsel %vm2674_vm15, %v7537_v20, %v2699_v3  ;;  %vm3508_vm9 = vcmask 64512   ;;  %v4569_v45 = vunpack.i.l.bf16 %v4568_v10  ;;  %v7862_v13 = vmax.f32 %v2376_v0, %v2377_v8  ;;  %v7887_v0 = vpop.permute.xlu2 %4582 }
 0x39a   : > { %v2701_v35 = vsel %vm9849_vm8, %v7650_v48, %v2700_v44  ;;  %v7864_v34 = vmax.f32 %v2383_v15, %v2384_v36  ;;  %v7866_v23 = vmax.f32 %v2390_v38, %v2391_v41  ;;  %v3052_v58 = vsel %vm9850_vm13, %v7658_v1, %v7656_v30 }
 0x39b   : > { %v7871_v4 = vmax.f32 %v2397_v6, %v2398_v31  ;;  %v7873_v20 = vmax.f32 %v2404_v43, %v2405_v62  ;;  %v7877_v49 = vsel %vm10324_vm6, %v7656_v30, %v2701_v35  ;;  %v7879_v48 = vmax.f32 %v2411_v12, %v2412_v9  ;;  %vm10334_vm6 = vmmov %vm10332_vm3 }
 0x39c   : > { %v7881_v22 = vmax.f32 %v2418_v32, %v2419_v24  ;;  %v7883_v51 = vmax.f32 %v2425_v37, %v2426_v40  ;;  %v3510_v41 = vsel %vm3508_vm9, %v7469_v63, %v4570_v56  ;;  %v7890_v15 = vsel %vm3508_vm9, %v2683_v7, %v4569_v45 }
 0x39d   : > { %v3053_v10 = vsel %vm2672_vm11, %v7766_v16, %v3052_v58  ;;  %v3126_v30 = vsel %vm9850_vm13, %v7766_v16, %v7658_v1  ;;  %vm3517_vm0 = vcmask 130048   ;;  %v4585_v63 = vunpack.i.h.bf16 %v7887_v0 }
 0x39e   : > { %v3054_v32 = vsel %vm2674_vm15, %v7787_v33, %v3053_v10  ;;  %v3127_v37 = vsel %vm2672_vm11, %v7787_v33, %v3126_v30  ;;  %v3200_v3 = vsel %vm9850_vm13, %v7787_v33, %v7766_v16  ;;  %v4584_v31 = vunpack.i.l.bf16 %v7887_v0 }
 0x39f   : > { %v1927_v39 = vpop.f32.mrf.mxu2  ;;  %v3128_v35 = vsel %vm2674_vm15, %v7794_v54, %v3127_v37  ;;  %v3201_v58 = vsel %vm2672_vm11, %v7794_v54, %v3200_v3 }
 0x3a0   : > { %v1918_v29 = vpop.f32.mrf.mxu0  ;;  %v1928_v52 = vadd.f32 %v7572_v11, %v1927_v39 }
 0x3a1   : > { %v1919_v47 = vadd.f32 %v7572_v11, %v1918_v29  ;;  %v7911_v29 = vpop.permute.xlu0 %4572 }
 0x3a2   : > { %v1959_v38 = vmax.f32 %v1928_v52, 0.0  ;;  %v3055_v52 = vsel %vm9849_vm8, %v7794_v54, %v3054_v32 }
 0x3a3   : > { %v1956_v19 = vmax.f32 %v1919_v47, 0.0  ;;  %v3056_v3 = vsel %vm10330_vm2, %v7796_v53, %v3055_v52  ;;  %vm10335_vm2 = vmmov %vm10329_vm12 }
 0x3a4   : > { %v2019_v62 = vrot.slane %v1959_v38, 2  ;;  %v2020_v9 = vrot.slane %v1959_v38, 4  ;;  %v2428_v24 = vsel %vm9845_vm7, %v1959_v38, -inf  ;;  %v2021_v45 = vrot.slane %v1959_v38, 6 }
 0x3a5   : > { %v2010_v60 = vrot.slane %v1956_v19, 2  ;;  %v2011_v6 = vrot.slane %v1956_v19, 4  ;;  %v2012_v43 = vrot.slane %v1956_v19, 6  ;;  %v2344_v12 = vsel %vm9845_vm7, %v1956_v19, -inf }
 0x3a6   : > { %v2345_v8 = vrot.slane %v2344_v12, 4  ;;  %v2442_v38 = vsel %vm9845_vm7, %v2020_v9, -inf  ;;  %v2449_v37 = vsel %vm9845_vm7, %v2021_v45, -inf  ;;  %v2611_v9 = vld [vmem:[%s10331_s3 + $0x78] sm:$0xff]  ;;  %v4574_v45 = vunpack.i.l.bf16 %v7911_v29 }
 0x3a7   : > { %v2351_v36 = vsel %vm9845_vm7, %v2010_v60, -inf  ;;  %v2358_v7 = vsel %vm9845_vm7, %v2011_v6, -inf  ;;  %v2365_v39 = vsel %vm9845_vm7, %v2012_v43, -inf  ;;  %v4575_v6 = vunpack.i.h.bf16 %v7911_v29  ;;  %3644 = vmatpush.msra.mxu1 %v2611_v9 }
 0x3a8   : > { %v2346_v40 = vmax.f32 %v2344_v12, %v2345_v8  ;;  %v2352_v56 = vrot.slane %v2351_v36, 4  ;;  %v2359_v47 = vrot.slane %v2358_v7, 4  ;;  %v2366_v44 = vrot.slane %v2365_v39, 4 }
 0x3a9   : > { %v2429_v43 = vrot.slane %v2428_v24, 4  ;;  %v2435_v12 = vsel %vm9845_vm7, %v2019_v62, -inf  ;;  %v3057_v21 = vsel %vm10332_vm3, %v7827_v59, %v3056_v3  ;;  %vm10336_vm3 = vmmov %vm10333_vm10 }
 0x3aa   : > { %v2347_v19 = vrot.slane %v2346_v40, 2  ;;  %v2353_v10 = vmax.f32 %v2351_v36, %v2352_v56  ;;  %v2360_v30 = vmax.f32 %v2358_v7, %v2359_v47  ;;  %v2367_v60 = vmax.f32 %v2365_v39, %v2366_v44 }
 0x3ab   : > { %v3129_v36 = vsel %vm9849_vm8, %v7796_v53, %v3128_v35  ;;  %v3202_v7 = vsel %vm2674_vm15, %v7796_v53, %v3201_v58  ;;  %v2436_v39 = vrot.slane %v2435_v12, 4  ;;  %v7936_v44 = vsel %vm3517_vm0, %v3510_v41, %v4575_v6 }
 0x3ac   : > { %v2348_v8 = vmax.f32 %v2346_v40, %v2347_v19  ;;  %v2354_v28 = vrot.slane %v2353_v10, 2  ;;  %v2361_v32 = vrot.slane %v2360_v30, 2  ;;  %v2368_v2 = vrot.slane %v2367_v60, 2  ;;  %v2610_v40 = vld [vmem:[%s10331_s3 + $0x70] sm:$0xff] }
 0x3ad   : > { %v2430_v52 = vmax.f32 %v2428_v24, %v2429_v43  ;;  %v2443_v35 = vrot.slane %v2442_v38, 4  ;;  %v3130_v41 = vsel %vm10333_vm10, %v7827_v59, %v3129_v36  ;;  %v3203_v24 = vsel %vm9849_vm8, %v7827_v59, %v3202_v7  ;;  %3645 = vmatpush.msra.mxu1 %v2610_v40  ;;  %vm10337_vm10 = vmmov %vm10334_vm6 }
 0x3ae   : > { %v2349_v56 = vrot.slane %v2348_v8, 1  ;;  %v2355_v62 = vmax.f32 %v2353_v10, %v2354_v28  ;;  %v2362_v47 = vmax.f32 %v2360_v30, %v2361_v32  ;;  %v2369_v10 = vmax.f32 %v2367_v60, %v2368_v2  ;;  %v2609_v30 = vld [vmem:[%s10331_s3 + $0x68] sm:$0xff]  ;;  %v2608_v60 = vld [vmem:[%s10331_s3 + $0x60] sm:$0xff] }
 0x3af   : > { %v2450_v32 = vrot.slane %v2449_v37, 4  ;;  %v2437_v29 = vmax.f32 %v2435_v12, %v2436_v39  ;;  %v2705_v2 = vsel %vm9850_vm13, %v7794_v54, %v7787_v33  ;;  %v2444_v3 = vmax.f32 %v2442_v38, %v2443_v35  ;;  %3646 = vmatpush.msra.mxu1 %v2609_v30  ;;  %v4578_v38 = vpop.permute.xlu1 %4577 }
 0x3b0   : > { %v7939_v58 = vmax.f32 %v2348_v8, %v2349_v56  ;;  %v2356_v28 = vrot.slane %v2355_v62, 1  ;;  %v2363_v19 = vrot.slane %v2362_v47, 1  ;;  %v2431_v8 = vrot.slane %v2430_v52, 2 }
 0x3b1   : > { %v2370_v7 = vrot.slane %v2369_v10, 1  ;;  %3647 = vmatpush.msra.mxu1 %v2608_v60  ;;  %v3518_v40 = vsel %vm3517_vm0, %v7890_v15, %v4574_v45  ;;  %v2438_v35 = vrot.slane %v2437_v29, 2 }
 0x3b2   : > { %v7950_v6 = vmax.f32 %v2355_v62, %v2356_v28  ;;  %v7952_v43 = vmax.f32 %v2362_v47, %v2363_v19  ;;  %v7962_v36 = vsel %vm10329_vm12, %v7939_v58, %v3057_v21  ;;  %v3131_v12 = vsel %vm10334_vm6, %v7939_v58, %v3130_v41  ;;  %v2607_v21 = vld [vmem:[%s10331_s3 + $0x58] sm:$0xff]  ;;  %vm10338_vm6 = vmmov %vm10335_vm2  ;;  %v7992_v28 = vpop.permute.xlu2 %4597 }
 0x3b3   : > { %v4661_v39 = vpack.i.bf16 %v7962_v36, %v7668_v50  ;;  %v3204_v56 = vsel %vm10336_vm3, %v7939_v58, %v3203_v24  ;;  %v2451_v62 = vmax.f32 %v2449_v37, %v2450_v32  ;;  %v2706_v50 = vsel %vm2672_vm11, %v7796_v53, %v2705_v2  ;;  %3648 = vmatpush.msra.mxu1 %v2607_v21  ;;  %v2606_v32 = vld [vmem:[%s10331_s3 + $0x50] sm:$0xff] }
 0x3b4   : > { %v7970_v33 = vsel %vm10335_vm2, %v7950_v6, %v3131_v12  ;;  %v3205_v9 = vsel %vm10337_vm10, %v7950_v6, %v3204_v56  ;;  %vm9843_vm12 = vcmask 261120   ;;  %v2445_v19 = vrot.slane %v2444_v3, 2  ;;  %vm10340_vm2 = vmmov %vm10337_vm10 }
 0x3b5   : > { %v4666_v47 = vpack.i.bf16 %v7970_v33, %v7681_v27  ;;  %4662 = vrot.lane.b32.xlu0 %v4661_v39, %s9828_s26  ;;  %v7988_v37 = vsel %vm10338_vm6, %v7952_v43, %v3205_v9  ;;  %v2707_v27 = vsel %vm2674_vm15, %v7827_v59, %v2706_v50  ;;  %v2703_v15 = vsel %vm10340_vm2, %v7658_v1, %v7877_v49  ;;  %vm10342_vm10 = vmmov %vm10340_vm2  ;;  %v2605_v39 = vld [vmem:[%s10331_s3 + $0x48] sm:$0xff]  ;;  %s10355_s26 = smov 80  }
 0x3b6   : > { %v4671_v30 = vpack.i.bf16 %v7988_v37, %v7691_v14  ;;  %v2708_v45 = vsel %vm9849_vm8, %v7939_v58, %v2707_v27  ;;  %v4580_v41 = vunpack.i.h.bf16 %v4578_v38  ;;  %v4579_v24 = vunpack.i.l.bf16 %v4578_v38  ;;  %vm10343_vm2 = vmmov %vm10338_vm6  ;;  %3649 = vmatpush.msra.mxu1 %v2606_v32 }
 0x3b7   : > { %4667 = vrot.lane.b32.xlu1 %v4666_v47, %s10339_s17  ;;  %v8005_v2 = vmax.f32 %v2369_v10, %v2370_v7  ;;  %v2709_v60 = vsel %vm10336_vm3, %v7950_v6, %v2708_v45  ;;  %v2432_v14 = vmax.f32 %v2430_v52, %v2431_v8  ;;  %v2452_v12 = vrot.slane %v2451_v62, 2 }
 0x3b8   : > { %4672 = vrot.lane.b32.xlu2 %v4671_v30, %s10341_s22  ;;  %v2710_v1 = vsel %vm10342_vm10, %v7952_v43, %v2709_v60  ;;  %v2763_v49 = vsel %vm9850_vm13, %v7796_v53, %v7794_v54  ;;  %v2439_v10 = vmax.f32 %v2437_v29, %v2438_v35  ;;  %v8020_v7 = vsel %vm10338_vm6, %v7766_v16, %v2703_v15 }
 0x3b9   : > { %v8024_v52 = vsel %vm10343_vm2, %v8005_v2, %v2710_v1  ;;  %v2764_v8 = vsel %vm2672_vm11, %v7827_v59, %v2763_v49  ;;  %v2446_v56 = vmax.f32 %v2444_v3, %v2445_v19  ;;  %v2837_v16 = vsel %vm9850_vm13, %v7827_v59, %v7796_v53  ;;  %3650 = vmatpush.msra.mxu1 %v2605_v39  ;;  %v4588_v53 = vpop.permute.xlu0 %4587  ;;  %v4593_v49 = vpop.permute.xlu1 %4592 }
 0x3ba   : > { %v4676_v54 = vpack.i.bf16 %v8024_v52, %v8020_v7  ;;  %v2765_v29 = vsel %vm2674_vm15, %v7939_v58, %v2764_v8  ;;  %v2838_v9 = vsel %vm2672_vm11, %v7939_v58, %v2837_v16  ;;  %v2911_v3 = vsel %vm9850_vm13, %v7939_v58, %v7827_v59  ;;  %v8053_v45 = vpop.permute.xlu2 %4612  ;;  %v2604_v8 = vld [vmem:[%s10331_s3 + $0x40] sm:$0xff] }
 0x3bb   : > { %v2766_v47 = vsel %vm9849_vm8, %v7950_v6, %v2765_v29  ;;  %vm10344_vm3 = vcmask 195584   ;;  %vm9837_vm6 = vcmask 326656   ;;  %vm10346_vm2 = vcmask 1045509   ;;  %3651 = vmatpush.msra.mxu1 %v2604_v8 }
 0x3bc   : > { %v3526_v50 = vsel %vm10344_vm3, %v3518_v40, %v4579_v24  ;;  %vm10345_vm10 = vmmov %vm10344_vm3  ;;  %v2433_v27 = vrot.slane %v2432_v14, 1  ;;  %v2453_v19 = vmax.f32 %v2451_v62, %v2452_v12  ;;  %v2839_v59 = vsel %vm2674_vm15, %v7950_v6, %v2838_v9 }
 0x3bd   : > { %v3527_v35 = vsel %vm10345_vm10, %v7936_v44, %v4580_v41  ;;  %4677 = vrot.lane.b32.xlu0 %v4676_v54, %s10347_s28  ;;  %v2440_v15 = vrot.slane %v2439_v10, 1  ;;  %v2447_v40 = vrot.slane %v2446_v56, 1  ;;  %vm10349_vm3 = vcmask 1047559   ;;  %v2603_v54 = vld [vmem:[%s10331_s3 + $0x38] sm:$0xff]  ;;  %vm10351_vm10 = vmmov %vm10346_vm2 }
 0x3be   : > { %v2912_v32 = vsel %vm2672_vm11, %v7950_v6, %v2911_v3  ;;  %v4600_v62 = vunpack.i.h.bf16 %v7992_v28  ;;  %v4599_v41 = vunpack.i.l.bf16 %v7992_v28  ;;  %v4589_v24 = vunpack.i.l.bf16 %v4588_v53  ;;  %v2602_v3 = vld [vmem:[%s10331_s3 + $0x30] sm:$0xff]  ;;  %3652 = vmatpush.msra.mxu1 %v2603_v54 }
 0x3bf   : > { %v1930_v21 = vpop.f32.mrf.mxu2  ;;  %v3535_v12 = vsel %vm9843_vm12, %v3526_v50, %v4584_v31  ;;  %v3536_v1 = vsel %vm9843_vm12, %v3527_v35, %v4585_v63  ;;  %v2840_v39 = vsel %vm9849_vm8, %v7952_v43, %v2839_v59  ;;  %v8082_v31 = vsel %vm9850_vm13, %v7866_v23, %v7864_v34 }
 0x3c0   : > { %v1931_v38 = vadd.f32 %v7572_v11, %v1930_v21  ;;  %v2767_v11 = vsel %vm10346_vm2, %v7952_v43, %v2766_v47  ;;  %v2454_v0 = vrot.slane %v2453_v19, 1  ;;  %v4615_v63 = vunpack.i.h.bf16 %v8053_v45  ;;  %3653 = vmatpush.msra.mxu1 %v2602_v3 }
 0x3c1   : > { %v2768_v30 = vsel %vm10348_vm5, %v8005_v2, %v2767_v11  ;;  %vm9838_vm5 = vcmask 457728   ;;  %v2913_v29 = vsel %vm2674_vm15, %v7952_v43, %v2912_v32  ;;  %v8089_v16 = vmax.f32 %v2432_v14, %v2433_v27  ;;  %v2601_v27 = vld [vmem:[%s10331_s3 + $0x28] sm:$0xff]  ;;  %v8141_v54 = vpop.permute.xlu0 %4602 }
 0x3c2   : > { %v8057_v44 = vsel %vm10349_vm3, %v7862_v13, %v2768_v30  ;;  %v8063_v60 = vmax.f32 %v1931_v38, 0.0  ;;  %v8091_v38 = vmax.f32 %v2439_v10, %v2440_v15  ;;  %v8093_v47 = vmax.f32 %v2446_v56, %v2447_v40  ;;  %3654 = vmatpush.msra.mxu1 %v2601_v27 }
 0x3c3   : > { %v4681_v21 = vpack.i.bf16 %v8057_v44, %v7800_v55  ;;  %v4590_v9 = vunpack.i.h.bf16 %v4588_v53  ;;  %v3544_v50 = vsel %vm9837_vm6, %v3535_v12, %v4589_v24  ;;  %v4594_v35 = vunpack.i.l.bf16 %v4593_v49  ;;  %v2600_v12 = vld [vmem:[%s10331_s3 + $0x20] sm:$0xff] }
 0x3c4   : > { %v2022_v55 = vrot.slane %v8063_v60, 2  ;;  %v2841_v14 = vsel %vm10351_vm10, %v8005_v2, %v2840_v39  ;;  %v2023_v10 = vrot.slane %v8063_v60, 4  ;;  %vm10352_vm2 = vcmask 1046534   ;;  %3655 = vmatpush.msra.mxu1 %v2600_v12 }
 0x3c5   : > { %4682 = vrot.lane.b32.xlu1 %v4681_v21, %s10350_s29  ;;  %v2842_v56 = vsel %vm10352_vm2, %v7862_v13, %v2841_v14  ;;  %v2914_v53 = vsel %vm9849_vm8, %v8005_v2, %v2913_v29  ;;  %v2985_v11 = vsel %vm9850_vm13, %v7950_v6, %v7939_v58  ;;  %v8114_v30 = vmax.f32 %v2453_v19, %v2454_v0 }
 0x3c6   : > { %v4595_v59 = vunpack.i.h.bf16 %v4593_v49  ;;  %v8118_v15 = vsel %vm10349_vm3, %v7864_v34, %v2842_v56  ;;  %v2915_v40 = vsel %vm10351_vm10, %v7862_v13, %v2914_v53  ;;  %v3545_v32 = vsel %vm9837_vm6, %v3536_v1, %v4590_v9  ;;  %v2599_v9 = vld [vmem:[%s10331_s3 + $0x18] sm:$0xff]  ;;  %v2598_v53 = vld [vmem:[%s10331_s3 + $0x10] sm:$0xff] }
 0x3c7   : > { %v2456_v58 = vsel %vm9845_vm7, %v8063_v60, -inf  ;;  %v4686_v24 = vpack.i.bf16 %v8118_v15, %v7812_v61  ;;  %v2916_v19 = vsel %vm10352_vm2, %v7864_v34, %v2915_v40  ;;  %vm10353_vm3 = vcmask 392192   ;;  %3656 = vmatpush.msra.mxu1 %v2599_v9 }
 0x3c8   : > { %v3552_v49 = vsel %vm10353_vm3, %v3544_v50, %v4594_v35  ;;  %v2463_v39 = vsel %vm9845_vm7, %v2022_v55, -inf  ;;  %vm10354_vm10 = vcmask 1047559   ;;  %v2986_v8 = vsel %vm2672_vm11, %v7952_v43, %v2985_v11  ;;  %vm10356_vm2 = vmmov %vm10353_vm3 }
 0x3c9   : > { %v8136_v1 = vsel %vm10354_vm10, %v7866_v23, %v2916_v19  ;;  %v4614_v61 = vunpack.i.l.bf16 %v8053_v45  ;;  %v2470_v0 = vsel %vm9845_vm7, %v2023_v10, -inf  ;;  %4687 = vrot.lane.b32.xlu2 %v4686_v24, %s10355_s26  ;;  %v2987_v29 = vsel %vm2674_vm15, %v8005_v2, %v2986_v8  ;;  %v4608_v19 = vpop.permute.xlu1 %4607  ;;  %3657 = vmatpush.msra.mxu1 %v2598_v53 }
 0x3ca   : > { %v4691_v21 = vpack.i.bf16 %v8136_v1, %v7823_v5  ;;  %v3553_v3 = vsel %vm10356_vm2, %v3545_v32, %v4595_v59  ;;  %vm9842_vm3 = vcmask 523264   ;;  %v2457_v50 = vrot.slane %v2456_v58, 4 }
 0x3cb   : > { %v2988_v35 = vsel %vm9849_vm8, %v7862_v13, %v2987_v29  ;;  %v3059_v55 = vsel %vm9850_vm13, %v7952_v43, %v7950_v6  ;;  %v3561_v5 = vsel %vm9838_vm5, %v3552_v49, %v4599_v41  ;;  %vm9841_vm10 = vcmask 588800  }
 0x3cc   : > { %v2464_v14 = vrot.slane %v2463_v39, 4  ;;  %4692 = vrot.lane.b32.xlu0 %v4691_v21, %s9834_s27  ;;  %v2989_v10 = vsel %vm10357_vm1, %v7864_v34, %v2988_v35  ;;  %v3060_v56 = vsel %vm2672_vm11, %v8005_v2, %v3059_v55  ;;  %v4605_v11 = vunpack.i.h.bf16 %v8141_v54  ;;  %s10362_s27 = smov 96   ;;  %v2596_v35 = vld [vmem:[%s10331_s3] sm:$0xff] }
 0x3cd   : > { %v2471_v6 = vrot.slane %v2470_v0, 4  ;;  %vm10358_vm2 = vcmask 1046534   ;;  %v3061_v27 = vsel %vm2674_vm15, %v7862_v13, %v3060_v56  ;;  %v4604_v59 = vunpack.i.l.bf16 %v8141_v54 }
 0x3ce   : > { %v2990_v41 = vsel %vm10358_vm2, %v7866_v23, %v2989_v10  ;;  %v2024_v40 = vrot.slane %v8063_v60, 6  ;;  %vm10359_vm1 = vcmask 1047559   ;;  %v3062_v24 = vsel %vm9849_vm8, %v7864_v34, %v3061_v27  ;;  %v2597_v60 = vld [vmem:[%s10331_s3 + $0x8] sm:$0xff]  ;;  %s10375_s3 = smov 16  }
 0x3cf   : > { %v8176_v32 = vsel %vm10359_vm1, %v7871_v4, %v2990_v41  ;;  %v2458_v12 = vmax.f32 %v2456_v58, %v2457_v50  ;;  %vm10360_vm2 = vcmask 1045509   ;;  %v3133_v54 = vsel %vm9850_vm13, %v8005_v2, %v7952_v43  ;;  %3658 = vmatpush.msra.mxu1 %v2597_v60 }
 0x3d0   : > { %v4696_v49 = vpack.i.bf16 %v8176_v32, %v7840_v18  ;;  %v3063_v8 = vsel %vm10360_vm2, %v7866_v23, %v3062_v24  ;;  %vm9840_vm1 = vcmask 654336   ;;  %v2465_v21 = vmax.f32 %v2463_v39, %v2464_v14 }
 0x3d1   : > { %v3064_v58 = vsel %vm10361_vm4, %v7871_v4, %v3063_v8  ;;  %v3134_v18 = vsel %vm2672_vm11, %v7862_v13, %v3133_v54  ;;  %v3207_v29 = vsel %vm9850_vm13, %v7862_v13, %v8005_v2  ;;  %v2472_v9 = vmax.f32 %v2470_v0, %v2471_v6  ;;  %3659 = vmatpush.msra.mxu1 %v2596_v35 }
 0x3d2   : > { %4697 = vrot.lane.b32.xlu1 %v4696_v49, %s10362_s27  ;;  %vm10363_vm2 = vcmask 1047559   ;;  %v3135_v39 = vsel %vm2674_vm15, %v7864_v34, %v3134_v18  ;;  %v3208_v50 = vsel %vm2672_vm11, %v7864_v34, %v3207_v29  ;;  %v2771_v14 = vsel %vm2672_vm11, %v7871_v4, %v8082_v31  ;;  %v8247_v29 = vpop.permute.xlu0 %4617 }
 0x3d3   : > { %v8200_v43 = vsel %vm10363_vm2, %v7873_v20, %v3064_v58  ;;  %v3136_v0 = vsel %vm9849_vm8, %v7866_v23, %v3135_v39  ;;  %v3209_v55 = vsel %vm2674_vm15, %v7866_v23, %v3208_v50  ;;  %v4609_v10 = vunpack.i.l.bf16 %v4608_v19 }
 0x3d4   : > { %v4701_v2 = vpack.i.bf16 %v8200_v43, %v7962_v36  ;;  %vm10364_vm4 = vcmask 1045509   ;;  %v3210_v53 = vsel %vm9849_vm8, %v7871_v4, %v3209_v55  ;;  %v2772_v36 = vsel %vm2674_vm15, %v7873_v20, %v2771_v14 }
 0x3d5   : > { %v3137_v56 = vsel %vm10364_vm4, %v7871_v4, %v3136_v0  ;;  %v3562_v6 = vsel %vm9838_vm5, %v3553_v3, %v4600_v62  ;;  %v4610_v41 = vunpack.i.h.bf16 %v4608_v19  ;;  %vm3596_vm2 = vcmask 719872  }
 0x3d6   : > { %v2477_v27 = vsel %vm9845_vm7, %v2024_v40, -inf  ;;  %4702 = vrot.lane.b32.xlu2 %v4701_v2, %s10365_s23  ;;  %v3138_v31 = vsel %vm10366_vm14, %v7873_v20, %v3137_v56  ;;  %v2459_v24 = vrot.slane %v2458_v12, 2  ;;  %vm10367_vm4 = vcmask 1047559  }
 0x3d7   : > { %v8233_v49 = vsel %vm10367_vm4, %v7879_v48, %v3138_v31  ;;  %vm10368_vm6 = vcmask 1045509   ;;  %v2773_v62 = vsel %vm9849_vm8, %v7879_v48, %v2772_v36  ;;  %v3570_v3 = vsel %vm9842_vm3, %v3561_v5, %v4604_v59  ;;  %v8256_v59 = vpop.permute.xlu1 %4622 }
 0x3d8   : > { %v3211_v28 = vsel %vm10368_vm6, %v7873_v20, %v3210_v53  ;;  %v2466_v40 = vrot.slane %v2465_v21, 2  ;;  %v2473_v19 = vrot.slane %v2472_v9, 2  ;;  %v4706_v8 = vpack.i.bf16 %v8233_v49, %v7970_v33 }
 0x3d9   : > { %v3571_v54 = vsel %vm9842_vm3, %v3562_v6, %v4605_v11  ;;  %v3579_v60 = vsel %vm9841_vm10, %v3570_v3, %v4609_v10  ;;  %vm3605_vm14 = vcmask 785408   ;;  %vm10369_vm4 = vcmask 1046534  }
 0x3da   : > { %v3212_v58 = vsel %vm10369_vm4, %v7879_v48, %v3211_v28  ;;  %v3580_v18 = vsel %vm9841_vm10, %v3571_v54, %v4610_v41  ;;  %v2478_v39 = vrot.slane %v2477_v27, 4  ;;  %4707 = vrot.lane.b32.xlu0 %v4706_v8, %s10370_s24  ;;  %vm10371_vm6 = vcmask 1047559  }
 0x3db   : > { %v8252_v5 = vsel %vm10371_vm6, %v7881_v22, %v3212_v58  ;;  %vm10372_vm5 = vcmask 1045509   ;;  %v2460_v11 = vmax.f32 %v2458_v12, %v2459_v24  ;;  %v2844_v2 = vsel %vm9850_vm13, %v7871_v4, %v7866_v23 }
 0x3dc   : > { %v2774_v33 = vsel %vm10372_vm5, %v7881_v22, %v2773_v62  ;;  %v4711_v50 = vpack.i.bf16 %v8252_v5, %v7988_v37  ;;  %v2467_v0 = vmax.f32 %v2465_v21, %v2466_v40  ;;  %v2474_v55 = vmax.f32 %v2472_v9, %v2473_v19 }
 0x3dd   : > { %v2775_v35 = vsel %vm10369_vm4, %v7883_v51, %v2774_v33  ;;  %v2845_v12 = vsel %vm2672_vm11, %v7873_v20, %v2844_v2  ;;  %v4619_v10 = vunpack.i.l.bf16 %v8247_v29  ;;  %v3588_v37 = vsel %vm9840_vm1, %v3579_v60, %v4614_v61  ;;  %v1936_v60 = vpop.f32.mrf.mxu3 }
 0x3de   : > { %v8267_v14 = vsel %vm10371_vm6, %v8089_v16, %v2775_v35  ;;  %4712 = vrot.lane.b32.xlu1 %v4711_v50, %s10373_s0  ;;  %v2846_v21 = vsel %vm2674_vm15, %v7879_v48, %v2845_v12  ;;  %v8283_v9 = vsel %vm9840_vm1, %v3580_v18, %v4615_v63  ;;  %v4624_v53 = vunpack.i.l.bf16 %v8256_v59 }
 0x3df   : > { %v4716_v56 = vpack.i.bf16 %v8267_v14, %v8057_v44  ;;  %v2847_v36 = vsel %vm9849_vm8, %v7881_v22, %v2846_v21  ;;  %v2918_v61 = vsel %vm9850_vm13, %v7873_v20, %v7871_v4  ;;  %v2461_v6 = vrot.slane %v2460_v11, 1  ;;  %v8293_v44 = vpop.permute.xlu2 %4627  ;;  %v8328_v12 = vpop.permute.xlu1 %4637 }
 0x3e0   : > { %v8291_v41 = vmax.f32 %v2477_v27, %v2478_v39  ;;  %v2848_v45 = vsel %vm10372_vm5, %v7883_v51, %v2847_v36  ;;  %v2919_v63 = vsel %vm2672_vm11, %v7879_v48, %v2918_v61  ;;  %v2468_v31 = vrot.slane %v2467_v0, 1  ;;  %v8318_v39 = vpop.permute.xlu0 %4632 }
 0x3e1   : > { %4717 = vrot.lane.b32.xlu2 %v4716_v56, %s10374_s1  ;;  %v2475_v24 = vrot.slane %v2474_v55, 1  ;;  %v2849_v28 = vsel %vm10369_vm4, %v8089_v16, %v2848_v45  ;;  %v2920_v62 = vsel %vm2674_vm15, %v7881_v22, %v2919_v63  ;;  %v4620_v27 = vunpack.i.h.bf16 %v8247_v29  ;;  %v8344_v56 = vld [vmem:[%s10179_s2] ss:$0 sm:$0xff]  ;;  %s10403_s2 = smov 88  }
 0x3e2   : > { %v3597_v3 = vsel %vm3596_vm2, %v3588_v37, %v4619_v10  ;;  %v8308_v40 = vsel %vm10371_vm6, %v8091_v38, %v2849_v28  ;;  %v2921_v19 = vsel %vm9849_vm8, %v7883_v51, %v2920_v62  ;;  %v4629_v54 = vunpack.i.l.bf16 %v8293_v44 }
 0x3e3   : > { %v3606_v8 = vsel %vm3605_vm14, %v3597_v3, %v4624_v53  ;;  %v4721_v58 = vpack.i.bf16 %v8308_v40, %v8118_v15  ;;  %v2922_v18 = vsel %vm10372_vm5, %v8089_v16, %v2921_v19  ;;  %v8320_v33 = vmax.f32 %v2460_v11, %v2461_v6  ;;  %v1933_v3 = vpop.f32.mrf.mxu2 }
 0x3e4   : > { %v2480_v50 = vrot.slane %v8291_v41, 2  ;;  %v2923_v35 = vsel %vm10369_vm4, %v8091_v38, %v2922_v18  ;;  %v2992_v2 = vsel %vm9850_vm13, %v7879_v48, %v7873_v20  ;;  %v8330_v10 = vmax.f32 %v2467_v0, %v2468_v31 }
 0x3e5   : > { %v8332_v15 = vmax.f32 %v2474_v55, %v2475_v24  ;;  %4722 = vrot.lane.b32.xlu0 %v4721_v58, %s10375_s3  ;;  %v8337_v11 = vsel %vm10371_vm6, %v8093_v47, %v2923_v35  ;;  %v2993_v37 = vsel %vm2672_vm11, %v7881_v22, %v2992_v2  ;;  %v1937_v21 = vadd.f32 %v8344_v56, %v1936_v60 }
 0x3e6   : > { %v4726_v0 = vpack.i.bf16 %v8337_v11, %v8136_v1  ;;  %v2994_v55 = vsel %vm2674_vm15, %v7883_v51, %v2993_v37  ;;  %v4634_v53 = vunpack.i.l.bf16 %v8318_v39  ;;  %v4639_v61 = vunpack.i.l.bf16 %v8328_v12 }
 0x3e7   : > { %v2995_v36 = vsel %vm9849_vm8, %v8089_v16, %v2994_v55  ;;  %v3066_v6 = vsel %vm9850_vm13, %v7881_v22, %v7879_v48  ;;  %v3140_v45 = vsel %vm9850_vm13, %v7883_v51, %v7881_v22  ;;  %vm9851_vm4 = vcmask 850944  }
 0x3e8   : > { %4727 = vrot.lane.b32.xlu1 %v4726_v0, %s10249_s21  ;;  %v2996_v1 = vsel %vm10372_vm5, %v8091_v38, %v2995_v36  ;;  %v3067_v63 = vsel %vm2672_vm11, %v7883_v51, %v3066_v6  ;;  %v3141_v31 = vsel %vm2672_vm11, %v8089_v16, %v3140_v45  ;;  %vm10376_vm6 = vcmask 1046534  }
 0x3e9   : > { %v2997_v24 = vsel %vm10376_vm6, %v8093_v47, %v2996_v1  ;;  %v3068_v28 = vsel %vm2674_vm15, %v8089_v16, %v3067_v63  ;;  %v3142_v62 = vsel %vm2674_vm15, %v8091_v38, %v3141_v31  ;;  %v3615_v19 = vsel %vm9851_vm4, %v3606_v8, %v4629_v54 }
 0x3ea   : > { %vm10377_vm5 = vcmask 1047559   ;;  %v3069_v58 = vsel %vm9849_vm8, %v8091_v38, %v3068_v28  ;;  %v3143_v18 = vsel %vm9849_vm8, %v8093_v47, %v3142_v62  ;;  %v1934_v35 = vadd.f32 %v8344_v56, %v1933_v3 }
 0x3eb   : > { %v8377_v60 = vsel %vm10377_vm5, %v8114_v30, %v2997_v24  ;;  %vm10378_vm6 = vcmask 1045509   ;;  %vm3623_vm10 = vcmask 916480   ;;  %vm10380_vm5 = vcmask 1046534  }
 0x3ec   : > { %v4731_v2 = vpack.i.bf16 %v8377_v60, %v8176_v32  ;;  %v3070_v37 = vsel %vm10378_vm6, %v8093_v47, %v3069_v58  ;;  %vm10379_vm1 = vmmov %vm10378_vm6  ;;  %v1961_v55 = vmax.f32 %v1934_v35, 0.0  ;;  %v3624_v36 = vsel %vm3623_vm10, %v3615_v19, %v4634_v53 }
 0x3ed   : > { %v3144_v8 = vsel %vm10379_vm1, %v8114_v30, %v3143_v18  ;;  %v3071_v54 = vsel %vm10380_vm5, %v8114_v30, %v3070_v37  ;;  %vm10381_vm3 = vmmov %vm10380_vm5  ;;  %vm10383_vm12 = vcmask 1047559   ;;  %vm9844_vm1 = vcmask 982016  }
 0x3ee   : > { %v3145_v0 = vsel %vm10381_vm3, %v8320_v33, %v3144_v8  ;;  %4732 = vrot.lane.b32.xlu2 %v4731_v2, %s10382_s11  ;;  %v8398_v32 = vsel %vm10383_vm12, %v8320_v33, %v3071_v54  ;;  %vm10384_vm6 = vmmov %vm10383_vm12  ;;  %v3214_v45 = vsel %vm9850_vm13, %v8089_v16, %v7883_v51  ;;  %v2025_v63 = vrot.slane %v1961_v55, 2 }
 0x3ef   : > { %v8402_v6 = vsel %vm10384_vm6, %v8330_v10, %v3145_v0  ;;  %v4736_v1 = vpack.i.bf16 %v8398_v32, %v8200_v43  ;;  %v2026_v31 = vrot.slane %v1961_v55, 4  ;;  %v8411_v24 = vmax.f32 %v1937_v21, 0.0  ;;  %vm10387_vm5 = vmmov %vm10384_vm6 }
 0x3f0   : > { %v4741_v53 = vpack.i.bf16 %v8402_v6, %v8233_v49  ;;  %v2484_v28 = vsel %vm9845_vm7, %v1961_v55, -inf  ;;  %v3633_v62 = vsel %vm9844_vm1, %v3624_v36, %v4639_v61  ;;  %v3215_v3 = vsel %vm2672_vm11, %v8091_v38, %v3214_v45 }
 0x3f1   : > { %4737 = vrot.lane.b32.xlu0 %v4736_v1, %s10385_s18  ;;  %v2485_v19 = vrot.slane %v2484_v28, 4  ;;  %v2491_v43 = vsel %vm9845_vm7, %v2025_v63, -inf  ;;  %v2498_v49 = vsel %vm9845_vm7, %v2026_v31, -inf  ;;  %v3216_v21 = vsel %vm2674_vm15, %v8093_v47, %v3215_v3  ;;  %3660 = vmatmul.f32.vlgmr.msra.gmra.mxu1 %v3633_v62 }
 0x3f2   : > { %4742 = vrot.lane.b32.xlu1 %v4741_v53, %s10339_s17  ;;  %v4625_v58 = vunpack.i.h.bf16 %v8256_v59  ;;  %v2027_v18 = vrot.slane %v1961_v55, 6  ;;  %v2492_v35 = vrot.slane %v2491_v43, 4  ;;  %v3217_v61 = vsel %vm9849_vm8, %v8114_v30, %v3216_v21 }
 0x3f3   : > { %v2481_v2 = vmax.f32 %v8291_v41, %v2480_v50  ;;  %v2499_v37 = vrot.slane %v2498_v49, 4  ;;  %vm10386_vm12 = vcmask 1045509   ;;  %v2712_v54 = vsel %vm9850_vm13, %v7864_v34, %v7862_v13 }
 0x3f4   : > { %v3218_v8 = vsel %vm10386_vm12, %v8320_v33, %v3217_v61  ;;  %v3598_v59 = vsel %vm3596_vm2, %v8283_v9, %v4620_v27  ;;  %v2486_v0 = vmax.f32 %v2484_v28, %v2485_v19  ;;  %v2713_v41 = vsel %vm2672_vm11, %v7866_v23, %v2712_v54  ;;  %vm10388_vm6 = vmmov %vm10386_vm12 }
 0x3f5   : > { %v3219_v55 = vsel %vm10381_vm3, %v8330_v10, %v3218_v8  ;;  %v2028_v50 = vrot.slane %v8411_v24, 2  ;;  %v2512_v36 = vsel %vm9845_vm7, %v8411_v24, -inf  ;;  %v2714_v34 = vsel %vm2674_vm15, %v7871_v4, %v2713_v41  ;;  %vm10389_vm12 = vmmov %vm10381_vm3 }
 0x3f6   : > { %v8447_v13 = vsel %vm10387_vm5, %v8332_v15, %v3219_v55  ;;  %v2493_v29 = vmax.f32 %v2491_v43, %v2492_v35  ;;  %v2505_v9 = vsel %vm9845_vm7, %v2027_v18, -inf  ;;  %v2715_v23 = vsel %vm9849_vm8, %v7873_v20, %v2714_v34  ;;  %vm10390_vm3 = vmmov %vm10388_vm6 }
 0x3f7   : > { %v4746_v27 = vpack.i.bf16 %v8447_v13, %v8252_v5  ;;  %v2482_v45 = vrot.slane %v2481_v2, 1  ;;  %v2500_v1 = vmax.f32 %v2498_v49, %v2499_v37  ;;  %v2716_v53 = vsel %vm10388_vm6, %v7879_v48, %v2715_v23  ;;  %vm10391_vm5 = vmmov %vm10389_vm12 }
 0x3f8   : > { %v2719_v63 = vsel %vm9850_vm13, %v8091_v38, %v8089_v16  ;;  %v3607_v4 = vsel %vm3605_vm14, %v3598_v59, %v4625_v58  ;;  %v4630_v31 = vunpack.i.h.bf16 %v8293_v44  ;;  %v2487_v28 = vrot.slane %v2486_v0, 2 }
 0x3f9   : > { %4747 = vrot.lane.b32.xlu2 %v4746_v27, %s10341_s22  ;;  %v2720_v5 = vsel %vm2672_vm11, %v8093_v47, %v2719_v63  ;;  %v2513_v20 = vrot.slane %v2512_v36, 4  ;;  %v2519_v62 = vsel %vm9845_vm7, %v2028_v50, -inf  ;;  %v2506_v3 = vrot.slane %v2505_v9, 4 }
 0x3fa   : > { %v2721_v48 = vsel %vm2674_vm15, %v8114_v30, %v2720_v5  ;;  %v4635_v19 = vunpack.i.h.bf16 %v8318_v39  ;;  %v2494_v16 = vrot.slane %v2493_v29, 2  ;;  %v2717_v43 = vsel %vm10389_vm12, %v7881_v22, %v2716_v53 }
 0x3fb   : > { %v2722_v44 = vsel %vm9849_vm8, %v8320_v33, %v2721_v48  ;;  %v8474_v49 = vmax.f32 %v2481_v2, %v2482_v45  ;;  %v4640_v21 = vunpack.i.h.bf16 %v8328_v12  ;;  %v2501_v58 = vrot.slane %v2500_v1, 2 }
 0x3fc   : > { %v2723_v18 = vsel %vm10390_vm3, %v8330_v10, %v2722_v44  ;;  %v2029_v35 = vrot.slane %v8411_v24, 4  ;;  %v2520_v61 = vrot.slane %v2519_v62, 4  ;;  %v2488_v37 = vmax.f32 %v2486_v0, %v2487_v28 }
 0x3fd   : > { %v2724_v39 = vsel %vm10391_vm5, %v8332_v15, %v2723_v18  ;;  %v2507_v8 = vmax.f32 %v2505_v9, %v2506_v3  ;;  %vm10392_vm6 = vcmask 1047559   ;;  %v3616_v12 = vsel %vm9851_vm4, %v3607_v4, %v4630_v31 }
 0x3fe   : > { %v8484_v22 = vsel %vm10392_vm6, %v7883_v51, %v2717_v43  ;;  %vm10393_vm12 = vmmov %vm10392_vm6  ;;  %v2514_v54 = vmax.f32 %v2512_v36, %v2513_v20  ;;  %v2495_v59 = vmax.f32 %v2493_v29, %v2494_v16  ;;  %v3625_v0 = vsel %vm3623_vm10, %v3616_v12, %v4635_v19  ;;  %v1939_v43 = vpop.f32.mrf.mxu3 }
 0x3ff   : > { %v8488_v2 = vsel %vm10393_vm12, %v8474_v49, %v2724_v39  ;;  %v2502_v41 = vmax.f32 %v2500_v1, %v2501_v58  ;;  %v3634_v50 = vsel %vm9844_vm1, %v3625_v0, %v4640_v21  ;;  %v2777_v51 = vsel %vm9850_vm13, %v8093_v47, %v8091_v38  ;;  %vm10395_vm6 = vmmov %vm10390_vm3 }
 0x400   : > { %v4751_v55 = vpack.i.bf16 %v8488_v2, %v8484_v22  ;;  %v2851_v34 = vsel %vm9850_vm13, %v8114_v30, %v8093_v47  ;;  %v2489_v9 = vrot.slane %v2488_v37, 1  ;;  %3663 = vmatmul.f32.gmra.mxu1 %v3634_v50  ;;  %v2778_v36 = vsel %vm2672_vm11, %v8114_v30, %v2777_v51  ;;  %vm10397_vm1 = vmmov %vm10395_vm6 }
 0x401   : > { %v2852_v29 = vsel %vm2672_vm11, %v8320_v33, %v2851_v34  ;;  %v2925_v27 = vsel %vm9850_vm13, %v8320_v33, %v8114_v30  ;;  %v2508_v23 = vrot.slane %v2507_v8, 2  ;;  %v2779_v38 = vsel %vm2674_vm15, %v8320_v33, %v2778_v36 }
 0x402   : > { %4752 = vrot.lane.b32.xlu0 %v4751_v55, %s10347_s28  ;;  %v2853_v47 = vsel %vm2674_vm15, %v8330_v10, %v2852_v29  ;;  %v2926_v45 = vsel %vm2672_vm11, %v8330_v10, %v2925_v27  ;;  %v2526_v1 = vsel %vm9845_vm7, %v2029_v35, -inf  ;;  %v2496_v53 = vrot.slane %v2495_v59, 1 }
 0x403   : > { %v2521_v63 = vmax.f32 %v2519_v62, %v2520_v61  ;;  %v2503_v4 = vrot.slane %v2502_v41, 1  ;;  %v2780_v31 = vsel %vm9849_vm8, %v8330_v10, %v2779_v38  ;;  %v2999_v30 = vsel %vm9850_vm13, %v8330_v10, %v8320_v33 }
 0x404   : > { %v8521_v28 = vmax.f32 %v2488_v37, %v2489_v9  ;;  %v2781_v5 = vsel %vm10390_vm3, %v8332_v15, %v2780_v31  ;;  %v2854_v20 = vsel %vm9849_vm8, %v8332_v15, %v2853_v47  ;;  %v2927_v3 = vsel %vm2674_vm15, %v8332_v15, %v2926_v45  ;;  %vm10396_vm3 = vmmov %vm10391_vm5 }
 0x405   : > { %v2515_v62 = vrot.slane %v2514_v54, 2  ;;  %v2509_v48 = vmax.f32 %v2507_v8, %v2508_v23  ;;  %v2527_v19 = vrot.slane %v2526_v1, 4  ;;  %v8529_v16 = vmax.f32 %v2495_v59, %v2496_v53 }
 0x406   : > { %10394 = vst [vmem:[#allocation70_spill] sm:$0xff] %v8521_v28  ;;  %v3000_v33 = vsel %vm2672_vm11, %v8332_v15, %v2999_v30  ;;  %v2522_v44 = vrot.slane %v2521_v63, 2  ;;  %v2782_v21 = vsel %vm10391_vm5, %v8474_v49, %v2781_v5  ;;  %v2855_v58 = vsel %vm10395_vm6, %v8474_v49, %v2854_v20  ;;  %vm10398_vm5 = vmmov %vm10393_vm12 }
 0x407   : > { %v2928_v18 = vsel %vm9849_vm8, %v8474_v49, %v2927_v3  ;;  %v8539_v35 = vmax.f32 %v2502_v41, %v2503_v4  ;;  %v8543_v61 = vsel %vm10393_vm12, %v8521_v28, %v2782_v21  ;;  %v2856_v37 = vsel %vm10396_vm3, %v8521_v28, %v2855_v58  ;;  %vm10399_vm6 = vmmov %vm10396_vm3 }
 0x408   : > { %v2929_v39 = vsel %vm10397_vm1, %v8521_v28, %v2928_v18  ;;  %v2516_v8 = vmax.f32 %v2514_v54, %v2515_v62  ;;  %v2510_v12 = vrot.slane %v2509_v48, 1  ;;  %v1940_v59 = vadd.f32 %v8344_v56, %v1939_v43  ;;  %vm10400_vm1 = vmmov %vm10398_vm5 }
 0x409   : > { %v3001_v55 = vsel %vm2674_vm15, %v8474_v49, %v3000_v33  ;;  %v4756_v0 = vpack.i.bf16 %v8543_v61, %v8267_v14  ;;  %v8556_v41 = vsel %vm10398_vm5, %v8529_v16, %v2856_v37  ;;  %v2930_v50 = vsel %vm10399_vm6, %v8529_v16, %v2929_v39  ;;  %vm10402_vm5 = vmmov %vm10400_vm1  ;;  %v1942_v37 = vpop.f32.mrf.mxu3 }
 0x40a   : > { %v3002_v51 = vsel %vm9849_vm8, %v8521_v28, %v3001_v55  ;;  %v2523_v54 = vmax.f32 %v2521_v63, %v2522_v44  ;;  %v2528_v34 = vmax.f32 %v2526_v1, %v2527_v19  ;;  %v4761_v9 = vpack.i.bf16 %v8556_v41, %v8308_v40 }
 0x40b   : > { %4757 = vrot.lane.b32.xlu1 %v4756_v0, %s10350_s29  ;;  %v8567_v14 = vsel %vm10400_vm1, %v8539_v35, %v2930_v50  ;;  %vm10401_vm12 = vcmask 1045509   ;;  %v3073_v29 = vsel %vm9850_vm13, %v8332_v15, %v8330_v10  ;;  %v2517_v27 = vrot.slane %v2516_v8, 1  ;;  %vm10405_vm1 = vmmov %vm10396_vm3 }
 0x40c   : > { %v3003_v36 = vsel %vm10401_vm12, %v8529_v16, %v3002_v51  ;;  %v8574_v23 = vmax.f32 %v2509_v48, %v2510_v12  ;;  %v1963_v38 = vmax.f32 %v1940_v59, 0.0  ;;  %4762 = vrot.lane.b32.xlu2 %v4761_v9, %s10355_s26  ;;  %v4766_v40 = vpack.i.bf16 %v8567_v14, %v8337_v11  ;;  %vm10404_vm6 = vmmov %vm10401_vm12 }
 0x40d   : > { %v3004_v47 = vsel %vm10396_vm3, %v8539_v35, %v3003_v36  ;;  %v3074_v45 = vsel %vm2672_vm11, %v8474_v49, %v3073_v29  ;;  %v2524_v1 = vrot.slane %v2523_v54, 1  ;;  %v3147_v63 = vsel %vm9850_vm13, %v8474_v49, %v8332_v15  ;;  %vm10406_vm12 = vmmov %vm10402_vm5 }
 0x40e   : > { %v8585_v53 = vsel %vm10402_vm5, %v8574_v23, %v3004_v47  ;;  %v3075_v10 = vsel %vm2674_vm15, %v8521_v28, %v3074_v45  ;;  %v2030_v11 = vrot.slane %v8411_v24, 6  ;;  %v2529_v4 = vrot.slane %v2528_v34, 2  ;;  %4767 = vrot.lane.b32.xlu0 %v4766_v40, %s10403_s2  ;;  %vm10407_vm3 = vmmov %vm10404_vm6 }
 0x40f   : > { %v3076_v31 = vsel %vm9849_vm8, %v8529_v16, %v3075_v10  ;;  %v3148_v30 = vsel %vm2672_vm11, %v8521_v28, %v3147_v63  ;;  %v8598_v5 = vmax.f32 %v2516_v8, %v2517_v27  ;;  %v2031_v15 = vrot.slane %v1963_v38, 2  ;;  %vm10408_vm5 = vmmov %vm10405_vm1 }
 0x410   : > { %v3077_v20 = vsel %vm10404_vm6, %v8539_v35, %v3076_v31  ;;  %v3149_v3 = vsel %vm2674_vm15, %v8529_v16, %v3148_v30  ;;  %v4771_v24 = vpack.i.bf16 %v8585_v53, %v8377_v60  ;;  %v8610_v19 = vmax.f32 %v2523_v54, %v2524_v1  ;;  %vm10409_vm6 = vmmov %vm10406_vm12 }
 0x411   : > { %v3078_v62 = vsel %vm10405_vm1, %v8574_v23, %v3077_v20  ;;  %v3150_v48 = vsel %vm9849_vm8, %v8539_v35, %v3149_v3  ;;  %v2032_v43 = vrot.slane %v1963_v38, 4  ;;  %v2530_v21 = vmax.f32 %v2528_v34, %v2529_v4  ;;  %vm10410_vm1 = vmmov %vm10407_vm3 }
 0x412   : > { %v8614_v33 = vsel %vm10406_vm12, %v8598_v5, %v3078_v62  ;;  %v3151_v44 = vsel %vm10407_vm3, %v8574_v23, %v3150_v48  ;;  %v2533_v58 = vsel %vm9845_vm7, %v2030_v11, -inf  ;;  %v2540_v8 = vsel %vm9845_vm7, %v1963_v38, -inf  ;;  %vm10411_vm12 = vmmov %vm10408_vm5 }
 0x413   : > { %4772 = vrot.lane.b32.xlu1 %v4771_v24, %s10362_s27  ;;  %v4776_v60 = vpack.i.bf16 %v8614_v33, %v8398_v32  ;;  %v3152_v18 = vsel %vm10408_vm5, %v8598_v5, %v3151_v44  ;;  %v2547_v12 = vsel %vm9845_vm7, %v2031_v15, -inf  ;;  %v2534_v55 = vrot.slane %v2533_v58, 4  ;;  %vm10412_vm3 = vmmov %vm10409_vm6 }
 0x414   : > { %v8626_v39 = vsel %vm10409_vm6, %v8610_v19, %v3152_v18  ;;  %v2554_v32 = vsel %vm9845_vm7, %v2032_v43, -inf  ;;  %v1943_v0 = vadd.f32 %v8344_v56, %v1942_v37  ;;  %v2531_v50 = vrot.slane %v2530_v21, 1  ;;  %vm10413_vm5 = vmmov %vm10410_vm1 }
 0x415   : > { %4777 = vrot.lane.b32.xlu2 %v4776_v60, %s10365_s23  ;;  %v4781_v59 = vpack.i.bf16 %v8626_v39, %v8402_v6  ;;  %v2033_v51 = vrot.slane %v1963_v38, 6  ;;  %v3221_v54 = vsel %vm9850_vm13, %v8521_v28, %v8474_v49  ;;  %v2541_v34 = vrot.slane %v2540_v8, 4  ;;  %v8673_v60 = vpop.permute.xlu2 %4642  ;;  %vm10414_vm6 = vmmov %vm10411_vm12 }
 0x416   : > { %v2548_v9 = vrot.slane %v2547_v12, 4  ;;  %v3222_v36 = vsel %vm2672_vm11, %v8529_v16, %v3221_v54  ;;  %v2555_v29 = vrot.slane %v2554_v32, 4  ;;  %v2535_v27 = vmax.f32 %v2533_v58, %v2534_v55 }
 0x417   : > { %4782 = vrot.lane.b32.xlu0 %v4781_v59, %s10370_s24  ;;  %v3223_v6 = vsel %vm2674_vm15, %v8539_v35, %v3222_v36  ;;  %v8643_v40 = vmax.f32 %v1943_v0, 0.0  ;;  %v8647_v38 = vmax.f32 %v2530_v21, %v2531_v50  ;;  %v2561_v47 = vsel %vm9845_vm7, %v2033_v51, -inf  ;;  %v8685_v50 = vpop.permute.xlu0 %4647 }
 0x418   : > { %v3224_v56 = vsel %vm9849_vm8, %v8574_v23, %v3223_v6  ;;  %v2542_v45 = vmax.f32 %v2540_v8, %v2541_v34  ;;  %v2549_v1 = vmax.f32 %v2547_v12, %v2548_v9  ;;  %v3253_v63 = vsel %vm9850_vm13, %v8529_v16, %v8521_v28 }
 0x419   : > { %v3225_v49 = vsel %vm10410_vm1, %v8598_v5, %v3224_v56  ;;  %v2556_v11 = vmax.f32 %v2554_v32, %v2555_v29  ;;  %v2536_v31 = vrot.slane %v2535_v27, 2  ;;  %v2568_v30 = vsel %vm9845_vm7, %v8643_v40, -inf  ;;  %vm10415_vm1 = vmmov %vm10412_vm3 }
 0x41a   : > { %v3226_v10 = vsel %vm10411_vm12, %v8610_v19, %v3225_v49  ;;  %v2562_v3 = vrot.slane %v2561_v47, 4  ;;  %v2034_v15 = vrot.slane %v8643_v40, 2  ;;  %v3254_v24 = vsel %vm2672_vm11, %v8539_v35, %v3253_v63  ;;  %vm10416_vm12 = vmmov %vm10413_vm5 }
 0x41b   : > { %v3227_v4 = vsel %vm10412_vm3, %v8647_v38, %v3226_v10  ;;  %v2543_v62 = vrot.slane %v2542_v45, 2  ;;  %v2550_v48 = vrot.slane %v2549_v1, 2  ;;  %v2569_v43 = vrot.slane %v2568_v30, 4  ;;  %vm10417_vm3 = vmmov %vm10413_vm5 }
 0x41c   : > { %v4786_v20 = vpack.i.bf16 %v3227_v4, %v8447_v13  ;;  %v2537_v44 = vmax.f32 %v2535_v27, %v2536_v31  ;;  %v3255_v21 = vsel %vm2674_vm15, %v8574_v23, %v3254_v24  ;;  %v2563_v13 = vmax.f32 %v2561_v47, %v2562_v3 }
 0x41d   : > { %2796 = vrot.lane.b32.xlu2 %v8543_v61, %s10374_s1  ;;  %v2557_v61 = vrot.slane %v2556_v11, 2  ;;  %v2575_v58 = vsel %vm9845_vm7, %v2034_v15, -inf  ;;  %v2544_v18 = vmax.f32 %v2542_v45, %v2543_v62  ;;  %v3317_v37 = vsel %vm9850_vm13, %v8574_v23, %v8539_v35 }
 0x41e   : > { %4787 = vrot.lane.b32.xlu1 %v4786_v20, %s10373_s0  ;;  %v2570_v12 = vmax.f32 %v2568_v30, %v2569_v43  ;;  %v3256_v59 = vsel %vm9849_vm8, %v8598_v5, %v3255_v21  ;;  %v3285_v55 = vsel %vm9850_vm13, %v8539_v35, %v8529_v16  ;;  %v2538_v32 = vrot.slane %v2537_v44, 1  ;;  %v8730_v43 = vpop.permute.xlu2 %4657 }
 0x41f   : > { %2870 = vrot.lane.b32.xlu0 %v8556_v41, %s10375_s3  ;;  %v2551_v41 = vmax.f32 %v2549_v1, %v2550_v48  ;;  %v2558_v8 = vmax.f32 %v2556_v11, %v2557_v61  ;;  %v2576_v0 = vrot.slane %v2575_v58, 4  ;;  %v3349_v51 = vsel %vm9850_vm13, %v8598_v5, %v8574_v23  ;;  %v8707_v1 = vpop.permute.xlu1 %4652 }
 0x420   : > { %v4644_v54 = vunpack.i.l.bf16 %v8673_v60  ;;  %v2564_v34 = vrot.slane %v2563_v13, 2  ;;  %v2545_v9 = vrot.slane %v2544_v18, 1  ;;  %v2035_v36 = vrot.slane %v8643_v40, 4 }
 0x421   : > { %v3257_v29 = vsel %vm10413_vm5, %v8610_v19, %v3256_v59  ;;  %v3286_v6 = vsel %vm2672_vm11, %v8574_v23, %v3285_v55  ;;  %v2552_v27 = vrot.slane %v2551_v41, 1  ;;  %v2559_v56 = vrot.slane %v2558_v8, 1  ;;  %vm10418_vm5 = vmmov %vm10417_vm3 }
 0x422   : > { %v2571_v47 = vrot.slane %v2570_v12, 2  ;;  %v8704_v49 = vmax.f32 %v2537_v44, %v2538_v32  ;;  %v4645_v45 = vunpack.i.h.bf16 %v8673_v60  ;;  %v2577_v10 = vmax.f32 %v2575_v58, %v2576_v0 }
 0x423   : > { %v3511_v63 = vsel %vm3508_vm9, %v7486_v46, %v4644_v54  ;;  %v4649_v11 = vunpack.i.l.bf16 %v8685_v50  ;;  %v3258_v31 = vsel %vm10414_vm6, %v8647_v38, %v3257_v29  ;;  %v3287_v30 = vsel %vm2674_vm15, %v8598_v5, %v3286_v6 }
 0x424   : > { %v8718_v20 = vmax.f32 %v2544_v18, %v2545_v9  ;;  %v2565_v3 = vmax.f32 %v2563_v13, %v2564_v34  ;;  %v2582_v15 = vsel %vm9845_vm7, %v2035_v36, -inf  ;;  %v8723_v62 = vmax.f32 %v2551_v41, %v2552_v27 }
 0x425   : > { %3018 = vrot.lane.b32.xlu2 %v8585_v53, %s10382_s11  ;;  %v3318_v53 = vsel %vm2672_vm11, %v8598_v5, %v3317_v37  ;;  %v8725_v48 = vmax.f32 %v2558_v8, %v2559_v56  ;;  %v2572_v46 = vmax.f32 %v2570_v12, %v2571_v47  ;;  %v3259_v44 = vsel %vm10415_vm1, %v8704_v49, %v3258_v31  ;;  %vm10419_vm1 = vmmov %vm10414_vm6 }
 0x426   : > { %2944 = vrot.lane.b32.xlu1 %v8567_v14, %s10249_s21  ;;  %v3319_v14 = vsel %vm2674_vm15, %v8610_v19, %v3318_v53  ;;  %v3288_v21 = vsel %vm9849_vm8, %v8610_v19, %v3287_v30  ;;  %v3413_v13 = vsel %vm9850_vm13, %v8647_v38, %v8610_v19  ;;  %v2578_v58 = vrot.slane %v2577_v10, 2 }
 0x427   : > { %3092 = vrot.lane.b32.xlu0 %v8614_v33, %s10385_s18  ;;  %v3350_v33 = vsel %vm2672_vm11, %v8610_v19, %v3349_v51  ;;  %v3320_v61 = vsel %vm9849_vm8, %v8647_v38, %v3319_v14  ;;  %v8739_v18 = vpop.permute.xlu0 %4662  ;;  %v2583_v41 = vrot.slane %v2582_v15, 4  ;;  %v3381_v8 = vsel %vm9850_vm13, %v8610_v19, %v8598_v5 }
 0x428   : > { %v3351_v24 = vsel %vm2674_vm15, %v8647_v38, %v3350_v33  ;;  %v4654_v12 = vunpack.i.l.bf16 %v8707_v1  ;;  %v3321_v59 = vsel %vm10416_vm12, %v8704_v49, %v3320_v61  ;;  %v3445_v32 = vsel %vm9850_vm13, %v8704_v49, %v8647_v38  ;;  %vm10420_vm12 = vmmov %vm10419_vm1 }
 0x429   : > { %v3352_v37 = vsel %vm9849_vm8, %v8704_v49, %v3351_v24  ;;  %v3289_v0 = vsel %vm10418_vm5, %v8647_v38, %v3288_v21  ;;  %v3322_v51 = vsel %vm10414_vm6, %v8718_v20, %v3321_v59  ;;  %v3414_v54 = vsel %vm2672_vm11, %v8704_v49, %v3413_v13  ;;  %v8770_v29 = vpop.permute.xlu1 %4667 }
 0x42a   : > { %v3353_v55 = vsel %vm10417_vm3, %v8718_v20, %v3352_v37  ;;  %v3382_v34 = vsel %vm2672_vm11, %v8647_v38, %v3381_v8  ;;  %v2573_v53 = vrot.slane %v2572_v46, 1  ;;  %v3415_v9 = vsel %vm2674_vm15, %v8718_v20, %v3414_v54 }
 0x42b   : > { %v2579_v36 = vmax.f32 %v2577_v10, %v2578_v58  ;;  %v2566_v6 = vrot.slane %v2565_v3, 1  ;;  %v4659_v27 = vunpack.i.l.bf16 %v8730_v43  ;;  %v3354_v56 = vsel %vm10419_vm1, %v8723_v62, %v3353_v55 }
 0x42c   : > { %v2584_v47 = vmax.f32 %v2582_v15, %v2583_v41  ;;  %v4650_v33 = vunpack.i.h.bf16 %v8685_v50  ;;  %v3290_v14 = vsel %vm10420_vm12, %v8704_v49, %v3289_v0  ;;  %vm10421_vm3 = vcmask 1047559   ;;  %v8790_v15 = vpop.permute.xlu2 %4672 }
 0x42d   : > { %3240 = vrot.lane.b32.xlu2 %v3227_v4, %s10341_s22  ;;  %v3520_v4 = vsel %vm3517_vm0, %v3511_v63, %v4649_v11  ;;  %v3323_v63 = vsel %vm10421_vm3, %v8723_v62, %v3322_v51  ;;  %vm10422_vm5 = vcmask 195584   ;;  %vm10423_vm6 = vmmov %vm10421_vm3  ;;  %v3383_v30 = vsel %vm2674_vm15, %v8704_v49, %v3382_v34 }
 0x42e   : > { %3166 = vrot.lane.b32.xlu1 %v8626_v39, %s10339_s17  ;;  %v3446_v39 = vsel %vm2672_vm11, %v8718_v20, %v3445_v32  ;;  %v3528_v11 = vsel %vm10422_vm5, %v3520_v4, %v4654_v12  ;;  %v3291_v31 = vsel %vm10423_vm6, %v8718_v20, %v3290_v14  ;;  %v3416_v50 = vsel %vm9849_vm8, %v8723_v62, %v3415_v9  ;;  %vm10424_vm1 = vmmov %vm10421_vm3 }
 0x42f   : > { %3272 = vrot.lane.b32.xlu0 %v3259_v44, %s10347_s28  ;;  %v3447_v10 = vsel %vm2674_vm15, %v8723_v62, %v3446_v39  ;;  %v3355_v24 = vsel %vm10424_vm1, %v8725_v48, %v3354_v56  ;;  %v3384_v61 = vsel %vm9849_vm8, %v8718_v20, %v3383_v30  ;;  %v8796_v44 = vmax.f32 %v2572_v46, %v2573_v53  ;;  %v4678_v12 = vpop.permute.xlu0 %4677 }
 0x430   : > { %v2580_v21 = vrot.slane %v2579_v36, 1  ;;  %v3448_v13 = vsel %vm9849_vm8, %v8725_v48, %v3447_v10  ;;  %v4664_v58 = vunpack.i.l.bf16 %v8739_v18  ;;  %v2585_v41 = vrot.slane %v2584_v47, 2 }
 0x431   : > { %v3477_v4 = vsel %vm9850_vm13, %v8718_v20, %v8704_v49  ;;  %v3512_v37 = vsel %vm3508_vm9, %v8020_v7, %v4645_v45  ;;  %v8810_v46 = vmax.f32 %v2565_v3, %v2566_v6  ;;  %vm10425_vm12 = vcmask 1045509  }
 0x432   : > { %v3417_v8 = vsel %vm10425_vm12, %v8725_v48, %v3416_v50  ;;  %v3521_v59 = vsel %vm3517_vm0, %v3512_v37, %v4650_v33  ;;  %v4655_v55 = vunpack.i.h.bf16 %v8707_v1  ;;  %vm10426_vm3 = vmmov %vm10425_vm12  ;;  %vm10427_vm5 = vcmask 261120  }
 0x433   : > { %v3385_v32 = vsel %vm10426_vm3, %v8723_v62, %v3384_v61  ;;  %v3537_v60 = vsel %vm10427_vm5, %v3528_v11, %v4659_v27  ;;  %v8819_v0 = vmax.f32 %v2579_v36, %v2580_v21  ;;  %vm10428_vm6 = vmmov %vm10426_vm3  ;;  %v4669_v45 = vunpack.i.l.bf16 %v8770_v29 }
 0x434   : > { %v3449_v7 = vsel %vm10428_vm6, %v8810_v46, %v3448_v13  ;;  %v3478_v3 = vsel %vm2672_vm11, %v8723_v62, %v3477_v4  ;;  %vm10429_vm1 = vcmask 1046534   ;;  %vm10431_vm7 = vcmask 326656  }
 0x435   : > { %3336 = vrot.lane.b32.xlu2 %v3323_v63, %s10355_s26  ;;  %v3418_v51 = vsel %vm10429_vm1, %v8810_v46, %v3417_v8  ;;  %vm10430_vm12 = vmmov %vm10429_vm1  ;;  %v3546_v54 = vsel %vm10431_vm7, %v3537_v60, %v4664_v58  ;;  %v2586_v39 = vmax.f32 %v2584_v47, %v2585_v41  ;;  %vm10433_vm5 = vcmask 1047559  }
 0x436   : > { %3304 = vrot.lane.b32.xlu1 %v3291_v31, %s10350_s29  ;;  %v3450_v1 = vsel %vm10430_vm12, %v8796_v44, %v3449_v7  ;;  %vm10432_vm3 = vmmov %vm10429_vm1  ;;  %v3419_v53 = vsel %vm10433_vm5, %v8796_v44, %v3418_v51  ;;  %v3479_v36 = vsel %vm2674_vm15, %v8725_v48, %v3478_v3  ;;  %vm10434_vm6 = vcmask 195584   ;;  %v4688_v31 = vpop.permute.xlu2 %4687 }
 0x437   : > { %3368 = vrot.lane.b32.xlu0 %v3355_v24, %s10403_s2  ;;  %v3386_v34 = vsel %vm10432_vm3, %v8725_v48, %v3385_v32  ;;  %v4683_v9 = vpop.permute.xlu1 %4682  ;;  %v3529_v6 = vsel %vm10434_vm6, %v3521_v59, %v4655_v55  ;;  %vm10435_vm1 = vmmov %vm10433_vm5  ;;  %vm10436_vm12 = vcmask 392192   ;;  %v4679_v47 = vunpack.i.l.bf16 %v4678_v12 }
 0x438   : > { %v3451_v27 = vsel %vm10435_vm1, %v8819_v0, %v3450_v1  ;;  %v3554_v56 = vsel %vm10436_vm12, %v3546_v54, %v4669_v45  ;;  %v4674_v33 = vunpack.i.l.bf16 %v8790_v15  ;;  %vm10437_vm7 = vmmov %vm10435_vm1  ;;  %v4665_v63 = vunpack.i.h.bf16 %v8739_v18 }
 0x439   : > { %v3387_v14 = vsel %vm10437_vm7, %v8810_v46, %v3386_v34  ;;  %v2587_v10 = vrot.slane %v2586_v39, 1  ;;  %v4660_v11 = vunpack.i.h.bf16 %v8730_v43  ;;  %v3480_v30 = vsel %vm9849_vm8, %v8810_v46, %v3479_v36 }
 0x43a   : > { %vm10438_vm3 = vcmask 1045509   ;;  %vm10439_vm5 = vcmask 457728   ;;  %v4684_v61 = vunpack.i.l.bf16 %v4683_v9  ;;  %vm10440_vm6 = vcmask 261120  }
 0x43b   : > { %v3481_v50 = vsel %vm10438_vm3, %v8796_v44, %v3480_v30  ;;  %v3563_v24 = vsel %vm10439_vm5, %v3554_v56, %v4674_v33  ;;  %v3538_v21 = vsel %vm10440_vm6, %v3529_v6, %v4660_v11  ;;  %v4670_v13 = vunpack.i.h.bf16 %v8770_v29 }
 0x43c   : > { %vm10441_vm1 = vcmask 523264   ;;  %vm10442_vm12 = vcmask 326656   ;;  %v8858_v41 = vmax.f32 %v2586_v39, %v2587_v10  ;;  %vm10444_vm7 = vcmask 1046534  }
 0x43d   : > { %3432 = vrot.lane.b32.xlu2 %v3419_v53, %s10365_s23  ;;  %v3572_v18 = vsel %vm10441_vm1, %v3563_v24, %v4679_v47  ;;  %v3547_v43 = vsel %vm10442_vm12, %v3538_v21, %v4665_v63  ;;  %v3482_v4 = vsel %vm10444_vm7, %v8819_v0, %v3481_v50  ;;  %vm10445_vm3 = vcmask 588800  }
 0x43e   : > { %3400 = vrot.lane.b32.xlu1 %v3387_v14, %s10362_s27  ;;  %v4693_v58 = vpop.permute.xlu0 %4692  ;;  %10443 = vst [vmem:[#allocation40_spill] sm:$0xff] %v8858_v41  ;;  %v3581_v37 = vsel %vm10445_vm3, %v3572_v18, %v4684_v61  ;;  %v4689_v59 = vunpack.i.l.bf16 %v4688_v31  ;;  %vm10446_vm5 = vcmask 392192   ;;  %v4680_v55 = vunpack.i.h.bf16 %v4678_v12  ;;  %v4703_v51 = vpop.permute.xlu2 %4702 }
 0x43f   : > { %3464 = vrot.lane.b32.xlu0 %v3451_v27, %s10370_s24  ;;  %v4694_v8 = vunpack.i.l.bf16 %v4693_v58  ;;  %v3555_v29 = vsel %vm10446_vm5, %v3547_v43, %v4670_v13  ;;  %v4675_v60 = vunpack.i.h.bf16 %v8790_v15  ;;  %vm10447_vm6 = vcmask 1047559  }
 0x440   : > { %v3483_v7 = vsel %vm10447_vm6, %v8858_v41, %v3482_v4  ;;  %vm10449_vm1 = vcmask 654336   ;;  %vm10450_vm12 = vcmask 457728   ;;  %v4685_v3 = vunpack.i.h.bf16 %v4683_v9 }
 0x441   : > { %v3590_v42 = vsel %vm10449_vm1, %v3581_v37, %v4689_v59  ;;  %v3564_v45 = vsel %vm10450_vm12, %v3555_v29, %v4675_v60  ;;  %vm10451_vm7 = vcmask 523264   ;;  %v4704_v54 = vunpack.i.l.bf16 %v4703_v51  ;;  %vm10456_vm5 = vmmov %vm10449_vm1  ;;  %v8909_v59 = vld [vmem:[%s9675_s4] ss:$0 sm:$0xff] }
 0x442   : > { %v3599_v12 = vsel %vm3596_vm2, %v3590_v42, %v4694_v8  ;;  %v3573_v15 = vsel %vm10451_vm7, %v3564_v45, %v4680_v55  ;;  %v4695_v34 = vunpack.i.h.bf16 %v4693_v58  ;;  %v4690_v53 = vunpack.i.h.bf16 %v4688_v31 }
 0x443   : > { %v3582_v39 = vsel %vm10445_vm3, %v3573_v15, %v4685_v3  ;;  %v10453_v9 = vrot.slane %v6942_v25, 5  ;;  %v10455_v27 = vrot.slane %v6942_v25, 3  ;;  %vm10457_vm6 = vcmask 982016  }
 0x444   : > { %v4698_v32 = vpop.permute.xlu1 %4697  ;;  %v3591_v56 = vsel %vm10456_vm5, %v3582_v39, %v4690_v53  ;;  %v4705_v30 = vunpack.i.h.bf16 %v4703_v51  ;;  %v10459_v24 = vrot.slane %v6942_v25, 7  ;;  %v10461_v13 = vrot.slane %v6942_v25, 6  ;;  %vm10462_vm1 = vmmov %vm10457_vm6 }
 0x445   : > { %1138 = vrot.lane.b32.xlu2 %v1100_v17, %s10081_s16  ;;  %v4699_v17 = vunpack.i.l.bf16 %v4698_v32  ;;  %s10454_s16 = smov 33   ;;  %v4700_v47 = vunpack.i.h.bf16 %v4698_v32  ;;  %vm3740_vm12 = vcmask 123904   ;;  %vm10463_vm7 = vcmask 195584  }
 0x446   : > { %3496 = vrot.lane.b32.xlu1 %v3483_v7, %s10373_s0  ;;  %v4718_v50 = vpop.permute.xlu2 %4717  ;;  %vm10464_vm3 = vcmask 261120   ;;  %vm10465_vm5 = vcmask 326656   ;;  %vm10471_vm8 = vcmask 588800  }
 0x447   : > { %1197 = vrot.lane.b32.xlu0 %v1159_v26, %s10448_s15  ;;  %v3608_v1 = vsel %vm3605_vm14, %v3599_v12, %v4699_v17  ;;  %s10452_s15 = smov 39   ;;  %v4719_v7 = vunpack.i.l.bf16 %v4718_v50 }
 0x448   : > { %v3617_v6 = vsel %vm9851_vm4, %v3608_v1, %v4704_v54 }
 0x449   : > { %v3513_v54 = vsel %vm3508_vm9, %v8024_v52, %v4719_v7 }
 0x44c   : > { %v4708_v26 = vpop.permute.xlu0 %4707 }
 0x44d   : > { %1315 = vrot.lane.b32.xlu2 %v1277_v57, %s10076_s14  ;;  %v4709_v36 = vunpack.i.l.bf16 %v4708_v26  ;;  %v3600_v57 = vsel %vm3596_vm2, %v3591_v56, %v4695_v34  ;;  %v4710_v31 = vunpack.i.h.bf16 %v4708_v26  ;;  %s10458_s14 = smov 45  }
 0x44e   : > { %1256 = vrot.lane.b32.xlu1 %v10455_v27, %s10454_s16  ;;  %v3609_v11 = vsel %vm3605_vm14, %v3600_v57, %v4700_v47  ;;  %v4733_v43 = vpop.permute.xlu2 %4732  ;;  %v4720_v27 = vunpack.i.h.bf16 %v4718_v50 }
 0x44f   : > { %1374 = vrot.lane.b32.xlu0 %v10453_v9, %s10452_s15  ;;  %v3626_v14 = vsel %vm3623_vm10, %v3617_v6, %v4709_v36  ;;  %v3618_v21 = vsel %vm9851_vm4, %v3609_v11, %v4705_v30  ;;  %s10460_s15 = smov 42  }
 0x450   : > { %v4713_v33 = vpop.permute.xlu1 %4712  ;;  %v3627_v18 = vsel %vm3623_vm10, %v3618_v21, %v4710_v31 }
 0x451   : > { %v4714_v63 = vunpack.i.l.bf16 %v4713_v33  ;;  %v4715_v61 = vunpack.i.h.bf16 %v4713_v33 }
 0x453   : > { %v3635_v10 = vsel %vm10457_vm6, %v3626_v14, %v4714_v63  ;;  %v3636_v58 = vsel %vm10462_vm1, %v3627_v18, %v4715_v61  ;;  %v4734_v14 = vunpack.i.l.bf16 %v4733_v43  ;;  %vm10466_vm6 = vcmask 392192   ;;  %vm10467_vm1 = vmmov %vm10463_vm7 }
 0x454   : > { %3666 = vmatmul.f32.gmra.mxu1 %v3635_v10 }
 0x455   : > { %1492 = vrot.lane.b32.xlu2 %v10459_v24, %s10458_s14  ;;  %v3514_v24 = vsel %vm3508_vm9, %v8484_v22, %v4720_v27 }
 0x456   : > { %1433 = vrot.lane.b32.xlu1 %v10461_v13, %s10460_s15  ;;  %v8904_v37 = vpop.permute.xlu2 %4747  ;;  %s323_s15 = sand.u32 1, %s4941_s10  }
 0x457   : > { %v4723_v4 = vpop.permute.xlu0 %4722  ;;  %v4749_v7 = vunpack.i.l.bf16 %v8904_v37  ;;  %s4459_s16 = sshll.u32 %s323_s15, 1 }
 0x458   : > { %v4724_v45 = vunpack.i.l.bf16 %v4723_v4  ;;  %v4725_v57 = vunpack.i.h.bf16 %v4723_v4 }
 0x45a   : > { %v4728_v8 = vpop.permute.xlu1 %4727  ;;  %v3522_v34 = vsel %vm3517_vm0, %v3513_v54, %v4724_v45  ;;  %v3523_v21 = vsel %vm3517_vm0, %v3514_v24, %v4725_v57 }
 0x45b   : > { %v4729_v39 = vunpack.i.l.bf16 %v4728_v8  ;;  %v4730_v61 = vunpack.i.h.bf16 %v4728_v8 }
 0x45c   : > { %3669 = vmatmul.f32.gmra.mxu1 %v3636_v58 }
 0x45d   : > { %v3530_v56 = vsel %vm10463_vm7, %v3522_v34, %v4729_v39  ;;  %v3531_v22 = vsel %vm10467_vm1, %v3523_v21, %v4730_v61  ;;  %vm10468_vm7 = vcmask 457728   ;;  %vm10472_vm1 = vcmask 392192  }
 0x45e   : > { %v3539_v52 = vsel %vm10464_vm3, %v3530_v56, %v4734_v14  ;;  %v4750_v56 = vunpack.i.h.bf16 %v8904_v37 }
 0x463   : > { %v4738_v55 = vpop.permute.xlu0 %4737 }
 0x464   : > { %v4743_v12 = vpop.permute.xlu1 %4742  ;;  %v4739_v47 = vunpack.i.l.bf16 %v4738_v55  ;;  %v4740_v8 = vunpack.i.h.bf16 %v4738_v55 }
 0x465   : > { %v4744_v31 = vunpack.i.l.bf16 %v4743_v12 }
 0x466   : > { %v8912_v32 = vpop.permute.xlu2 %4762  ;;  %v3548_v50 = vsel %vm10465_vm5, %v3539_v52, %v4739_v47  ;;  %vm10469_vm5 = vcmask 523264  }
 0x467   : > { %v3556_v4 = vsel %vm10466_vm6, %v3548_v50, %v4744_v31  ;;  %vm10470_vm6 = vcmask 326656  }
 0x468   : > { %v3565_v45 = vsel %vm10468_vm7, %v3556_v4, %v4749_v7 }
 0x46e   : > { %v3661_v29 = vpop.f32.mrf.mxu1 }
 0x46f   : > { %v3662_v25 = vadd.f32 %v8909_v59, %v3661_v29  ;;  %v8924_v33 = vpop.permute.xlu2 %4777 }
 0x471   : > { %v8914_v60 = vmax.f32 %v3662_v25, 0.0 }
 0x473   : > { %v3698_v42 = vrot.slane %v8914_v60, 2  ;;  %v3741_v17 = vsel %vm3740_vm12, %v8914_v60, -inf }
 0x474   : > { %v3742_v3 = vrot.slane %v3741_v17, 4  ;;  %v4753_v36 = vpop.permute.xlu0 %4752 }
 0x475   : > { %v3748_v51 = vsel %vm3740_vm12, %v3698_v42, -inf  ;;  %v4754_v29 = vunpack.i.l.bf16 %v4753_v36 }
 0x476   : > { %v3743_v15 = vmax.f32 %v3741_v17, %v3742_v3  ;;  %v3749_v1 = vrot.slane %v3748_v51, 4  ;;  %v4735_v17 = vunpack.i.h.bf16 %v4733_v43  ;;  %v4755_v43 = vunpack.i.h.bf16 %v4753_v36 }
 0x477   : > { %v2797_v3 = vpop.permute.xlu2 %2796  ;;  %v4765_v36 = vunpack.i.h.bf16 %v8912_v32 }
 0x478   : > { %v3744_v26 = vrot.slane %v3743_v15, 2  ;;  %v3750_v53 = vmax.f32 %v3748_v51, %v3749_v1  ;;  %v3540_v51 = vsel %vm10464_vm3, %v3531_v22, %v4735_v17  ;;  %v3574_v1 = vsel %vm10469_vm5, %v3565_v45, %v4754_v29  ;;  %vm10474_vm3 = vmmov %vm10469_vm5 }
 0x479   : > { %v3549_v54 = vsel %vm10470_vm6, %v3540_v51, %v4740_v8  ;;  %vm10475_vm5 = vcmask 982016  }
 0x47a   : > { %v3745_v9 = vmax.f32 %v3743_v15, %v3744_v26  ;;  %v3751_v6 = vrot.slane %v3750_v53, 2  ;;  %v4745_v15 = vunpack.i.h.bf16 %v4743_v12  ;;  %v4764_v26 = vunpack.i.l.bf16 %v8912_v32  ;;  %vm10476_vm6 = vmmov %vm10475_vm5 }
 0x47b   : > { %v4780_v32 = vunpack.i.h.bf16 %v8924_v33 }
 0x47c   : > { %v3746_v63 = vrot.slane %v3745_v9, 1  ;;  %v3752_v10 = vmax.f32 %v3750_v53, %v3751_v6  ;;  %v3557_v55 = vsel %vm10472_vm1, %v3549_v54, %v4745_v15  ;;  %vm10477_vm1 = vcmask 195584  }
 0x47d   : > { %v4758_v11 = vpop.permute.xlu1 %4757  ;;  %v3566_v47 = vsel %vm10468_vm7, %v3557_v55, %v4750_v56  ;;  %vm10478_vm7 = vcmask 261120  }
 0x47e   : > { %v3753_v30 = vrot.slane %v3752_v10, 1  ;;  %v3747_v13 = vmax.f32 %v3745_v9, %v3746_v63  ;;  %v4759_v42 = vunpack.i.l.bf16 %v4758_v11  ;;  %v4760_v12 = vunpack.i.h.bf16 %v4758_v11 }
 0x47f   : > { %v3575_v57 = vsel %vm10474_vm3, %v3566_v47, %v4755_v43  ;;  %v3019_v31 = vpop.permute.xlu2 %3018  ;;  %vm10479_vm3 = vcmask 326656  }
 0x480   : > { %v8931_v18 = vmax.f32 %v3752_v10, %v3753_v30  ;;  %v4768_v58 = vpop.permute.xlu0 %4767  ;;  %v3583_v39 = vsel %vm10471_vm8, %v3574_v1, %v4759_v42  ;;  %v4779_v10 = vunpack.i.l.bf16 %v8924_v33  ;;  %v3584_v52 = vsel %vm10471_vm8, %v3575_v57, %v4760_v12 }
 0x481   : > { %v4769_v53 = vunpack.i.l.bf16 %v4768_v58  ;;  %v4770_v24 = vunpack.i.h.bf16 %v4768_v58  ;;  %v3515_v1 = vsel %vm3508_vm9, %v8488_v2, %v2797_v3  ;;  %vm10480_vm8 = vcmask 392192  }
 0x482   : > { %v8936_v25 = vsel %vm9850_vm13, %v8931_v18, %v3747_v13  ;;  %vm10473_vm13 = vcmask 654336  }
 0x483   : > { %v3592_v6 = vsel %vm10473_vm13, %v3583_v39, %v4764_v26  ;;  %v3593_v11 = vsel %vm10473_vm13, %v3584_v52, %v4765_v36  ;;  %vm10481_vm13 = vcmask 457728   ;;  %v4886_v36 = vld [vmem:[%s5083_s25 + $0x90] sm:$0xff] }
 0x484   : > { %v3601_v14 = vsel %vm3596_vm2, %v3592_v6, %v4769_v53  ;;  %v3602_v29 = vsel %vm3596_vm2, %v3593_v11, %v4770_v24  ;;  %v10487_v11 = vld [vmem:[#allocation97_spill] sm:$0xff] }
 0x485   : > { %v4773_v34 = vpop.permute.xlu1 %4772 }
 0x486   : > { %v4774_v27 = vunpack.i.l.bf16 %v4773_v34  ;;  %v4775_v50 = vunpack.i.h.bf16 %v4773_v34 }
 0x487   : > { %v3241_v8 = vpop.permute.xlu2 %3240 }
 0x488   : > { %v3610_v63 = vsel %vm3605_vm14, %v3601_v14, %v4774_v27  ;;  %v3611_v22 = vsel %vm3605_vm14, %v3602_v29, %v4775_v50  ;;  %v10492_v29 = vld [vmem:[#allocation163_spill] sm:$0xff] }
 0x489   : > { %v4783_v9 = vpop.permute.xlu0 %4782  ;;  %v3619_v37 = vsel %vm9851_vm4, %v3610_v63, %v4779_v10  ;;  %v3620_v45 = vsel %vm9851_vm4, %v3611_v22, %v4780_v32  ;;  %v10494_v32 = vld [vmem:[#allocation189_spill] sm:$0xff] }
 0x48a   : > { %v4784_v30 = vunpack.i.l.bf16 %v4783_v9  ;;  %v4785_v58 = vunpack.i.h.bf16 %v4783_v9 }
 0x48c   : > { %v3628_v4 = vsel %vm3623_vm10, %v3619_v37, %v4784_v30  ;;  %v3629_v15 = vsel %vm3623_vm10, %v3620_v45, %v4785_v58  ;;  %v10485_v30 = vld [vmem:[#allocation67_spill] sm:$0xff]  ;;  %v10498_v45 = vld [vmem:[#allocation200_spill] sm:$0xff] }
 0x48f   : > { %v3337_v9 = vpop.permute.xlu2 %3336 }
 0x490   : > { %v4788_v21 = vpop.permute.xlu1 %4787 }
 0x491   : > { %v2871_v61 = vpop.permute.xlu0 %2870  ;;  %v4789_v13 = vunpack.i.l.bf16 %v4788_v21  ;;  %v4790_v42 = vunpack.i.h.bf16 %v4788_v21 }
 0x492   : > { %v3524_v39 = vsel %vm3517_vm0, %v3515_v1, %v2871_v61 }
 0x493   : > { %v3637_v7 = vsel %vm10475_vm5, %v3628_v4, %v4789_v13  ;;  %v3638_v54 = vsel %vm10476_vm6, %v3629_v15, %v4790_v42  ;;  %vm10482_vm5 = vcmask 523264   ;;  %vm10483_vm6 = vcmask 588800   ;;  %v10490_v13 = vld [vmem:[#allocation113_spill] sm:$0xff]  ;;  %v10500_v15 = vld [vmem:[#allocation130_spill] sm:$0xff] }
 0x494   : > { %3672 = vmatmul.f32.gmra.mxu1 %v3637_v7 }
 0x497   : > { %v3433_v56 = vpop.permute.xlu2 %3432 }
 0x498   : > { %v2945_v51 = vpop.permute.xlu1 %2944 }
 0x499   : > { %v3093_v17 = vpop.permute.xlu0 %3092  ;;  %v3532_v34 = vsel %vm10477_vm1, %v3524_v39, %v2945_v51  ;;  %vm10484_vm1 = vcmask 654336  }
 0x49a   : > { %v3541_v26 = vsel %vm10478_vm7, %v3532_v34, %v3019_v31  ;;  %vm10486_vm7 = vcmask 23552  }
 0x49b   : > { %v3550_v55 = vsel %vm10479_vm3, %v3541_v26, %v3093_v17  ;;  %v1532_v24 = vsel %vm10486_vm7, %v4886_v36, %v10485_v30  ;;  %vm10488_vm3 = vcmask 48128   ;;  %vm10499_vm7 = vcmask 171008   ;;  %v3664_v26 = vpop.f32.mrf.mxu1 }
 0x49c   : > { %3675 = vmatmul.f32.gmra.mxu1 %v3638_v54  ;;  %v1552_v50 = vsel %vm10488_vm3, %v1532_v24, %v10487_v11  ;;  %vm10501_vm3 = vcmask 195584  }
 0x49f   : > { %v1139_v52 = vpop.permute.xlu2 %1138 }
 0x4a0   : > { %v3167_v53 = vpop.permute.xlu1 %3166 }
 0x4a1   : > { %v3273_v33 = vpop.permute.xlu0 %3272  ;;  %v3558_v43 = vsel %vm10480_vm8, %v3550_v55, %v3167_v53  ;;  %vm10489_vm8 = vcmask 982016   ;;  %v3665_v55 = vadd.f32 %v8909_v59, %v3664_v26 }
 0x4a2   : > { %v3567_v6 = vsel %vm10481_vm13, %v3558_v43, %v3241_v8  ;;  %vm10491_vm13 = vcmask 72704   ;;  %v10496_v8 = vld [vmem:[#allocation192_spill] sm:$0xff] }
 0x4a3   : > { %v3576_v27 = vsel %vm10482_vm5, %v3567_v6, %v3273_v33  ;;  %v1572_v4 = vsel %vm10491_vm13, %v1552_v50, %v10490_v13  ;;  %vm10493_vm5 = vcmask 97280   ;;  %vm10503_vm13 = vcmask 244736  }
 0x4a4   : > { %v1592_v7 = vsel %vm10493_vm5, %v1572_v4, %v10492_v29  ;;  %vm10504_vm5 = vcmask 269312  }
 0x4a7   : > { %v1316_v17 = vpop.permute.xlu2 %1315 }
 0x4a8   : > { %v3305_v3 = vpop.permute.xlu1 %3304 }
 0x4a9   : > { %v3369_v2 = vpop.permute.xlu0 %3368  ;;  %v3585_v12 = vsel %vm10483_vm6, %v3576_v27, %v3305_v3  ;;  %vm10495_vm6 = vcmask 121856   ;;  %v3699_v3 = vrot.slane %v8914_v60, 4 }
 0x4aa   : > { %v3594_v47 = vsel %vm10484_vm1, %v3585_v12, %v3337_v9  ;;  %v1612_v58 = vsel %vm10495_vm6, %v1592_v7, %v10494_v32  ;;  %vm10497_vm1 = vcmask 146432   ;;  %vm10506_vm6 = vcmask 318464  }
 0x4ab   : > { %v3603_v57 = vsel %vm3596_vm2, %v3594_v47, %v3369_v2  ;;  %v1632_v42 = vsel %vm10497_vm1, %v1612_v58, %v10496_v8  ;;  %vm10507_vm1 = vcmask 343040   ;;  %v3755_v47 = vsel %vm3740_vm12, %v3699_v3, -inf }
 0x4ac   : > { %v1652_v51 = vsel %vm10499_vm7, %v1632_v42, %v10498_v45  ;;  %vm10508_vm7 = vcmask 367616  }
 0x4ad   : > { %v1672_v1 = vsel %vm10501_vm3, %v1652_v51, %v10500_v15  ;;  %vm10509_vm3 = vcmask 392192  }
 0x4af   : > { %v1493_v43 = vpop.permute.xlu2 %1492 }
 0x4b0   : > { %v3401_v14 = vpop.permute.xlu1 %3400 }
 0x4b1   : > { %v3465_v63 = vpop.permute.xlu0 %3464  ;;  %v3612_v10 = vsel %vm3605_vm14, %v3603_v57, %v3401_v14  ;;  %v3700_v14 = vrot.slane %v8914_v60, 6 }
 0x4b2   : > { %v3621_v31 = vsel %vm9851_vm4, %v3612_v10, %v3433_v56  ;;  %vm10505_vm4 = vcmask 293888   ;;  %v3685_v56 = vmax.f32 %v3665_v55, 0.0  ;;  %v3756_v10 = vrot.slane %v3755_v47, 4 }
 0x4b3   : > { %v3630_v61 = vsel %vm3623_vm10, %v3621_v31, %v3465_v63  ;;  %v3762_v31 = vsel %vm3740_vm12, %v3700_v14, -inf }
 0x4b4   : > { %v3701_v57 = vrot.slane %v3685_v56, 2  ;;  %v3702_v63 = vrot.slane %v3685_v56, 4  ;;  %v3703_v36 = vrot.slane %v3685_v56, 6  ;;  %v3763_v11 = vrot.slane %v3762_v31, 4 }
 0x4b6   : > { %v3776_v30 = vsel %vm3740_vm12, %v3701_v57, -inf  ;;  %v3783_v24 = vsel %vm3740_vm12, %v3702_v63, -inf  ;;  %v3790_v13 = vsel %vm3740_vm12, %v3703_v36, -inf  ;;  %v3764_v29 = vmax.f32 %v3762_v31, %v3763_v11 }
 0x4b7   : > { %v3777_v50 = vrot.slane %v3776_v30, 4 }
 0x4b8   : > { %v3497_v37 = vpop.permute.xlu1 %3496 }
 0x4b9   : > { %v3639_v21 = vsel %vm10489_vm8, %v3630_v61, %v3497_v37  ;;  %v1198_v22 = vpop.permute.xlu0 %1197  ;;  %vm10502_vm8 = vcmask 220160   ;;  %v3757_v61 = vmax.f32 %v3755_v47, %v3756_v10  ;;  %v3778_v7 = vmax.f32 %v3776_v30, %v3777_v50 }
 0x4ba   : > { %3678 = vmatmul.f32.gmra.mxu1 %v3639_v21  ;;  %v1692_v54 = vsel %vm10502_vm8, %v1672_v1, %v1139_v52  ;;  %v3769_v52 = vsel %vm3740_vm12, %v3685_v56, -inf  ;;  %v3784_v21 = vrot.slane %v3783_v24, 4  ;;  %vm10511_vm8 = vcmask 1045509  }
 0x4bb   : > { %v1712_v34 = vsel %vm10503_vm13, %v1692_v54, %v1198_v22  ;;  %v3770_v37 = vrot.slane %v3769_v52, 4  ;;  %v3758_v60 = vrot.slane %v3757_v61, 2  ;;  %v3791_v22 = vrot.slane %v3790_v13, 4 }
 0x4bc   : > { %v3785_v32 = vmax.f32 %v3783_v24, %v3784_v21  ;;  %v3779_v45 = vrot.slane %v3778_v7, 2  ;;  %vm10512_vm13 = vcmask 1046534  }
 0x4bd   : > { %v3771_v4 = vmax.f32 %v3769_v52, %v3770_v37  ;;  %v3759_v8 = vmax.f32 %v3757_v61, %v3758_v60  ;;  %v3792_v51 = vmax.f32 %v3790_v13, %v3791_v22 }
 0x4be   : > { %v3786_v15 = vrot.slane %v3785_v32, 2 }
 0x4bf   : > { %v3772_v42 = vrot.slane %v3771_v4, 2  ;;  %v3760_v1 = vrot.slane %v3759_v8, 1 }
 0x4c0   : > { %v1257_v39 = vpop.permute.xlu1 %1256  ;;  %v3787_v26 = vmax.f32 %v3785_v32, %v3786_v15 }
 0x4c1   : > { %v1732_v33 = vsel %vm10504_vm5, %v1712_v34, %v1257_v39  ;;  %v1375_v9 = vpop.permute.xlu0 %1374  ;;  %v3773_v54 = vmax.f32 %v3771_v4, %v3772_v42  ;;  %v3780_v34 = vmax.f32 %v3778_v7, %v3779_v45  ;;  %vm10513_vm5 = vcmask 1047559  }
 0x4c2   : > { %v1752_v53 = vsel %vm10505_vm4, %v1732_v33, %v1316_v17  ;;  %v3765_v17 = vrot.slane %v3764_v29, 2  ;;  %v3793_v33 = vrot.slane %v3792_v51, 2  ;;  %vm10510_vm4 = vcmask 1044484  }
 0x4c3   : > { %v1772_v6 = vsel %vm10506_vm6, %v1752_v53, %v1375_v9  ;;  %v9017_v9 = vmax.f32 %v3759_v8, %v3760_v1  ;;  %v3774_v55 = vrot.slane %v3773_v54, 1  ;;  %vm10515_vm6 = vcmask 1041409  }
 0x4c4   : > { %v3766_v39 = vmax.f32 %v3764_v29, %v3765_v17  ;;  %v3794_v3 = vmax.f32 %v3792_v51, %v3793_v33 }
 0x4c5   : > { %v9020_v47 = vmax.f32 %v3773_v54, %v3774_v55  ;;  %v3984_v14 = vsel %vm2672_vm11, %v9017_v9, %v8936_v25 }
 0x4c6   : > { %v3795_v10 = vrot.slane %v3794_v3, 1 }
 0x4c8   : > { %v1434_v2 = vpop.permute.xlu1 %1433  ;;  %v9032_v11 = vmax.f32 %v3794_v3, %v3795_v10 }
 0x4c9   : > { %v1792_v27 = vsel %vm10507_vm1, %v1772_v6, %v1434_v2  ;;  %v3767_v6 = vrot.slane %v3766_v39, 1  ;;  %v3781_v2 = vrot.slane %v3780_v34, 1  ;;  %vm10516_vm1 = vmmov %vm10515_vm6 }
 0x4ca   : > { %v1812_v12 = vsel %vm10508_vm7, %v1792_v27, %v1493_v43  ;;  %v3788_v27 = vrot.slane %v3787_v26, 1  ;;  %vm10517_vm7 = vmmov %vm10516_vm1 }
 0x4cb   : > { %4479 = vmatmul.msk.f32.gmra.mxu3 %vm10509_vm3, %v1812_v12  ;;  %v3768_v57 = vmax.f32 %v3766_v39, %v3767_v6  ;;  %v9025_v63 = vmax.f32 %v3780_v34, %v3781_v2  ;;  %vm10518_vm3 = vmmov %vm10510_vm4 }
 0x4cc   : > { %v9027_v52 = vmax.f32 %v3787_v26, %v3788_v27 }
 0x4cd   : > { %v3985_v30 = vsel %vm2674_vm15, %v3768_v57, %v3984_v14 }
 0x4ce   : > { %v3986_v37 = vsel %vm10510_vm4, %v9020_v47, %v3985_v30  ;;  %vm10519_vm4 = vmmov %vm10511_vm8 }
 0x4cf   : > { %v3987_v25 = vsel %vm10511_vm8, %v9025_v63, %v3986_v37  ;;  %vm10520_vm8 = vmmov %vm10516_vm1 }
 0x4d0   : > { %v3988_v50 = vsel %vm10512_vm13, %v9027_v52, %v3987_v25  ;;  %vm10521_vm13 = vmmov %vm10518_vm3 }
 0x4d1   : > { %v3667_v58 = vpop.f32.mrf.mxu1  ;;  %v9041_v60 = vsel %vm10513_vm5, %v9032_v11, %v3988_v50  ;;  %vm10522_vm5 = vcmask 1046534  }
 0x4d2   : > { %v3668_v53 = vadd.f32 %v8909_v59, %v3667_v58  ;;  %10514 = vst [vmem:[#allocation19_spill] sm:$0xff] %v9041_v60 }
 0x4d4   : > { %v3686_v56 = vmax.f32 %v3668_v53, 0.0 }
 0x4d6   : > { %v3704_v31 = vrot.slane %v3686_v56, 2  ;;  %v3705_v24 = vrot.slane %v3686_v56, 4  ;;  %v3706_v61 = vrot.slane %v3686_v56, 6  ;;  %v3797_v22 = vsel %vm3740_vm12, %v3686_v56, -inf }
 0x4d7   : > { %v3798_v51 = vrot.slane %v3797_v22, 4 }
 0x4d8   : > { %v3804_v21 = vsel %vm3740_vm12, %v3704_v31, -inf  ;;  %v3811_v4 = vsel %vm3740_vm12, %v3705_v24, -inf  ;;  %v3818_v29 = vsel %vm3740_vm12, %v3706_v61, -inf  ;;  %v3997_v31 = vsel %vm10515_vm6, %v9017_v9, %v8931_v18  ;;  %vm10523_vm6 = vmmov %vm10518_vm3 }
 0x4d9   : > { %v3670_v43 = vpop.f32.mrf.mxu1  ;;  %v3805_v32 = vrot.slane %v3804_v21, 4  ;;  %v3812_v8 = vrot.slane %v3811_v4, 4  ;;  %v3819_v42 = vrot.slane %v3818_v29, 4  ;;  %v3799_v55 = vmax.f32 %v3797_v22, %v3798_v51 }
 0x4da   : > { %v3671_v12 = vadd.f32 %v8909_v59, %v3670_v43  ;;  %v4033_v22 = vsel %vm10516_vm1, %v9020_v47, %v3768_v57  ;;  %v4015_v18 = vsel %vm10517_vm7, %v3768_v57, %v9017_v9  ;;  %vm10524_vm7 = vmmov %vm10516_vm1 }
 0x4db   : > { %v3806_v54 = vmax.f32 %v3804_v21, %v3805_v32  ;;  %v3813_v34 = vmax.f32 %v3811_v4, %v3812_v8  ;;  %v3820_v33 = vmax.f32 %v3818_v29, %v3819_v42  ;;  %v3800_v14 = vrot.slane %v3799_v55, 2 }
 0x4dc   : > { %v3687_v36 = vmax.f32 %v3671_v12, 0.0 }
 0x4dd   : > { %v3807_v6 = vrot.slane %v3806_v54, 2  ;;  %v3814_v3 = vrot.slane %v3813_v34, 2  ;;  %v3821_v27 = vrot.slane %v3820_v33, 2  ;;  %v3801_v50 = vmax.f32 %v3799_v55, %v3800_v14 }
 0x4de   : > { %v3707_v13 = vrot.slane %v3687_v36, 2  ;;  %v3708_v7 = vrot.slane %v3687_v36, 4  ;;  %v3825_v58 = vsel %vm3740_vm12, %v3687_v36, -inf  ;;  %v3709_v45 = vrot.slane %v3687_v36, 6 }
 0x4df   : > { %v3826_v15 = vrot.slane %v3825_v58, 4  ;;  %v3808_v36 = vmax.f32 %v3806_v54, %v3807_v6  ;;  %v3815_v24 = vmax.f32 %v3813_v34, %v3814_v3  ;;  %v3822_v61 = vmax.f32 %v3820_v33, %v3821_v27 }
 0x4e0   : > { %v3832_v17 = vsel %vm3740_vm12, %v3707_v13, -inf  ;;  %v3839_v1 = vsel %vm3740_vm12, %v3708_v7, -inf  ;;  %v3846_v53 = vsel %vm3740_vm12, %v3709_v45, -inf  ;;  %v3998_v13 = vsel %vm2672_vm11, %v3768_v57, %v3997_v31 }
 0x4e1   : > { %v3833_v39 = vrot.slane %v3832_v17, 4  ;;  %v3840_v26 = vrot.slane %v3839_v1, 4  ;;  %v3827_v43 = vmax.f32 %v3825_v58, %v3826_v15  ;;  %v3847_v56 = vrot.slane %v3846_v53, 4 }
 0x4e2   : > { %v3809_v4 = vrot.slane %v3808_v36, 1  ;;  %v3999_v7 = vsel %vm2674_vm15, %v9020_v47, %v3998_v13  ;;  %v3816_v32 = vrot.slane %v3815_v24, 1  ;;  %v3823_v58 = vrot.slane %v3822_v61, 1 }
 0x4e3   : > { %v3834_v2 = vmax.f32 %v3832_v17, %v3833_v39  ;;  %v3841_v12 = vmax.f32 %v3839_v1, %v3840_v26  ;;  %v3828_v10 = vrot.slane %v3827_v43, 2  ;;  %v3848_v37 = vmax.f32 %v3846_v53, %v3847_v56 }
 0x4e4   : > { %v4016_v17 = vsel %vm2672_vm11, %v9020_v47, %v4015_v18  ;;  %v3802_v45 = vrot.slane %v3801_v50, 1  ;;  %v4000_v15 = vsel %vm10518_vm3, %v9025_v63, %v3999_v7  ;;  %v4034_v1 = vsel %vm2672_vm11, %v9025_v63, %v4033_v22  ;;  %vm10525_vm3 = vmmov %vm10516_vm1 }
 0x4e5   : > { %v3835_v30 = vrot.slane %v3834_v2, 2  ;;  %v3842_v25 = vrot.slane %v3841_v12, 2  ;;  %v3829_v21 = vmax.f32 %v3827_v43, %v3828_v10  ;;  %v3849_v8 = vrot.slane %v3848_v37, 2 }
 0x4e6   : > { %v9066_v54 = vmax.f32 %v3808_v36, %v3809_v4  ;;  %v9068_v34 = vmax.f32 %v3815_v24, %v3816_v32  ;;  %v9070_v9 = vmax.f32 %v3822_v61, %v3823_v58  ;;  %v4017_v33 = vsel %vm2674_vm15, %v9025_v63, %v4016_v17 }
 0x4e7   : > { %v3836_v29 = vmax.f32 %v3834_v2, %v3835_v30  ;;  %v3843_v42 = vmax.f32 %v3841_v12, %v3842_v25  ;;  %v3830_v51 = vrot.slane %v3829_v21, 1  ;;  %v3850_v57 = vmax.f32 %v3848_v37, %v3849_v8 }
 0x4e8   : > { %v4001_v53 = vsel %vm10519_vm4, %v9027_v52, %v4000_v15  ;;  %v4035_v55 = vsel %vm2674_vm15, %v9027_v52, %v4034_v1  ;;  %v4051_v43 = vsel %vm10520_vm8, %v9025_v63, %v9020_v47  ;;  %v9081_v6 = vmax.f32 %v3801_v50, %v3802_v45  ;;  %vm10526_vm8 = vmmov %vm10519_vm4 }
 0x4e9   : > { %v3837_v39 = vrot.slane %v3836_v29, 1  ;;  %v3844_v26 = vrot.slane %v3843_v42, 1  ;;  %v9083_v2 = vmax.f32 %v3829_v21, %v3830_v51  ;;  %v4018_v27 = vsel %vm10521_vm13, %v9027_v52, %v4017_v33  ;;  %vm10527_vm13 = vmmov %vm10516_vm1 }
 0x4ea   : > { %v3851_v56 = vrot.slane %v3850_v57, 1  ;;  %v4002_v12 = vsel %vm10522_vm5, %v9032_v11, %v4001_v53  ;;  %v4036_v14 = vsel %vm10523_vm6, %v9032_v11, %v4035_v55  ;;  %v4052_v10 = vsel %vm2672_vm11, %v9027_v52, %v4051_v43  ;;  %vm10528_vm5 = vmmov %vm10523_vm6 }
 0x4eb   : > { %v9085_v3 = vmax.f32 %v3836_v29, %v3837_v39  ;;  %v9095_v47 = vmax.f32 %v3843_v42, %v3844_v26  ;;  %v4004_v31 = vsel %vm10516_vm1, %v9068_v34, %v9066_v54  ;;  %v4022_v36 = vsel %vm10524_vm7, %v9070_v9, %v9068_v34  ;;  %vm10530_vm1 = vmmov %vm10528_vm5 }
 0x4ec   : > { %v4069_v30 = vsel %vm10525_vm3, %v9027_v52, %v9025_v63  ;;  %v4005_v24 = vsel %vm2672_vm11, %v9070_v9, %v4004_v31  ;;  %v4019_v61 = vsel %vm10519_vm4, %v9032_v11, %v4018_v27  ;;  %v4023_v37 = vsel %vm2672_vm11, %v9083_v2, %v4022_v36  ;;  %vm10532_vm3 = vmmov %vm10530_vm1 }
 0x4ed   : > { %v4037_v25 = vsel %vm10526_vm8, %v9081_v6, %v4036_v14  ;;  %v4006_v50 = vsel %vm2674_vm15, %v9083_v2, %v4005_v24  ;;  %v4024_v21 = vsel %vm2674_vm15, %v9085_v3, %v4023_v37  ;;  %v4040_v63 = vsel %vm10527_vm13, %v9083_v2, %v9070_v9  ;;  %vm10533_vm8 = vmmov %vm10519_vm4 }
 0x4ee   : > { %v4053_v13 = vsel %vm2674_vm15, %v9032_v11, %v4052_v10  ;;  %v9123_v4 = vmax.f32 %v3850_v57, %v3851_v56  ;;  %v9127_v29 = vsel %vm10528_vm5, %v9085_v3, %v4006_v50  ;;  %v4041_v7 = vsel %vm2672_vm11, %v9085_v3, %v4040_v63 }
 0x4ef   : > { %v4070_v22 = vsel %vm2672_vm11, %v9032_v11, %v4069_v30  ;;  %vm10529_vm6 = vcmask 1046534   ;;  %v9137_v32 = vsel %vm10530_vm1, %v9095_v47, %v4024_v21  ;;  %v4054_v8 = vsel %vm10532_vm3, %v9081_v6, %v4053_v13  ;;  %vm10538_vm3 = vmmov %vm10519_vm4 }
 0x4f0   : > { %v4020_v18 = vsel %vm10529_vm6, %v9081_v6, %v4019_v61  ;;  %vm10531_vm7 = vmmov %vm10529_vm6  ;;  %v4133_v17 = vsel %vm10519_vm4, %v9095_v47, %v9127_v29  ;;  %v4042_v45 = vsel %vm2674_vm15, %v9095_v47, %v4041_v7  ;;  %v4055_v51 = vsel %vm10533_vm8, %v9066_v54, %v4054_v8 }
 0x4f1   : > { %v4038_v58 = vsel %vm10531_vm7, %v9066_v54, %v4037_v25  ;;  %v4087_v15 = vsel %vm10527_vm13, %v9032_v11, %v9027_v52  ;;  %vm10534_vm5 = vmmov %vm10529_vm6  ;;  %v4071_v33 = vsel %vm2674_vm15, %v9081_v6, %v4070_v22  ;;  %vm10536_vm1 = vcmask 1047559  }
 0x4f2   : > { %v4056_v39 = vsel %vm10534_vm5, %v9068_v34, %v4055_v51  ;;  %vm10535_vm6 = vmmov %vm10527_vm13  ;;  %v9163_v26 = vsel %vm10536_vm1, %v9081_v6, %v4002_v12  ;;  %v9172_v52 = vsel %vm10538_vm3, %v9123_v4, %v9137_v32  ;;  %vm10541_vm13 = vcmask 1044484  }
 0x4f3   : > { %v4058_v57 = vsel %vm10535_vm6, %v9085_v3, %v9083_v2  ;;  %vm10537_vm7 = vmmov %vm10536_vm1  ;;  %v4072_v56 = vsel %vm10541_vm13, %v9066_v54, %v4071_v33  ;;  %v4088_v12 = vsel %vm2672_vm11, %v9081_v6, %v4087_v15 }
 0x4f4   : > { %v9167_v53 = vsel %vm10537_vm7, %v9066_v54, %v4020_v18  ;;  %vm10539_vm4 = vmmov %vm10536_vm1  ;;  %v4059_v31 = vsel %vm2672_vm11, %v9095_v47, %v4058_v57  ;;  %v4089_v36 = vsel %vm2674_vm15, %v9066_v54, %v4088_v12  ;;  %vm10545_vm7 = vcmask 1041409  }
 0x4f5   : > { %v9176_v55 = vsel %vm10539_vm4, %v9068_v34, %v4038_v58  ;;  %vm10540_vm8 = vmmov %vm10534_vm5  ;;  %v4076_v21 = vsel %vm10545_vm7, %v9095_v47, %v9085_v3  ;;  %v4060_v15 = vsel %vm2674_vm15, %v9123_v4, %v4059_v31 }
 0x4f6   : > { %v9180_v27 = vsel %vm10540_vm8, %v9123_v4, %v4133_v17  ;;  %vm10542_vm5 = vmmov %vm10541_vm13 }
 0x4f7   : > { %v9188_v14 = vsel %vm10542_vm5, %v9123_v4, %v4042_v45  ;;  %vm10543_vm6 = vmmov %vm10536_vm1 }
 0x4f8   : > { %v9192_v10 = vsel %vm10543_vm6, %v9070_v9, %v4056_v39  ;;  %vm10544_vm1 = vmmov %vm10538_vm3 }
 0x4f9   : > { %v4073_v50 = vsel %vm10544_vm1, %v9068_v34, %v4072_v56  ;;  %vm10546_vm3 = vmmov %vm10545_vm7 }
 0x4fa   : > { %v4105_v63 = vsel %vm10546_vm3, %v9081_v6, %v9032_v11  ;;  %vm10547_vm4 = vmmov %vm10542_vm5  ;;  %v9217_v11 = vsel %vm10540_vm8, %v9070_v9, %v4073_v50 }
 0x4fb   : > { %v4090_v18 = vsel %vm10547_vm4, %v9068_v34, %v4089_v36  ;;  %vm10548_vm13 = vmmov %vm10544_vm1  ;;  %v4106_v31 = vsel %vm2672_vm11, %v9066_v54, %v4105_v63  ;;  %vm10551_vm1 = vcmask 1047559  }
 0x4fc   : > { %v4091_v12 = vsel %vm10548_vm13, %v9070_v9, %v4090_v18  ;;  %vm10549_vm5 = vmmov %vm10546_vm3 }
 0x4fd   : > { %v9226_v36 = vsel %vm10549_vm5, %v9123_v4, %v9095_v47  ;;  %vm10550_vm6 = vmmov %vm10540_vm8 }
 0x4fe   : > { %v4092_v28 = vsel %vm10550_vm6, %v9083_v2, %v4091_v12  ;;  %vm10552_vm7 = vmmov %vm10550_vm6 }
 0x4ff   : > { %vm10553_vm3 = vmmov %vm10548_vm13 }
 0x500   : > { %vm10554_vm8 = vmmov %vm10551_vm1 }
 0x501   : > { %vm10555_vm13 = vmmov %vm10550_vm6 }
 0x502   : > { %vm10556_vm5 = vmmov %vm10553_vm3 }
 0x503   : > { %vm10557_vm6 = vmmov %vm10551_vm1 }
 0x511   : > { %v3673_v42 = vpop.f32.mrf.mxu1 }
 0x512   : > { %v3674_v1 = vadd.f32 %v8909_v59, %v3673_v42 }
 0x514   : > { %v3688_v43 = vmax.f32 %v3674_v1, 0.0  ;;  %v4077_v1 = vsel %vm2672_vm11, %v9123_v4, %v4076_v21 }
 0x516   : > { %v3710_v30 = vrot.slane %v3688_v43, 2  ;;  %v3711_v24 = vrot.slane %v3688_v43, 4  ;;  %v3712_v61 = vrot.slane %v3688_v43, 6  ;;  %v3853_v37 = vsel %vm3740_vm12, %v3688_v43, -inf }
 0x517   : > { %v3854_v25 = vrot.slane %v3853_v37, 4 }
 0x518   : > { %v3860_v13 = vsel %vm3740_vm12, %v3710_v30, -inf  ;;  %v3867_v7 = vsel %vm3740_vm12, %v3711_v24, -inf  ;;  %v3874_v22 = vsel %vm3740_vm12, %v3712_v61, -inf }
 0x519   : > { %v3855_v58 = vmax.f32 %v3853_v37, %v3854_v25  ;;  %v3861_v8 = vrot.slane %v3860_v13, 4  ;;  %v3868_v42 = vrot.slane %v3867_v7, 4  ;;  %v3875_v17 = vrot.slane %v3874_v22, 4  ;;  %v3676_v45 = vpop.f32.mrf.mxu1 }
 0x51a   : > { %v3677_v51 = vadd.f32 %v8909_v59, %v3676_v45 }
 0x51b   : > { %v3856_v39 = vrot.slane %v3855_v58, 2  ;;  %v3862_v57 = vmax.f32 %v3860_v13, %v3861_v8  ;;  %v3869_v33 = vmax.f32 %v3867_v7, %v3868_v42  ;;  %v3876_v43 = vmax.f32 %v3874_v22, %v3875_v17 }
 0x51c   : > { %v3689_v56 = vmax.f32 %v3677_v51, 0.0 }
 0x51d   : > { %v3857_v30 = vmax.f32 %v3855_v58, %v3856_v39  ;;  %v3863_v24 = vrot.slane %v3862_v57, 2  ;;  %v3870_v61 = vrot.slane %v3869_v33, 2  ;;  %v3877_v37 = vrot.slane %v3876_v43, 2 }
 0x51e   : > { %v3713_v25 = vrot.slane %v3689_v56, 2  ;;  %v3714_v50 = vrot.slane %v3689_v56, 4  ;;  %v3715_v21 = vrot.slane %v3689_v56, 6  ;;  %v3881_v13 = vsel %vm3740_vm12, %v3689_v56, -inf }
 0x51f   : > { %v3858_v7 = vrot.slane %v3857_v30, 1  ;;  %v3864_v22 = vmax.f32 %v3862_v57, %v3863_v24  ;;  %v3871_v18 = vmax.f32 %v3869_v33, %v3870_v61  ;;  %v3878_v8 = vmax.f32 %v3876_v43, %v3877_v37 }
 0x520   : > { %v3882_v42 = vrot.slane %v3881_v13, 4  ;;  %v3888_v17 = vsel %vm3740_vm12, %v3713_v25, -inf  ;;  %v3895_v45 = vsel %vm3740_vm12, %v3714_v50, -inf  ;;  %v3902_v63 = vsel %vm3740_vm12, %v3715_v21, -inf }
 0x521   : > { %v9234_v58 = vmax.f32 %v3857_v30, %v3858_v7  ;;  %v3865_v51 = vrot.slane %v3864_v22, 1  ;;  %v3872_v39 = vrot.slane %v3871_v18, 1  ;;  %v3889_v56 = vrot.slane %v3888_v17, 4 }
 0x522   : > { %v3883_v60 = vmax.f32 %v3881_v13, %v3882_v42  ;;  %v3896_v41 = vrot.slane %v3895_v45, 4  ;;  %v3903_v57 = vrot.slane %v3902_v63, 4  ;;  %v3879_v43 = vrot.slane %v3878_v8, 1 }
 0x523   : > { %v9238_v33 = vmax.f32 %v3864_v22, %v3865_v51  ;;  %v4135_v24 = vsel %vm10551_vm1, %v9234_v58, %v9180_v27  ;;  %v4107_v30 = vsel %vm2674_vm15, %v9068_v34, %v4106_v31  ;;  %v9245_v61 = vmax.f32 %v3871_v18, %v3872_v39  ;;  %vm10558_vm1 = vmmov %vm10552_vm7 }
 0x524   : > { %v3884_v37 = vrot.slane %v3883_v60, 2  ;;  %v3890_v25 = vmax.f32 %v3888_v17, %v3889_v56  ;;  %v3897_v50 = vmax.f32 %v3895_v45, %v3896_v41  ;;  %v4791_v12 = vpack.i.bf16 %v4135_v24, %v9163_v26 }
 0x525   : > { %v4148_v21 = vsel %vm10552_vm7, %v9234_v58, %v9172_v52  ;;  %v4161_v13 = vsel %vm10553_vm3, %v9234_v58, %v9188_v14  ;;  %v9256_v27 = vsel %vm10547_vm4, %v9234_v58, %v4060_v15  ;;  %v3904_v18 = vmax.f32 %v3902_v63, %v3903_v57  ;;  %vm10559_vm7 = vmmov %vm10547_vm4 }
 0x526   : > { %v3885_v31 = vmax.f32 %v3883_v60, %v3884_v37  ;;  %v3891_v7 = vrot.slane %v3890_v25, 2  ;;  %v3898_v22 = vrot.slane %v3897_v50, 2  ;;  %4792 = vrot.lane.b32.xlu0 %v4791_v12, %s10375_s3  ;;  %v4149_v41 = vsel %vm10554_vm8, %v9238_v33, %v4148_v21  ;;  %vm10560_vm3 = vmmov %vm10557_vm6 }
 0x527   : > { %v4162_v26 = vsel %vm10555_vm13, %v9238_v33, %v4161_v13  ;;  %v4175_v52 = vsel %vm10556_vm5, %v9238_v33, %v9256_v27  ;;  %v4078_v15 = vsel %vm2674_vm15, %v9234_v58, %v4077_v1  ;;  %v9268_v42 = vmax.f32 %v3878_v8, %v3879_v43  ;;  %vm10561_vm4 = vmmov %vm10556_vm5 }
 0x528   : > { %v3886_v60 = vrot.slane %v3885_v31, 1  ;;  %v3892_v17 = vmax.f32 %v3890_v25, %v3891_v7  ;;  %v3899_v45 = vmax.f32 %v3897_v50, %v3898_v22  ;;  %v4796_v63 = vpack.i.bf16 %v4149_v41, %v9167_v53  ;;  %vm10562_vm8 = vmmov %vm10560_vm3 }
 0x529   : > { %v4163_v51 = vsel %vm10557_vm6, %v9245_v61, %v4162_v26  ;;  %v4176_v39 = vsel %vm10558_vm1, %v9245_v61, %v4175_v52  ;;  %v9277_v56 = vsel %vm10559_vm7, %v9238_v33, %v4078_v15  ;;  %v3905_v43 = vrot.slane %v3904_v18, 2  ;;  %vm10563_vm13 = vmmov %vm10559_vm7 }
 0x52a   : > { %v9279_v57 = vmax.f32 %v3885_v31, %v3886_v60  ;;  %v3893_v1 = vrot.slane %v3892_v17, 1  ;;  %v3900_v8 = vrot.slane %v3899_v45, 1  ;;  %4797 = vrot.lane.b32.xlu1 %v4796_v63, %s10382_s11  ;;  %v4801_v24 = vpack.i.bf16 %v4163_v51, %v9176_v55  ;;  %vm10564_vm5 = vmmov %vm10558_vm1 }
 0x52b   : > { %v4177_v53 = vsel %vm10560_vm3, %v9268_v42, %v4176_v39  ;;  %v4189_v37 = vsel %vm10561_vm4, %v9245_v61, %v9277_v56  ;;  %v4095_v25 = vsel %vm2672_vm11, %v9234_v58, %v9226_v36  ;;  %v4075_v21 = vsel %vm10562_vm8, %v9083_v2, %v9217_v11  ;;  %vm10565_vm6 = vmmov %vm10561_vm4 }
 0x52c   : > { %v9291_v50 = vmax.f32 %v3892_v17, %v3893_v1  ;;  %v4806_v12 = vpack.i.bf16 %v4177_v53, %v9192_v10  ;;  %v4108_v55 = vsel %vm10563_vm13, %v9070_v9, %v4107_v30  ;;  %4802 = vrot.lane.b32.xlu2 %v4801_v24, %s10339_s17  ;;  %v4190_v13 = vsel %vm10564_vm5, %v9268_v42, %v4189_v37  ;;  %vm10567_vm7 = vmmov %vm10560_vm3 }
 0x52d   : > { %v4096_v31 = vsel %vm2674_vm15, %v9238_v33, %v4095_v25  ;;  %v4109_v36 = vsel %vm10565_vm6, %v9083_v2, %v4108_v55  ;;  %vm10566_vm1 = vcmask 1041409   ;;  %v4191_v11 = vsel %vm10567_vm7, %v9279_v57, %v4190_v13  ;;  %vm10568_vm4 = vmmov %vm10563_vm13 }
 0x52e   : > { %v4112_v10 = vsel %vm10566_vm1, %v9234_v58, %v9123_v4  ;;  %v4093_v30 = vsel %vm10560_vm3, %v9085_v3, %v4092_v28  ;;  %v9315_v7 = vsel %vm10568_vm4, %v9245_v61, %v4096_v31  ;;  %v9319_v41 = vmax.f32 %v3899_v45, %v3900_v8  ;;  %4807 = vrot.lane.b32.xlu0 %v4806_v12, %s10347_s28  ;;  %vm10569_vm8 = vmmov %vm10565_vm6 }
 0x52f   : > { %v4113_v22 = vsel %vm2672_vm11, %v9238_v33, %v4112_v10  ;;  %v3906_v26 = vmax.f32 %v3904_v18, %v3905_v43  ;;  %v4203_v52 = vsel %vm10569_vm8, %v9268_v42, %v9315_v7  ;;  %vm10570_vm13 = vmmov %vm10564_vm5  ;;  %v4110_v60 = vsel %vm10564_vm5, %v9085_v3, %v4109_v36 }
 0x530   : > { %v4114_v15 = vsel %vm2674_vm15, %v9245_v61, %v4113_v22  ;;  %v4204_v28 = vsel %vm10570_vm13, %v9279_v57, %v4203_v52  ;;  %vm10571_vm6 = vmmov %vm10568_vm4  ;;  %v4136_v18 = vsel %vm10566_vm1, %v9245_v61, %v9238_v33  ;;  %v4811_v45 = vpack.i.bf16 %v4191_v11, %v4075_v21 }
 0x531   : > { %v9333_v17 = vsel %vm10571_vm6, %v9268_v42, %v4114_v15  ;;  %vm10572_vm7 = vmmov %vm10560_vm3  ;;  %v4137_v43 = vsel %vm2672_vm11, %v9268_v42, %v4136_v18  ;;  %v3907_v12 = vrot.slane %v3906_v26, 1 }
 0x532   : > { %v4205_v63 = vsel %vm10572_vm7, %v9291_v50, %v4204_v28  ;;  %vm10573_vm3 = vmmov %vm10569_vm8  ;;  %4812 = vrot.lane.b32.xlu1 %v4811_v45, %s10355_s26  ;;  %v4138_v37 = vsel %vm2674_vm15, %v9279_v57, %v4137_v43 }
 0x533   : > { %v4217_v51 = vsel %vm10573_vm3, %v9279_v57, %v9333_v17  ;;  %vm10574_vm4 = vmmov %vm10566_vm1  ;;  %v4816_v1 = vpack.i.bf16 %v4205_v63, %v4093_v30  ;;  %v3908_v30 = vmax.f32 %v3906_v26, %v3907_v12 }
 0x534   : > { %v4150_v39 = vsel %vm10574_vm4, %v9268_v42, %v9245_v61  ;;  %vm10575_vm8 = vmmov %vm10564_vm5 }
 0x535   : > { %v4218_v8 = vsel %vm10575_vm8, %v9291_v50, %v4217_v51  ;;  %v4151_v24 = vsel %vm2672_vm11, %v9279_v57, %v4150_v39  ;;  %vm10576_vm13 = vmmov %vm10572_vm7  ;;  %4817 = vrot.lane.b32.xlu2 %v4816_v1, %s10362_s27 }
 0x536   : > { %v4219_v53 = vsel %vm10576_vm13, %v9319_v41, %v4218_v8  ;;  %vm10577_vm5 = vmmov %vm10566_vm1  ;;  %v4152_v31 = vsel %vm2674_vm15, %v9291_v50, %v4151_v24  ;;  %vm10579_vm1 = vcmask 1044484  }
 0x537   : > { %v4164_v25 = vsel %vm10577_vm5, %v9279_v57, %v9268_v42  ;;  %vm10578_vm6 = vmmov %vm10572_vm7  ;;  %v4139_v36 = vsel %vm10579_vm1, %v9291_v50, %v4138_v37  ;;  %v3679_v10 = vpop.f32.mrf.mxu1  ;;  %v4178_v37 = vsel %vm10574_vm4, %v9291_v50, %v9279_v57 }
 0x538   : > { %v4111_v21 = vsel %vm10578_vm6, %v9095_v47, %v4110_v60  ;;  %v4165_v55 = vsel %vm2672_vm11, %v9291_v50, %v4164_v25  ;;  %v3680_v22 = vadd.f32 %v8909_v59, %v3679_v10  ;;  %vm10580_vm7 = vmmov %vm10579_vm1  ;;  %v4826_v15 = vpack.i.bf16 %v4139_v36, %v9127_v29 }
 0x539   : > { %v4821_v13 = vpack.i.bf16 %v4219_v53, %v4111_v21  ;;  %v4166_v11 = vsel %vm2674_vm15, %v9319_v41, %v4165_v55  ;;  %v4153_v52 = vsel %vm10580_vm7, %v9319_v41, %v4152_v31  ;;  %vm10581_vm3 = vmmov %vm10579_vm1  ;;  %v4179_v10 = vsel %vm2672_vm11, %v9319_v41, %v4178_v37 }
 0x53a   : > { %v3690_v28 = vmax.f32 %v3680_v22, 0.0  ;;  %v4167_v60 = vsel %vm10581_vm3, %v3908_v30, %v4166_v11  ;;  %4827 = vrot.lane.b32.xlu1 %v4826_v15, %s10375_s3  ;;  %v4831_v18 = vpack.i.bf16 %v4153_v52, %v9137_v32  ;;  %vm10583_vm8 = vmmov %vm10574_vm4 }
 0x53b   : > { %4822 = vrot.lane.b32.xlu0 %v4821_v13, %s10370_s24  ;;  %v4836_v59 = vpack.i.bf16 %v4167_v60, %v9188_v14  ;;  %v3990_v22 = vsel %vm10583_vm8, %v9066_v54, %v9081_v6  ;;  %vm10584_vm13 = vmmov %vm10574_vm4  ;;  %vm10591_vm8 = vcmask 1047559  }
 0x53c   : > { %v3716_v45 = vrot.slane %v3690_v28, 2  ;;  %v3717_v63 = vrot.slane %v3690_v28, 4  ;;  %v3718_v51 = vrot.slane %v3690_v28, 6  ;;  %v3909_v39 = vsel %vm3740_vm12, %v3690_v28, -inf  ;;  %vm10585_vm5 = vmmov %vm10579_vm1 }
 0x53d   : > { %v3910_v26 = vrot.slane %v3909_v39, 4  ;;  %4832 = vrot.lane.b32.xlu2 %v4831_v18, %s10382_s11  ;;  %v3991_v18 = vsel %vm2672_vm11, %v9068_v34, %v3990_v22  ;;  %vm10586_vm6 = vmmov %vm10574_vm4  ;;  %v3945_v22 = vld [vmem:[%s9676_s5 + $0x40] sm:$0xff] }
 0x53e   : > { %v3916_v1 = vsel %vm3740_vm12, %v3716_v45, -inf  ;;  %v3923_v29 = vsel %vm3740_vm12, %v3717_v63, -inf  ;;  %v3930_v8 = vsel %vm3740_vm12, %v3718_v51, -inf  ;;  %vm10582_vm12 = vmmov %vm10574_vm4  ;;  %v3992_v54 = vsel %vm2674_vm15, %v9070_v9, %v3991_v18  ;;  %v3959_v18 = vld [vmem:[%s9676_s5 + $0xb0] sm:$0xff] }
 0x53f   : > { %v3911_v43 = vmax.f32 %v3909_v39, %v3910_v26  ;;  %v3917_v24 = vrot.slane %v3916_v1, 4  ;;  %v3924_v53 = vrot.slane %v3923_v29, 4  ;;  %v3931_v32 = vrot.slane %v3930_v8, 4  ;;  %vm10587_vm7 = vmmov %vm10579_vm1 }
 0x540   : > { %v4192_v11 = vsel %vm10582_vm12, %v9319_v41, %v9291_v50  ;;  %v4206_v39 = vsel %vm10584_vm13, %v3908_v30, %v9319_v41  ;;  %v4180_v26 = vsel %vm2674_vm15, %v3908_v30, %v4179_v10  ;;  %v9415_v9 = vsel %vm10587_vm7, %v9083_v2, %v3992_v54  ;;  %vm10588_vm3 = vmmov %vm10579_vm1  ;;  %v3946_v10 = vld [vmem:[%s9676_s5 + $0x48] sm:$0xff]  ;;  %v3955_v54 = vld [vmem:[%s9676_s5 + $0x90] sm:$0xff] }
 0x541   : > { %v3912_v25 = vrot.slane %v3911_v43, 2  ;;  %v3918_v12 = vmax.f32 %v3916_v1, %v3917_v24  ;;  %v3925_v21 = vmax.f32 %v3923_v29, %v3924_v53  ;;  %v3932_v14 = vmax.f32 %v3930_v8, %v3931_v32  ;;  %vm10592_vm13 = vmmov %vm10579_vm1 }
 0x542   : > { %v4193_v50 = vsel %vm2672_vm11, %v3908_v30, %v4192_v11  ;;  %vm10589_vm4 = vcmask 1045509   ;;  %vm10590_vm12 = vcmask 1046534   ;;  %v3962_v11 = vld [vmem:[%s9676_s5 + $0xc8] sm:$0xff]  ;;  %vm10598_vm7 = vcmask 392192  }
 0x543   : > { %4837 = vrot.lane.b32.xlu0 %v4836_v59, %s10339_s17  ;;  %v3913_v55 = vmax.f32 %v3911_v43, %v3912_v25  ;;  %v3919_v13 = vrot.slane %v3918_v12, 2  ;;  %v3926_v31 = vrot.slane %v3925_v21, 2  ;;  %v3933_v36 = vrot.slane %v3932_v14, 2 }
 0x545   : > { %v3914_v52 = vrot.slane %v3913_v55, 1  ;;  %v3920_v15 = vmax.f32 %v3918_v12, %v3919_v13  ;;  %v3927_v28 = vmax.f32 %v3925_v21, %v3926_v31  ;;  %v3934_v60 = vmax.f32 %v3932_v14, %v3933_v36  ;;  %v3947_v31 = vld [vmem:[%s9676_s5 + $0x50] sm:$0xff] }
 0x547   : > { %v3915_v45 = vmax.f32 %v3913_v55, %v3914_v52  ;;  %v3921_v63 = vrot.slane %v3920_v15, 1  ;;  %v3928_v51 = vrot.slane %v3927_v28, 1  ;;  %v3935_v59 = vrot.slane %v3934_v60, 1  ;;  %v3961_v52 = vld [vmem:[%s9676_s5 + $0xc0] sm:$0xff] }
 0x549   : > { %v4181_v6 = vsel %vm10585_vm5, %v3915_v45, %v4180_v26  ;;  %v3922_v1 = vmax.f32 %v3920_v15, %v3921_v63  ;;  %v4194_v29 = vsel %vm2674_vm15, %v3915_v45, %v4193_v50  ;;  %v3929_v34 = vmax.f32 %v3927_v28, %v3928_v51  ;;  %v3944_v15 = vld [vmem:[%s9676_s5 + $0x38] sm:$0xff]  ;;  %v3958_v63 = vld [vmem:[%s9676_s5 + $0xa8] sm:$0xff]  ;;  %v3941_v51 = vld [vmem:[%s9676_s5 + $0x20] sm:$0xff] }
 0x54a   : > { %v4841_v8 = vpack.i.bf16 %v4181_v6, %v9256_v27  ;;  %v4207_v43 = vsel %vm2672_vm11, %v3915_v45, %v4206_v39  ;;  %v4220_v41 = vsel %vm10586_vm6, %v3915_v45, %v3908_v30  ;;  %v4123_v30 = vsel %vm10589_vm4, %v9085_v3, %v9415_v9  ;;  %v3960_v28 = vld [vmem:[%s9676_s5 + $0xb8] sm:$0xff]  ;;  %v3942_v45 = vld [vmem:[%s9676_s5 + $0x28] sm:$0xff]  ;;  %v3957_v39 = vld [vmem:[%s9676_s5 + $0xa0] sm:$0xff] }
 0x54b   : > { %v4195_v24 = vsel %vm10579_vm1, %v3922_v1, %v4194_v29  ;;  %v4208_v53 = vsel %vm2674_vm15, %v3922_v1, %v4207_v43  ;;  %v4221_v32 = vsel %vm2672_vm11, %v3922_v1, %v4220_v41  ;;  %v3936_v21 = vmax.f32 %v3934_v60, %v3935_v59  ;;  %v3943_v60 = vld [vmem:[%s9676_s5 + $0x30] sm:$0xff]  ;;  %v3940_v26 = vld [vmem:[%s9676_s5 + $0x18] sm:$0xff]  ;;  %v3938_v6 = vld [vmem:[%s9676_s5 + $0x8] sm:$0xff] }
 0x54c   : > { %4842 = vrot.lane.b32.xlu1 %v4841_v8, %s10347_s28  ;;  %v4846_v37 = vpack.i.bf16 %v4195_v24, %v9277_v56  ;;  %v4209_v27 = vsel %vm10588_vm3, %v3929_v34, %v4208_v53  ;;  %v4222_v25 = vsel %vm2674_vm15, %v3929_v34, %v4221_v32  ;;  %v4124_v14 = vsel %vm10590_vm12, %v9095_v47, %v4123_v30  ;;  %v3956_v50 = vld [vmem:[%s9676_s5 + $0x98] sm:$0xff]  ;;  %v3939_v59 = vld [vmem:[%s9676_s5 + $0x10] sm:$0xff]  ;;  %v3954_v1 = vld [vmem:[%s9676_s5 + $0x88] sm:$0xff] }
 0x54d   : > { %v4851_v12 = vpack.i.bf16 %v4209_v27, %v9315_v7  ;;  %v9430_v56 = vsel %vm10591_vm8, %v9123_v4, %v4124_v14  ;;  %v4223_v55 = vsel %vm10592_vm13, %v3936_v21, %v4222_v25  ;;  %v2036_v3 = vrot.slane %v8643_v40, 6  ;;  %v3951_v40 = vld [vmem:[%s9676_s5 + $0x70] sm:$0xff]  ;;  %v10594_v7 = vld [vmem:[#allocation40_spill] sm:$0xff]  ;;  %vm10599_vm3 = vmmov %vm10598_vm7 }
 0x54e   : > { %v1945_v2 = vpop.f32.mrf.mxu3  ;;  %4847 = vrot.lane.b32.xlu2 %v4846_v37, %s10355_s26  ;;  %v4856_v13 = vpack.i.bf16 %v4223_v55, %v9333_v17  ;;  %vm10593_vm5 = vcmask 58368   ;;  %v3964_v17 = vld [vmem:[%s9676_s5 + $0xd8] sm:$0xff]  ;;  %v3937_v29 = vld [vmem:[%s9676_s5] sm:$0xff]  ;;  %vm10596_vm6 = vcmask 261120   ;;  %vm10600_vm4 = vcmask 523264  }
 0x54f   : > { %4852 = vrot.lane.b32.xlu0 %v4851_v12, %s10362_s27  ;;  %v2589_v47 = vsel %vm10593_vm5, %v2036_v3, -inf  ;;  %v3953_v34 = vld [vmem:[%s9676_s5 + $0x80] sm:$0xff]  ;;  %vm10597_vm1 = vmmov %vm10596_vm6  ;;  %vm10602_vm8 = vcmask 654336   ;;  %vm10604_vm5 = vcmask 1041409  }
 0x550   : > { %v10595_v37 = vld [vmem:[#allocation19_spill] sm:$0xff]  ;;  %vm10601_vm12 = vmmov %vm10600_vm4 }
 0x551   : > { %vm10603_vm13 = vmmov %vm10602_vm8 }
 0x554   : > { %4857 = vrot.lane.b32.xlu1 %v4856_v13, %s10370_s24 }
 0x556   : > { %2798 = vrot.lane.b32.xlu2 %v8529_v16, %s10374_s1  ;;  %v2590_v16 = vrot.slane %v2589_v47, 4 }
 0x557   : > { %2872 = vrot.lane.b32.xlu0 %v8539_v35, %s10375_s3 }
 0x558   : > { %v2591_v35 = vmax.f32 %v2589_v47, %v2590_v16 }
 0x55c   : > { %2946 = vrot.lane.b32.xlu1 %v8574_v23, %s10249_s21  ;;  %v2592_v23 = vrot.slane %v2591_v35, 2 }
 0x55e   : > { %3020 = vrot.lane.b32.xlu2 %v8598_v5, %s10382_s11  ;;  %v3952_v5 = vld [vmem:[%s9676_s5 + $0x78] sm:$0xff] }
 0x55f   : > { %3094 = vrot.lane.b32.xlu0 %v8610_v19, %s10385_s18  ;;  %v3968_v19 = vld [vmem:[%s9676_s5 + $0xf8] sm:$0xff]  ;;  %4261 = vmatpush.msrb.mxu2 %v3952_v5 }
 0x560   : > { %4284 = vmatpush.msrb.mxu3 %v3968_v19 }
 0x561   : > { %4262 = vmatpush.msrb.mxu2 %v3951_v40 }
 0x564   : > { %3168 = vrot.lane.b32.xlu1 %v8647_v38, %s10339_s17  ;;  %v3967_v38 = vld [vmem:[%s9676_s5 + $0xf0] sm:$0xff] }
 0x565   : > { %4285 = vmatpush.msrb.mxu3 %v3967_v38 }
 0x566   : > { %3242 = vrot.lane.b32.xlu2 %v8704_v49, %s10341_s22  ;;  %v2593_v49 = vmax.f32 %v2591_v35, %v2592_v23  ;;  %s4381_s22 = scalar_lea.sflag [#allocation3], %s323_s15 }
 0x567   : > { %3274 = vrot.lane.b32.xlu0 %v8718_v20, %s10347_s28  ;;  %v3950_v20 = vld [vmem:[%s9676_s5 + $0x68] sm:$0xff] }
 0x568   : > { %4263 = vmatpush.msrb.mxu2 %v3950_v20  ;;  %v2594_v4 = vrot.slane %v2593_v49, 1 }
 0x56a   : > { %v2595_v36 = vmax.f32 %v2593_v49, %v2594_v4 }
 0x56c   : > { %3306 = vrot.lane.b32.xlu1 %v8723_v62, %s10350_s29  ;;  %v3966_v62 = vld [vmem:[%s9676_s5 + $0xe8] sm:$0xff] }
 0x56d   : > { %4286 = vmatpush.msrb.mxu3 %v3966_v62 }
 0x56e   : > { %3338 = vrot.lane.b32.xlu2 %v8725_v48, %s10355_s26  ;;  %v3949_v48 = vld [vmem:[%s9676_s5 + $0x60] sm:$0xff]  ;;  %s4907_s26 = scalar_lea.hbm %s9680_s9, 4 }
 0x56f   : > { %3370 = vrot.lane.b32.xlu0 %v8810_v46, %s10403_s2  ;;  %v3965_v46 = vld [vmem:[%s9676_s5 + $0xe0] sm:$0xff]  ;;  %4264 = vmatpush.msrb.mxu2 %v3949_v48 }
 0x570   : > { %4287 = vmatpush.msrb.mxu3 %v3965_v46 }
 0x572   : > { %4288 = vmatpush.msrb.mxu3 %v3964_v17 }
 0x574   : > { %3402 = vrot.lane.b32.xlu1 %v8796_v44, %s10362_s27  ;;  %v3948_v44 = vld [vmem:[%s9676_s5 + $0x58] sm:$0xff]  ;;  %s4482_s27 = sshll.u32 %s5051_s13, 1 }
 0x575   : > { %4265 = vmatpush.msrb.mxu2 %v3948_v44  ;;  %s4391_s20 = scalar_lea.hbm %s9680_s9, %s4482_s27 }
 0x576   : > { %3434 = vrot.lane.b32.xlu2 %v8819_v0, %s10365_s23  ;;  %v3963_v0 = vld [vmem:[%s9676_s5 + $0xd0] sm:$0xff]  ;;  %s325_s23 = scalar_lea.vmem [#allocation2], %s4459_s16 }
 0x577   : > { %3466 = vrot.lane.b32.xlu0 %v10594_v7, %s10370_s24  ;;  %4266 = vmatpush.msrb.mxu2 %v3947_v31  ;;  %s4393_s17 = sshll.u32 %s325_s23, 4  ;;  %s4395_s24 = sshll.u32 %s4391_s20, 4  ;;  %s4394_s17 = int_to_ptr.vmem [resolvable:$true] %s4393_s17  ;;  %s4396_s24 = int_to_ptr.hbm [resolvable:$true] %s4395_s24 }
 0x578   : > { %4289 = vmatpush.msrb.mxu3 %v3963_v0  ;;  %s4901_s13 = sshra.s32 %s4396_s24, 4  ;;  %s4902_s13 = int_to_ptr.hbm [resolvable:$true] %s4901_s13 }
 0x579   : > { %4267 = vmatpush.msrb.mxu2 %v3946_v10  ;;  %s4903_s28 = scalar_lea.hbm %s4902_s13, 2  ;;  %p4908_p0 = scmp.lt.s32.totalorder %s4902_s13, %s9680_s9 }
 0x57a   : > { %4290 = vmatpush.msrb.mxu3 %v3962_v11  ;;  %p4904_p11 = scmp.ne.s32.totalorder %s4902_s13, %s4903_s28  ;;  %p4909_p1 = scmp.lt.s32.totalorder %s4907_s26, %s4903_s28 }
 0x57b   : > { %4268 = vmatpush.msrb.mxu2 %v3945_v22 }
 0x57c   : > { %3498 = vrot.lane.b32.xlu1 %v2595_v36, %s10373_s0  ;;  %4291 = vmatpush.msrb.mxu3 %v3961_v52  ;;  %v4126_v36 = vsel %vm10604_vm5, %v9238_v33, %v9234_v58  ;;  %vm10614_vm5 = vmmov %vm10597_vm1  ;;  %p4905_p12 = pnand %p4904_p11, %p5068_p5  ;;  %p4910_p2 = por %p4909_p1, %p4908_p0 }
 0x57d   : > { %4269 = vmatpush.msrb.mxu2 %v3944_v15  ;;  %v4127_v22 = vsel %vm2672_vm11, %v9245_v61, %v4126_v36  ;;  %vm10606_vm11 = vmmov %vm10597_vm1 }
 0x57e   : > { %4292 = vmatpush.msrb.mxu3 %v3960_v28  ;;  %p4906_p13 = pneg %p4905_p12 }
 0x57f   : > { %4270 = vmatpush.msrb.mxu2 %v3943_v60  ;;  %v4128_v60 = vsel %vm2674_vm15, %v9268_v42, %v4127_v22  ;;  %vm10607_vm15 = vmmov %vm10599_vm3 }
 0x580   : > { %4293 = vmatpush.msrb.mxu3 %v3959_v18  ;;  %p4911_p3 = pnand %p4910_p2, %p4906_p13 }
 0x581   : > { %4271 = vmatpush.msrb.mxu2 %v3942_v45 }
 0x582   : > { %4294 = vmatpush.msrb.mxu3 %v3958_v63 }
 0x583   : > { %4272 = vmatpush.msrb.mxu2 %v3941_v51 }
 0x584   : > { %4295 = vmatpush.msrb.mxu3 %v3957_v39 }
 0x585   : > { %4273 = vmatpush.msrb.mxu2 %v3940_v26 }
 0x586   : > { %4296 = vmatpush.msrb.mxu3 %v3956_v50  ;;  %v4803_v24 = vpop.permute.xlu2 %4802 }
 0x587   : > { %4274 = vmatpush.msrb.mxu2 %v3939_v59  ;;  %v4805_v2 = vunpack.i.h.bf16 %v4803_v24  ;;  %v4804_v55 = vunpack.i.l.bf16 %v4803_v24 }
 0x588   : > { %4297 = vmatpush.msrb.mxu3 %v3955_v54 }
 0x589   : > { %4275 = vmatpush.msrb.mxu2 %v3938_v6 }
 0x58a   : > { %4298 = vmatpush.msrb.mxu3 %v3954_v1 }
 0x58b   : > { %4276 = vmatpush.msrb.mxu2 %v3937_v29 }
 0x58c   : > { %4299 = vmatpush.msrb.mxu3 %v3953_v34 }
 0x58f   : > { %v4818_v5 = vpop.permute.xlu2 %4817 }
 0x590   : > { %v4820_v20 = vunpack.i.h.bf16 %v4818_v5  ;;  %v4819_v62 = vunpack.i.l.bf16 %v4818_v5 }
 0x597   : > { %v4833_v0 = vpop.permute.xlu2 %4832 }
 0x598   : > { %v4793_v8 = vpop.permute.xlu0 %4792  ;;  %v4835_v51 = vunpack.i.h.bf16 %v4833_v0  ;;  %v4834_v39 = vunpack.i.l.bf16 %v4833_v0 }
 0x599   : > { %v4795_v43 = vunpack.i.h.bf16 %v4793_v8  ;;  %v4794_v41 = vunpack.i.l.bf16 %v4793_v8 }
 0x59b   : > { %v4244_v32 = vsel %vm3517_vm0, %v9430_v56, %v4795_v43  ;;  %v4230_v27 = vsel %vm3517_vm0, %v10595_v37, %v4794_v41 }
 0x59c   : > { %v4798_v53 = vpop.permute.xlu1 %4797 }
 0x59d   : > { %v4800_v25 = vunpack.i.h.bf16 %v4798_v53  ;;  %v4799_v30 = vunpack.i.l.bf16 %v4798_v53 }
 0x59f   : > { %v4232_v12 = vsel %vm10596_vm6, %v4230_v27, %v4799_v30  ;;  %v4246_v21 = vsel %vm10597_vm1, %v4244_v32, %v4800_v25  ;;  %vm10605_vm6 = vcmask 1044484  }
 0x5a0   : > { %v4808_v14 = vpop.permute.xlu0 %4807  ;;  %v4234_v47 = vsel %vm10598_vm7, %v4232_v12, %v4804_v55  ;;  %v4248_v16 = vsel %vm10599_vm3, %v4246_v21, %v4805_v2  ;;  %v4129_v18 = vsel %vm10605_vm6, %v9279_v57, %v4128_v60  ;;  %vm10608_vm7 = vmmov %vm10599_vm3  ;;  %vm10615_vm6 = vcmask 326656  }
 0x5a1   : > { %v4810_v13 = vunpack.i.h.bf16 %v4808_v14  ;;  %v4809_v3 = vunpack.i.l.bf16 %v4808_v14  ;;  %vm10609_vm3 = vmmov %vm10600_vm4 }
 0x5a3   : > { %v4236_v56 = vsel %vm10600_vm4, %v4234_v47, %v4809_v3  ;;  %v4250_v35 = vsel %vm10601_vm12, %v4248_v16, %v4810_v13  ;;  %vm10610_vm4 = vmmov %vm10609_vm3  ;;  %v10612_v13 = vld [vmem:[#allocation70_spill] sm:$0xff] }
 0x5a4   : > { %v4813_v23 = vpop.permute.xlu1 %4812  ;;  %vm10611_vm12 = vmmov %vm10602_vm8 }
 0x5a5   : > { %v4815_v19 = vunpack.i.h.bf16 %v4813_v23  ;;  %v4814_v40 = vunpack.i.l.bf16 %v4813_v23 }
 0x5a7   : > { %v4238_v38 = vsel %vm10602_vm8, %v4236_v56, %v4814_v40  ;;  %v4252_v49 = vsel %vm10603_vm13, %v4250_v35, %v4815_v19  ;;  %vm10613_vm13 = vcmask 195584  }
 0x5a8   : > { %v4240_v7 = vsel %vm3605_vm14, %v4238_v38, %v4819_v62  ;;  %v4254_v44 = vsel %vm3605_vm14, %v4252_v49, %v4820_v20  ;;  %v4848_v11 = vpop.permute.xlu2 %4847 }
 0x5a9   : > { %v4850_v34 = vunpack.i.h.bf16 %v4848_v11  ;;  %v4849_v8 = vunpack.i.l.bf16 %v4848_v11 }
 0x5ac   : > { %v4828_v10 = vpop.permute.xlu1 %4827 }
 0x5ad   : > { %v4823_v48 = vpop.permute.xlu0 %4822  ;;  %v4830_v52 = vunpack.i.h.bf16 %v4828_v10  ;;  %v4829_v15 = vunpack.i.l.bf16 %v4828_v10 }
 0x5ae   : > { %v4825_v46 = vunpack.i.h.bf16 %v4823_v48  ;;  %v4824_v4 = vunpack.i.l.bf16 %v4823_v48 }
 0x5af   : > { %v4245_v45 = vsel %vm3517_vm0, %v4129_v18, %v4830_v52  ;;  %v4231_v63 = vsel %vm3517_vm0, %v9415_v9, %v4829_v15  ;;  %v4863_v15 = vld [vmem:[%s9677_s6] ss:$0 sm:$0xff] }
 0x5b0   : > { %v4242_v17 = vsel %vm3623_vm10, %v4240_v7, %v4824_v4  ;;  %v4256_v31 = vsel %vm3623_vm10, %v4254_v44, %v4825_v46  ;;  %v4233_v59 = vsel %vm10606_vm11, %v4231_v63, %v4834_v39  ;;  %v4247_v54 = vsel %vm10597_vm1, %v4245_v45, %v4835_v51  ;;  %v2799_v1 = vpop.permute.xlu2 %2798  ;;  %vm10616_vm11 = vmmov %vm10608_vm7 }
 0x5b1   : > { %4277 = vmatmul.f32.vlgmr.msrb.gmra.mxu2 %v4242_v17  ;;  %4300 = vmatmul.f32.vlgmr.msrb.gmra.mxu3 %v4256_v31  ;;  %v3516_v3 = vsel %vm3508_vm9, %v10612_v13, %v2799_v1  ;;  %vm10617_vm1 = vcmask 457728   ;;  %vm10619_vm9 = vcmask 588800   ;;  %v4864_v13 = vld [vmem:[%s9679_s8] ss:$0 sm:$0xff] }
 0x5b5   : > { %v4838_v28 = vpop.permute.xlu0 %4837 }
 0x5b6   : > { %v4840_v58 = vunpack.i.h.bf16 %v4838_v28  ;;  %v4839_v33 = vunpack.i.l.bf16 %v4838_v28 }
 0x5b8   : > { %v4249_v42 = vsel %vm10607_vm15, %v4247_v54, %v4840_v58  ;;  %v4235_v57 = vsel %vm10608_vm7, %v4233_v59, %v4839_v33  ;;  %v3021_v2 = vpop.permute.xlu2 %3020  ;;  %vm10618_vm15 = vmmov %vm10609_vm3  ;;  %vm10621_vm7 = vcmask 850944   ;;  %v4348_v58 = vld [vmem:[%s9678_s7 + $0x18] sm:$0xff]  ;;  %v4347_v33 = vld [vmem:[%s9678_s7 + $0x10] sm:$0xff] }
 0x5b9   : > { %4370 = vmatpush.msra.mxu2 %v4348_v58 }
 0x5bb   : > { %4371 = vmatpush.msra.mxu2 %v4347_v33 }
 0x5be   : > { %v4843_v26 = vpop.permute.xlu1 %4842 }
 0x5bf   : > { %v4845_v61 = vunpack.i.h.bf16 %v4843_v26  ;;  %v4844_v50 = vunpack.i.l.bf16 %v4843_v26 }
 0x5c0   : > { %v3243_v35 = vpop.permute.xlu2 %3242 }
 0x5c1   : > { %v4853_v6 = vpop.permute.xlu0 %4852  ;;  %v4237_v29 = vsel %vm10609_vm3, %v4235_v57, %v4844_v50  ;;  %v4251_v9 = vsel %vm10610_vm4, %v4249_v42, %v4845_v61  ;;  %vm10622_vm3 = vcmask 982016   ;;  %v4346_v61 = vld [vmem:[%s9678_s7 + $0x8] sm:$0xff]  ;;  %v4345_v50 = vld [vmem:[%s9678_s7] sm:$0xff]  ;;  %vm4378_vm4 = vcmask 254976  }
 0x5c2   : > { %v4855_v43 = vunpack.i.h.bf16 %v4853_v6  ;;  %v4854_v41 = vunpack.i.l.bf16 %v4853_v6  ;;  %v4239_v24 = vsel %vm10611_vm12, %v4237_v29, %v4849_v8  ;;  %v4253_v53 = vsel %vm10602_vm8, %v4251_v9, %v4850_v34  ;;  %4372 = vmatpush.msra.mxu2 %v4346_v61 }
 0x5c4   : > { %v4241_v25 = vsel %vm3605_vm14, %v4239_v24, %v4854_v41  ;;  %v4255_v30 = vsel %vm3605_vm14, %v4253_v53, %v4855_v43  ;;  %4373 = vmatpush.msra.mxu2 %v4345_v50 }
 0x5c6   : > { %v4858_v32 = vpop.permute.xlu1 %4857 }
 0x5c7   : > { %v4860_v37 = vunpack.i.h.bf16 %v4858_v32  ;;  %v4859_v27 = vunpack.i.l.bf16 %v4858_v32 }
 0x5c8   : > { %v3339_v62 = vpop.permute.xlu2 %3338 }
 0x5c9   : > { %v2873_v12 = vpop.permute.xlu0 %2872  ;;  %v4243_v21 = vsel %vm3623_vm10, %v4241_v25, %v4859_v27  ;;  %v4257_v14 = vsel %vm3623_vm10, %v4255_v30, %v4860_v37 }
 0x5ca   : > { %4280 = vmatmul.f32.gmra.mxu2 %v4243_v21  ;;  %4303 = vmatmul.f32.gmra.mxu3 %v4257_v14  ;;  %v3525_v16 = vsel %vm3517_vm0, %v3516_v3, %v2873_v12  ;;  %vm10620_vm0 = vmmov %vm10602_vm8 }
 0x5ce   : > { %v2947_v55 = vpop.permute.xlu1 %2946 }
 0x5cf   : > { %v3533_v56 = vsel %vm10613_vm13, %v3525_v16, %v2947_v55 }
 0x5d0   : > { %v3542_v23 = vsel %vm10614_vm5, %v3533_v56, %v3021_v2  ;;  %v3435_v0 = vpop.permute.xlu2 %3434 }
 0x5d1   : > { %v3095_v47 = vpop.permute.xlu0 %3094 }
 0x5d2   : > { %v3551_v19 = vsel %vm10615_vm6, %v3542_v23, %v3095_v47 }
 0x5d6   : > { %v3169_v5 = vpop.permute.xlu1 %3168 }
 0x5d7   : > { %v3559_v38 = vsel %vm10616_vm11, %v3551_v19, %v3169_v5 }
 0x5d8   : > { %v3568_v49 = vsel %vm10617_vm1, %v3559_v38, %v3243_v35 }
 0x5d9   : > { %v3275_v40 = vpop.permute.xlu0 %3274 }
 0x5da   : > { %v3577_v48 = vsel %vm10618_vm15, %v3568_v49, %v3275_v40 }
 0x5de   : > { %v3307_v20 = vpop.permute.xlu1 %3306 }
 0x5df   : > { %v3586_v46 = vsel %vm10619_vm9, %v3577_v48, %v3307_v20 }
 0x5e0   : > { %v3595_v7 = vsel %vm10620_vm0, %v3586_v46, %v3339_v62 }
 0x5e1   : > { %v3371_v4 = vpop.permute.xlu0 %3370 }
 0x5e2   : > { %v3604_v17 = vsel %vm3596_vm2, %v3595_v7, %v3371_v4  ;;  %vm10623_vm2 = vcmask 1041409  }
 0x5e6   : > { %v3403_v44 = vpop.permute.xlu1 %3402 }
 0x5e7   : > { %v3613_v31 = vsel %vm3605_vm14, %v3604_v17, %v3403_v44  ;;  %vm10624_vm14 = vmmov %vm10614_vm5 }
 0x5e8   : > { %v3622_v36 = vsel %vm10621_vm7, %v3613_v31, %v3435_v0 }
 0x5e9   : > { %v3467_v10 = vpop.permute.xlu0 %3466 }
 0x5ea   : > { %v3631_v11 = vsel %vm3623_vm10, %v3622_v36, %v3467_v10  ;;  %vm4330_vm10 = vcmask 259072  }
 0x5ee   : > { %v3499_v22 = vpop.permute.xlu1 %3498 }
 0x5ef   : > { %v3640_v52 = vsel %vm10622_vm3, %v3631_v11, %v3499_v22 }
 0x5f0   : > { %3681 = vmatmul.f32.gmra.mxu1 %v3640_v52 }
 0x634   : > { %v4278_v28 = vpop.f32.mrf.mxu2  ;;  %v4301_v18 = vpop.f32.mrf.mxu3 }
 0x635   : > { %v4279_v60 = vadd.f32 %v4863_v15, %v4278_v28 }
 0x637   : > { %v4302_v45 = vadd.f32 %v4301_v18, %v4279_v60 }
 0x639   : > { %v4307_v63 = vmax.f32 %v4302_v45, 0.0 }
 0x63b   : > { %v4311_v51 = vrot.slane %v4307_v63, 2  ;;  %v4312_v39 = vrot.slane %v4307_v63, 4  ;;  %v4313_v26 = vrot.slane %v4307_v63, 6  ;;  %4315 = vst [vmem:[#allocation1] ss:$4 sm:$0xff] %v4307_v63 }
 0x63d   : > { %4317 = vst [vmem:[#allocation1 + $0x1] ss:$4 sm:$0xff] %v4311_v51 }
 0x63e   : > { %4319 = vst [vmem:[#allocation1 + $0x2] ss:$4 sm:$0xff] %v4312_v39 }
 0x63f   : > { %4322 = vst [vmem:[#allocation1 + $0x20] ss:$4 sm:$0xff] %v4313_v26 }
 0x645   : > { %v4320_v57 = vld.sshfl [vmem:[#allocation1] sm:$0xff pattern:$0x73625140] }
 0x646   : > { %v4331_v29 = vsel %vm4330_vm10, %v4320_v57, -inf }
 0x647   : > { %v4332_v34 = vrot.slane %v4331_v29, 4 }
 0x649   : > { %v4333_v8 = vmax.f32 %v4331_v29, %v4332_v34 }
 0x64b   : > { %v4334_v41 = vrot.slane %v4333_v8, 2 }
 0x64d   : > { %v4281_v59 = vpop.f32.mrf.mxu2  ;;  %v4304_v42 = vpop.f32.mrf.mxu3  ;;  %v4335_v32 = vmax.f32 %v4333_v8, %v4334_v41 }
 0x64e   : > { %v4282_v54 = vadd.f32 %v4863_v15, %v4281_v59 }
 0x64f   : > { %v4336_v25 = vrot.slane %v4335_v32, 1 }
 0x650   : > { %v4305_v6 = vadd.f32 %v4304_v42, %v4282_v54 }
 0x651   : > { %v4337_v21 = vmax.f32 %v4335_v32, %v4336_v25 }
 0x652   : > { %v4308_v1 = vmax.f32 %v4305_v6, 0.0 }
 0x654   : > { %v4314_v9 = vrot.slane %v4308_v1, 2  ;;  %4324 = vst [vmem:[#allocation1 + $0x21] ss:$4 sm:$0xff] %v4308_v1 }
 0x656   : > { %4326 = vst [vmem:[#allocation1 + $0x22] ss:$4 sm:$0xff] %v4314_v9 }
 0x65d   : > { %v4327_v43 = vld.sshfl [vmem:[#allocation1 + $0x20] sm:$0xff pattern:$0x73625140] }
 0x65e   : > { %v4338_v24 = vsel %vm4330_vm10, %v4327_v43, -inf }
 0x65f   : > { %v4339_v53 = vrot.slane %v4338_v24, 4 }
 0x661   : > { %v4340_v37 = vmax.f32 %v4338_v24, %v4339_v53 }
 0x663   : > { %v4341_v27 = vrot.slane %v4340_v37, 2 }
 0x665   : > { %v4342_v30 = vmax.f32 %v4340_v37, %v4341_v27 }
 0x667   : > { %v4343_v12 = vrot.slane %v4342_v30, 1 }
 0x669   : > { %v4344_v14 = vmax.f32 %v4342_v30, %v4343_v12 }
 0x66b   : > { %v4355_v2 = vsel %vm10623_vm2, %v4344_v14, %v4337_v21 }
 0x66c   : > { %4480 = vmatmul.msk.f32.vlgmr.msra.gmra.mxu2 %vm10624_vm14, %v4355_v2 }
 0x66d   : > { %v3682_v55 = vpop.f32.mrf.mxu1 }
 0x6ef   : > { %v4375_v3 = vpop.f32.mrf.mxu2 }
 0x6f0   : > { %v4376_v47 = vadd.f32 %v4864_v13, %v4375_v3 }
 0x6f2   : > { %4379 = vst.msk [vmem:[%s325_s23] sm:$0x3] %vm4378_vm4, %v4376_v47 }
 0x6f3   : > { %4914 = shalt.err (!%p4911_p3)
}
 0x6f4   : > { %4498 = dma.vmem_to_hbm [thread:$0]  (%p5068_p5), %s4394_s17, 32, %s4396_s24, %s4381_s22  }
 0x6f5 PF: > { %p4504_p4 = scmp.ge.s32.totalorder %s4949_s12, 2  ;;  %s4407_s14 = sand.u32 1, %s4937_s30  }
 0x6f6   : > { %s4408_s15 = scalar_lea.sflag [#allocation3], %s4407_s14 }
 0x6f7   : > { %p4501_p7 = pnand %p4504_p4, %p5072_p6 }
 0x6f9   : > { %p4502_p8 = pneg %p4501_p7 }
 0x6fb   : > { %4932 = dma.done.wait (%p4502_p8), %s4408_s15, 32  }
 0x6fc   : > { %4934 = vsyncadd (%p4502_p8), %s4408_s15, 4294967264  ;;  %s10626_s12 = sld [smem:[#allocation6_spill]]  ;;  %s10629_s30 = smov %s4941_s10 }
 0x6fd   : > { %s10627_s16 = sld [smem:[#allocation5_spill]] }
 0x6fe   : > { %s10628_s11 = sld [smem:[#allocation7_spill]] }
 0x702   : > { %p19_p9 = scmp.ge.s32.totalorder %s10626_s12, 4  }
 0x703   : > { %s10630_s10 = smov %s10627_s16 }
 0x704   :  { %21 = sbr.rel (!%p19_p9) target bundleno = 8 (0x8), region = 96 }
 0x709   :  { %4414 = vsyncpa [#allocation3], 1 }
 0x70a   :  { %4416 = vsyncpa [#allocation3 + $0x1], 1 }

</bundles_post_ra>
